<compile_context>
chip_gen: v6e
topology: v6e:2x2x1
jax: 0.10.0
libtpu: 0.0.40
codegen_flags: <defaults>
</compile_context>

<pallas_src>
import functools

import jax
import jax.numpy as jnp
from jax.experimental import pallas as pl
from jax.experimental.pallas import tpu as pltpu


# ----------------------------- Pallas kernels ------------------------------

def _mm_kernel(a_ref, w_ref, b_ref, o_ref, *, relu):
    """(tm, K) @ (K, N) + bias(, ReLU) with f32 accumulation."""
    acc = jnp.dot(a_ref[...], w_ref[...], preferred_element_type=jnp.float32)
    acc = acc + b_ref[...]
    if relu:
        acc = jnp.maximum(acc, 0.0)
    o_ref[...] = acc.astype(o_ref.dtype)


def matmul_bias_act(a, w, b, relu=False, out_dtype=jnp.float32):
    """a: (M, K) bf16, w: (K, N) bf16, b: (N,) f32 -> (M, N).

    BN is pre-folded into w / b by the caller.  tm = largest power-of-two tile
    (<=1024) dividing M, else a single full-M block; M axis marked parallel.
    """
    M, K = a.shape
    N = w.shape[1]
    tm = M
    for cand in (1024, 512, 256, 128, 64, 32, 16, 8):
        if M % cand == 0:
            tm = cand
            break
    return pl.pallas_call(
        functools.partial(_mm_kernel, relu=relu),
        out_shape=jax.ShapeDtypeStruct((M, N), out_dtype),
        grid=(M // tm,),
        in_specs=[
            pl.BlockSpec((tm, K), lambda i: (i, 0)),
            pl.BlockSpec((K, N), lambda i: (0, 0)),
            pl.BlockSpec((1, N), lambda i: (0, 0)),
        ],
        out_specs=pl.BlockSpec((tm, N), lambda i: (i, 0)),
        compiler_params=pltpu.CompilerParams(
            dimension_semantics=("parallel",)),
    )(a, w, b.reshape(1, N))


def _conv3x3_kernel(x_ref, w_ref, b_ref, o_ref, *, Ho, Wo, Cout):
    """Fused 3x3/s1 conv + folded-BN + ReLU for one batch element.

    x_ref: (1, Ho+2, Wo+2, Cin) padded input; w_ref: (9, Cin, Cout);
    accumulates the 9 shifted-window matmuls in f32 — no im2col in HBM.
    """
    xv = x_ref[0].astype(jnp.float32)                  # (Ho+2, Wo+2, Cin)
    cin = xv.shape[-1]
    acc = jnp.zeros((Ho * Wo, Cout), jnp.float32)
    for t in range(9):
        di, dj = divmod(t, 3)
        patch = xv[di:di + Ho, dj:dj + Wo, :].reshape(Ho * Wo, cin)
        acc = acc + jnp.dot(patch.astype(jnp.bfloat16), w_ref[t],
                            preferred_element_type=jnp.float32)
    y = jnp.maximum(acc + b_ref[...], 0.0)
    o_ref[...] = y.reshape(1, Ho, Wo, Cout).astype(o_ref.dtype)


def conv3x3_bn_relu(x, p):
    """x: (B, H, W, Cin) bf16 NHWC -> (B, H, W, Cout) bf16.  BN folded in p."""
    B, H, W, Cin = x.shape
    Cout = p["w"].shape[2]
    xp = jnp.pad(x, ((0, 0), (1, 1), (1, 1), (0, 0)))          # glue only
    return pl.pallas_call(
        functools.partial(_conv3x3_kernel, Ho=H, Wo=W, Cout=Cout),
        out_shape=jax.ShapeDtypeStruct((B, H, W, Cout), jnp.bfloat16),
        grid=(B,),
        in_specs=[
            pl.BlockSpec((1, H + 2, W + 2, Cin), lambda b: (b, 0, 0, 0)),
            pl.BlockSpec((9, Cin, Cout), lambda b: (0, 0, 0)),
            pl.BlockSpec((1, Cout), lambda b: (0, 0)),
        ],
        out_specs=pl.BlockSpec((1, H, W, Cout), lambda b: (b, 0, 0, 0)),
        compiler_params=pltpu.CompilerParams(
            dimension_semantics=("parallel",)),
    )(xp, p["w"], p["b"].reshape(1, Cout))


def _bottleneck_kernel(x_ref, w1_ref, b1_ref, w2_ref, b2_ref, w3_ref, b3_ref,
                       o_ref, pad_ref, *, H, W, C, Cm):
    """Whole bottleneck (1x1 -> 3x3 -> 1x1 -> +residual -> ReLU) in one kernel.

    The narrow (Cm-channel) intermediates never touch HBM: the zero-padded
    image for the inner 3x3 lives in the f32 VMEM scratch `pad_ref`.
    """
    x2d = x_ref[0].reshape(H * W, C)                            # bf16
    # 1x1 reduce (C -> Cm), folded BN, ReLU
    y1 = jnp.dot(x2d, w1_ref[...], preferred_element_type=jnp.float32)
    y1 = jnp.maximum(y1 + b1_ref[...], 0.0)                     # f32 (HW, Cm)
    # zero-padded (H+2, W+2, Cm) image in VMEM scratch
    pad_ref[...] = jnp.zeros_like(pad_ref)
    pad_ref[1:H + 1, 1:W + 1, :] = y1.reshape(H, W, Cm)
    # 3x3 conv as 9 shifted-window matmuls accumulated in f32
    acc = jnp.zeros((H * W, Cm), jnp.float32)
    for t in range(9):
        di, dj = divmod(t, 3)
        patch = pad_ref[di:di + H, dj:dj + W, :].reshape(H * W, Cm)
        acc = acc + jnp.dot(patch.astype(jnp.bfloat16), w2_ref[t],
                            preferred_element_type=jnp.float32)
    y2 = jnp.maximum(acc + b2_ref[...], 0.0).astype(jnp.bfloat16)
    # 1x1 expand (Cm -> C), folded BN, residual add, ReLU — all in-register
    y3 = jnp.dot(y2, w3_ref[...], preferred_element_type=jnp.float32)
    y3 = y3 + b3_ref[...]
    out = jnp.maximum(y3 + x2d.astype(jnp.float32), 0.0)
    o_ref[...] = out.reshape(1, H, W, C).astype(o_ref.dtype)


def bottleneck(x, p):
    B, H, W, C = x.shape
    Cm = p["w1"].shape[1]
    return pl.pallas_call(
        functools.partial(_bottleneck_kernel, H=H, W=W, C=C, Cm=Cm),
        out_shape=jax.ShapeDtypeStruct((B, H, W, C), jnp.bfloat16),
        grid=(B,),
        in_specs=[
            pl.BlockSpec((1, H, W, C), lambda b: (b, 0, 0, 0)),
            pl.BlockSpec((C, Cm), lambda b: (0, 0)),
            pl.BlockSpec((1, Cm), lambda b: (0, 0)),
            pl.BlockSpec((9, Cm, Cm), lambda b: (0, 0, 0)),
            pl.BlockSpec((1, Cm), lambda b: (0, 0)),
            pl.BlockSpec((Cm, C), lambda b: (0, 0)),
            pl.BlockSpec((1, C), lambda b: (0, 0)),
        ],
        out_specs=pl.BlockSpec((1, H, W, C), lambda b: (b, 0, 0, 0)),
        scratch_shapes=[pltpu.VMEM((H + 2, W + 2, Cm), jnp.float32)],
        compiler_params=pltpu.CompilerParams(
            dimension_semantics=("parallel",)),
    )(x, p["w1"], p["b1"].reshape(1, Cm), p["w2"], p["b2"].reshape(1, Cm),
      p["w3"], p["b3"].reshape(1, C))


def _head_tail_kernel(a_ref, wh_ref, bh_ref, wc_ref, bc_ref, o_ref, *, B, HW):
    """Head 1x1 conv + BN + ReLU + global-avg-pool + (score∘last_linear)."""
    h = jnp.dot(a_ref[...], wh_ref[...], preferred_element_type=jnp.float32)
    h = jnp.maximum(h + bh_ref[...], 0.0)                       # (B*HW, Ch)
    feat = jnp.mean(h.reshape(B, HW, -1), axis=1)               # (B, Ch)
    out = jnp.dot(feat, wc_ref[...], preferred_element_type=jnp.float32)
    o_ref[...] = (out + bc_ref[...]).astype(o_ref.dtype)


def head_gap_classifier(a2d, B, HW, wh, bh, wc, bc):
    M, C = a2d.shape
    Ch = wh.shape[1]
    ncls = wc.shape[1]
    return pl.pallas_call(
        functools.partial(_head_tail_kernel, B=B, HW=HW),
        out_shape=jax.ShapeDtypeStruct((B, ncls), jnp.float32),
        grid=(1,),
        in_specs=[
            pl.BlockSpec((M, C), lambda i: (0, 0)),
            pl.BlockSpec((C, Ch), lambda i: (0, 0)),
            pl.BlockSpec((1, Ch), lambda i: (0, 0)),
            pl.BlockSpec((Ch, ncls), lambda i: (0, 0)),
            pl.BlockSpec((1, ncls), lambda i: (0, 0)),
        ],
        out_specs=pl.BlockSpec((B, ncls), lambda i: (0, 0)),
        compiler_params=pltpu.CompilerParams(
            dimension_semantics=("arbitrary",)),
    )(a2d, wh, bh.reshape(1, Ch), wc, bc.reshape(1, ncls))


# ------------------------------ glue (JAX) ---------------------------------

def im2col(x, k, stride, pad):
    """NHWC -> (B*Ho*Wo, k*k*C).  Only used for the Cin=3 stem conv (K=27)."""
    B, H, W, C = x.shape
    xp = jnp.pad(x, ((0, 0), (pad, pad), (pad, pad), (0, 0)))
    Ho = (H + 2 * pad - k) // stride + 1
    Wo = (W + 2 * pad - k) // stride + 1
    cols = [xp[:, di:di + stride * Ho:stride, dj:dj + stride * Wo:stride, :]
            for di in range(k) for dj in range(k)]
    patches = jnp.concatenate(cols, axis=-1)
    return patches.reshape(B * Ho * Wo, k * k * C), (B, Ho, Wo)


def maxpool2x2(x):
    # TODO(synk): FishNet uses a 3x3/stride-2 max pool; plain-JAX 2x2/s2 here.
    B, H, W, C = x.shape
    return x.reshape(B, H // 2, 2, W // 2, 2, C).max(axis=(2, 4))


# --------------------------- parameters (synthetic) -------------------------

def conv_w(key, k, cin, cout):
    fan_in = k * k * cin
    return jax.random.normal(key, (k, k, cin, cout), jnp.float32) / jnp.sqrt(
        jnp.float32(fan_in))


def bn_scale_shift(key, c):
    k1, k2, k3, k4 = jax.random.split(key, 4)
    gamma = 1.0 + 0.1 * jax.random.normal(k1, (c,), jnp.float32)
    beta = 0.1 * jax.random.normal(k2, (c,), jnp.float32)
    mean = 0.1 * jax.random.normal(k3, (c,), jnp.float32)
    var = jnp.abs(jax.random.normal(k4, (c,), jnp.float32)) + 0.5
    scale = gamma / jnp.sqrt(var + 1e-5)
    shift = beta - mean * scale
    return scale, shift


def init_params(key):
    keys = iter(jax.random.split(key, 64))

    def conv_bn(k, cin, cout):
        # Fold inference BatchNorm into the conv: w <- w * scale, bias <- shift.
        w = conv_w(next(keys), k, cin, cout)
        scale, shift = bn_scale_shift(next(keys), cout)
        return (w * scale).astype(jnp.bfloat16), shift.astype(jnp.float32)

    p = {}
    # FishNet-style stem: 3->64 (s2), 64->64, 64->128
    w, b = conv_bn(3, 3, 64)
    p["conv1"] = {"w": w.reshape(27, 64), "b": b}
    w, b = conv_bn(3, 64, 64)
    p["conv2"] = {"w": w.reshape(9, 64, 64), "b": b}
    w, b = conv_bn(3, 64, 128)
    p["conv3"] = {"w": w.reshape(9, 64, 128), "b": b}

    # two residual bottlenecks at 128 channels, mid width 32
    for name in ("block1", "block2"):
        w1, b1 = conv_bn(1, 128, 32)
        w2, b2 = conv_bn(3, 32, 32)
        w3, b3 = conv_bn(1, 32, 128)
        p[name] = {"w1": w1.reshape(128, 32), "b1": b1,
                   "w2": w2.reshape(9, 32, 32), "b2": b2,
                   "w3": w3.reshape(32, 128), "b3": b3}

    # head 1x1 conv 128 -> 256 (folded BN)
    w, b = conv_bn(1, 128, 256)
    p["head"] = {"w": w.reshape(128, 256), "b": b}

    # score head (256 -> 1000 features) followed by last_linear(1000 -> 1).
    # No nonlinearity sits between them, so they collapse exactly into one
    # affine map, precomputed here (avoids the N=1000 intermediate and the
    # pathological N=1 matmul).
    score_w = jax.random.normal(next(keys), (256, 1000), jnp.float32) / 16.0
    score_b = 0.01 * jax.random.normal(next(keys), (1000,), jnp.float32)
    last_w = jax.random.normal(next(keys), (1000, 1), jnp.float32) / jnp.sqrt(
        jnp.float32(1000))
    last_b = jnp.zeros((1,), jnp.float32)
    p["cls"] = {"w": score_w @ last_w,                 # (256, n_classes)
                "b": score_b @ last_w + last_b}        # (n_classes,)
    return p


# ------------------------------- forward -----------------------------------

@jax.jit
def forward(params, x_nchw):
    # NCHW -> NHWC once; activations carried as bf16 (f32 accumulation inside
    # the kernels; elementwise math stays f32 in-kernel).
    x = jnp.transpose(x_nchw, (0, 2, 3, 1)).astype(jnp.bfloat16)

    # stem conv1 3x3/s2: Cin=3 so im2col is only K=27 — fused BN+ReLU matmul.
    a, (B, Ho, Wo) = im2col(x, 3, 2, 1)
    x = matmul_bias_act(a, params["conv1"]["w"], params["conv1"]["b"],
                        relu=True, out_dtype=jnp.bfloat16).reshape(B, Ho, Wo, -1)
    # stem conv2/conv3: in-kernel 9-tap conv + folded BN + ReLU (no im2col).
    x = conv3x3_bn_relu(x, params["conv2"])
    x = conv3x3_bn_relu(x, params["conv3"])
    x = maxpool2x2(x)

    # two fully-fused residual bottlenecks (one pallas_call each)
    x = bottleneck(x, params["block1"])
    x = bottleneck(x, params["block2"])

    # head conv + GAP + (score ∘ last_linear) fused into one kernel
    B, H, W, C = x.shape
    out = head_gap_classifier(x.reshape(B * H * W, C), B, H * W,
                              params["head"]["w"], params["head"]["b"],
                              params["cls"]["w"], params["cls"]["b"])
    return out                                         # (B, n_classes) f32


if __name__ == "__main__":
    key = jax.random.PRNGKey(0)
    x = jax.random.normal(key, (2, 3, 32, 32), jnp.float32)   # NCHW like PyTorch
    params = init_params(jax.random.PRNGKey(42))
    out = forward(params, x)
    out = jax.block_until_ready(out)
    assert out.shape == (2, 1) and out.dtype == jnp.float32
    print("KERNEL_OK")
</pallas_src>

<mosaic_0001>
module attributes {stable_mosaic.version = 11 : i64} {
  func.func @_mm_kernel(%arg0: i32, %arg1: memref<512x27xbf16, #tpu.memory_space<vmem>>, %arg2: memref<27x64xbf16, #tpu.memory_space<vmem>>, %arg3: memref<1x64xf32, #tpu.memory_space<vmem>>, %arg4: memref<512x64xbf16, #tpu.memory_space<vmem>>) attributes {dimension_semantics = [#tpu.dimension_semantics<parallel>], iteration_bounds = array<i64: 1>, scalar_prefetch = 0 : i64, scratch_operands = 0 : i64, tpu.core_type = #tpu.core_type<tc>, window_params = [{transform_indices = @transform_0, window_bounds = array<i64: 512, 27>}, {pipeline_mode = #tpu.pipeline_mode<synchronous>, transform_indices = @transform_1, window_bounds = array<i64: 27, 64>}, {pipeline_mode = #tpu.pipeline_mode<synchronous>, transform_indices = @transform_2, window_bounds = array<i64: 1, 64>}, {transform_indices = @transform_3, window_bounds = array<i64: 512, 64>}]} {
    %c0 = arith.constant 0 : index
    %c0_0 = arith.constant 0 : index
    %0 = vector.load %arg1[%c0, %c0_0] : memref<512x27xbf16, #tpu.memory_space<vmem>>, vector<512x27xbf16>
    %c0_1 = arith.constant 0 : index
    %c0_2 = arith.constant 0 : index
    %1 = vector.load %arg2[%c0_1, %c0_2] : memref<27x64xbf16, #tpu.memory_space<vmem>>, vector<27x64xbf16>
    %cst = arith.constant dense<0.000000e+00> : vector<512x64xf32>
    %2 = tpu.matmul %0, %1, %cst {dimension_numbers = #tpu.dot_dimension_numbers<[1], [0], [0], [1], [0, 0, 1, 1], [], []>} : vector<512x27xbf16>, vector<27x64xbf16>, vector<512x64xf32> -> vector<512x64xf32>
    %c0_3 = arith.constant 0 : index
    %c0_4 = arith.constant 0 : index
    %3 = vector.load %arg3[%c0_3, %c0_4] : memref<1x64xf32, #tpu.memory_space<vmem>>, vector<1x64xf32>
    %4 = vector.broadcast %3 : vector<1x64xf32> to vector<512x64xf32>
    %5 = arith.addf %2, %4 : vector<512x64xf32>
    %cst_5 = arith.constant 0.000000e+00 : f32
    %6 = vector.broadcast %cst_5 : f32 to vector<512x64xf32>
    %7 = arith.maximumf %5, %6 : vector<512x64xf32>
    %8 = arith.truncf %7 : vector<512x64xf32> to vector<512x64xbf16>
    %c0_6 = arith.constant 0 : index
    %c0_7 = arith.constant 0 : index
    %9 = vector.load %arg4[%c0_6, %c0_7] : memref<512x64xbf16, #tpu.memory_space<vmem>>, vector<512x64xbf16>
    tpu.vector_store %arg4[%c0_6, %c0_7], %8 {strides = array<i32>} : memref<512x64xbf16, #tpu.memory_space<vmem>>, vector<512x64xbf16>,
    return
  }
  func.func @transform_0(%arg0: i32) -> (i32, i32) {
    %c0_i32 = arith.constant 0 : i32
    %c0_i32_0 = arith.constant 0 : i32
    return %arg0, %c0_i32 : i32, i32
  }
  func.func @transform_1(%arg0: i32) -> (i32, i32) {
    %c0_i32 = arith.constant 0 : i32
    %c0_i32_0 = arith.constant 0 : i32
    %c0_i32_1 = arith.constant 0 : i32
    return %c0_i32, %c0_i32_0 : i32, i32
  }
  func.func @transform_2(%arg0: i32) -> (i32, i32) {
    %c0_i32 = arith.constant 0 : i32
    %c0_i32_0 = arith.constant 0 : i32
    %c0_i32_1 = arith.constant 0 : i32
    return %c0_i32, %c0_i32_0 : i32, i32
  }
  func.func @transform_3(%arg0: i32) -> (i32, i32) {
    %c0_i32 = arith.constant 0 : i32
    %c0_i32_0 = arith.constant 0 : i32
    return %arg0, %c0_i32 : i32, i32
  }
}

module attributes {stable_mosaic.version = 11 : i64} {
  func.func @_conv3x3_kernel(%arg0: i32, %arg1: memref<1x18x18x64xbf16, #tpu.memory_space<vmem>>, %arg2: memref<9x64x64xbf16, #tpu.memory_space<vmem>>, %arg3: memref<1x64xf32, #tpu.memory_space<vmem>>, %arg4: memref<1x16x16x64xbf16, #tpu.memory_space<vmem>>) attributes {dimension_semantics = [#tpu.dimension_semantics<parallel>], iteration_bounds = array<i64: 2>, scalar_prefetch = 0 : i64, scratch_operands = 0 : i64, tpu.core_type = #tpu.core_type<tc>, window_params = [{transform_indices = @transform_0, window_bounds = array<i64: 1, 18, 18, 64>}, {pipeline_mode = #tpu.pipeline_mode<synchronous>, transform_indices = @transform_1, window_bounds = array<i64: 9, 64, 64>}, {pipeline_mode = #tpu.pipeline_mode<synchronous>, transform_indices = @transform_2, window_bounds = array<i64: 1, 64>}, {transform_indices = @transform_3, window_bounds = array<i64: 1, 16, 16, 64>}]} {
    %c0 = arith.constant 0 : index
    %c0_0 = arith.constant 0 : index
    %c0_1 = arith.constant 0 : index
    %c0_2 = arith.constant 0 : index
    %0 = vector.load %arg1[%c0, %c0_0, %c0_1, %c0_2] : memref<1x18x18x64xbf16, #tpu.memory_space<vmem>>, vector<1x18x18x64xbf16>
    %1 = vector.shape_cast %0 : vector<1x18x18x64xbf16> to vector<18x18x64xbf16>
    %2 = arith.extf %1 : vector<18x18x64xbf16> to vector<18x18x64xf32>
    %cst = arith.constant 0.000000e+00 : f32
    %3 = vector.broadcast %cst : f32 to vector<256x64xf32>
    %4 = vector.extract_strided_slice %2 {offsets = [0, 0, 0], sizes = [16, 16, 64], strides = [1, 1, 1]} : vector<18x18x64xf32> to vector<16x16x64xf32>
    %5 = vector.shape_cast %4 : vector<16x16x64xf32> to vector<256x64xf32>
    %6 = arith.truncf %5 : vector<256x64xf32> to vector<256x64xbf16>
    %c0_3 = arith.constant 0 : index
    %c0_4 = arith.constant 0 : index
    %c0_5 = arith.constant 0 : index
    %7 = vector.load %arg2[%c0_3, %c0_4, %c0_5] : memref<9x64x64xbf16, #tpu.memory_space<vmem>>, vector<1x64x64xbf16>
    %8 = vector.shape_cast %7 : vector<1x64x64xbf16> to vector<64x64xbf16>
    %cst_6 = arith.constant dense<0.000000e+00> : vector<256x64xf32>
    %9 = tpu.matmul %6, %8, %cst_6 {dimension_numbers = #tpu.dot_dimension_numbers<[1], [0], [0], [1], [0, 0, 1, 1], [], []>} : vector<256x64xbf16>, vector<64x64xbf16>, vector<256x64xf32> -> vector<256x64xf32>
    %10 = arith.addf %3, %9 : vector<256x64xf32>
    %11 = vector.extract_strided_slice %2 {offsets = [0, 1, 0], sizes = [16, 16, 64], strides = [1, 1, 1]} : vector<18x18x64xf32> to vector<16x16x64xf32>
    %12 = vector.shape_cast %11 : vector<16x16x64xf32> to vector<256x64xf32>
    %13 = arith.truncf %12 : vector<256x64xf32> to vector<256x64xbf16>
    %c1 = arith.constant 1 : index
    %c0_7 = arith.constant 0 : index
    %c0_8 = arith.constant 0 : index
    %14 = vector.load %arg2[%c1, %c0_7, %c0_8] : memref<9x64x64xbf16, #tpu.memory_space<vmem>>, vector<1x64x64xbf16>
    %15 = vector.shape_cast %14 : vector<1x64x64xbf16> to vector<64x64xbf16>
    %cst_9 = arith.constant dense<0.000000e+00> : vector<256x64xf32>
    %16 = tpu.matmul %13, %15, %cst_9 {dimension_numbers = #tpu.dot_dimension_numbers<[1], [0], [0], [1], [0, 0, 1, 1], [], []>} : vector<256x64xbf16>, vector<64x64xbf16>, vector<256x64xf32> -> vector<256x64xf32>
    %17 = arith.addf %10, %16 : vector<256x64xf32>
    %18 = vector.extract_strided_slice %2 {offsets = [0, 2, 0], sizes = [16, 16, 64], strides = [1, 1, 1]} : vector<18x18x64xf32> to vector<16x16x64xf32>
    %19 = vector.shape_cast %18 : vector<16x16x64xf32> to vector<256x64xf32>
    %20 = arith.truncf %19 : vector<256x64xf32> to vector<256x64xbf16>
    %c2 = arith.constant 2 : index
    %c0_10 = arith.constant 0 : index
    %c0_11 = arith.constant 0 : index
    %21 = vector.load %arg2[%c2, %c0_10, %c0_11] : memref<9x64x64xbf16, #tpu.memory_space<vmem>>, vector<1x64x64xbf16>
    %22 = vector.shape_cast %21 : vector<1x64x64xbf16> to vector<64x64xbf16>
    %cst_12 = arith.constant dense<0.000000e+00> : vector<256x64xf32>
    %23 = tpu.matmul %20, %22, %cst_12 {dimension_numbers = #tpu.dot_dimension_numbers<[1], [0], [0], [1], [0, 0, 1, 1], [], []>} : vector<256x64xbf16>, vector<64x64xbf16>, vector<256x64xf32> -> vector<256x64xf32>
    %24 = arith.addf %17, %23 : vector<256x64xf32>
    %25 = vector.extract_strided_slice %2 {offsets = [1, 0, 0], sizes = [16, 16, 64], strides = [1, 1, 1]} : vector<18x18x64xf32> to vector<16x16x64xf32>
    %26 = vector.shape_cast %25 : vector<16x16x64xf32> to vector<256x64xf32>
    %27 = arith.truncf %26 : vector<256x64xf32> to vector<256x64xbf16>
    %c3 = arith.constant 3 : index
    %c0_13 = arith.constant 0 : index
    %c0_14 = arith.constant 0 : index
    %28 = vector.load %arg2[%c3, %c0_13, %c0_14] : memref<9x64x64xbf16, #tpu.memory_space<vmem>>, vector<1x64x64xbf16>
    %29 = vector.shape_cast %28 : vector<1x64x64xbf16> to vector<64x64xbf16>
    %cst_15 = arith.constant dense<0.000000e+00> : vector<256x64xf32>
    %30 = tpu.matmul %27, %29, %cst_15 {dimension_numbers = #tpu.dot_dimension_numbers<[1], [0], [0], [1], [0, 0, 1, 1], [], []>} : vector<256x64xbf16>, vector<64x64xbf16>, vector<256x64xf32> -> vector<256x64xf32>
    %31 = arith.addf %24, %30 : vector<256x64xf32>
    %32 = vector.extract_strided_slice %2 {offsets = [1, 1, 0], sizes = [16, 16, 64], strides = [1, 1, 1]} : vector<18x18x64xf32> to vector<16x16x64xf32>
    %33 = vector.shape_cast %32 : vector<16x16x64xf32> to vector<256x64xf32>
    %34 = arith.truncf %33 : vector<256x64xf32> to vector<256x64xbf16>
    %c4 = arith.constant 4 : index
    %c0_16 = arith.constant 0 : index
    %c0_17 = arith.constant 0 : index
    %35 = vector.load %arg2[%c4, %c0_16, %c0_17] : memref<9x64x64xbf16, #tpu.memory_space<vmem>>, vector<1x64x64xbf16>
    %36 = vector.shape_cast %35 : vector<1x64x64xbf16> to vector<64x64xbf16>
    %cst_18 = arith.constant dense<0.000000e+00> : vector<256x64xf32>
    %37 = tpu.matmul %34, %36, %cst_18 {dimension_numbers = #tpu.dot_dimension_numbers<[1], [0], [0], [1], [0, 0, 1, 1], [], []>} : vector<256x64xbf16>, vector<64x64xbf16>, vector<256x64xf32> -> vector<256x64xf32>
    %38 = arith.addf %31, %37 : vector<256x64xf32>
    %39 = vector.extract_strided_slice %2 {offsets = [1, 2, 0], sizes = [16, 16, 64], strides = [1, 1, 1]} : vector<18x18x64xf32> to vector<16x16x64xf32>
    %40 = vector.shape_cast %39 : vector<16x16x64xf32> to vector<256x64xf32>
    %41 = arith.truncf %40 : vector<256x64xf32> to vector<256x64xbf16>
    %c5 = arith.constant 5 : index
    %c0_19 = arith.constant 0 : index
    %c0_20 = arith.constant 0 : index
    %42 = vector.load %arg2[%c5, %c0_19, %c0_20] : memref<9x64x64xbf16, #tpu.memory_space<vmem>>, vector<1x64x64xbf16>
    %43 = vector.shape_cast %42 : vector<1x64x64xbf16> to vector<64x64xbf16>
    %cst_21 = arith.constant dense<0.000000e+00> : vector<256x64xf32>
    %44 = tpu.matmul %41, %43, %cst_21 {dimension_numbers = #tpu.dot_dimension_numbers<[1], [0], [0], [1], [0, 0, 1, 1], [], []>} : vector<256x64xbf16>, vector<64x64xbf16>, vector<256x64xf32> -> vector<256x64xf32>
    %45 = arith.addf %38, %44 : vector<256x64xf32>
    %46 = vector.extract_strided_slice %2 {offsets = [2, 0, 0], sizes = [16, 16, 64], strides = [1, 1, 1]} : vector<18x18x64xf32> to vector<16x16x64xf32>
    %47 = vector.shape_cast %46 : vector<16x16x64xf32> to vector<256x64xf32>
    %48 = arith.truncf %47 : vector<256x64xf32> to vector<256x64xbf16>
    %c6 = arith.constant 6 : index
    %c0_22 = arith.constant 0 : index
    %c0_23 = arith.constant 0 : index
    %49 = vector.load %arg2[%c6, %c0_22, %c0_23] : memref<9x64x64xbf16, #tpu.memory_space<vmem>>, vector<1x64x64xbf16>
    %50 = vector.shape_cast %49 : vector<1x64x64xbf16> to vector<64x64xbf16>
    %cst_24 = arith.constant dense<0.000000e+00> : vector<256x64xf32>
    %51 = tpu.matmul %48, %50, %cst_24 {dimension_numbers = #tpu.dot_dimension_numbers<[1], [0], [0], [1], [0, 0, 1, 1], [], []>} : vector<256x64xbf16>, vector<64x64xbf16>, vector<256x64xf32> -> vector<256x64xf32>
    %52 = arith.addf %45, %51 : vector<256x64xf32>
    %53 = vector.extract_strided_slice %2 {offsets = [2, 1, 0], sizes = [16, 16, 64], strides = [1, 1, 1]} : vector<18x18x64xf32> to vector<16x16x64xf32>
    %54 = vector.shape_cast %53 : vector<16x16x64xf32> to vector<256x64xf32>
    %55 = arith.truncf %54 : vector<256x64xf32> to vector<256x64xbf16>
    %c7 = arith.constant 7 : index
    %c0_25 = arith.constant 0 : index
    %c0_26 = arith.constant 0 : index
    %56 = vector.load %arg2[%c7, %c0_25, %c0_26] : memref<9x64x64xbf16, #tpu.memory_space<vmem>>, vector<1x64x64xbf16>
    %57 = vector.shape_cast %56 : vector<1x64x64xbf16> to vector<64x64xbf16>
    %cst_27 = arith.constant dense<0.000000e+00> : vector<256x64xf32>
    %58 = tpu.matmul %55, %57, %cst_27 {dimension_numbers = #tpu.dot_dimension_numbers<[1], [0], [0], [1], [0, 0, 1, 1], [], []>} : vector<256x64xbf16>, vector<64x64xbf16>, vector<256x64xf32> -> vector<256x64xf32>
    %59 = arith.addf %52, %58 : vector<256x64xf32>
    %60 = vector.extract_strided_slice %2 {offsets = [2, 2, 0], sizes = [16, 16, 64], strides = [1, 1, 1]} : vector<18x18x64xf32> to vector<16x16x64xf32>
    %61 = vector.shape_cast %60 : vector<16x16x64xf32> to vector<256x64xf32>
    %62 = arith.truncf %61 : vector<256x64xf32> to vector<256x64xbf16>
    %c8 = arith.constant 8 : index
    %c0_28 = arith.constant 0 : index
    %c0_29 = arith.constant 0 : index
    %63 = vector.load %arg2[%c8, %c0_28, %c0_29] : memref<9x64x64xbf16, #tpu.memory_space<vmem>>, vector<1x64x64xbf16>
    %64 = vector.shape_cast %63 : vector<1x64x64xbf16> to vector<64x64xbf16>
    %cst_30 = arith.constant dense<0.000000e+00> : vector<256x64xf32>
    %65 = tpu.matmul %62, %64, %cst_30 {dimension_numbers = #tpu.dot_dimension_numbers<[1], [0], [0], [1], [0, 0, 1, 1], [], []>} : vector<256x64xbf16>, vector<64x64xbf16>, vector<256x64xf32> -> vector<256x64xf32>
    %66 = arith.addf %59, %65 : vector<256x64xf32>
    %c0_31 = arith.constant 0 : index
    %c0_32 = arith.constant 0 : index
    %67 = vector.load %arg3[%c0_31, %c0_32] : memref<1x64xf32, #tpu.memory_space<vmem>>, vector<1x64xf32>
    %68 = vector.broadcast %67 : vector<1x64xf32> to vector<256x64xf32>
    %69 = arith.addf %66, %68 : vector<256x64xf32>
    %cst_33 = arith.constant 0.000000e+00 : f32
    %70 = vector.broadcast %cst_33 : f32 to vector<256x64xf32>
    %71 = arith.maximumf %69, %70 : vector<256x64xf32>
    %72 = vector.shape_cast %71 : vector<256x64xf32> to vector<1x16x16x64xf32>
    %73 = arith.truncf %72 : vector<1x16x16x64xf32> to vector<1x16x16x64xbf16>
    %c0_34 = arith.constant 0 : index
    %c0_35 = arith.constant 0 : index
    %c0_36 = arith.constant 0 : index
    %c0_37 = arith.constant 0 : index
    %74 = vector.load %arg4[%c0_34, %c0_35, %c0_36, %c0_37] : memref<1x16x16x64xbf16, #tpu.memory_space<vmem>>, vector<1x16x16x64xbf16>
    tpu.vector_store %arg4[%c0_34, %c0_35, %c0_36, %c0_37], %73 {strides = array<i32>} : memref<1x16x16x64xbf16, #tpu.memory_space<vmem>>, vector<1x16x16x64xbf16>,
    return
  }
  func.func @transform_0(%arg0: i32) -> (i32, i32, i32, i32) {
    %c0_i32 = arith.constant 0 : i32
    %c0_i32_0 = arith.constant 0 : i32
    %c0_i32_1 = arith.constant 0 : i32
    %c0_i32_2 = arith.constant 0 : i32
    return %arg0, %c0_i32, %c0_i32_0, %c0_i32_1 : i32, i32, i32, i32
  }
  func.func @transform_1(%arg0: i32) -> (i32, i32, i32) {
    %c0_i32 = arith.constant 0 : i32
    %c0_i32_0 = arith.constant 0 : i32
    %c0_i32_1 = arith.constant 0 : i32
    %c0_i32_2 = arith.constant 0 : i32
    return %c0_i32, %c0_i32_0, %c0_i32_1 : i32, i32, i32
  }
  func.func @transform_2(%arg0: i32) -> (i32, i32) {
    %c0_i32 = arith.constant 0 : i32
    %c0_i32_0 = arith.constant 0 : i32
    %c0_i32_1 = arith.constant 0 : i32
    return %c0_i32, %c0_i32_0 : i32, i32
  }
  func.func @transform_3(%arg0: i32) -> (i32, i32, i32, i32) {
    %c0_i32 = arith.constant 0 : i32
    %c0_i32_0 = arith.constant 0 : i32
    %c0_i32_1 = arith.constant 0 : i32
    %c0_i32_2 = arith.constant 0 : i32
    return %arg0, %c0_i32, %c0_i32_0, %c0_i32_1 : i32, i32, i32, i32
  }
}

module attributes {stable_mosaic.version = 11 : i64} {
  func.func @_conv3x3_kernel(%arg0: i32, %arg1: memref<1x18x18x64xbf16, #tpu.memory_space<vmem>>, %arg2: memref<9x64x128xbf16, #tpu.memory_space<vmem>>, %arg3: memref<1x128xf32, #tpu.memory_space<vmem>>, %arg4: memref<1x16x16x128xbf16, #tpu.memory_space<vmem>>) attributes {dimension_semantics = [#tpu.dimension_semantics<parallel>], iteration_bounds = array<i64: 2>, scalar_prefetch = 0 : i64, scratch_operands = 0 : i64, tpu.core_type = #tpu.core_type<tc>, window_params = [{transform_indices = @transform_0, window_bounds = array<i64: 1, 18, 18, 64>}, {pipeline_mode = #tpu.pipeline_mode<synchronous>, transform_indices = @transform_1, window_bounds = array<i64: 9, 64, 128>}, {pipeline_mode = #tpu.pipeline_mode<synchronous>, transform_indices = @transform_2, window_bounds = array<i64: 1, 128>}, {transform_indices = @transform_3, window_bounds = array<i64: 1, 16, 16, 128>}]} {
    %c0 = arith.constant 0 : index
    %c0_0 = arith.constant 0 : index
    %c0_1 = arith.constant 0 : index
    %c0_2 = arith.constant 0 : index
    %0 = vector.load %arg1[%c0, %c0_0, %c0_1, %c0_2] : memref<1x18x18x64xbf16, #tpu.memory_space<vmem>>, vector<1x18x18x64xbf16>
    %1 = vector.shape_cast %0 : vector<1x18x18x64xbf16> to vector<18x18x64xbf16>
    %2 = arith.extf %1 : vector<18x18x64xbf16> to vector<18x18x64xf32>
    %cst = arith.constant 0.000000e+00 : f32
    %3 = vector.broadcast %cst : f32 to vector<256x128xf32>
    %4 = vector.extract_strided_slice %2 {offsets = [0, 0, 0], sizes = [16, 16, 64], strides = [1, 1, 1]} : vector<18x18x64xf32> to vector<16x16x64xf32>
    %5 = vector.shape_cast %4 : vector<16x16x64xf32> to vector<256x64xf32>
    %6 = arith.truncf %5 : vector<256x64xf32> to vector<256x64xbf16>
    %c0_3 = arith.constant 0 : index
    %c0_4 = arith.constant 0 : index
    %c0_5 = arith.constant 0 : index
    %7 = vector.load %arg2[%c0_3, %c0_4, %c0_5] : memref<9x64x128xbf16, #tpu.memory_space<vmem>>, vector<1x64x128xbf16>
    %8 = vector.shape_cast %7 : vector<1x64x128xbf16> to vector<64x128xbf16>
    %cst_6 = arith.constant dense<0.000000e+00> : vector<256x128xf32>
    %9 = tpu.matmul %6, %8, %cst_6 {dimension_numbers = #tpu.dot_dimension_numbers<[1], [0], [0], [1], [0, 0, 1, 1], [], []>} : vector<256x64xbf16>, vector<64x128xbf16>, vector<256x128xf32> -> vector<256x128xf32>
    %10 = arith.addf %3, %9 : vector<256x128xf32>
    %11 = vector.extract_strided_slice %2 {offsets = [0, 1, 0], sizes = [16, 16, 64], strides = [1, 1, 1]} : vector<18x18x64xf32> to vector<16x16x64xf32>
    %12 = vector.shape_cast %11 : vector<16x16x64xf32> to vector<256x64xf32>
    %13 = arith.truncf %12 : vector<256x64xf32> to vector<256x64xbf16>
    %c1 = arith.constant 1 : index
    %c0_7 = arith.constant 0 : index
    %c0_8 = arith.constant 0 : index
    %14 = vector.load %arg2[%c1, %c0_7, %c0_8] : memref<9x64x128xbf16, #tpu.memory_space<vmem>>, vector<1x64x128xbf16>
    %15 = vector.shape_cast %14 : vector<1x64x128xbf16> to vector<64x128xbf16>
    %cst_9 = arith.constant dense<0.000000e+00> : vector<256x128xf32>
    %16 = tpu.matmul %13, %15, %cst_9 {dimension_numbers = #tpu.dot_dimension_numbers<[1], [0], [0], [1], [0, 0, 1, 1], [], []>} : vector<256x64xbf16>, vector<64x128xbf16>, vector<256x128xf32> -> vector<256x128xf32>
    %17 = arith.addf %10, %16 : vector<256x128xf32>
    %18 = vector.extract_strided_slice %2 {offsets = [0, 2, 0], sizes = [16, 16, 64], strides = [1, 1, 1]} : vector<18x18x64xf32> to vector<16x16x64xf32>
    %19 = vector.shape_cast %18 : vector<16x16x64xf32> to vector<256x64xf32>
    %20 = arith.truncf %19 : vector<256x64xf32> to vector<256x64xbf16>
    %c2 = arith.constant 2 : index
    %c0_10 = arith.constant 0 : index
    %c0_11 = arith.constant 0 : index
    %21 = vector.load %arg2[%c2, %c0_10, %c0_11] : memref<9x64x128xbf16, #tpu.memory_space<vmem>>, vector<1x64x128xbf16>
    %22 = vector.shape_cast %21 : vector<1x64x128xbf16> to vector<64x128xbf16>
    %cst_12 = arith.constant dense<0.000000e+00> : vector<256x128xf32>
    %23 = tpu.matmul %20, %22, %cst_12 {dimension_numbers = #tpu.dot_dimension_numbers<[1], [0], [0], [1], [0, 0, 1, 1], [], []>} : vector<256x64xbf16>, vector<64x128xbf16>, vector<256x128xf32> -> vector<256x128xf32>
    %24 = arith.addf %17, %23 : vector<256x128xf32>
    %25 = vector.extract_strided_slice %2 {offsets = [1, 0, 0], sizes = [16, 16, 64], strides = [1, 1, 1]} : vector<18x18x64xf32> to vector<16x16x64xf32>
    %26 = vector.shape_cast %25 : vector<16x16x64xf32> to vector<256x64xf32>
    %27 = arith.truncf %26 : vector<256x64xf32> to vector<256x64xbf16>
    %c3 = arith.constant 3 : index
    %c0_13 = arith.constant 0 : index
    %c0_14 = arith.constant 0 : index
    %28 = vector.load %arg2[%c3, %c0_13, %c0_14] : memref<9x64x128xbf16, #tpu.memory_space<vmem>>, vector<1x64x128xbf16>
    %29 = vector.shape_cast %28 : vector<1x64x128xbf16> to vector<64x128xbf16>
    %cst_15 = arith.constant dense<0.000000e+00> : vector<256x128xf32>
    %30 = tpu.matmul %27, %29, %cst_15 {dimension_numbers = #tpu.dot_dimension_numbers<[1], [0], [0], [1], [0, 0, 1, 1], [], []>} : vector<256x64xbf16>, vector<64x128xbf16>, vector<256x128xf32> -> vector<256x128xf32>
    %31 = arith.addf %24, %30 : vector<256x128xf32>
    %32 = vector.extract_strided_slice %2 {offsets = [1, 1, 0], sizes = [16, 16, 64], strides = [1, 1, 1]} : vector<18x18x64xf32> to vector<16x16x64xf32>
    %33 = vector.shape_cast %32 : vector<16x16x64xf32> to vector<256x64xf32>
    %34 = arith.truncf %33 : vector<256x64xf32> to vector<256x64xbf16>
    %c4 = arith.constant 4 : index
    %c0_16 = arith.constant 0 : index
    %c0_17 = arith.constant 0 : index
    %35 = vector.load %arg2[%c4, %c0_16, %c0_17] : memref<9x64x128xbf16, #tpu.memory_space<vmem>>, vector<1x64x128xbf16>
    %36 = vector.shape_cast %35 : vector<1x64x128xbf16> to vector<64x128xbf16>
    %cst_18 = arith.constant dense<0.000000e+00> : vector<256x128xf32>
    %37 = tpu.matmul %34, %36, %cst_18 {dimension_numbers = #tpu.dot_dimension_numbers<[1], [0], [0], [1], [0, 0, 1, 1], [], []>} : vector<256x64xbf16>, vector<64x128xbf16>, vector<256x128xf32> -> vector<256x128xf32>
    %38 = arith.addf %31, %37 : vector<256x128xf32>
    %39 = vector.extract_strided_slice %2 {offsets = [1, 2, 0], sizes = [16, 16, 64], strides = [1, 1, 1]} : vector<18x18x64xf32> to vector<16x16x64xf32>
    %40 = vector.shape_cast %39 : vector<16x16x64xf32> to vector<256x64xf32>
    %41 = arith.truncf %40 : vector<256x64xf32> to vector<256x64xbf16>
    %c5 = arith.constant 5 : index
    %c0_19 = arith.constant 0 : index
    %c0_20 = arith.constant 0 : index
    %42 = vector.load %arg2[%c5, %c0_19, %c0_20] : memref<9x64x128xbf16, #tpu.memory_space<vmem>>, vector<1x64x128xbf16>
    %43 = vector.shape_cast %42 : vector<1x64x128xbf16> to vector<64x128xbf16>
    %cst_21 = arith.constant dense<0.000000e+00> : vector<256x128xf32>
    %44 = tpu.matmul %41, %43, %cst_21 {dimension_numbers = #tpu.dot_dimension_numbers<[1], [0], [0], [1], [0, 0, 1, 1], [], []>} : vector<256x64xbf16>, vector<64x128xbf16>, vector<256x128xf32> -> vector<256x128xf32>
    %45 = arith.addf %38, %44 : vector<256x128xf32>
    %46 = vector.extract_strided_slice %2 {offsets = [2, 0, 0], sizes = [16, 16, 64], strides = [1, 1, 1]} : vector<18x18x64xf32> to vector<16x16x64xf32>
    %47 = vector.shape_cast %46 : vector<16x16x64xf32> to vector<256x64xf32>
    %48 = arith.truncf %47 : vector<256x64xf32> to vector<256x64xbf16>
    %c6 = arith.constant 6 : index
    %c0_22 = arith.constant 0 : index
    %c0_23 = arith.constant 0 : index
    %49 = vector.load %arg2[%c6, %c0_22, %c0_23] : memref<9x64x128xbf16, #tpu.memory_space<vmem>>, vector<1x64x128xbf16>
    %50 = vector.shape_cast %49 : vector<1x64x128xbf16> to vector<64x128xbf16>
    %cst_24 = arith.constant dense<0.000000e+00> : vector<256x128xf32>
    %51 = tpu.matmul %48, %50, %cst_24 {dimension_numbers = #tpu.dot_dimension_numbers<[1], [0], [0], [1], [0, 0, 1, 1], [], []>} : vector<256x64xbf16>, vector<64x128xbf16>, vector<256x128xf32> -> vector<256x128xf32>
    %52 = arith.addf %45, %51 : vector<256x128xf32>
    %53 = vector.extract_strided_slice %2 {offsets = [2, 1, 0], sizes = [16, 16, 64], strides = [1, 1, 1]} : vector<18x18x64xf32> to vector<16x16x64xf32>
    %54 = vector.shape_cast %53 : vector<16x16x64xf32> to vector<256x64xf32>
    %55 = arith.truncf %54 : vector<256x64xf32> to vector<256x64xbf16>
    %c7 = arith.constant 7 : index
    %c0_25 = arith.constant 0 : index
    %c0_26 = arith.constant 0 : index
    %56 = vector.load %arg2[%c7, %c0_25, %c0_26] : memref<9x64x128xbf16, #tpu.memory_space<vmem>>, vector<1x64x128xbf16>
    %57 = vector.shape_cast %56 : vector<1x64x128xbf16> to vector<64x128xbf16>
    %cst_27 = arith.constant dense<0.000000e+00> : vector<256x128xf32>
    %58 = tpu.matmul %55, %57, %cst_27 {dimension_numbers = #tpu.dot_dimension_numbers<[1], [0], [0], [1], [0, 0, 1, 1], [], []>} : vector<256x64xbf16>, vector<64x128xbf16>, vector<256x128xf32> -> vector<256x128xf32>
    %59 = arith.addf %52, %58 : vector<256x128xf32>
    %60 = vector.extract_strided_slice %2 {offsets = [2, 2, 0], sizes = [16, 16, 64], strides = [1, 1, 1]} : vector<18x18x64xf32> to vector<16x16x64xf32>
    %61 = vector.shape_cast %60 : vector<16x16x64xf32> to vector<256x64xf32>
    %62 = arith.truncf %61 : vector<256x64xf32> to vector<256x64xbf16>
    %c8 = arith.constant 8 : index
    %c0_28 = arith.constant 0 : index
    %c0_29 = arith.constant 0 : index
    %63 = vector.load %arg2[%c8, %c0_28, %c0_29] : memref<9x64x128xbf16, #tpu.memory_space<vmem>>, vector<1x64x128xbf16>
    %64 = vector.shape_cast %63 : vector<1x64x128xbf16> to vector<64x128xbf16>
    %cst_30 = arith.constant dense<0.000000e+00> : vector<256x128xf32>
    %65 = tpu.matmul %62, %64, %cst_30 {dimension_numbers = #tpu.dot_dimension_numbers<[1], [0], [0], [1], [0, 0, 1, 1], [], []>} : vector<256x64xbf16>, vector<64x128xbf16>, vector<256x128xf32> -> vector<256x128xf32>
    %66 = arith.addf %59, %65 : vector<256x128xf32>
    %c0_31 = arith.constant 0 : index
    %c0_32 = arith.constant 0 : index
    %67 = vector.load %arg3[%c0_31, %c0_32] : memref<1x128xf32, #tpu.memory_space<vmem>>, vector<1x128xf32>
    %68 = vector.broadcast %67 : vector<1x128xf32> to vector<256x128xf32>
    %69 = arith.addf %66, %68 : vector<256x128xf32>
    %cst_33 = arith.constant 0.000000e+00 : f32
    %70 = vector.broadcast %cst_33 : f32 to vector<256x128xf32>
    %71 = arith.maximumf %69, %70 : vector<256x128xf32>
    %72 = vector.shape_cast %71 : vector<256x128xf32> to vector<1x16x16x128xf32>
    %73 = arith.truncf %72 : vector<1x16x16x128xf32> to vector<1x16x16x128xbf16>
    %c0_34 = arith.constant 0 : index
    %c0_35 = arith.constant 0 : index
    %c0_36 = arith.constant 0 : index
    %c0_37 = arith.constant 0 : index
    %74 = vector.load %arg4[%c0_34, %c0_35, %c0_36, %c0_37] : memref<1x16x16x128xbf16, #tpu.memory_space<vmem>>, vector<1x16x16x128xbf16>
    tpu.vector_store %arg4[%c0_34, %c0_35, %c0_36, %c0_37], %73 {strides = array<i32>} : memref<1x16x16x128xbf16, #tpu.memory_space<vmem>>, vector<1x16x16x128xbf16>,
    return
  }
  func.func @transform_0(%arg0: i32) -> (i32, i32, i32, i32) {
    %c0_i32 = arith.constant 0 : i32
    %c0_i32_0 = arith.constant 0 : i32
    %c0_i32_1 = arith.constant 0 : i32
    %c0_i32_2 = arith.constant 0 : i32
    return %arg0, %c0_i32, %c0_i32_0, %c0_i32_1 : i32, i32, i32, i32
  }
  func.func @transform_1(%arg0: i32) -> (i32, i32, i32) {
    %c0_i32 = arith.constant 0 : i32
    %c0_i32_0 = arith.constant 0 : i32
    %c0_i32_1 = arith.constant 0 : i32
    %c0_i32_2 = arith.constant 0 : i32
    return %c0_i32, %c0_i32_0, %c0_i32_1 : i32, i32, i32
  }
  func.func @transform_2(%arg0: i32) -> (i32, i32) {
    %c0_i32 = arith.constant 0 : i32
    %c0_i32_0 = arith.constant 0 : i32
    %c0_i32_1 = arith.constant 0 : i32
    return %c0_i32, %c0_i32_0 : i32, i32
  }
  func.func @transform_3(%arg0: i32) -> (i32, i32, i32, i32) {
    %c0_i32 = arith.constant 0 : i32
    %c0_i32_0 = arith.constant 0 : i32
    %c0_i32_1 = arith.constant 0 : i32
    %c0_i32_2 = arith.constant 0 : i32
    return %arg0, %c0_i32, %c0_i32_0, %c0_i32_1 : i32, i32, i32, i32
  }
}

module attributes {stable_mosaic.version = 11 : i64} {
  func.func @_bottleneck_kernel(%arg0: i32, %arg1: memref<1x8x8x128xbf16, #tpu.memory_space<vmem>>, %arg2: memref<128x32xbf16, #tpu.memory_space<vmem>>, %arg3: memref<1x32xf32, #tpu.memory_space<vmem>>, %arg4: memref<9x32x32xbf16, #tpu.memory_space<vmem>>, %arg5: memref<1x32xf32, #tpu.memory_space<vmem>>, %arg6: memref<32x128xbf16, #tpu.memory_space<vmem>>, %arg7: memref<1x128xf32, #tpu.memory_space<vmem>>, %arg8: memref<1x8x8x128xbf16, #tpu.memory_space<vmem>>, %arg9: memref<10x10x32xf32, #tpu.memory_space<vmem>>) attributes {dimension_semantics = [#tpu.dimension_semantics<parallel>], iteration_bounds = array<i64: 2>, scalar_prefetch = 0 : i64, scratch_operands = 1 : i64, tpu.core_type = #tpu.core_type<tc>, window_params = [{transform_indices = @transform_0, window_bounds = array<i64: 1, 8, 8, 128>}, {pipeline_mode = #tpu.pipeline_mode<synchronous>, transform_indices = @transform_1, window_bounds = array<i64: 128, 32>}, {pipeline_mode = #tpu.pipeline_mode<synchronous>, transform_indices = @transform_2, window_bounds = array<i64: 1, 32>}, {pipeline_mode = #tpu.pipeline_mode<synchronous>, transform_indices = @transform_3, window_bounds = array<i64: 9, 32, 32>}, {pipeline_mode = #tpu.pipeline_mode<synchronous>, transform_indices = @transform_4, window_bounds = array<i64: 1, 32>}, {pipeline_mode = #tpu.pipeline_mode<synchronous>, transform_indices = @transform_5, window_bounds = array<i64: 32, 128>}, {pipeline_mode = #tpu.pipeline_mode<synchronous>, transform_indices = @transform_6, window_bounds = array<i64: 1, 128>}, {transform_indices = @transform_7, window_bounds = array<i64: 1, 8, 8, 128>}]} {
    %c0 = arith.constant 0 : index
    %c0_0 = arith.constant 0 : index
    %c0_1 = arith.constant 0 : index
    %c0_2 = arith.constant 0 : index
    %0 = vector.load %arg1[%c0, %c0_0, %c0_1, %c0_2] : memref<1x8x8x128xbf16, #tpu.memory_space<vmem>>, vector<1x8x8x128xbf16>
    %1 = vector.shape_cast %0 : vector<1x8x8x128xbf16> to vector<8x8x128xbf16>
    %2 = vector.shape_cast %1 : vector<8x8x128xbf16> to vector<64x128xbf16>
    %c0_3 = arith.constant 0 : index
    %c0_4 = arith.constant 0 : index
    %3 = vector.load %arg2[%c0_3, %c0_4] : memref<128x32xbf16, #tpu.memory_space<vmem>>, vector<128x32xbf16>
    %cst = arith.constant dense<0.000000e+00> : vector<64x32xf32>
    %4 = tpu.matmul %2, %3, %cst {dimension_numbers = #tpu.dot_dimension_numbers<[1], [0], [0], [1], [0, 0, 1, 1], [], []>} : vector<64x128xbf16>, vector<128x32xbf16>, vector<64x32xf32> -> vector<64x32xf32>
    %c0_5 = arith.constant 0 : index
    %c0_6 = arith.constant 0 : index
    %5 = vector.load %arg3[%c0_5, %c0_6] : memref<1x32xf32, #tpu.memory_space<vmem>>, vector<1x32xf32>
    %6 = vector.broadcast %5 : vector<1x32xf32> to vector<64x32xf32>
    %7 = arith.addf %4, %6 : vector<64x32xf32>
    %cst_7 = arith.constant 0.000000e+00 : f32
    %8 = vector.broadcast %cst_7 : f32 to vector<64x32xf32>
    %9 = arith.maximumf %7, %8 : vector<64x32xf32>
    %cst_8 = arith.constant 0.000000e+00 : f32
    %10 = vector.broadcast %cst_8 : f32 to vector<10x10x32xf32>
    %c0_9 = arith.constant 0 : index
    %c0_10 = arith.constant 0 : index
    %c0_11 = arith.constant 0 : index
    %11 = vector.load %arg9[%c0_9, %c0_10, %c0_11] : memref<10x10x32xf32, #tpu.memory_space<vmem>>, vector<10x10x32xf32>
    tpu.vector_store %arg9[%c0_9, %c0_10, %c0_11], %10 {strides = array<i32>} : memref<10x10x32xf32, #tpu.memory_space<vmem>>, vector<10x10x32xf32>,
    %12 = vector.shape_cast %9 : vector<64x32xf32> to vector<8x8x32xf32>
    %c1 = arith.constant 1 : index
    %c1_12 = arith.constant 1 : index
    %c0_13 = arith.constant 0 : index
    %13 = vector.load %arg9[%c1, %c1_12, %c0_13] : memref<10x10x32xf32, #tpu.memory_space<vmem>>, vector<8x8x32xf32>
    tpu.vector_store %arg9[%c1, %c1_12, %c0_13], %12 {strides = array<i32>} : memref<10x10x32xf32, #tpu.memory_space<vmem>>, vector<8x8x32xf32>,
    %cst_14 = arith.constant 0.000000e+00 : f32
    %14 = vector.broadcast %cst_14 : f32 to vector<64x32xf32>
    %c0_15 = arith.constant 0 : index
    %c0_16 = arith.constant 0 : index
    %c0_17 = arith.constant 0 : index
    %15 = vector.load %arg9[%c0_15, %c0_16, %c0_17] : memref<10x10x32xf32, #tpu.memory_space<vmem>>, vector<8x8x32xf32>
    %16 = vector.shape_cast %15 : vector<8x8x32xf32> to vector<64x32xf32>
    %17 = arith.truncf %16 : vector<64x32xf32> to vector<64x32xbf16>
    %c0_18 = arith.constant 0 : index
    %c0_19 = arith.constant 0 : index
    %c0_20 = arith.constant 0 : index
    %18 = vector.load %arg4[%c0_18, %c0_19, %c0_20] : memref<9x32x32xbf16, #tpu.memory_space<vmem>>, vector<1x32x32xbf16>
    %19 = vector.shape_cast %18 : vector<1x32x32xbf16> to vector<32x32xbf16>
    %cst_21 = arith.constant dense<0.000000e+00> : vector<64x32xf32>
    %20 = tpu.matmul %17, %19, %cst_21 {dimension_numbers = #tpu.dot_dimension_numbers<[1], [0], [0], [1], [0, 0, 1, 1], [], []>} : vector<64x32xbf16>, vector<32x32xbf16>, vector<64x32xf32> -> vector<64x32xf32>
    %21 = arith.addf %14, %20 : vector<64x32xf32>
    %c0_22 = arith.constant 0 : index
    %c1_23 = arith.constant 1 : index
    %c0_24 = arith.constant 0 : index
    %22 = vector.load %arg9[%c0_22, %c1_23, %c0_24] : memref<10x10x32xf32, #tpu.memory_space<vmem>>, vector<8x8x32xf32>
    %23 = vector.shape_cast %22 : vector<8x8x32xf32> to vector<64x32xf32>
    %24 = arith.truncf %23 : vector<64x32xf32> to vector<64x32xbf16>
    %c1_25 = arith.constant 1 : index
    %c0_26 = arith.constant 0 : index
    %c0_27 = arith.constant 0 : index
    %25 = vector.load %arg4[%c1_25, %c0_26, %c0_27] : memref<9x32x32xbf16, #tpu.memory_space<vmem>>, vector<1x32x32xbf16>
    %26 = vector.shape_cast %25 : vector<1x32x32xbf16> to vector<32x32xbf16>
    %cst_28 = arith.constant dense<0.000000e+00> : vector<64x32xf32>
    %27 = tpu.matmul %24, %26, %cst_28 {dimension_numbers = #tpu.dot_dimension_numbers<[1], [0], [0], [1], [0, 0, 1, 1], [], []>} : vector<64x32xbf16>, vector<32x32xbf16>, vector<64x32xf32> -> vector<64x32xf32>
    %28 = arith.addf %21, %27 : vector<64x32xf32>
    %c0_29 = arith.constant 0 : index
    %c2 = arith.constant 2 : index
    %c0_30 = arith.constant 0 : index
    %29 = vector.load %arg9[%c0_29, %c2, %c0_30] : memref<10x10x32xf32, #tpu.memory_space<vmem>>, vector<8x8x32xf32>
    %30 = vector.shape_cast %29 : vector<8x8x32xf32> to vector<64x32xf32>
    %31 = arith.truncf %30 : vector<64x32xf32> to vector<64x32xbf16>
    %c2_31 = arith.constant 2 : index
    %c0_32 = arith.constant 0 : index
    %c0_33 = arith.constant 0 : index
    %32 = vector.load %arg4[%c2_31, %c0_32, %c0_33] : memref<9x32x32xbf16, #tpu.memory_space<vmem>>, vector<1x32x32xbf16>
    %33 = vector.shape_cast %32 : vector<1x32x32xbf16> to vector<32x32xbf16>
    %cst_34 = arith.constant dense<0.000000e+00> : vector<64x32xf32>
    %34 = tpu.matmul %31, %33, %cst_34 {dimension_numbers = #tpu.dot_dimension_numbers<[1], [0], [0], [1], [0, 0, 1, 1], [], []>} : vector<64x32xbf16>, vector<32x32xbf16>, vector<64x32xf32> -> vector<64x32xf32>
    %35 = arith.addf %28, %34 : vector<64x32xf32>
    %c1_35 = arith.constant 1 : index
    %c0_36 = arith.constant 0 : index
    %c0_37 = arith.constant 0 : index
    %36 = vector.load %arg9[%c1_35, %c0_36, %c0_37] : memref<10x10x32xf32, #tpu.memory_space<vmem>>, vector<8x8x32xf32>
    %37 = vector.shape_cast %36 : vector<8x8x32xf32> to vector<64x32xf32>
    %38 = arith.truncf %37 : vector<64x32xf32> to vector<64x32xbf16>
    %c3 = arith.constant 3 : index
    %c0_38 = arith.constant 0 : index
    %c0_39 = arith.constant 0 : index
    %39 = vector.load %arg4[%c3, %c0_38, %c0_39] : memref<9x32x32xbf16, #tpu.memory_space<vmem>>, vector<1x32x32xbf16>
    %40 = vector.shape_cast %39 : vector<1x32x32xbf16> to vector<32x32xbf16>
    %cst_40 = arith.constant dense<0.000000e+00> : vector<64x32xf32>
    %41 = tpu.matmul %38, %40, %cst_40 {dimension_numbers = #tpu.dot_dimension_numbers<[1], [0], [0], [1], [0, 0, 1, 1], [], []>} : vector<64x32xbf16>, vector<32x32xbf16>, vector<64x32xf32> -> vector<64x32xf32>
    %42 = arith.addf %35, %41 : vector<64x32xf32>
    %c1_41 = arith.constant 1 : index
    %c1_42 = arith.constant 1 : index
    %c0_43 = arith.constant 0 : index
    %43 = vector.load %arg9[%c1_41, %c1_42, %c0_43] : memref<10x10x32xf32, #tpu.memory_space<vmem>>, vector<8x8x32xf32>
    %44 = vector.shape_cast %43 : vector<8x8x32xf32> to vector<64x32xf32>
    %45 = arith.truncf %44 : vector<64x32xf32> to vector<64x32xbf16>
    %c4 = arith.constant 4 : index
    %c0_44 = arith.constant 0 : index
    %c0_45 = arith.constant 0 : index
    %46 = vector.load %arg4[%c4, %c0_44, %c0_45] : memref<9x32x32xbf16, #tpu.memory_space<vmem>>, vector<1x32x32xbf16>
    %47 = vector.shape_cast %46 : vector<1x32x32xbf16> to vector<32x32xbf16>
    %cst_46 = arith.constant dense<0.000000e+00> : vector<64x32xf32>
    %48 = tpu.matmul %45, %47, %cst_46 {dimension_numbers = #tpu.dot_dimension_numbers<[1], [0], [0], [1], [0, 0, 1, 1], [], []>} : vector<64x32xbf16>, vector<32x32xbf16>, vector<64x32xf32> -> vector<64x32xf32>
    %49 = arith.addf %42, %48 : vector<64x32xf32>
    %c1_47 = arith.constant 1 : index
    %c2_48 = arith.constant 2 : index
    %c0_49 = arith.constant 0 : index
    %50 = vector.load %arg9[%c1_47, %c2_48, %c0_49] : memref<10x10x32xf32, #tpu.memory_space<vmem>>, vector<8x8x32xf32>
    %51 = vector.shape_cast %50 : vector<8x8x32xf32> to vector<64x32xf32>
    %52 = arith.truncf %51 : vector<64x32xf32> to vector<64x32xbf16>
    %c5 = arith.constant 5 : index
    %c0_50 = arith.constant 0 : index
    %c0_51 = arith.constant 0 : index
    %53 = vector.load %arg4[%c5, %c0_50, %c0_51] : memref<9x32x32xbf16, #tpu.memory_space<vmem>>, vector<1x32x32xbf16>
    %54 = vector.shape_cast %53 : vector<1x32x32xbf16> to vector<32x32xbf16>
    %cst_52 = arith.constant dense<0.000000e+00> : vector<64x32xf32>
    %55 = tpu.matmul %52, %54, %cst_52 {dimension_numbers = #tpu.dot_dimension_numbers<[1], [0], [0], [1], [0, 0, 1, 1], [], []>} : vector<64x32xbf16>, vector<32x32xbf16>, vector<64x32xf32> -> vector<64x32xf32>
    %56 = arith.addf %49, %55 : vector<64x32xf32>
    %c2_53 = arith.constant 2 : index
    %c0_54 = arith.constant 0 : index
    %c0_55 = arith.constant 0 : index
    %57 = vector.load %arg9[%c2_53, %c0_54, %c0_55] : memref<10x10x32xf32, #tpu.memory_space<vmem>>, vector<8x8x32xf32>
    %58 = vector.shape_cast %57 : vector<8x8x32xf32> to vector<64x32xf32>
    %59 = arith.truncf %58 : vector<64x32xf32> to vector<64x32xbf16>
    %c6 = arith.constant 6 : index
    %c0_56 = arith.constant 0 : index
    %c0_57 = arith.constant 0 : index
    %60 = vector.load %arg4[%c6, %c0_56, %c0_57] : memref<9x32x32xbf16, #tpu.memory_space<vmem>>, vector<1x32x32xbf16>
    %61 = vector.shape_cast %60 : vector<1x32x32xbf16> to vector<32x32xbf16>
    %cst_58 = arith.constant dense<0.000000e+00> : vector<64x32xf32>
    %62 = tpu.matmul %59, %61, %cst_58 {dimension_numbers = #tpu.dot_dimension_numbers<[1], [0], [0], [1], [0, 0, 1, 1], [], []>} : vector<64x32xbf16>, vector<32x32xbf16>, vector<64x32xf32> -> vector<64x32xf32>
    %63 = arith.addf %56, %62 : vector<64x32xf32>
    %c2_59 = arith.constant 2 : index
    %c1_60 = arith.constant 1 : index
    %c0_61 = arith.constant 0 : index
    %64 = vector.load %arg9[%c2_59, %c1_60, %c0_61] : memref<10x10x32xf32, #tpu.memory_space<vmem>>, vector<8x8x32xf32>
    %65 = vector.shape_cast %64 : vector<8x8x32xf32> to vector<64x32xf32>
    %66 = arith.truncf %65 : vector<64x32xf32> to vector<64x32xbf16>
    %c7 = arith.constant 7 : index
    %c0_62 = arith.constant 0 : index
    %c0_63 = arith.constant 0 : index
    %67 = vector.load %arg4[%c7, %c0_62, %c0_63] : memref<9x32x32xbf16, #tpu.memory_space<vmem>>, vector<1x32x32xbf16>
    %68 = vector.shape_cast %67 : vector<1x32x32xbf16> to vector<32x32xbf16>
    %cst_64 = arith.constant dense<0.000000e+00> : vector<64x32xf32>
    %69 = tpu.matmul %66, %68, %cst_64 {dimension_numbers = #tpu.dot_dimension_numbers<[1], [0], [0], [1], [0, 0, 1, 1], [], []>} : vector<64x32xbf16>, vector<32x32xbf16>, vector<64x32xf32> -> vector<64x32xf32>
    %70 = arith.addf %63, %69 : vector<64x32xf32>
    %c2_65 = arith.constant 2 : index
    %c2_66 = arith.constant 2 : index
    %c0_67 = arith.constant 0 : index
    %71 = vector.load %arg9[%c2_65, %c2_66, %c0_67] : memref<10x10x32xf32, #tpu.memory_space<vmem>>, vector<8x8x32xf32>
    %72 = vector.shape_cast %71 : vector<8x8x32xf32> to vector<64x32xf32>
    %73 = arith.truncf %72 : vector<64x32xf32> to vector<64x32xbf16>
    %c8 = arith.constant 8 : index
    %c0_68 = arith.constant 0 : index
    %c0_69 = arith.constant 0 : index
    %74 = vector.load %arg4[%c8, %c0_68, %c0_69] : memref<9x32x32xbf16, #tpu.memory_space<vmem>>, vector<1x32x32xbf16>
    %75 = vector.shape_cast %74 : vector<1x32x32xbf16> to vector<32x32xbf16>
    %cst_70 = arith.constant dense<0.000000e+00> : vector<64x32xf32>
    %76 = tpu.matmul %73, %75, %cst_70 {dimension_numbers = #tpu.dot_dimension_numbers<[1], [0], [0], [1], [0, 0, 1, 1], [], []>} : vector<64x32xbf16>, vector<32x32xbf16>, vector<64x32xf32> -> vector<64x32xf32>
    %77 = arith.addf %70, %76 : vector<64x32xf32>
    %c0_71 = arith.constant 0 : index
    %c0_72 = arith.constant 0 : index
    %78 = vector.load %arg5[%c0_71, %c0_72] : memref<1x32xf32, #tpu.memory_space<vmem>>, vector<1x32xf32>
    %79 = vector.broadcast %78 : vector<1x32xf32> to vector<64x32xf32>
    %80 = arith.addf %77, %79 : vector<64x32xf32>
    %cst_73 = arith.constant 0.000000e+00 : f32
    %81 = vector.broadcast %cst_73 : f32 to vector<64x32xf32>
    %82 = arith.maximumf %80, %81 : vector<64x32xf32>
    %83 = arith.truncf %82 : vector<64x32xf32> to vector<64x32xbf16>
    %c0_74 = arith.constant 0 : index
    %c0_75 = arith.constant 0 : index
    %84 = vector.load %arg6[%c0_74, %c0_75] : memref<32x128xbf16, #tpu.memory_space<vmem>>, vector<32x128xbf16>
    %cst_76 = arith.constant dense<0.000000e+00> : vector<64x128xf32>
    %85 = tpu.matmul %83, %84, %cst_76 {dimension_numbers = #tpu.dot_dimension_numbers<[1], [0], [0], [1], [0, 0, 1, 1], [], []>} : vector<64x32xbf16>, vector<32x128xbf16>, vector<64x128xf32> -> vector<64x128xf32>
    %c0_77 = arith.constant 0 : index
    %c0_78 = arith.constant 0 : index
    %86 = vector.load %arg7[%c0_77, %c0_78] : memref<1x128xf32, #tpu.memory_space<vmem>>, vector<1x128xf32>
    %87 = vector.broadcast %86 : vector<1x128xf32> to vector<64x128xf32>
    %88 = arith.addf %85, %87 : vector<64x128xf32>
    %89 = arith.extf %2 : vector<64x128xbf16> to vector<64x128xf32>
    %90 = arith.addf %88, %89 : vector<64x128xf32>
    %cst_79 = arith.constant 0.000000e+00 : f32
    %91 = vector.broadcast %cst_79 : f32 to vector<64x128xf32>
    %92 = arith.maximumf %90, %91 : vector<64x128xf32>
    %93 = vector.shape_cast %92 : vector<64x128xf32> to vector<1x8x8x128xf32>
    %94 = arith.truncf %93 : vector<1x8x8x128xf32> to vector<1x8x8x128xbf16>
    %c0_80 = arith.constant 0 : index
    %c0_81 = arith.constant 0 : index
    %c0_82 = arith.constant 0 : index
    %c0_83 = arith.constant 0 : index
    %95 = vector.load %arg8[%c0_80, %c0_81, %c0_82, %c0_83] : memref<1x8x8x128xbf16, #tpu.memory_space<vmem>>, vector<1x8x8x128xbf16>
    tpu.vector_store %arg8[%c0_80, %c0_81, %c0_82, %c0_83], %94 {strides = array<i32>} : memref<1x8x8x128xbf16, #tpu.memory_space<vmem>>, vector<1x8x8x128xbf16>,
    return
  }
  func.func @transform_0(%arg0: i32) -> (i32, i32, i32, i32) {
    %c0_i32 = arith.constant 0 : i32
    %c0_i32_0 = arith.constant 0 : i32
    %c0_i32_1 = arith.constant 0 : i32
    %c0_i32_2 = arith.constant 0 : i32
    return %arg0, %c0_i32, %c0_i32_0, %c0_i32_1 : i32, i32, i32, i32
  }
  func.func @transform_1(%arg0: i32) -> (i32, i32) {
    %c0_i32 = arith.constant 0 : i32
    %c0_i32_0 = arith.constant 0 : i32
    %c0_i32_1 = arith.constant 0 : i32
    return %c0_i32, %c0_i32_0 : i32, i32
  }
  func.func @transform_2(%arg0: i32) -> (i32, i32) {
    %c0_i32 = arith.constant 0 : i32
    %c0_i32_0 = arith.constant 0 : i32
    %c0_i32_1 = arith.constant 0 : i32
    return %c0_i32, %c0_i32_0 : i32, i32
  }
  func.func @transform_3(%arg0: i32) -> (i32, i32, i32) {
    %c0_i32 = arith.constant 0 : i32
    %c0_i32_0 = arith.constant 0 : i32
    %c0_i32_1 = arith.constant 0 : i32
    %c0_i32_2 = arith.constant 0 : i32
    return %c0_i32, %c0_i32_0, %c0_i32_1 : i32, i32, i32
  }
  func.func @transform_4(%arg0: i32) -> (i32, i32) {
    %c0_i32 = arith.constant 0 : i32
    %c0_i32_0 = arith.constant 0 : i32
    %c0_i32_1 = arith.constant 0 : i32
    return %c0_i32, %c0_i32_0 : i32, i32
  }
  func.func @transform_5(%arg0: i32) -> (i32, i32) {
    %c0_i32 = arith.constant 0 : i32
    %c0_i32_0 = arith.constant 0 : i32
    %c0_i32_1 = arith.constant 0 : i32
    return %c0_i32, %c0_i32_0 : i32, i32
  }
  func.func @transform_6(%arg0: i32) -> (i32, i32) {
    %c0_i32 = arith.constant 0 : i32
    %c0_i32_0 = arith.constant 0 : i32
    %c0_i32_1 = arith.constant 0 : i32
    return %c0_i32, %c0_i32_0 : i32, i32
  }
  func.func @transform_7(%arg0: i32) -> (i32, i32, i32, i32) {
    %c0_i32 = arith.constant 0 : i32
    %c0_i32_0 = arith.constant 0 : i32
    %c0_i32_1 = arith.constant 0 : i32
    %c0_i32_2 = arith.constant 0 : i32
    return %arg0, %c0_i32, %c0_i32_0, %c0_i32_1 : i32, i32, i32, i32
  }
}

module attributes {stable_mosaic.version = 11 : i64} {
  func.func @_head_tail_kernel(%arg0: i32, %arg1: memref<128x128xbf16, #tpu.memory_space<vmem>>, %arg2: memref<128x256xbf16, #tpu.memory_space<vmem>>, %arg3: memref<1x256xf32, #tpu.memory_space<vmem>>, %arg4: memref<256x1xf32, #tpu.memory_space<vmem>>, %arg5: memref<1x1xf32, #tpu.memory_space<vmem>>, %arg6: memref<2x1xf32, #tpu.memory_space<vmem>>) attributes {dimension_semantics = [#tpu.dimension_semantics<arbitrary>], iteration_bounds = array<i64: 1>, scalar_prefetch = 0 : i64, scratch_operands = 0 : i64, tpu.core_type = #tpu.core_type<tc>, window_params = [{pipeline_mode = #tpu.pipeline_mode<synchronous>, transform_indices = @transform_0, window_bounds = array<i64: 128, 128>}, {pipeline_mode = #tpu.pipeline_mode<synchronous>, transform_indices = @transform_1, window_bounds = array<i64: 128, 256>}, {pipeline_mode = #tpu.pipeline_mode<synchronous>, transform_indices = @transform_2, window_bounds = array<i64: 1, 256>}, {pipeline_mode = #tpu.pipeline_mode<synchronous>, transform_indices = @transform_3, window_bounds = array<i64: 256, 1>}, {pipeline_mode = #tpu.pipeline_mode<synchronous>, transform_indices = @transform_4, window_bounds = array<i64: 1, 1>}, {pipeline_mode = #tpu.pipeline_mode<synchronous>, transform_indices = @transform_5, window_bounds = array<i64: 2, 1>}]} {
    %c0 = arith.constant 0 : index
    %c0_0 = arith.constant 0 : index
    %0 = vector.load %arg1[%c0, %c0_0] : memref<128x128xbf16, #tpu.memory_space<vmem>>, vector<128x128xbf16>
    %c0_1 = arith.constant 0 : index
    %c0_2 = arith.constant 0 : index
    %1 = vector.load %arg2[%c0_1, %c0_2] : memref<128x256xbf16, #tpu.memory_space<vmem>>, vector<128x256xbf16>
    %cst = arith.constant dense<0.000000e+00> : vector<128x256xf32>
    %2 = tpu.matmul %0, %1, %cst {dimension_numbers = #tpu.dot_dimension_numbers<[1], [0], [0], [1], [0, 0, 1, 1], [], []>} : vector<128x128xbf16>, vector<128x256xbf16>, vector<128x256xf32> -> vector<128x256xf32>
    %c0_3 = arith.constant 0 : index
    %c0_4 = arith.constant 0 : index
    %3 = vector.load %arg3[%c0_3, %c0_4] : memref<1x256xf32, #tpu.memory_space<vmem>>, vector<1x256xf32>
    %4 = vector.broadcast %3 : vector<1x256xf32> to vector<128x256xf32>
    %5 = arith.addf %2, %4 : vector<128x256xf32>
    %cst_5 = arith.constant 0.000000e+00 : f32
    %6 = vector.broadcast %cst_5 : f32 to vector<128x256xf32>
    %7 = arith.maximumf %5, %6 : vector<128x256xf32>
    %8 = vector.shape_cast %7 : vector<128x256xf32> to vector<2x64x256xf32>
    %cst_6 = arith.constant dense<0.000000e+00> : vector<2x256xf32>
    %9 = vector.multi_reduction <add>, %8, %cst_6 [1] : vector<2x64x256xf32> to vector<2x256xf32>
    %cst_7 = arith.constant 6.400000e+01 : f32
    %10 = vector.broadcast %cst_7 : f32 to vector<2x256xf32>
    %11 = arith.divf %9, %10 : vector<2x256xf32>
    %c0_8 = arith.constant 0 : index
    %c0_9 = arith.constant 0 : index
    %12 = vector.load %arg4[%c0_8, %c0_9] : memref<256x1xf32, #tpu.memory_space<vmem>>, vector<256x1xf32>
    %cst_10 = arith.constant dense<0.000000e+00> : vector<2x1xf32>
    %13 = tpu.matmul %11, %12, %cst_10 {dimension_numbers = #tpu.dot_dimension_numbers<[1], [0], [0], [1], [0, 0, 1, 1], [], []>} : vector<2x256xf32>, vector<256x1xf32>, vector<2x1xf32> -> vector<2x1xf32>
    %c0_11 = arith.constant 0 : index
    %c0_12 = arith.constant 0 : index
    %14 = vector.load %arg5[%c0_11, %c0_12] : memref<1x1xf32, #tpu.memory_space<vmem>>, vector<1x1xf32>
    %15 = vector.broadcast %14 : vector<1x1xf32> to vector<2x1xf32>
    %16 = arith.addf %13, %15 : vector<2x1xf32>
    %c0_13 = arith.constant 0 : index
    %c0_14 = arith.constant 0 : index
    %17 = vector.load %arg6[%c0_13, %c0_14] : memref<2x1xf32, #tpu.memory_space<vmem>>, vector<2x1xf32>
    tpu.vector_store %arg6[%c0_13, %c0_14], %16 {strides = array<i32>} : memref<2x1xf32, #tpu.memory_space<vmem>>, vector<2x1xf32>,
    return
  }
  func.func @transform_0(%arg0: i32) -> (i32, i32) {
    %c0_i32 = arith.constant 0 : i32
    %c0_i32_0 = arith.constant 0 : i32
    %c0_i32_1 = arith.constant 0 : i32
    return %c0_i32, %c0_i32_0 : i32, i32
  }
  func.func @transform_1(%arg0: i32) -> (i32, i32) {
    %c0_i32 = arith.constant 0 : i32
    %c0_i32_0 = arith.constant 0 : i32
    %c0_i32_1 = arith.constant 0 : i32
    return %c0_i32, %c0_i32_0 : i32, i32
  }
  func.func @transform_2(%arg0: i32) -> (i32, i32) {
    %c0_i32 = arith.constant 0 : i32
    %c0_i32_0 = arith.constant 0 : i32
    %c0_i32_1 = arith.constant 0 : i32
    return %c0_i32, %c0_i32_0 : i32, i32
  }
  func.func @transform_3(%arg0: i32) -> (i32, i32) {
    %c0_i32 = arith.constant 0 : i32
    %c0_i32_0 = arith.constant 0 : i32
    %c0_i32_1 = arith.constant 0 : i32
    return %c0_i32, %c0_i32_0 : i32, i32
  }
  func.func @transform_4(%arg0: i32) -> (i32, i32) {
    %c0_i32 = arith.constant 0 : i32
    %c0_i32_0 = arith.constant 0 : i32
    %c0_i32_1 = arith.constant 0 : i32
    return %c0_i32, %c0_i32_0 : i32, i32
  }
  func.func @transform_5(%arg0: i32) -> (i32, i32) {
    %c0_i32 = arith.constant 0 : i32
    %c0_i32_0 = arith.constant 0 : i32
    %c0_i32_1 = arith.constant 0 : i32
    return %c0_i32, %c0_i32_0 : i32, i32
  }
}

</mosaic_0001>

<bundles_post_ra>
// kernel: forward.6
= control target key start
LH: loop header
LB: loop body
LE: loop exit
PB: predicated region body
PF: predicated region fallthrough
CT: control target
= control target key end

     0   :  { %vm358_vm0 = vcmask 1044480   ;;  %vm359_vm1 = vcmask 1045504   ;;  %v1379_v1 = vmov 65535   ;;  %vm261_vm2 = vcmask 220160   ;;  %s1859_s1 = inlined_call_operand.vmem [shape: bf16[27,64], index: 1, kind: input, shape index: {}]   ;;  %s1860_s0 = inlined_call_operand.vmem [shape: bf16[512,27], index: 0, kind: input, shape index: {}]   ;;  %s1861_s2 = inlined_call_operand.vmem [shape: f32[1,64], index: 2, kind: input, shape index: {}]   ;;  %s1862_s3 = inlined_call_operand.vmem [shape: bf16[512,64], index: 3, kind: output, shape index: {}]  }
   0x1   :  { %v1345_v0 = vld [vmem:[%s1859_s1 + $0x8] sm:$0x3f]   ;;  %v360_v2 = vsel %vm358_vm0, 4294967295, %v1379_v1  ;;  %v1347_v4 = vld [vmem:[%s1860_s0] sm:$0xff]   ;;  %v1351_v10 = vld [vmem:[%s1860_s0 + $0x10] sm:$0xff]   ;;  %vm974_vm3 = vcmask 519168  }
   0x2   :  { %v361_v3 = vsel %vm359_vm1, %v360_v2, 0  ;;  %v1346_v6 = vld [vmem:[%s1859_s1] sm:$0xff]   ;;  %1276 = vmatprep.mubr.msk.bf16.mxu0 %vm261_vm2, %v1347_v4  ;;  %v1349_v8 = vld [vmem:[%s1860_s0 + $0x8] sm:$0xff]   ;;  %v1352_v11 = vld [vmem:[%s1860_s0 + $0x90] sm:$0xff]  }
   0x3   :  { %v363_v5 = vand.u32 %v1345_v0, %v361_v3  ;;  %v1348_v7 = vld [vmem:[%s1860_s0 + $0x80] sm:$0xff]   ;;  %v1350_v9 = vld [vmem:[%s1860_s0 + $0x88] sm:$0xff]   ;;  %v1353_v12 = vld [vmem:[%s1860_s0 + $0x18] sm:$0xff]  }
   0x4   :  { %1308 = vmatprep.mubr.msk.bf16.mxu1 %vm261_vm2, %v1348_v7  ;;  %v1354_v13 = vld [vmem:[%s1860_s0 + $0x98] sm:$0xff]   ;;  %v1355_v14 = vld [vmem:[%s1860_s0 + $0x20] sm:$0xff]   ;;  %v1357_v16 = vld [vmem:[%s1860_s0 + $0x28] sm:$0xff]  }
   0x5   :  { %1272 = vmatprep.subr.bf16.mxu0 %v363_v5  ;;  %1340 = vmatprep.subr.bf16.mxu1 %v363_v5  ;;  %v1356_v15 = vld [vmem:[%s1860_s0 + $0xa0] sm:$0xff]   ;;  %v1358_v17 = vld [vmem:[%s1860_s0 + $0xa8] sm:$0xff]   ;;  %v1359_v18 = vld [vmem:[%s1860_s0 + $0x30] sm:$0xff]  }
   0x6   :  { %1273 = vmatpush3.bf16.msra.mxu0 %v363_v5  ;;  %1342 = vmatpush3.bf16.msra.mxu1 %v363_v5  ;;  %v1360_v19 = vld [vmem:[%s1860_s0 + $0xb0] sm:$0xff]   ;;  %v1361_v20 = vld [vmem:[%s1860_s0 + $0x38] sm:$0xff]   ;;  %v1363_v22 = vld [vmem:[%s1860_s0 + $0x40] sm:$0xff]  }
   0x7   :  { %1274 = vmatprep.subr.bf16.mxu0 %v1346_v6  ;;  %1341 = vmatprep.subr.bf16.mxu1 %v1346_v6  ;;  %v1362_v21 = vld [vmem:[%s1860_s0 + $0xb8] sm:$0xff]   ;;  %v1364_v23 = vld [vmem:[%s1860_s0 + $0xc0] sm:$0xff]   ;;  %v1365_v24 = vld [vmem:[%s1860_s0 + $0x48] sm:$0xff]  }
   0x8   :  { %v1366_v25 = vld [vmem:[%s1860_s0 + $0xc8] sm:$0xff]   ;;  %v1367_v26 = vld [vmem:[%s1860_s0 + $0x50] sm:$0xff]   ;;  %v1369_v28 = vld [vmem:[%s1860_s0 + $0x58] sm:$0xff]  }
   0x9   :  { %v1368_v27 = vld [vmem:[%s1860_s0 + $0xd0] sm:$0xff]   ;;  %v1370_v29 = vld [vmem:[%s1860_s0 + $0xd8] sm:$0xff]   ;;  %v1371_v30 = vld [vmem:[%s1860_s0 + $0x60] sm:$0xff]  }
   0xa   :  { %1275 = vmatpush3.bf16.msra.mxu0 %v1346_v6  ;;  %1343 = vmatpush3.bf16.msra.mxu1 %v1346_v6  ;;  %v1372_v31 = vld [vmem:[%s1860_s0 + $0xe0] sm:$0xff]   ;;  %v1373_v32 = vld [vmem:[%s1860_s0 + $0x68] sm:$0xff]   ;;  %v1375_v34 = vld [vmem:[%s1860_s0 + $0x70] sm:$0xff]  }
   0xb   :  { %v1374_v33 = vld [vmem:[%s1860_s0 + $0xe8] sm:$0xff]   ;;  %v1376_v35 = vld [vmem:[%s1860_s0 + $0xf0] sm:$0xff]   ;;  %v1377_v36 = vld [vmem:[%s1860_s0 + $0x78] sm:$0xff]  }
   0xc   :  { %v1378_v37 = vld [vmem:[%s1860_s0 + $0xf8] sm:$0xff]   ;;  %v1537_v38 = vld [vmem:[%s1861_s2] ss:$0 sm:$0xff] }
   0xd   :  { %1277 = vmatmul.mubr.msk.bf16.vlgmr.msra.gmra.mxu0 %vm261_vm2, %v1349_v8  ;;  %1309 = vmatmul.mubr.msk.bf16.vlgmr.msra.gmra.mxu1 %vm261_vm2, %v1350_v9 }
   0xe   :  { %1280 = vmatprep.mubr.msk.bf16.mxu0 %vm261_vm2, %v1351_v10  ;;  %1312 = vmatprep.mubr.msk.bf16.mxu1 %vm261_vm2, %v1352_v11 }
  0x15   :  { %1281 = vmatmul.mubr.msk.bf16.gmra.mxu0 %vm261_vm2, %v1353_v12  ;;  %1313 = vmatmul.mubr.msk.bf16.gmra.mxu1 %vm261_vm2, %v1354_v13 }
  0x16   :  { %1284 = vmatprep.mubr.msk.bf16.mxu0 %vm261_vm2, %v1355_v14  ;;  %1316 = vmatprep.mubr.msk.bf16.mxu1 %vm261_vm2, %v1356_v15 }
  0x1d   :  { %1285 = vmatmul.mubr.msk.bf16.gmra.mxu0 %vm261_vm2, %v1357_v16  ;;  %1317 = vmatmul.mubr.msk.bf16.gmra.mxu1 %vm261_vm2, %v1358_v17 }
  0x1e   :  { %1288 = vmatprep.mubr.msk.bf16.mxu0 %vm261_vm2, %v1359_v18  ;;  %1320 = vmatprep.mubr.msk.bf16.mxu1 %vm261_vm2, %v1360_v19 }
  0x25   :  { %1289 = vmatmul.mubr.msk.bf16.gmra.mxu0 %vm261_vm2, %v1361_v20  ;;  %1321 = vmatmul.mubr.msk.bf16.gmra.mxu1 %vm261_vm2, %v1362_v21 }
  0x26   :  { %1292 = vmatprep.mubr.msk.bf16.mxu0 %vm261_vm2, %v1363_v22  ;;  %1324 = vmatprep.mubr.msk.bf16.mxu1 %vm261_vm2, %v1364_v23 }
  0x2d   :  { %1293 = vmatmul.mubr.msk.bf16.gmra.mxu0 %vm261_vm2, %v1365_v24  ;;  %1325 = vmatmul.mubr.msk.bf16.gmra.mxu1 %vm261_vm2, %v1366_v25 }
  0x2e   :  { %1296 = vmatprep.mubr.msk.bf16.mxu0 %vm261_vm2, %v1367_v26  ;;  %1328 = vmatprep.mubr.msk.bf16.mxu1 %vm261_vm2, %v1368_v27 }
  0x35   :  { %1297 = vmatmul.mubr.msk.bf16.gmra.mxu0 %vm261_vm2, %v1369_v28  ;;  %1329 = vmatmul.mubr.msk.bf16.gmra.mxu1 %vm261_vm2, %v1370_v29 }
  0x36   :  { %1300 = vmatprep.mubr.msk.bf16.mxu0 %vm261_vm2, %v1371_v30  ;;  %1332 = vmatprep.mubr.msk.bf16.mxu1 %vm261_vm2, %v1372_v31 }
  0x3d   :  { %1301 = vmatmul.mubr.msk.bf16.gmra.mxu0 %vm261_vm2, %v1373_v32  ;;  %1333 = vmatmul.mubr.msk.bf16.gmra.mxu1 %vm261_vm2, %v1374_v33 }
  0x3e   :  { %1304 = vmatprep.mubr.msk.bf16.mxu0 %vm261_vm2, %v1375_v34  ;;  %1336 = vmatprep.mubr.msk.bf16.mxu1 %vm261_vm2, %v1376_v35 }
  0x45   :  { %1305 = vmatmul.mubr.msk.bf16.gmra.mxu0 %vm261_vm2, %v1377_v36  ;;  %1337 = vmatmul.mubr.msk.bf16.gmra.mxu1 %vm261_vm2, %v1378_v37 }
  0xcd   :  { %v1278_v39 = vpop.f32.mrf.mxu0  ;;  %v1310_v40 = vpop.f32.mrf.mxu1 }
  0xce   :  { %v408_v41 = vadd.f32 %v1278_v39, %v1537_v38  ;;  %v536_v42 = vadd.f32 %v1310_v40, %v1537_v38 }
  0xcf   :  { %v399_v43 = vpop.f32.mrf.mxu0  ;;  %v527_v44 = vpop.f32.mrf.mxu1 }
  0xd0   :  { %v656_v45 = vmax.f32 %v408_v41, 0.0  ;;  %v688_v46 = vmax.f32 %v536_v42, 0.0  ;;  %v400_v47 = vadd.f32 %v1537_v38, %v399_v43  ;;  %v528_v48 = vadd.f32 %v1537_v38, %v527_v44 }
  0xd1   :  { %v1279_v49 = vpop.f32.mrf.mxu0  ;;  %v1311_v50 = vpop.f32.mrf.mxu1 }
  0xd2   :  { %v1176_v51 = vpack.c.bf16 %v656_v45, %v656_v45  ;;  %v1208_v52 = vpack.c.bf16 %v688_v46, %v688_v46  ;;  %v654_v53 = vmax.f32 %v400_v47, 0.0  ;;  %v686_v54 = vmax.f32 %v528_v48, 0.0 }
  0xd3   :  { %v411_v55 = vadd.f32 %v1279_v49, %v1537_v38  ;;  %v539_v56 = vadd.f32 %v1311_v50, %v1537_v38  ;;  %v402_v57 = vpop.f32.mrf.mxu0  ;;  %v530_v58 = vpop.f32.mrf.mxu1 }
  0xd4   :  { %977 = vst.msk [vmem:[%s1862_s3 + $0x8] sm:$0xf] %vm974_vm3, %v1176_v51  ;;  %1009 = vst.msk [vmem:[%s1862_s3 + $0x88] sm:$0xf] %vm974_vm3, %v1208_v52  ;;  %v1174_v59 = vpack.c.bf16 %v654_v53, %v654_v53  ;;  %v1206_v60 = vpack.c.bf16 %v686_v54, %v686_v54  ;;  %v403_v61 = vadd.f32 %v1537_v38, %v402_v57 }
  0xd5   :  { %v531_v62 = vadd.f32 %v1537_v38, %v530_v58  ;;  %v657_v63 = vmax.f32 %v411_v55, 0.0  ;;  %v689_v0 = vmax.f32 %v539_v56, 0.0  ;;  %v1282_v1 = vpop.f32.mrf.mxu0  ;;  %v1314_v2 = vpop.f32.mrf.mxu1 }
  0xd6   :  { %975 = vst.msk [vmem:[%s1862_s3] sm:$0xf] %vm974_vm3, %v1174_v59  ;;  %1007 = vst.msk [vmem:[%s1862_s3 + $0x80] sm:$0xf] %vm974_vm3, %v1206_v60  ;;  %v655_v3 = vmax.f32 %v403_v61, 0.0  ;;  %v424_v5 = vadd.f32 %v1282_v1, %v1537_v38  ;;  %v552_v6 = vadd.f32 %v1314_v2, %v1537_v38 }
  0xd7   :  { %v687_v4 = vmax.f32 %v531_v62, 0.0  ;;  %v1177_v7 = vpack.c.bf16 %v657_v63, %v657_v63  ;;  %v1209_v8 = vpack.c.bf16 %v689_v0, %v689_v0  ;;  %v415_v9 = vpop.f32.mrf.mxu0  ;;  %v543_v10 = vpop.f32.mrf.mxu1 }
  0xd8   :  { %v1175_v11 = vpack.c.bf16 %v655_v3, %v655_v3  ;;  %v660_v13 = vmax.f32 %v424_v5, 0.0  ;;  %v692_v14 = vmax.f32 %v552_v6, 0.0  ;;  %v416_v15 = vadd.f32 %v1537_v38, %v415_v9 }
  0xd9   :  { %v1207_v12 = vpack.c.bf16 %v687_v4, %v687_v4  ;;  %978 = vst.msk [vmem:[%s1862_s3 + $0xc] sm:$0xf] %vm974_vm3, %v1177_v7  ;;  %1010 = vst.msk [vmem:[%s1862_s3 + $0x8c] sm:$0xf] %vm974_vm3, %v1209_v8  ;;  %v544_v16 = vadd.f32 %v1537_v38, %v543_v10  ;;  %v1283_v17 = vpop.f32.mrf.mxu0  ;;  %v1315_v18 = vpop.f32.mrf.mxu1 }
  0xda   :  { %976 = vst.msk [vmem:[%s1862_s3 + $0x4] sm:$0xf] %vm974_vm3, %v1175_v11  ;;  %v1180_v19 = vpack.c.bf16 %v660_v13, %v660_v13  ;;  %v1212_v20 = vpack.c.bf16 %v692_v14, %v692_v14  ;;  %v427_v21 = vadd.f32 %v1283_v17, %v1537_v38  ;;  %v555_v22 = vadd.f32 %v1315_v18, %v1537_v38 }
  0xdb   :  { %1008 = vst.msk [vmem:[%s1862_s3 + $0x84] sm:$0xf] %vm974_vm3, %v1207_v12  ;;  %v658_v23 = vmax.f32 %v416_v15, 0.0  ;;  %v690_v24 = vmax.f32 %v544_v16, 0.0  ;;  %v418_v25 = vpop.f32.mrf.mxu0  ;;  %v546_v26 = vpop.f32.mrf.mxu1 }
  0xdc   :  { %981 = vst.msk [vmem:[%s1862_s3 + $0x18] sm:$0xf] %vm974_vm3, %v1180_v19  ;;  %1013 = vst.msk [vmem:[%s1862_s3 + $0x98] sm:$0xf] %vm974_vm3, %v1212_v20  ;;  %v661_v27 = vmax.f32 %v427_v21, 0.0  ;;  %v693_v28 = vmax.f32 %v555_v22, 0.0  ;;  %v419_v29 = vadd.f32 %v1537_v38, %v418_v25  ;;  %v547_v30 = vadd.f32 %v1537_v38, %v546_v26 }
  0xdd   :  { %v1178_v31 = vpack.c.bf16 %v658_v23, %v658_v23  ;;  %v1210_v32 = vpack.c.bf16 %v690_v24, %v690_v24  ;;  %v1286_v33 = vpop.f32.mrf.mxu0  ;;  %v1318_v34 = vpop.f32.mrf.mxu1 }
  0xde   :  { %v1181_v35 = vpack.c.bf16 %v661_v27, %v661_v27  ;;  %v1213_v36 = vpack.c.bf16 %v693_v28, %v693_v28  ;;  %v659_v37 = vmax.f32 %v419_v29, 0.0  ;;  %v691_v39 = vmax.f32 %v547_v30, 0.0 }
  0xdf   :  { %979 = vst.msk [vmem:[%s1862_s3 + $0x10] sm:$0xf] %vm974_vm3, %v1178_v31  ;;  %1011 = vst.msk [vmem:[%s1862_s3 + $0x90] sm:$0xf] %vm974_vm3, %v1210_v32  ;;  %v440_v40 = vadd.f32 %v1286_v33, %v1537_v38  ;;  %v568_v41 = vadd.f32 %v1318_v34, %v1537_v38  ;;  %v431_v42 = vpop.f32.mrf.mxu0  ;;  %v559_v43 = vpop.f32.mrf.mxu1 }
  0xe0   :  { %982 = vst.msk [vmem:[%s1862_s3 + $0x1c] sm:$0xf] %vm974_vm3, %v1181_v35  ;;  %1014 = vst.msk [vmem:[%s1862_s3 + $0x9c] sm:$0xf] %vm974_vm3, %v1213_v36  ;;  %v1179_v44 = vpack.c.bf16 %v659_v37, %v659_v37  ;;  %v1211_v45 = vpack.c.bf16 %v691_v39, %v691_v39  ;;  %v432_v46 = vadd.f32 %v1537_v38, %v431_v42 }
  0xe1   :  { %v560_v47 = vadd.f32 %v1537_v38, %v559_v43  ;;  %v664_v48 = vmax.f32 %v440_v40, 0.0  ;;  %v696_v49 = vmax.f32 %v568_v41, 0.0  ;;  %v1287_v50 = vpop.f32.mrf.mxu0  ;;  %v1319_v51 = vpop.f32.mrf.mxu1 }
  0xe2   :  { %980 = vst.msk [vmem:[%s1862_s3 + $0x14] sm:$0xf] %vm974_vm3, %v1179_v44  ;;  %1012 = vst.msk [vmem:[%s1862_s3 + $0x94] sm:$0xf] %vm974_vm3, %v1211_v45  ;;  %v662_v52 = vmax.f32 %v432_v46, 0.0  ;;  %v443_v54 = vadd.f32 %v1287_v50, %v1537_v38  ;;  %v571_v55 = vadd.f32 %v1319_v51, %v1537_v38 }
  0xe3   :  { %v694_v53 = vmax.f32 %v560_v47, 0.0  ;;  %v1184_v56 = vpack.c.bf16 %v664_v48, %v664_v48  ;;  %v1216_v57 = vpack.c.bf16 %v696_v49, %v696_v49  ;;  %v434_v58 = vpop.f32.mrf.mxu0  ;;  %v562_v59 = vpop.f32.mrf.mxu1 }
  0xe4   :  { %v1182_v60 = vpack.c.bf16 %v662_v52, %v662_v52  ;;  %v665_v62 = vmax.f32 %v443_v54, 0.0  ;;  %v697_v63 = vmax.f32 %v571_v55, 0.0  ;;  %v435_v0 = vadd.f32 %v1537_v38, %v434_v58 }
  0xe5   :  { %v1214_v61 = vpack.c.bf16 %v694_v53, %v694_v53  ;;  %985 = vst.msk [vmem:[%s1862_s3 + $0x28] sm:$0xf] %vm974_vm3, %v1184_v56  ;;  %1017 = vst.msk [vmem:[%s1862_s3 + $0xa8] sm:$0xf] %vm974_vm3, %v1216_v57  ;;  %v563_v1 = vadd.f32 %v1537_v38, %v562_v59  ;;  %v1290_v2 = vpop.f32.mrf.mxu0  ;;  %v1322_v3 = vpop.f32.mrf.mxu1 }
  0xe6   :  { %983 = vst.msk [vmem:[%s1862_s3 + $0x20] sm:$0xf] %vm974_vm3, %v1182_v60  ;;  %v1185_v4 = vpack.c.bf16 %v665_v62, %v665_v62  ;;  %v1217_v5 = vpack.c.bf16 %v697_v63, %v697_v63  ;;  %v456_v6 = vadd.f32 %v1290_v2, %v1537_v38  ;;  %v584_v7 = vadd.f32 %v1322_v3, %v1537_v38 }
  0xe7   :  { %1015 = vst.msk [vmem:[%s1862_s3 + $0xa0] sm:$0xf] %vm974_vm3, %v1214_v61  ;;  %v663_v8 = vmax.f32 %v435_v0, 0.0  ;;  %v695_v9 = vmax.f32 %v563_v1, 0.0  ;;  %v447_v10 = vpop.f32.mrf.mxu0  ;;  %v575_v11 = vpop.f32.mrf.mxu1 }
  0xe8   :  { %986 = vst.msk [vmem:[%s1862_s3 + $0x2c] sm:$0xf] %vm974_vm3, %v1185_v4  ;;  %1018 = vst.msk [vmem:[%s1862_s3 + $0xac] sm:$0xf] %vm974_vm3, %v1217_v5  ;;  %v668_v12 = vmax.f32 %v456_v6, 0.0  ;;  %v700_v13 = vmax.f32 %v584_v7, 0.0  ;;  %v448_v14 = vadd.f32 %v1537_v38, %v447_v10  ;;  %v576_v15 = vadd.f32 %v1537_v38, %v575_v11 }
  0xe9   :  { %v1183_v16 = vpack.c.bf16 %v663_v8, %v663_v8  ;;  %v1215_v17 = vpack.c.bf16 %v695_v9, %v695_v9  ;;  %v1291_v18 = vpop.f32.mrf.mxu0  ;;  %v1323_v19 = vpop.f32.mrf.mxu1 }
  0xea   :  { %v1188_v20 = vpack.c.bf16 %v668_v12, %v668_v12  ;;  %v1220_v21 = vpack.c.bf16 %v700_v13, %v700_v13  ;;  %v666_v22 = vmax.f32 %v448_v14, 0.0  ;;  %v698_v23 = vmax.f32 %v576_v15, 0.0 }
  0xeb   :  { %984 = vst.msk [vmem:[%s1862_s3 + $0x24] sm:$0xf] %vm974_vm3, %v1183_v16  ;;  %1016 = vst.msk [vmem:[%s1862_s3 + $0xa4] sm:$0xf] %vm974_vm3, %v1215_v17  ;;  %v459_v24 = vadd.f32 %v1291_v18, %v1537_v38  ;;  %v587_v25 = vadd.f32 %v1323_v19, %v1537_v38  ;;  %v450_v26 = vpop.f32.mrf.mxu0  ;;  %v578_v27 = vpop.f32.mrf.mxu1 }
  0xec   :  { %989 = vst.msk [vmem:[%s1862_s3 + $0x38] sm:$0xf] %vm974_vm3, %v1188_v20  ;;  %1021 = vst.msk [vmem:[%s1862_s3 + $0xb8] sm:$0xf] %vm974_vm3, %v1220_v21  ;;  %v1186_v28 = vpack.c.bf16 %v666_v22, %v666_v22  ;;  %v1218_v29 = vpack.c.bf16 %v698_v23, %v698_v23  ;;  %v451_v30 = vadd.f32 %v1537_v38, %v450_v26 }
  0xed   :  { %v579_v31 = vadd.f32 %v1537_v38, %v578_v27  ;;  %v669_v32 = vmax.f32 %v459_v24, 0.0  ;;  %v701_v33 = vmax.f32 %v587_v25, 0.0  ;;  %v1294_v34 = vpop.f32.mrf.mxu0  ;;  %v1326_v35 = vpop.f32.mrf.mxu1 }
  0xee   :  { %987 = vst.msk [vmem:[%s1862_s3 + $0x30] sm:$0xf] %vm974_vm3, %v1186_v28  ;;  %1019 = vst.msk [vmem:[%s1862_s3 + $0xb0] sm:$0xf] %vm974_vm3, %v1218_v29  ;;  %v667_v36 = vmax.f32 %v451_v30, 0.0  ;;  %v472_v39 = vadd.f32 %v1294_v34, %v1537_v38  ;;  %v600_v40 = vadd.f32 %v1326_v35, %v1537_v38 }
  0xef   :  { %v699_v37 = vmax.f32 %v579_v31, 0.0  ;;  %v1189_v41 = vpack.c.bf16 %v669_v32, %v669_v32  ;;  %v1221_v42 = vpack.c.bf16 %v701_v33, %v701_v33  ;;  %v463_v43 = vpop.f32.mrf.mxu0  ;;  %v591_v44 = vpop.f32.mrf.mxu1 }
  0xf0   :  { %v1187_v45 = vpack.c.bf16 %v667_v36, %v667_v36  ;;  %v672_v47 = vmax.f32 %v472_v39, 0.0  ;;  %v704_v48 = vmax.f32 %v600_v40, 0.0  ;;  %v464_v49 = vadd.f32 %v1537_v38, %v463_v43 }
  0xf1   :  { %v1219_v46 = vpack.c.bf16 %v699_v37, %v699_v37  ;;  %990 = vst.msk [vmem:[%s1862_s3 + $0x3c] sm:$0xf] %vm974_vm3, %v1189_v41  ;;  %1022 = vst.msk [vmem:[%s1862_s3 + $0xbc] sm:$0xf] %vm974_vm3, %v1221_v42  ;;  %v592_v50 = vadd.f32 %v1537_v38, %v591_v44  ;;  %v1295_v51 = vpop.f32.mrf.mxu0  ;;  %v1327_v52 = vpop.f32.mrf.mxu1 }
  0xf2   :  { %988 = vst.msk [vmem:[%s1862_s3 + $0x34] sm:$0xf] %vm974_vm3, %v1187_v45  ;;  %v1192_v53 = vpack.c.bf16 %v672_v47, %v672_v47  ;;  %v1224_v54 = vpack.c.bf16 %v704_v48, %v704_v48  ;;  %v475_v55 = vadd.f32 %v1295_v51, %v1537_v38  ;;  %v603_v56 = vadd.f32 %v1327_v52, %v1537_v38 }
  0xf3   :  { %1020 = vst.msk [vmem:[%s1862_s3 + $0xb4] sm:$0xf] %vm974_vm3, %v1219_v46  ;;  %v670_v57 = vmax.f32 %v464_v49, 0.0  ;;  %v702_v58 = vmax.f32 %v592_v50, 0.0  ;;  %v466_v59 = vpop.f32.mrf.mxu0  ;;  %v594_v60 = vpop.f32.mrf.mxu1 }
  0xf4   :  { %993 = vst.msk [vmem:[%s1862_s3 + $0x48] sm:$0xf] %vm974_vm3, %v1192_v53  ;;  %1025 = vst.msk [vmem:[%s1862_s3 + $0xc8] sm:$0xf] %vm974_vm3, %v1224_v54  ;;  %v673_v61 = vmax.f32 %v475_v55, 0.0  ;;  %v705_v62 = vmax.f32 %v603_v56, 0.0  ;;  %v467_v63 = vadd.f32 %v1537_v38, %v466_v59  ;;  %v595_v0 = vadd.f32 %v1537_v38, %v594_v60 }
  0xf5   :  { %v1190_v1 = vpack.c.bf16 %v670_v57, %v670_v57  ;;  %v1222_v2 = vpack.c.bf16 %v702_v58, %v702_v58  ;;  %v1298_v3 = vpop.f32.mrf.mxu0  ;;  %v1330_v4 = vpop.f32.mrf.mxu1 }
  0xf6   :  { %v1193_v5 = vpack.c.bf16 %v673_v61, %v673_v61  ;;  %v1225_v6 = vpack.c.bf16 %v705_v62, %v705_v62  ;;  %v671_v7 = vmax.f32 %v467_v63, 0.0  ;;  %v703_v8 = vmax.f32 %v595_v0, 0.0 }
  0xf7   :  { %991 = vst.msk [vmem:[%s1862_s3 + $0x40] sm:$0xf] %vm974_vm3, %v1190_v1  ;;  %1023 = vst.msk [vmem:[%s1862_s3 + $0xc0] sm:$0xf] %vm974_vm3, %v1222_v2  ;;  %v488_v9 = vadd.f32 %v1298_v3, %v1537_v38  ;;  %v616_v10 = vadd.f32 %v1330_v4, %v1537_v38  ;;  %v479_v11 = vpop.f32.mrf.mxu0  ;;  %v607_v12 = vpop.f32.mrf.mxu1 }
  0xf8   :  { %994 = vst.msk [vmem:[%s1862_s3 + $0x4c] sm:$0xf] %vm974_vm3, %v1193_v5  ;;  %1026 = vst.msk [vmem:[%s1862_s3 + $0xcc] sm:$0xf] %vm974_vm3, %v1225_v6  ;;  %v1191_v13 = vpack.c.bf16 %v671_v7, %v671_v7  ;;  %v1223_v14 = vpack.c.bf16 %v703_v8, %v703_v8  ;;  %v480_v15 = vadd.f32 %v1537_v38, %v479_v11 }
  0xf9   :  { %v608_v16 = vadd.f32 %v1537_v38, %v607_v12  ;;  %v676_v17 = vmax.f32 %v488_v9, 0.0  ;;  %v708_v18 = vmax.f32 %v616_v10, 0.0  ;;  %v1299_v19 = vpop.f32.mrf.mxu0  ;;  %v1331_v20 = vpop.f32.mrf.mxu1 }
  0xfa   :  { %992 = vst.msk [vmem:[%s1862_s3 + $0x44] sm:$0xf] %vm974_vm3, %v1191_v13  ;;  %1024 = vst.msk [vmem:[%s1862_s3 + $0xc4] sm:$0xf] %vm974_vm3, %v1223_v14  ;;  %v674_v21 = vmax.f32 %v480_v15, 0.0  ;;  %v491_v23 = vadd.f32 %v1299_v19, %v1537_v38  ;;  %v619_v24 = vadd.f32 %v1331_v20, %v1537_v38 }
  0xfb   :  { %v706_v22 = vmax.f32 %v608_v16, 0.0  ;;  %v1196_v25 = vpack.c.bf16 %v676_v17, %v676_v17  ;;  %v1228_v26 = vpack.c.bf16 %v708_v18, %v708_v18  ;;  %v482_v27 = vpop.f32.mrf.mxu0  ;;  %v610_v28 = vpop.f32.mrf.mxu1 }
  0xfc   :  { %v1194_v29 = vpack.c.bf16 %v674_v21, %v674_v21  ;;  %v677_v31 = vmax.f32 %v491_v23, 0.0  ;;  %v709_v32 = vmax.f32 %v619_v24, 0.0  ;;  %v483_v33 = vadd.f32 %v1537_v38, %v482_v27 }
  0xfd   :  { %v1226_v30 = vpack.c.bf16 %v706_v22, %v706_v22  ;;  %997 = vst.msk [vmem:[%s1862_s3 + $0x58] sm:$0xf] %vm974_vm3, %v1196_v25  ;;  %1029 = vst.msk [vmem:[%s1862_s3 + $0xd8] sm:$0xf] %vm974_vm3, %v1228_v26  ;;  %v611_v34 = vadd.f32 %v1537_v38, %v610_v28  ;;  %v1302_v35 = vpop.f32.mrf.mxu0  ;;  %v1334_v36 = vpop.f32.mrf.mxu1 }
  0xfe   :  { %995 = vst.msk [vmem:[%s1862_s3 + $0x50] sm:$0xf] %vm974_vm3, %v1194_v29  ;;  %v1197_v37 = vpack.c.bf16 %v677_v31, %v677_v31  ;;  %v1229_v39 = vpack.c.bf16 %v709_v32, %v709_v32  ;;  %v504_v40 = vadd.f32 %v1302_v35, %v1537_v38  ;;  %v632_v41 = vadd.f32 %v1334_v36, %v1537_v38 }
  0xff   :  { %1027 = vst.msk [vmem:[%s1862_s3 + $0xd0] sm:$0xf] %vm974_vm3, %v1226_v30  ;;  %v675_v42 = vmax.f32 %v483_v33, 0.0  ;;  %v707_v43 = vmax.f32 %v611_v34, 0.0  ;;  %v495_v44 = vpop.f32.mrf.mxu0  ;;  %v623_v45 = vpop.f32.mrf.mxu1 }
 0x100   :  { %998 = vst.msk [vmem:[%s1862_s3 + $0x5c] sm:$0xf] %vm974_vm3, %v1197_v37  ;;  %1030 = vst.msk [vmem:[%s1862_s3 + $0xdc] sm:$0xf] %vm974_vm3, %v1229_v39  ;;  %v680_v46 = vmax.f32 %v504_v40, 0.0  ;;  %v712_v47 = vmax.f32 %v632_v41, 0.0  ;;  %v496_v48 = vadd.f32 %v1537_v38, %v495_v44  ;;  %v624_v49 = vadd.f32 %v1537_v38, %v623_v45 }
 0x101   :  { %v1195_v50 = vpack.c.bf16 %v675_v42, %v675_v42  ;;  %v1227_v51 = vpack.c.bf16 %v707_v43, %v707_v43  ;;  %v1303_v52 = vpop.f32.mrf.mxu0  ;;  %v1335_v53 = vpop.f32.mrf.mxu1 }
 0x102   :  { %v1200_v54 = vpack.c.bf16 %v680_v46, %v680_v46  ;;  %v1232_v55 = vpack.c.bf16 %v712_v47, %v712_v47  ;;  %v678_v56 = vmax.f32 %v496_v48, 0.0  ;;  %v710_v57 = vmax.f32 %v624_v49, 0.0 }
 0x103   :  { %996 = vst.msk [vmem:[%s1862_s3 + $0x54] sm:$0xf] %vm974_vm3, %v1195_v50  ;;  %1028 = vst.msk [vmem:[%s1862_s3 + $0xd4] sm:$0xf] %vm974_vm3, %v1227_v51  ;;  %v507_v58 = vadd.f32 %v1303_v52, %v1537_v38  ;;  %v635_v59 = vadd.f32 %v1335_v53, %v1537_v38  ;;  %v498_v60 = vpop.f32.mrf.mxu0  ;;  %v626_v61 = vpop.f32.mrf.mxu1 }
 0x104   :  { %1001 = vst.msk [vmem:[%s1862_s3 + $0x68] sm:$0xf] %vm974_vm3, %v1200_v54  ;;  %1033 = vst.msk [vmem:[%s1862_s3 + $0xe8] sm:$0xf] %vm974_vm3, %v1232_v55  ;;  %v1198_v62 = vpack.c.bf16 %v678_v56, %v678_v56  ;;  %v1230_v63 = vpack.c.bf16 %v710_v57, %v710_v57  ;;  %v499_v0 = vadd.f32 %v1537_v38, %v498_v60 }
 0x105   :  { %v627_v1 = vadd.f32 %v1537_v38, %v626_v61  ;;  %v681_v2 = vmax.f32 %v507_v58, 0.0  ;;  %v713_v3 = vmax.f32 %v635_v59, 0.0  ;;  %v1306_v4 = vpop.f32.mrf.mxu0  ;;  %v1338_v5 = vpop.f32.mrf.mxu1 }
 0x106   :  { %999 = vst.msk [vmem:[%s1862_s3 + $0x60] sm:$0xf] %vm974_vm3, %v1198_v62  ;;  %1031 = vst.msk [vmem:[%s1862_s3 + $0xe0] sm:$0xf] %vm974_vm3, %v1230_v63  ;;  %v679_v6 = vmax.f32 %v499_v0, 0.0  ;;  %v520_v8 = vadd.f32 %v1306_v4, %v1537_v38  ;;  %v648_v9 = vadd.f32 %v1338_v5, %v1537_v38 }
 0x107   :  { %v711_v7 = vmax.f32 %v627_v1, 0.0  ;;  %v1201_v10 = vpack.c.bf16 %v681_v2, %v681_v2  ;;  %v1233_v11 = vpack.c.bf16 %v713_v3, %v713_v3  ;;  %v511_v12 = vpop.f32.mrf.mxu0  ;;  %v639_v13 = vpop.f32.mrf.mxu1 }
 0x108   :  { %v1199_v14 = vpack.c.bf16 %v679_v6, %v679_v6  ;;  %v684_v16 = vmax.f32 %v520_v8, 0.0  ;;  %v716_v17 = vmax.f32 %v648_v9, 0.0  ;;  %v512_v18 = vadd.f32 %v1537_v38, %v511_v12 }
 0x109   :  { %v1231_v15 = vpack.c.bf16 %v711_v7, %v711_v7  ;;  %1002 = vst.msk [vmem:[%s1862_s3 + $0x6c] sm:$0xf] %vm974_vm3, %v1201_v10  ;;  %1034 = vst.msk [vmem:[%s1862_s3 + $0xec] sm:$0xf] %vm974_vm3, %v1233_v11  ;;  %v640_v19 = vadd.f32 %v1537_v38, %v639_v13  ;;  %v1307_v20 = vpop.f32.mrf.mxu0  ;;  %v1339_v21 = vpop.f32.mrf.mxu1 }
 0x10a   :  { %1000 = vst.msk [vmem:[%s1862_s3 + $0x64] sm:$0xf] %vm974_vm3, %v1199_v14  ;;  %v1204_v22 = vpack.c.bf16 %v684_v16, %v684_v16  ;;  %v1236_v23 = vpack.c.bf16 %v716_v17, %v716_v17  ;;  %v523_v24 = vadd.f32 %v1307_v20, %v1537_v38  ;;  %v651_v25 = vadd.f32 %v1339_v21, %v1537_v38 }
 0x10b   :  { %1032 = vst.msk [vmem:[%s1862_s3 + $0xe4] sm:$0xf] %vm974_vm3, %v1231_v15  ;;  %v682_v26 = vmax.f32 %v512_v18, 0.0  ;;  %v714_v27 = vmax.f32 %v640_v19, 0.0  ;;  %v514_v28 = vpop.f32.mrf.mxu0  ;;  %v642_v29 = vpop.f32.mrf.mxu1 }
 0x10c   :  { %1005 = vst.msk [vmem:[%s1862_s3 + $0x78] sm:$0xf] %vm974_vm3, %v1204_v22  ;;  %1037 = vst.msk [vmem:[%s1862_s3 + $0xf8] sm:$0xf] %vm974_vm3, %v1236_v23  ;;  %v685_v30 = vmax.f32 %v523_v24, 0.0  ;;  %v717_v31 = vmax.f32 %v651_v25, 0.0  ;;  %v515_v32 = vadd.f32 %v1537_v38, %v514_v28  ;;  %v643_v33 = vadd.f32 %v1537_v38, %v642_v29 }
 0x10d   :  { %v1202_v34 = vpack.c.bf16 %v682_v26, %v682_v26  ;;  %v1234_v35 = vpack.c.bf16 %v714_v27, %v714_v27 }
 0x10e   :  { %v1205_v36 = vpack.c.bf16 %v685_v30, %v685_v30  ;;  %v1237_v37 = vpack.c.bf16 %v717_v31, %v717_v31  ;;  %v683_v39 = vmax.f32 %v515_v32, 0.0  ;;  %v715_v40 = vmax.f32 %v643_v33, 0.0 }
 0x10f   :  { %1003 = vst.msk [vmem:[%s1862_s3 + $0x70] sm:$0xf] %vm974_vm3, %v1202_v34  ;;  %1035 = vst.msk [vmem:[%s1862_s3 + $0xf0] sm:$0xf] %vm974_vm3, %v1234_v35 }
 0x110   :  { %1006 = vst.msk [vmem:[%s1862_s3 + $0x7c] sm:$0xf] %vm974_vm3, %v1205_v36  ;;  %1038 = vst.msk [vmem:[%s1862_s3 + $0xfc] sm:$0xf] %vm974_vm3, %v1237_v37  ;;  %v1203_v38 = vpack.c.bf16 %v683_v39, %v683_v39  ;;  %v1235_v41 = vpack.c.bf16 %v715_v40, %v715_v40 }
 0x112   :  { %1004 = vst.msk [vmem:[%s1862_s3 + $0x74] sm:$0xf] %vm974_vm3, %v1203_v38  ;;  %1036 = vst.msk [vmem:[%s1862_s3 + $0xf4] sm:$0xf] %vm974_vm3, %v1235_v41 }

// kernel: forward.7
= control target key start
LH: loop header
LB: loop body
LE: loop exit
PB: predicated region body
PF: predicated region fallthrough
CT: control target
= control target key end

     0   :  { %s4056_s12 = smov 0   ;;  %s5545_s0 = inlined_call_operand.vmem [shape: bf16[2,18,18,64], index: 0, kind: input, shape index: {}]   ;;  %s5546_s1 = inlined_call_operand.vmem [shape: bf16[9,64,64], index: 1, kind: input, shape index: {}]   ;;  %s5547_s2 = inlined_call_operand.vmem [shape: f32[1,64], index: 2, kind: input, shape index: {}]   ;;  %s5548_s3 = inlined_call_operand.vmem [shape: bf16[2,16,16,64], index: 3, kind: output, shape index: {}]  }
   0x1 LB: > { %s3061_s13 = sadd.s32 4294967295, %s4034_s12   ;;  %p3065_p0 = scmp.ge.s32.totalorder %s4034_s12, 1  ;;  %s4034_s12 = sphi %s4056_s12, %s13_s12  }
   0x2   : > { %p137_p1 = scmp.lt.s32.totalorder %s4034_s12, 3 }
   0x4   : > { %p138_p2 = pnand %p3065_p0, %p137_p1 }
   0x6   : > { %141 = sbr.rel (%p138_p2) target bundleno = 525 (0x20d), region = 32 }
   0xb   : > { %v3956_v0 = vld [vmem:[%s5546_s1 + $0x38] sm:$0xff]   ;;  %p161_p3 = scmp.lt.s32.totalorder %s3061_s13, 1  ;;  %v3957_v1 = vld [vmem:[%s5546_s1 + $0x30] sm:$0xff]   ;;  %v3958_v2 = vld [vmem:[%s5546_s1 + $0x28] sm:$0xff]   ;;  %vm352_vm0 = vcmask 1046528   ;;  %vm514_vm1 = vcmask 523264  }
   0xc   : > { %3579 = vmatprep.subr.bf16.mxu0 %v3956_v0  ;;  %3939 = vmatprep.subr.bf16.mxu1 %v3956_v0  ;;  %v3959_v6 = vld [vmem:[%s5546_s1 + $0x20] sm:$0xff]   ;;  %v4124_v29 = vld [vmem:[%s5546_s1 + $0x18] sm:$0xff]   ;;  %v3964_v57 = vld [vmem:[%s5546_s1 + $0x50] sm:$0xff]   ;;  %vm957_vm2 = vcmask 1045504   ;;  %vm2973_vm3 = vcmask 519168  }
   0xd   : > { %s5745_s13 = smov (!%p161_p3, %s3061_s13), 1  ;;  %3580 = vmatpush3.bf16.msra.mxu0 %v3956_v0  ;;  %3943 = vmatpush3.bf16.msra.mxu1 %v3956_v0  ;;  %v3962_v30 = vld [vmem:[%s5546_s1 + $0x58] sm:$0xff]  }
   0xe   : > { %3581 = vmatprep.subr.bf16.mxu0 %v3957_v1  ;;  %3940 = vmatprep.subr.bf16.mxu1 %v3957_v1  ;;  %s3947_s20 = smul.u32 216, %s5745_s13  ;;  %s3366_s18 = sshll.u32 %s5745_s13, 7 }
  0x10   : > { %s4079_s23 = scalar_lea.vmem %s5545_s0, %s3947_s20  ;;  %s5372_s20 = scalar_lea.vmem %s5548_s3, %s3366_s18 }
  0x11   : > { %3582 = vmatpush3.bf16.msra.mxu0 %v3957_v1  ;;  %3944 = vmatpush3.bf16.msra.mxu1 %v3957_v1  ;;  %v4082_v3 = vld [vmem:[%s4079_s23] sm:$0xff]   ;;  %v174_v4 = vld [vmem:[%s4079_s23 + $0x8] sm:$0x1]  ;;  %v4098_v12 = vld [vmem:[%s4079_s23 + $0xc] sm:$0xff]  }
  0x12   : > { %v4086_v5 = vld [vmem:[%s4079_s23 + $0x60] sm:$0xff]   ;;  %3583 = vmatprep.subr.bf16.mxu0 %v3958_v2  ;;  %3941 = vmatprep.subr.bf16.mxu1 %v3958_v2  ;;  %v226_v7 = vunpack.c.l.bf16 %v4082_v3  ;;  %v227_v8 = vunpack.c.h.bf16 %v4082_v3  ;;  %v228_v9 = vunpack.c.l.bf16 %v174_v4  ;;  %v4094_v10 = vld [vmem:[%s4079_s23 + $0x68] sm:$0x1]  ;;  %v4103_v15 = vld [vmem:[%s4079_s23 + $0x14] sm:$0x1]  ;;  %v229_v16 = vunpack.c.l.bf16 %v4098_v12 }
  0x13   : > { %v5563_v11 = vunpack.c.l.bf16 %v4086_v5  ;;  %v5562_v13 = vunpack.c.h.bf16 %v4086_v5  ;;  %v5558_v14 = vunpack.c.l.bf16 %v4094_v10  ;;  %v230_v20 = vunpack.c.h.bf16 %v4098_v12  ;;  %v4119_v28 = vld [vmem:[%s4079_s23 + $0x6c] sm:$0xff]   ;;  %v4133_v35 = vld [vmem:[%s4079_s23 + $0x74] sm:$0x1]  ;;  %v4141_v40 = vld [vmem:[%s4079_s23 + $0x18] sm:$0xff]  }
  0x14   : > { %v353_v17 = vrot.slane %v226_v7, 1  ;;  %v354_v18 = vrot.slane %v227_v8, 1  ;;  %v356_v19 = vrot.slane %v228_v9, 1  ;;  %v4107_v21 = vrot.slane %v226_v7, 2  ;;  %v4151_v45 = vld [vmem:[%s4079_s23 + $0x20] sm:$0x1] }
  0x15   : > { %3584 = vmatpush3.bf16.msra.mxu0 %v3958_v2  ;;  %3945 = vmatpush3.bf16.msra.mxu1 %v3958_v2  ;;  %v393_v22 = vrot.slane %v5563_v11, 1  ;;  %v394_v23 = vrot.slane %v5562_v13, 1  ;;  %v396_v26 = vrot.slane %v5558_v14, 1  ;;  %v5583_v27 = vunpack.c.l.bf16 %v4103_v15  ;;  %v4154_v46 = vld [vmem:[%s4079_s23 + $0x78] sm:$0xff]   ;;  %v4163_v51 = vld [vmem:[%s4079_s23 + $0x80] sm:$0x1] }
  0x16   : > { %3585 = vmatprep.subr.bf16.mxu0 %v3959_v6  ;;  %3942 = vmatprep.subr.bf16.mxu1 %v3959_v6  ;;  %v355_v24 = vsel %vm352_vm0, %v353_v17, %v354_v18  ;;  %v357_v25 = vsel %vm352_vm0, %v354_v18, %v356_v19  ;;  %v4129_v32 = vrot.slane %v227_v8, 2  ;;  %v358_v34 = vrot.slane %v229_v16, 1  ;;  %v4174_v56 = vld [vmem:[%s4079_s23 + $0x24] sm:$0xff]   ;;  %v4194_v2 = vld [vmem:[%s4079_s23 + $0x2c] sm:$0x1] }
  0x17   : > { %v465_v31 = vpack.c.bf16 %v357_v25, %v355_v24  ;;  %v395_v33 = vsel %vm352_vm0, %v393_v22, %v394_v23  ;;  %v4135_v36 = vrot.slane %v228_v9, 2  ;;  %v397_v37 = vsel %vm352_vm0, %v394_v23, %v396_v26  ;;  %v4203_v9 = vld [vmem:[%s4079_s23 + $0x84] sm:$0xff]   ;;  %v3963_v22 = vld [vmem:[%s5546_s1 + $0x10] sm:$0xff]  }
  0x18   : > { %v359_v38 = vrot.slane %v230_v20, 1  ;;  %v361_v39 = vrot.slane %v5583_v27, 1  ;;  %v4143_v41 = vpack.c.bf16 %v397_v37, %v395_v33  ;;  %v4145_v42 = vrot.slane %v229_v16, 2  ;;  %v4219_v23 = vld [vmem:[%s4079_s23 + $0x30] sm:$0xff]   ;;  %v3966_v33 = vld [vmem:[%s5546_s1 + $0x48] sm:$0xff]  }
  0x19   : > { %3586 = vmatpush3.bf16.msra.mxu0 %v3959_v6  ;;  %3946 = vmatpush3.bf16.msra.mxu1 %v3959_v6  ;;  %v4147_v43 = vrot.slane %v230_v20, 2  ;;  %v5557_v44 = vunpack.c.l.bf16 %v4119_v28  ;;  %v5556_v49 = vunpack.c.h.bf16 %v4119_v28  ;;  %v5555_v50 = vunpack.c.l.bf16 %v4133_v35  ;;  %v4213_v20 = vld [vmem:[%s4079_s23 + $0x8c] sm:$0x1] }
  0x1a   : > { %3587 = vmatprep.mubr.msk.bf16.mxu0 %vm514_vm1, %v465_v31  ;;  %v360_v47 = vsel %vm352_vm0, %v358_v34, %v359_v38  ;;  %v362_v48 = vsel %vm352_vm0, %v359_v38, %v361_v39  ;;  %3619 = vmatprep.subr.bf16.mxu1 %v4124_v29  ;;  %v5578_v54 = vunpack.c.l.bf16 %v4141_v40  ;;  %v5577_v55 = vunpack.c.h.bf16 %v4141_v40  ;;  %v4226_v31 = vld [vmem:[%s4079_s23 + $0x38] sm:$0x1] }
  0x1b   : > { %3603 = vmatprep.mubr.msk.bf16.mxu1 %vm514_vm1, %v4143_v41  ;;  %v4167_v52 = vpack.c.bf16 %v362_v48, %v360_v47  ;;  %v398_v53 = vrot.slane %v5557_v44, 1  ;;  %3659 = vmatprep.subr.bf16.mxu0 %v3962_v30  ;;  %v399_v58 = vrot.slane %v5556_v49, 1  ;;  %v401_v59 = vrot.slane %v5555_v50, 1  ;;  %v4239_v47 = vld [vmem:[%s4079_s23 + $0x90] sm:$0xff]   ;;  %v3967_v49 = vld [vmem:[%s5546_s1] sm:$0xff]  }
  0x1c   : > { %v5576_v60 = vunpack.c.l.bf16 %v4151_v45  ;;  %v5551_v61 = vunpack.c.l.bf16 %v4154_v46  ;;  %v363_v62 = vrot.slane %v5578_v54, 1  ;;  %v364_v63 = vrot.slane %v5577_v55, 1 }
  0x1d   : > { %3588 = vmatmul.mubr.msk.bf16.vlgmr.msra.gmra.mxu0 %vm514_vm1, %v4167_v52  ;;  %v5550_v0 = vunpack.c.h.bf16 %v4154_v46  ;;  %v5549_v1 = vunpack.c.l.bf16 %v4163_v51  ;;  %v400_v4 = vsel %vm352_vm0, %v398_v53, %v399_v58  ;;  %v402_v6 = vsel %vm352_vm0, %v399_v58, %v401_v59 }
  0x1e   : > { %3660 = vmatpush3.bf16.msra.mxu0 %v3962_v30  ;;  %v366_v7 = vrot.slane %v5576_v60, 1  ;;  %v403_v8 = vrot.slane %v5551_v61, 1  ;;  %v4205_v16 = vpack.c.bf16 %v402_v6, %v400_v4  ;;  %v365_v17 = vsel %vm352_vm0, %v363_v62, %v364_v63  ;;  %v4251_v62 = vld [vmem:[%s4079_s23 + $0x98] sm:$0x1] }
  0x1f   : > { %v404_v18 = vrot.slane %v5550_v0, 1  ;;  %v406_v19 = vrot.slane %v5549_v1, 1  ;;  %3661 = vmatprep.subr.bf16.mxu0 %v3964_v57  ;;  %v5575_v25 = vunpack.c.l.bf16 %v4174_v56  ;;  %v5574_v26 = vunpack.c.h.bf16 %v4174_v56  ;;  %v4287_v1 = vld [vmem:[%s4079_s23 + $0x9c] sm:$0xff]  }
  0x20   : > { %v367_v24 = vsel %vm352_vm0, %v364_v63, %v366_v7  ;;  %v5572_v30 = vunpack.c.l.bf16 %v4194_v2  ;;  %3604 = vmatmul.mubr.msk.bf16.vlgmr.msra.gmra.mxu1 %vm514_vm1, %v4205_v16  ;;  %v5554_v39 = vunpack.c.l.bf16 %v4203_v9  ;;  %v4254_v63 = vld [vmem:[%s4079_s23 + $0x3c] sm:$0xff]   ;;  %v5553_v4 = vunpack.c.l.bf16 %v4213_v20 }
  0x21   : > { %v4233_v34 = vpack.c.bf16 %v367_v24, %v365_v17  ;;  %v405_v37 = vsel %vm352_vm0, %v403_v8, %v404_v18  ;;  %v407_v38 = vsel %vm352_vm0, %v404_v18, %v406_v19  ;;  %3620 = vmatpush3.bf16.msra.mxu1 %v4124_v29  ;;  %v368_v53 = vrot.slane %v5575_v25, 1  ;;  %v3968_v24 = vld [vmem:[%s5546_s1 + $0x40] sm:$0xff]  }
  0x22   : > { %v4242_v48 = vpack.c.bf16 %v407_v38, %v405_v37  ;;  %v369_v58 = vrot.slane %v5574_v26, 1  ;;  %v371_v59 = vrot.slane %v5572_v30, 1  ;;  %3662 = vmatpush3.bf16.msra.mxu0 %v3964_v57  ;;  %v5552_v29 = vunpack.c.h.bf16 %v4203_v9  ;;  %3621 = vmatprep.subr.bf16.mxu1 %v3963_v22  ;;  %v3965_v57 = vld [vmem:[%s5546_s1 + $0x8] sm:$0xff]  }
  0x23   : > { %3591 = vmatprep.mubr.msk.bf16.mxu0 %vm514_vm1, %v4233_v34  ;;  %v408_v6 = vrot.slane %v5554_v39, 1  ;;  %v5571_v7 = vunpack.c.l.bf16 %v4219_v23  ;;  %v5566_v18 = vunpack.c.h.bf16 %v4219_v23  ;;  %v5564_v19 = vunpack.c.l.bf16 %v4226_v31  ;;  %3663 = vmatprep.subr.bf16.mxu0 %v3966_v33 }
  0x24   : > { %3607 = vmatprep.mubr.msk.bf16.mxu1 %vm514_vm1, %v4242_v48  ;;  %v370_v8 = vsel %vm352_vm0, %v368_v53, %v369_v58  ;;  %v372_v17 = vsel %vm352_vm0, %v369_v58, %v371_v59  ;;  %v409_v38 = vrot.slane %v5552_v29, 1  ;;  %v411_v53 = vrot.slane %v5553_v4, 1  ;;  %v4284_v59 = vld [vmem:[%s4079_s23 + $0x44] sm:$0x1] }
  0x25   : > { %v4275_v37 = vpack.c.bf16 %v372_v17, %v370_v8  ;;  %v373_v58 = vrot.slane %v5571_v7, 1  ;;  %3622 = vmatpush3.bf16.msra.mxu1 %v3963_v22  ;;  %v374_v0 = vrot.slane %v5566_v18, 1  ;;  %v376_v8 = vrot.slane %v5564_v19, 1  ;;  %v4296_v29 = vld [vmem:[%s4079_s23 + $0xa4] sm:$0x1] }
  0x26   : > { %v5560_v17 = vunpack.c.l.bf16 %v4239_v47  ;;  %v5559_v61 = vunpack.c.h.bf16 %v4239_v47  ;;  %3664 = vmatpush3.bf16.msra.mxu0 %v3966_v33  ;;  %v410_v4 = vsel %vm352_vm0, %v408_v6, %v409_v38  ;;  %v412_v22 = vsel %vm352_vm0, %v409_v38, %v411_v53  ;;  %3623 = vmatprep.subr.bf16.mxu1 %v3965_v57  ;;  %v4316_v38 = vld [vmem:[%s5546_s1 + $0x98] sm:$0xff]   ;;  %v4349_v18 = vld [vmem:[%s4079_s23 + $0xb0] sm:$0x1] }
  0x27   : > { %3592 = vmatmul.mubr.msk.bf16.gmra.mxu0 %vm514_vm1, %v4275_v37  ;;  %v5561_v39 = vunpack.c.l.bf16 %v4251_v62  ;;  %v5565_v50 = vunpack.c.l.bf16 %v4254_v63  ;;  %v4307_v44 = vpack.c.bf16 %v412_v22, %v410_v4  ;;  %v375_v33 = vsel %vm352_vm0, %v373_v58, %v374_v0  ;;  %3665 = vmatprep.subr.bf16.mxu0 %v3968_v24  ;;  %v4326_v58 = vld [vmem:[%s4079_s23 + $0x50] sm:$0x1] }
  0x28   : > { %v377_v14 = vsel %vm352_vm0, %v374_v0, %v376_v8  ;;  %v413_v6 = vrot.slane %v5560_v17, 1  ;;  %v414_v4 = vrot.slane %v5559_v61, 1  ;;  %v5569_v0 = vunpack.c.h.bf16 %v4254_v63  ;;  %v4336_v17 = vld [vmem:[%s4079_s23 + $0x48] sm:$0xff]  }
  0x29   : > { %v4318_v53 = vpack.c.bf16 %v377_v14, %v375_v33  ;;  %v416_v22 = vrot.slane %v5561_v39, 1  ;;  %3608 = vmatmul.mubr.msk.bf16.gmra.mxu1 %vm514_vm1, %v4307_v44  ;;  %v5567_v8 = vunpack.c.l.bf16 %v4284_v59  ;;  %v378_v14 = vrot.slane %v5565_v50, 1  ;;  %v4346_v50 = vld [vmem:[%s4079_s23 + $0xa8] sm:$0xff]  }
  0x2a   : > { %v5568_v33 = vunpack.c.l.bf16 %v4287_v1  ;;  %v5570_v61 = vunpack.c.h.bf16 %v4287_v1  ;;  %3666 = vmatpush3.bf16.msra.mxu0 %v3968_v24  ;;  %v415_v39 = vsel %vm352_vm0, %v413_v6, %v414_v4  ;;  %v379_v11 = vrot.slane %v5569_v0, 1  ;;  %3624 = vmatpush3.bf16.msra.mxu1 %v3965_v57  ;;  %v4362_v57 = vld [vmem:[%s5546_s1 + $0x78] sm:$0xff]  }
  0x2b   : > { %3595 = vmatprep.mubr.msk.bf16.mxu0 %vm514_vm1, %v4318_v53  ;;  %v417_v13 = vsel %vm352_vm0, %v414_v4, %v416_v22  ;;  %v5573_v19 = vunpack.c.l.bf16 %v4296_v29  ;;  %v381_v6 = vrot.slane %v5567_v8, 1  ;;  %3625 = vmatprep.subr.bf16.mxu1 %v3967_v49  ;;  %v5582_v8 = vunpack.c.l.bf16 %v4336_v17  ;;  %v4371_v0 = vld [vmem:[%s4079_s23 + $0x54] sm:$0xff]  }
  0x2c   : > { %v4351_v24 = vpack.c.bf16 %v417_v13, %v415_v39  ;;  %v418_v4 = vrot.slane %v5568_v33, 1  ;;  %v419_v22 = vrot.slane %v5570_v61, 1  ;;  %3739 = vmatprep.subr.bf16.mxu0 %v4316_v38  ;;  %v380_v13 = vsel %vm352_vm0, %v378_v14, %v379_v11  ;;  %v4374_v61 = vld [vmem:[%s4079_s23 + $0x5c] sm:$0x1] }
  0x2d   : > { %v421_v39 = vrot.slane %v5573_v19, 1  ;;  %v5580_v33 = vunpack.c.h.bf16 %v4336_v17  ;;  %v382_v7 = vsel %vm352_vm0, %v379_v11, %v381_v6  ;;  %v5579_v14 = vunpack.c.l.bf16 %v4326_v58 }
  0x2e   : > { %3611 = vmatprep.mubr.msk.bf16.mxu1 %vm514_vm1, %v4351_v24  ;;  %v420_v30 = vsel %vm352_vm0, %v418_v4, %v419_v22  ;;  %v5581_v19 = vunpack.c.l.bf16 %v4346_v50  ;;  %v4382_v26 = vpack.c.bf16 %v382_v7, %v380_v13  ;;  %v383_v60 = vrot.slane %v5582_v8, 1  ;;  %3626 = vmatpush3.bf16.msra.mxu1 %v3967_v49  ;;  %v4396_v4 = vld [vmem:[%s4079_s23 + $0xb4] sm:$0xff]  }
  0x2f   : > { %v422_v25 = vsel %vm352_vm0, %v419_v22, %v421_v39  ;;  %v384_v55 = vrot.slane %v5580_v33, 1  ;;  %v386_v11 = vrot.slane %v5579_v14, 1  ;;  %v5584_v6 = vunpack.c.h.bf16 %v4346_v50  ;;  %3699 = vmatprep.subr.bf16.mxu1 %v4362_v57  ;;  %v4415_v33 = vld [vmem:[%s4079_s23 + $0xbc] sm:$0x1] }
  0x30   : > { %v4389_v54 = vpack.c.bf16 %v422_v25, %v420_v30  ;;  %v5585_v7 = vunpack.c.l.bf16 %v4349_v18  ;;  %3596 = vmatmul.mubr.msk.bf16.gmra.mxu0 %vm514_vm1, %v4382_v26  ;;  %v423_v49 = vrot.slane %v5581_v19, 1  ;;  %v5589_v25 = vunpack.c.l.bf16 %v4371_v0 }
  0x31   : > { %v385_v22 = vsel %vm352_vm0, %v383_v60, %v384_v55  ;;  %v5588_v30 = vunpack.c.h.bf16 %v4371_v0  ;;  %v387_v13 = vsel %vm352_vm0, %v384_v55, %v386_v11  ;;  %v424_v39 = vrot.slane %v5584_v6, 1 }
  0x32   : > { %5595 = vst [vmem:[#allocation2_spill] sm:$0xff] %v4389_v54  ;;  %3612 = vmatmul.mubr.msk.bf16.gmra.mxu1 %vm514_vm1, %v4389_v54  ;;  %v426_v14 = vrot.slane %v5585_v7, 1  ;;  %v5590_v60 = vunpack.c.l.bf16 %v4374_v61  ;;  %v4417_v19 = vpack.c.bf16 %v387_v13, %v385_v22  ;;  %v388_v8 = vrot.slane %v5589_v25, 1 }
  0x33   : > { %v389_v27 = vrot.slane %v5588_v30, 1  ;;  %v5592_v55 = vunpack.c.l.bf16 %v4396_v4  ;;  %v425_v11 = vsel %vm352_vm0, %v423_v49, %v424_v39  ;;  %v5591_v54 = vunpack.c.h.bf16 %v4396_v4 }
  0x34   : > { %v427_v6 = vsel %vm352_vm0, %v424_v39, %v426_v14  ;;  %v391_v7 = vrot.slane %v5590_v60, 1  ;;  %3599 = vmatprep.mubr.msk.bf16.mxu0 %vm514_vm1, %v4417_v19  ;;  %v5593_v30 = vunpack.c.l.bf16 %v4415_v33  ;;  %v5596_v49 = vunpack.c.l.bf16 %v4103_v15 }
  0x35   : > { %v4431_v22 = vpack.c.bf16 %v427_v6, %v425_v11  ;;  %v390_v13 = vsel %vm352_vm0, %v388_v8, %v389_v27  ;;  %v428_v25 = vrot.slane %v5592_v55, 1  ;;  %v429_v60 = vrot.slane %v5591_v54, 1 }
  0x36   : > { %v966_v14 = vrot.slane %v5596_v49, 2  ;;  %v392_v39 = vsel %vm352_vm0, %v389_v27, %v391_v7  ;;  %v960_v6 = vsel %vm957_vm2, %v4107_v21, %v4129_v32  ;;  %v431_v11 = vrot.slane %v5593_v30, 1 }
  0x37   : > { %3615 = vmatprep.mubr.msk.bf16.mxu1 %vm514_vm1, %v4431_v22  ;;  %v4447_v8 = vpack.c.bf16 %v392_v39, %v390_v13  ;;  %v962_v15 = vsel %vm957_vm2, %v4129_v32, %v4135_v36  ;;  %v430_v27 = vsel %vm352_vm0, %v428_v25, %v429_v60  ;;  %v5597_v49 = vunpack.c.l.bf16 %v4141_v40 }
  0x38   : > { %v1070_v7 = vpack.c.bf16 %v962_v15, %v960_v6  ;;  %v432_v21 = vsel %vm352_vm0, %v429_v60, %v431_v11  ;;  %v5598_v13 = vunpack.c.h.bf16 %v4141_v40  ;;  %v965_v32 = vsel %vm957_vm2, %v4145_v42, %v4147_v43 }
  0x39   : > { %3600 = vmatmul.mubr.msk.bf16.gmra.mxu0 %vm514_vm1, %v4447_v8  ;;  %v968_v54 = vrot.slane %v5597_v49, 2  ;;  %v4462_v55 = vpack.c.bf16 %v432_v21, %v430_v27  ;;  %v967_v36 = vsel %vm957_vm2, %v4147_v43, %v966_v14  ;;  %v5599_v25 = vunpack.c.l.bf16 %v4151_v45 }
  0x3a   : > { %v969_v39 = vrot.slane %v5598_v13, 2  ;;  %3667 = vmatprep.mubr.msk.bf16.mxu0 %vm514_vm1, %v1070_v7  ;;  %v5600_v15 = vunpack.c.l.bf16 %v4174_v56  ;;  %v5601_v7 = vunpack.c.h.bf16 %v4174_v56  ;;  %v5602_v42 = vunpack.c.l.bf16 %v4194_v2  ;;  %v3977_v2 = vld [vmem:[%s5546_s1 + $0x90] sm:$0xff]  }
  0x3b   : > { %v971_v60 = vrot.slane %v5599_v25, 2  ;;  %3616 = vmatmul.mubr.msk.bf16.gmra.mxu1 %vm514_vm1, %v4462_v55  ;;  %v4484_v43 = vpack.c.bf16 %v967_v36, %v965_v32  ;;  %v5603_v45 = vunpack.c.l.bf16 %v4219_v23  ;;  %v5604_v14 = vunpack.c.h.bf16 %v4219_v23 }
  0x3c   : > { %v970_v6 = vsel %vm957_vm2, %v968_v54, %v969_v39  ;;  %v973_v27 = vrot.slane %v5600_v15, 2  ;;  %v974_v21 = vrot.slane %v5601_v7, 2  ;;  %v976_v49 = vrot.slane %v5602_v42, 2  ;;  %3627 = vmatprep.mubr.msk.bf16.mxu1 %vm514_vm1, %v4082_v3 }
  0x3d   : > { %v972_v11 = vsel %vm957_vm2, %v969_v39, %v971_v60  ;;  %v978_v54 = vrot.slane %v5603_v45, 2  ;;  %v979_v13 = vrot.slane %v5604_v14, 2  ;;  %v5605_v39 = vunpack.c.l.bf16 %v4226_v31  ;;  %v3976_v31 = vld [vmem:[%s5546_s1 + $0x70] sm:$0xff]  }
  0x3e   : > { %v4492_v60 = vpack.c.bf16 %v972_v11, %v970_v6  ;;  %v975_v15 = vsel %vm957_vm2, %v973_v27, %v974_v21  ;;  %v977_v3 = vsel %vm957_vm2, %v974_v21, %v976_v49  ;;  %v5606_v11 = vunpack.c.l.bf16 %v4254_v63 }
  0x3f   : > { %v981_v25 = vrot.slane %v5605_v39, 2  ;;  %v980_v32 = vsel %vm957_vm2, %v978_v54, %v979_v13  ;;  %v4509_v6 = vpack.c.bf16 %v977_v3, %v975_v15  ;;  %v5607_v7 = vunpack.c.l.bf16 %v4086_v5 }
  0x40   : > { %v983_v27 = vrot.slane %v5606_v11, 2  ;;  %v5608_v49 = vunpack.c.h.bf16 %v4254_v63  ;;  %v5609_v54 = vunpack.c.h.bf16 %v4086_v5  ;;  %v5612_v3 = vunpack.c.l.bf16 %v4119_v28 }
  0x41   : > { %3668 = vmatmul.mubr.msk.bf16.vlgmr.msra.gmra.mxu0 %vm514_vm1, %v4484_v43  ;;  %v982_v36 = vsel %vm957_vm2, %v979_v13, %v981_v25  ;;  %v998_v21 = vrot.slane %v5607_v7, 2  ;;  %v5610_v13 = vunpack.c.l.bf16 %v4094_v10  ;;  %v5611_v25 = vunpack.c.l.bf16 %v4284_v59 }
  0x42   : > { %3740 = vmatpush3.bf16.msra.mxu0 %v4316_v38  ;;  %3671 = vmatprep.mubr.msk.bf16.mxu0 %vm514_vm1, %v4492_v60  ;;  %v3983_v38 = vld [vmem:[%s5546_s1 + $0x88] sm:$0xff]   ;;  %v4520_v42 = vpack.c.bf16 %v982_v36, %v980_v32  ;;  %v984_v45 = vrot.slane %v5608_v49, 2  ;;  %v999_v14 = vrot.slane %v5609_v54, 2  ;;  %v1003_v32 = vrot.slane %v5612_v3, 2 }
  0x43   : > { %3741 = vmatprep.subr.bf16.mxu0 %v3977_v2  ;;  %3628 = vmatmul.mubr.msk.bf16.vlgmr.msra.gmra.mxu1 %vm514_vm1, %v4098_v12  ;;  %v1001_v39 = vrot.slane %v5610_v13, 2  ;;  %v986_v15 = vrot.slane %v5611_v25, 2  ;;  %v5613_v36 = vunpack.c.h.bf16 %v4119_v28  ;;  %v5614_v7 = vunpack.c.l.bf16 %v4133_v35  ;;  %v3982_v3 = vld [vmem:[%s5546_s1 + $0x68] sm:$0xff]  }
  0x44   : > { %3700 = vmatpush3.bf16.msra.mxu1 %v4362_v57  ;;  %3631 = vmatprep.mubr.msk.bf16.mxu1 %vm514_vm1, %v4141_v40  ;;  %v5615_v10 = vunpack.c.l.bf16 %v4336_v17  ;;  %v5616_v54 = vunpack.c.h.bf16 %v4336_v17  ;;  %v1000_v59 = vsel %vm957_vm2, %v998_v21, %v999_v14  ;;  %v5618_v21 = vunpack.c.l.bf16 %v4203_v9 }
  0x45   : > { %v1004_v11 = vrot.slane %v5613_v36, 2  ;;  %v1006_v49 = vrot.slane %v5614_v7, 2  ;;  %3701 = vmatprep.subr.bf16.mxu1 %v3976_v31  ;;  %v1002_v25 = vsel %vm957_vm2, %v999_v14, %v1001_v39  ;;  %v5617_v36 = vunpack.c.l.bf16 %v4326_v58  ;;  %v3989_v14 = vld [vmem:[%s5546_s1 + $0x80] sm:$0xff]  }
  0x46   : > { %3742 = vmatpush3.bf16.msra.mxu0 %v3977_v2  ;;  %v988_v57 = vrot.slane %v5615_v10, 2  ;;  %v989_v13 = vrot.slane %v5616_v54, 2  ;;  %v4550_v7 = vpack.c.bf16 %v1002_v25, %v1000_v59  ;;  %v1013_v54 = vrot.slane %v5618_v21, 2  ;;  %v3988_v25 = vld [vmem:[%s5546_s1 + $0x60] sm:$0xff]  }
  0x47   : > { %v991_v35 = vrot.slane %v5617_v36, 2  ;;  %v1005_v2 = vsel %vm957_vm2, %v1003_v32, %v1004_v11  ;;  %v1007_v10 = vsel %vm957_vm2, %v1004_v11, %v1006_v49  ;;  %3743 = vmatprep.subr.bf16.mxu0 %v3983_v38  ;;  %v5619_v58 = vunpack.c.h.bf16 %v4203_v9 }
  0x48   : > { %v4554_v30 = vpack.c.bf16 %v1007_v10, %v1005_v2  ;;  %3702 = vmatpush3.bf16.msra.mxu1 %v3976_v31  ;;  %v5620_v32 = vunpack.c.l.bf16 %v4213_v20  ;;  %v985_v49 = vsel %vm957_vm2, %v983_v27, %v984_v45  ;;  %v987_v59 = vsel %vm957_vm2, %v984_v45, %v986_v15 }
  0x49   : > { %3672 = vmatmul.mubr.msk.bf16.gmra.mxu0 %vm514_vm1, %v4509_v6  ;;  %v1014_v39 = vrot.slane %v5619_v58, 2  ;;  %3703 = vmatprep.subr.bf16.mxu1 %v3982_v3  ;;  %v990_v31 = vsel %vm957_vm2, %v988_v57, %v989_v13  ;;  %v992_v36 = vsel %vm957_vm2, %v989_v13, %v991_v35  ;;  %v5621_v45 = vunpack.c.l.bf16 %v4287_v1  ;;  %v4587_v57 = vld [vmem:[%s5546_s1 + $0xd8] sm:$0xff]  }
  0x4a   : > { %v1016_v11 = vrot.slane %v5620_v32, 2  ;;  %3675 = vmatprep.mubr.msk.bf16.mxu0 %vm514_vm1, %v4520_v42  ;;  %3744 = vmatpush3.bf16.msra.mxu0 %v3983_v38  ;;  %v4591_v38 = vpack.c.bf16 %v987_v59, %v985_v49  ;;  %v5622_v13 = vunpack.c.h.bf16 %v4287_v1  ;;  %v5623_v10 = vunpack.c.l.bf16 %v4296_v29 }
  0x4b   : > { %v1015_v20 = vsel %vm957_vm2, %v1013_v54, %v1014_v39  ;;  %3632 = vmatmul.mubr.msk.bf16.gmra.mxu1 %vm514_vm1, %v4174_v56  ;;  %v1023_v15 = vrot.slane %v5621_v45, 2  ;;  %3745 = vmatprep.subr.bf16.mxu0 %v3989_v14  ;;  %v4597_v54 = vpack.c.bf16 %v992_v36, %v990_v31  ;;  %v5624_v58 = vunpack.c.l.bf16 %v4371_v0 }
  0x4c   : > { %v1017_v2 = vsel %vm957_vm2, %v1014_v39, %v1016_v11  ;;  %3635 = vmatprep.mubr.msk.bf16.mxu1 %vm514_vm1, %v4219_v23  ;;  %3704 = vmatpush3.bf16.msra.mxu1 %v3982_v3  ;;  %v1024_v35 = vrot.slane %v5622_v13, 2  ;;  %v1026_v21 = vrot.slane %v5623_v10, 2  ;;  %v5625_v32 = vunpack.c.h.bf16 %v4371_v0  ;;  %v4608_v3 = vld [vmem:[%s5546_s1 + $0xb8] sm:$0xff]  }
  0x4d   : > { %v4580_v27 = vpack.c.bf16 %v1017_v2, %v1015_v20  ;;  %v993_v39 = vrot.slane %v5624_v58, 2  ;;  %v5626_v20 = vunpack.c.l.bf16 %v4374_v61  ;;  %3705 = vmatprep.subr.bf16.mxu1 %v3988_v25  ;;  %v5627_v36 = vunpack.c.l.bf16 %v4154_v46 }
  0x4e   : > { %v994_v11 = vrot.slane %v5625_v32, 2  ;;  %v1025_v29 = vsel %vm957_vm2, %v1023_v15, %v1024_v35  ;;  %v1027_v49 = vsel %vm957_vm2, %v1024_v35, %v1026_v21  ;;  %3746 = vmatpush3.bf16.msra.mxu0 %v3989_v14  ;;  %v5628_v45 = vunpack.c.h.bf16 %v4154_v46 }
  0x4f   : > { %v996_v2 = vrot.slane %v5626_v20, 2  ;;  %v4612_v59 = vpack.c.bf16 %v1027_v49, %v1025_v29  ;;  %3819 = vmatprep.subr.bf16.mxu0 %v4587_v57  ;;  %v5629_v13 = vunpack.c.l.bf16 %v4163_v51  ;;  %v5630_v51 = vunpack.c.l.bf16 %v4239_v47 }
  0x50   : > { %3706 = vmatpush3.bf16.msra.mxu1 %v3988_v25  ;;  %v995_v61 = vsel %vm957_vm2, %v993_v39, %v994_v11  ;;  %v1008_v25 = vrot.slane %v5627_v36, 2  ;;  %v1009_v15 = vrot.slane %v5628_v45, 2  ;;  %v5631_v32 = vunpack.c.h.bf16 %v4239_v47 }
  0x51   : > { %3676 = vmatmul.mubr.msk.bf16.gmra.mxu0 %vm514_vm1, %v4591_v38  ;;  %v997_v31 = vsel %vm957_vm2, %v994_v11, %v996_v2  ;;  %3779 = vmatprep.subr.bf16.mxu1 %v4608_v3  ;;  %v1011_v35 = vrot.slane %v5629_v13, 2  ;;  %v1018_v39 = vrot.slane %v5630_v51, 2  ;;  %v5632_v20 = vunpack.c.l.bf16 %v4251_v62 }
  0x52   : > { %3679 = vmatprep.mubr.msk.bf16.mxu0 %vm514_vm1, %v4597_v54  ;;  %v4626_v14 = vpack.c.bf16 %v997_v31, %v995_v61  ;;  %v1010_v10 = vsel %vm957_vm2, %v1008_v25, %v1009_v15  ;;  %v1019_v11 = vrot.slane %v5631_v32, 2  ;;  %v5633_v62 = vunpack.c.l.bf16 %v4346_v50 }
  0x53   : > { %3636 = vmatmul.mubr.msk.bf16.gmra.mxu1 %vm514_vm1, %v4254_v63  ;;  %v1012_v21 = vsel %vm957_vm2, %v1009_v15, %v1011_v35  ;;  %v1021_v2 = vrot.slane %v5632_v20, 2  ;;  %v5634_v36 = vunpack.c.h.bf16 %v4346_v50  ;;  %v5635_v45 = vunpack.c.l.bf16 %v4349_v18  ;;  %v4689_v20 = vld [vmem:[%s4079_s23 + $0xc0] sm:$0xff]  }
  0x54   : > { %3639 = vmatprep.mubr.msk.bf16.mxu1 %vm514_vm1, %v4336_v17  ;;  %v4644_v58 = vpack.c.bf16 %v1012_v21, %v1010_v10  ;;  %v1020_v29 = vsel %vm957_vm2, %v1018_v39, %v1019_v11  ;;  %v1028_v31 = vrot.slane %v5633_v62, 2  ;;  %v5636_v18 = vunpack.c.l.bf16 %v4396_v4 }
  0x55   : > { %v1022_v49 = vsel %vm957_vm2, %v1019_v11, %v1021_v2  ;;  %v1029_v25 = vrot.slane %v5634_v36, 2  ;;  %v1031_v15 = vrot.slane %v5635_v45, 2  ;;  %v5637_v51 = vunpack.c.h.bf16 %v4396_v4 }
  0x56   : > { %v4662_v61 = vpack.c.bf16 %v1022_v49, %v1020_v29  ;;  %v1033_v21 = vrot.slane %v5636_v18, 2  ;;  %v5638_v32 = vunpack.c.l.bf16 %v4415_v33  ;;  %v4698_v49 = vld [vmem:[%s4079_s23 + $0xc8] sm:$0x1]  ;;  %v274_v62 = vunpack.c.l.bf16 %v4689_v20 }
  0x57   : > { %v1030_v13 = vsel %vm957_vm2, %v1028_v31, %v1029_v25  ;;  %v1032_v35 = vsel %vm957_vm2, %v1029_v25, %v1031_v15  ;;  %v1034_v39 = vrot.slane %v5637_v51, 2  ;;  %v275_v31 = vunpack.c.h.bf16 %v4689_v20  ;;  %v3999_v51 = vld [vmem:[%s5546_s1 + $0xc0] sm:$0xff]  }
  0x58   : > { %v4680_v10 = vpack.c.bf16 %v1032_v35, %v1030_v13  ;;  %v1036_v11 = vrot.slane %v5638_v32, 2  ;;  %v1830_v36 = vrot.slane %v274_v62, 2  ;;  %v276_v45 = vunpack.c.l.bf16 %v4698_v49  ;;  %v4001_v32 = vld [vmem:[%s5546_s1 + $0xf8] sm:$0xff]  }
  0x59   : > { %3680 = vmatmul.mubr.msk.bf16.gmra.mxu0 %vm514_vm1, %v4626_v14  ;;  %v1035_v2 = vsel %vm957_vm2, %v1033_v21, %v1034_v39  ;;  %v1831_v25 = vrot.slane %v275_v31, 2  ;;  %v3995_v21 = vld [vmem:[%s5546_s1 + $0xd0] sm:$0xff]  }
  0x5a   : > { %3683 = vmatprep.mubr.msk.bf16.mxu0 %vm514_vm1, %v4550_v7  ;;  %v1037_v29 = vsel %vm957_vm2, %v1034_v39, %v1036_v11  ;;  %v1833_v15 = vrot.slane %v276_v45, 2  ;;  %v4002_v39 = vld [vmem:[%s5546_s1 + $0x118] sm:$0xff]   ;;  %v5639_v11 = vld [vmem:[#allocation2_spill] sm:$0xff]  ;;  %v1596_v49 = vrot.slane %v276_v45, 1 }
  0x5b   : > { %3640 = vmatmul.mubr.msk.bf16.gmra.mxu1 %vm514_vm1, %v4371_v0  ;;  %v4706_v33 = vpack.c.bf16 %v1037_v29, %v1035_v2  ;;  %v1832_v13 = vsel %vm957_vm2, %v1830_v36, %v1831_v25  ;;  %v1593_v2 = vrot.slane %v274_v62, 1  ;;  %v1594_v29 = vrot.slane %v275_v31, 1  ;;  %v4004_v31 = vld [vmem:[%s5546_s1 + $0x110] sm:$0xff]   ;;  %v4007_v45 = vld [vmem:[%s5546_s1 + $0xe0] sm:$0xff]  }
  0x5c   : > { %3643 = vmatprep.mubr.msk.bf16.mxu1 %vm514_vm1, %v4086_v5  ;;  %v1834_v35 = vsel %vm957_vm2, %v1831_v25, %v1833_v15 }
  0x5d   : > { %v4719_v18 = vpack.c.bf16 %v1834_v35, %v1832_v13  ;;  %v1595_v36 = vsel %vm352_vm0, %v1593_v2, %v1594_v29  ;;  %v1597_v25 = vsel %vm352_vm0, %v1594_v29, %v1596_v49 }
  0x5e   : > { %v4813_v62 = vpack.c.bf16 %v1597_v25, %v1595_v36 }
  0x60   : > { %5640 = vst [vmem:[#allocation2_spill] sm:$0xff] %v4813_v62 }
  0x61   : > { %3684 = vmatmul.mubr.msk.bf16.gmra.mxu0 %vm514_vm1, %v4554_v30 }
  0x62   : > { %3687 = vmatprep.mubr.msk.bf16.mxu0 %vm514_vm1, %v4644_v58 }
  0x63   : > { %3644 = vmatmul.mubr.msk.bf16.gmra.mxu1 %vm514_vm1, %v4119_v28 }
  0x64   : > { %3647 = vmatprep.mubr.msk.bf16.mxu1 %vm514_vm1, %v4154_v46 }
  0x69   : > { %3688 = vmatmul.mubr.msk.bf16.gmra.mxu0 %vm514_vm1, %v4580_v27 }
  0x6a   : > { %3691 = vmatprep.mubr.msk.bf16.mxu0 %vm514_vm1, %v4662_v61 }
  0x6b   : > { %3648 = vmatmul.mubr.msk.bf16.gmra.mxu1 %vm514_vm1, %v4203_v9 }
  0x6c   : > { %3651 = vmatprep.mubr.msk.bf16.mxu1 %vm514_vm1, %v4239_v47 }
  0x71   : > { %3692 = vmatmul.mubr.msk.bf16.gmra.mxu0 %vm514_vm1, %v4612_v59 }
  0x72   : > { %3695 = vmatprep.mubr.msk.bf16.mxu0 %vm514_vm1, %v4680_v10 }
  0x73   : > { %3652 = vmatmul.mubr.msk.bf16.gmra.mxu1 %vm514_vm1, %v4287_v1 }
  0x74   : > { %3655 = vmatprep.mubr.msk.bf16.mxu1 %vm514_vm1, %v4346_v50 }
  0x79   : > { %3696 = vmatmul.mubr.msk.bf16.gmra.mxu0 %vm514_vm1, %v4706_v33 }
  0x7a   : > { %3747 = vmatprep.mubr.msk.bf16.mxu0 %vm514_vm1, %v4167_v52  ;;  %v3994_v52 = vld [vmem:[%s5546_s1 + $0xb0] sm:$0xff]  }
  0x7b   : > { %3656 = vmatmul.mubr.msk.bf16.gmra.mxu1 %vm514_vm1, %v4396_v4 }
  0x7c   : > { %3707 = vmatprep.mubr.msk.bf16.mxu1 %vm514_vm1, %v4098_v12  ;;  %v3997_v12 = vld [vmem:[%s5546_s1 + $0xc8] sm:$0xff]  }
  0x81   : > { %3748 = vmatmul.mubr.msk.bf16.vlgmr.msra.gmra.mxu0 %vm514_vm1, %v4233_v34 }
  0x82   : > { %3820 = vmatpush3.bf16.msra.mxu0 %v4587_v57  ;;  %3751 = vmatprep.mubr.msk.bf16.mxu0 %vm514_vm1, %v4275_v37  ;;  %v3996_v57 = vld [vmem:[%s5546_s1 + $0xa8] sm:$0xff]  }
  0x83   : > { %3821 = vmatprep.subr.bf16.mxu0 %v3995_v21  ;;  %3708 = vmatmul.mubr.msk.bf16.vlgmr.msra.gmra.mxu1 %vm514_vm1, %v4141_v40 }
  0x84   : > { %3780 = vmatpush3.bf16.msra.mxu1 %v4608_v3  ;;  %3711 = vmatprep.mubr.msk.bf16.mxu1 %vm514_vm1, %v4174_v56  ;;  %v3998_v3 = vld [vmem:[%s5546_s1 + $0xa0] sm:$0xff]  }
  0x85   : > { %3781 = vmatprep.subr.bf16.mxu1 %v3994_v52 }
  0x86   : > { %3822 = vmatpush3.bf16.msra.mxu0 %v3995_v21 }
  0x87   : > { %3823 = vmatprep.subr.bf16.mxu0 %v3997_v12 }
  0x88   : > { %3782 = vmatpush3.bf16.msra.mxu1 %v3994_v52 }
  0x89   : > { %3752 = vmatmul.mubr.msk.bf16.gmra.mxu0 %vm514_vm1, %v4318_v53  ;;  %3783 = vmatprep.subr.bf16.mxu1 %v3996_v57 }
  0x8a   : > { %3755 = vmatprep.mubr.msk.bf16.mxu0 %vm514_vm1, %v4382_v26  ;;  %3824 = vmatpush3.bf16.msra.mxu0 %v3997_v12 }
  0x8b   : > { %3712 = vmatmul.mubr.msk.bf16.gmra.mxu1 %vm514_vm1, %v4219_v23  ;;  %3825 = vmatprep.subr.bf16.mxu0 %v3999_v51 }
  0x8c   : > { %3715 = vmatprep.mubr.msk.bf16.mxu1 %vm514_vm1, %v4254_v63  ;;  %3784 = vmatpush3.bf16.msra.mxu1 %v3996_v57 }
  0x8d   : > { %3785 = vmatprep.subr.bf16.mxu1 %v3998_v3 }
  0x8e   : > { %3826 = vmatpush3.bf16.msra.mxu0 %v3999_v51 }
  0x8f   : > { %3899 = vmatprep.subr.bf16.mxu0 %v4002_v39 }
  0x90   : > { %3786 = vmatpush3.bf16.msra.mxu1 %v3998_v3  ;;  %v4924_v3 = vld [vmem:[%s4079_s23 + $0xcc] sm:$0xff]  }
  0x91   : > { %3756 = vmatmul.mubr.msk.bf16.gmra.mxu0 %vm514_vm1, %v4417_v19  ;;  %3859 = vmatprep.subr.bf16.mxu1 %v4001_v32 }
  0x92   : > { %3759 = vmatprep.mubr.msk.bf16.mxu0 %vm514_vm1, %v4447_v8 }
  0x93   : > { %3716 = vmatmul.mubr.msk.bf16.gmra.mxu1 %vm514_vm1, %v4336_v17 }
  0x94   : > { %3719 = vmatprep.mubr.msk.bf16.mxu1 %vm514_vm1, %v4371_v0 }
  0x99   : > { %3760 = vmatmul.mubr.msk.bf16.gmra.mxu0 %vm514_vm1, %v4143_v41 }
  0x9a   : > { %3763 = vmatprep.mubr.msk.bf16.mxu0 %vm514_vm1, %v4205_v16 }
  0x9b   : > { %3720 = vmatmul.mubr.msk.bf16.gmra.mxu1 %vm514_vm1, %v4086_v5 }
  0x9c   : > { %3723 = vmatprep.mubr.msk.bf16.mxu1 %vm514_vm1, %v4119_v28 }
  0xa1   : > { %3764 = vmatmul.mubr.msk.bf16.gmra.mxu0 %vm514_vm1, %v4242_v48 }
  0xa2   : > { %3767 = vmatprep.mubr.msk.bf16.mxu0 %vm514_vm1, %v4307_v44 }
  0xa3   : > { %3724 = vmatmul.mubr.msk.bf16.gmra.mxu1 %vm514_vm1, %v4154_v46 }
  0xa4   : > { %3727 = vmatprep.mubr.msk.bf16.mxu1 %vm514_vm1, %v4203_v9 }
  0xa9   : > { %3768 = vmatmul.mubr.msk.bf16.gmra.mxu0 %vm514_vm1, %v4351_v24 }
  0xaa   : > { %3771 = vmatprep.mubr.msk.bf16.mxu0 %vm514_vm1, %v5639_v11 }
  0xab   : > { %3728 = vmatmul.mubr.msk.bf16.gmra.mxu1 %vm514_vm1, %v4239_v47 }
  0xac   : > { %3731 = vmatprep.mubr.msk.bf16.mxu1 %vm514_vm1, %v4287_v1 }
  0xb1   : > { %3772 = vmatmul.mubr.msk.bf16.gmra.mxu0 %vm514_vm1, %v4431_v22 }
  0xb2   : > { %3775 = vmatprep.mubr.msk.bf16.mxu0 %vm514_vm1, %v4462_v55 }
  0xb3   : > { %3732 = vmatmul.mubr.msk.bf16.gmra.mxu1 %vm514_vm1, %v4346_v50 }
  0xb4   : > { %3735 = vmatprep.mubr.msk.bf16.mxu1 %vm514_vm1, %v4396_v4 }
  0xb9   : > { %3776 = vmatmul.mubr.msk.bf16.gmra.mxu0 %vm514_vm1, %v4813_v62 }
  0xba   : > { %3827 = vmatprep.mubr.msk.bf16.mxu0 %vm514_vm1, %v4141_v40  ;;  %v4003_v40 = vld [vmem:[%s5546_s1 + $0xf0] sm:$0xff]  }
  0xbb   : > { %3736 = vmatmul.mubr.msk.bf16.gmra.mxu1 %vm514_vm1, %v4689_v20 }
  0xbc   : > { %3787 = vmatprep.mubr.msk.bf16.mxu1 %vm514_vm1, %v4484_v43  ;;  %v4006_v43 = vld [vmem:[%s5546_s1 + $0x108] sm:$0xff]  }
  0xc1   : > { %3828 = vmatmul.mubr.msk.bf16.vlgmr.msra.gmra.mxu0 %vm514_vm1, %v4174_v56  ;;  %v4005_v56 = vld [vmem:[%s5546_s1 + $0xe8] sm:$0xff]  }
  0xc2   : > { %3900 = vmatpush3.bf16.msra.mxu0 %v4002_v39  ;;  %3831 = vmatprep.mubr.msk.bf16.mxu0 %vm514_vm1, %v4219_v23  ;;  %v4008_v23 = vld [vmem:[%s5546_s1 + $0x100] sm:$0xff]  }
  0xc3   : > { %3901 = vmatprep.subr.bf16.mxu0 %v4004_v31  ;;  %3788 = vmatmul.mubr.msk.bf16.vlgmr.msra.gmra.mxu1 %vm514_vm1, %v4492_v60 }
  0xc4   : > { %3860 = vmatpush3.bf16.msra.mxu1 %v4001_v32  ;;  %3791 = vmatprep.mubr.msk.bf16.mxu1 %vm514_vm1, %v4509_v6 }
  0xc5   : > { %3861 = vmatprep.subr.bf16.mxu1 %v4003_v40 }
  0xc6   : > { %3902 = vmatpush3.bf16.msra.mxu0 %v4004_v31 }
  0xc7   : > { %3903 = vmatprep.subr.bf16.mxu0 %v4006_v43 }
  0xc8   : > { %3862 = vmatpush3.bf16.msra.mxu1 %v4003_v40 }
  0xc9   : > { %3832 = vmatmul.mubr.msk.bf16.gmra.mxu0 %vm514_vm1, %v4254_v63  ;;  %3863 = vmatprep.subr.bf16.mxu1 %v4005_v56 }
  0xca   : > { %3835 = vmatprep.mubr.msk.bf16.mxu0 %vm514_vm1, %v4336_v17  ;;  %3904 = vmatpush3.bf16.msra.mxu0 %v4006_v43 }
  0xcb   : > { %3792 = vmatmul.mubr.msk.bf16.gmra.mxu1 %vm514_vm1, %v4520_v42  ;;  %3905 = vmatprep.subr.bf16.mxu0 %v4008_v23 }
  0xcc   : > { %3795 = vmatprep.mubr.msk.bf16.mxu1 %vm514_vm1, %v4591_v38  ;;  %3864 = vmatpush3.bf16.msra.mxu1 %v4005_v56 }
  0xcd   : > { %3865 = vmatprep.subr.bf16.mxu1 %v4007_v45 }
  0xce   : > { %3906 = vmatpush3.bf16.msra.mxu0 %v4008_v23 }
  0xd0   : > { %3866 = vmatpush3.bf16.msra.mxu1 %v4007_v45 }
  0xd1   : > { %3836 = vmatmul.mubr.msk.bf16.gmra.mxu0 %vm514_vm1, %v4371_v0 }
  0xd2   : > { %3839 = vmatprep.mubr.msk.bf16.mxu0 %vm514_vm1, %v4086_v5 }
  0xd3   : > { %3796 = vmatmul.mubr.msk.bf16.gmra.mxu1 %vm514_vm1, %v4597_v54 }
  0xd4   : > { %3799 = vmatprep.mubr.msk.bf16.mxu1 %vm514_vm1, %v4626_v14 }
  0xd9   : > { %3840 = vmatmul.mubr.msk.bf16.gmra.mxu0 %vm514_vm1, %v4119_v28 }
  0xda   : > { %3843 = vmatprep.mubr.msk.bf16.mxu0 %vm514_vm1, %v4154_v46 }
  0xdb   : > { %3800 = vmatmul.mubr.msk.bf16.gmra.mxu1 %vm514_vm1, %v4550_v7 }
  0xdc   : > { %3803 = vmatprep.mubr.msk.bf16.mxu1 %vm514_vm1, %v4554_v30 }
  0xdd   : > { %v3589_v63 = vpop.f32.mrf.mxu0 }
  0xdf   : > { %v597_v5 = vpop.f32.mrf.mxu0 }
  0xe0   : > { %v4873_v17 = vpop.f32.mrf.mxu1 }
  0xe1   : > { %3844 = vmatmul.mubr.msk.bf16.gmra.mxu0 %vm514_vm1, %v4203_v9  ;;  %v3590_v0 = vpop.f32.mrf.mxu0 }
  0xe2   : > { %3847 = vmatprep.mubr.msk.bf16.mxu0 %vm514_vm1, %v4239_v47  ;;  %v4879_v28 = vpop.f32.mrf.mxu1 }
  0xe3   : > { %v4881_v46 = vpop.f32.mrf.mxu0  ;;  %3804 = vmatmul.mubr.msk.bf16.gmra.mxu1 %vm514_vm1, %v4644_v58 }
  0xe4   : > { %v4885_v15 = vpop.f32.mrf.mxu1  ;;  %3807 = vmatprep.mubr.msk.bf16.mxu1 %vm514_vm1, %v4580_v27 }
  0xe6   : > { %v4889_v13 = vpop.f32.mrf.mxu1 }
  0xe7   : > { %v4891_v35 = vpop.f32.mrf.mxu0 }
  0xe9   : > { %3848 = vmatmul.mubr.msk.bf16.gmra.mxu0 %vm514_vm1, %v4287_v1  ;;  %v4895_v9 = vpop.f32.mrf.mxu0  ;;  %v4897_v47 = vpop.f32.mrf.mxu1 }
  0xea   : > { %3851 = vmatprep.mubr.msk.bf16.mxu0 %vm514_vm1, %v4346_v50 }
  0xeb   : > { %v4901_v21 = vpop.f32.mrf.mxu0  ;;  %3808 = vmatmul.mubr.msk.bf16.gmra.mxu1 %vm514_vm1, %v4662_v61  ;;  %v4905_v52 = vpop.f32.mrf.mxu1 }
  0xec   : > { %3811 = vmatprep.mubr.msk.bf16.mxu1 %vm514_vm1, %v4612_v59 }
  0xed   : > { %v4907_v12 = vpop.f32.mrf.mxu0  ;;  %v4911_v1 = vpop.f32.mrf.mxu1 }
  0xef   : > { %v4913_v57 = vpop.f32.mrf.mxu1 }
  0xf0   : > { %v4915_v51 = vpop.f32.mrf.mxu0 }
  0xf1   : > { %3852 = vmatmul.mubr.msk.bf16.gmra.mxu0 %vm514_vm1, %v4396_v4 }
  0xf2   : > { %v4919_v50 = vpop.f32.mrf.mxu1  ;;  %3855 = vmatprep.mubr.msk.bf16.mxu0 %vm514_vm1, %v4689_v20  ;;  %v4926_v39 = vpop.f32.mrf.mxu0 }
  0xf3   : > { %5641 = vst [vmem:[#allocation3_spill] sm:$0xff] %v4919_v50  ;;  %3812 = vmatmul.mubr.msk.bf16.gmra.mxu1 %vm514_vm1, %v4680_v10 }
  0xf4   : > { %v4930_v32 = vpop.f32.mrf.mxu1  ;;  %v4932_v2 = vpop.f32.mrf.mxu0  ;;  %3815 = vmatprep.mubr.msk.bf16.mxu1 %vm514_vm1, %v4706_v33 }
  0xf5   : > { %5642 = vst [vmem:[#allocation4_spill] sm:$0xff] %v4930_v32 }
  0xf6   : > { %v4936_v4 = vpop.f32.mrf.mxu1  ;;  %v4938_v29 = vpop.f32.mrf.mxu0 }
  0xf7   : > { %5643 = vst [vmem:[#allocation5_spill] sm:$0xff] %v4936_v4 }
  0xf8   : > { %v4940_v49 = vpop.f32.mrf.mxu1 }
  0xf9   : > { %5644 = vst [vmem:[#allocation6_spill] sm:$0xff] %v4940_v49  ;;  %v4942_v20 = vpop.f32.mrf.mxu0  ;;  %3856 = vmatmul.mubr.msk.bf16.gmra.mxu0 %vm514_vm1, %v4924_v3 }
  0xfa   : > { %3907 = vmatprep.mubr.msk.bf16.mxu0 %vm514_vm1, %v4492_v60 }
  0xfb   : > { %v4948_v36 = vpop.f32.mrf.mxu0  ;;  %v4950_v25 = vpop.f32.mrf.mxu1  ;;  %3816 = vmatmul.mubr.msk.bf16.gmra.mxu1 %vm514_vm1, %v4719_v18 }
  0xfc   : > { %5645 = vst [vmem:[#allocation7_spill] sm:$0xff] %v4950_v25  ;;  %3867 = vmatprep.mubr.msk.bf16.mxu1 %vm514_vm1, %v4233_v34 }
  0xfd   : > { %v4954_v31 = vpop.f32.mrf.mxu0  ;;  %v4958_v40 = vpop.f32.mrf.mxu1 }
  0xfe   : > { %5646 = vst [vmem:[#allocation8_spill] sm:$0xff] %v4958_v40 }
  0xff   : > { %v4960_v43 = vpop.f32.mrf.mxu0  ;;  %v4962_v56 = vpop.f32.mrf.mxu1 }
 0x100   : > { %5647 = vst [vmem:[#allocation9_spill] sm:$0xff] %v4962_v56 }
 0x101   : > { %v3669_v23 = vpop.f32.mrf.mxu0  ;;  %3908 = vmatmul.mubr.msk.bf16.vlgmr.msra.gmra.mxu0 %vm514_vm1, %v4509_v6  ;;  %v4966_v60 = vpop.f32.mrf.mxu1 }
 0x102   : > { %5648 = vst [vmem:[#allocation10_spill] sm:$0xff] %v4966_v60  ;;  %3911 = vmatprep.mubr.msk.bf16.mxu0 %vm514_vm1, %v4520_v42 }
 0x103   : > { %v1201_v45 = vpop.f32.mrf.mxu0  ;;  %v3629_v25 = vpop.f32.mrf.mxu1  ;;  %3868 = vmatmul.mubr.msk.bf16.vlgmr.msra.gmra.mxu1 %vm514_vm1, %v4275_v37 }
 0x104   : > { %v839_v34 = vadd.f32 %v3629_v25, %v3589_v63  ;;  %3871 = vmatprep.mubr.msk.bf16.mxu1 %vm514_vm1, %v4318_v53 }
 0x105   : > { %v3670_v40 = vpop.f32.mrf.mxu0  ;;  %v830_v56 = vpop.f32.mrf.mxu1 }
 0x106   : > { %v4974_v49 = vadd.f32 %v3669_v23, %v839_v34  ;;  %v831_v4 = vadd.f32 %v830_v56, %v597_v5 }
 0x107   : > { %v1204_v6 = vpop.f32.mrf.mxu0  ;;  %v3630_v32 = vpop.f32.mrf.mxu1 }
 0x108   : > { %v4976_v60 = vadd.f32 %v1201_v45, %v831_v4  ;;  %v842_v62 = vadd.f32 %v3630_v32, %v3590_v0 }
 0x109   : > { %v3673_v42 = vpop.f32.mrf.mxu0  ;;  %3912 = vmatmul.mubr.msk.bf16.gmra.mxu0 %vm514_vm1, %v4591_v38  ;;  %v833_v50 = vpop.f32.mrf.mxu1 }
 0x10a   : > { %3915 = vmatprep.mubr.msk.bf16.mxu0 %vm514_vm1, %v4597_v54  ;;  %v4982_v37 = vadd.f32 %v3670_v40, %v842_v62  ;;  %v834_v53 = vadd.f32 %v833_v50, %v4881_v46 }
 0x10b   : > { %v1217_v63 = vpop.f32.mrf.mxu0  ;;  %v3633_v25 = vpop.f32.mrf.mxu1  ;;  %3872 = vmatmul.mubr.msk.bf16.gmra.mxu1 %vm514_vm1, %v4382_v26 }
 0x10c   : > { %v4987_v5 = vadd.f32 %v1204_v6, %v834_v53  ;;  %v855_v0 = vadd.f32 %v3633_v25, %v4891_v35  ;;  %3875 = vmatprep.mubr.msk.bf16.mxu1 %vm514_vm1, %v4417_v19 }
 0x10d   : > { %v3674_v32 = vpop.f32.mrf.mxu0  ;;  %v846_v38 = vpop.f32.mrf.mxu1 }
 0x10e   : > { %v4992_v4 = vadd.f32 %v3673_v42, %v855_v0  ;;  %v847_v54 = vadd.f32 %v846_v38, %v4895_v9 }
 0x10f   : > { %v1220_v62 = vpop.f32.mrf.mxu0  ;;  %v3634_v46 = vpop.f32.mrf.mxu1 }
 0x110   : > { %v4995_v50 = vadd.f32 %v1217_v63, %v847_v54  ;;  %v858_v40 = vadd.f32 %v3634_v46, %v4901_v21 }
 0x111   : > { %v3677_v26 = vpop.f32.mrf.mxu0  ;;  %3916 = vmatmul.mubr.msk.bf16.gmra.mxu0 %vm514_vm1, %v4626_v14  ;;  %v849_v35 = vpop.f32.mrf.mxu1 }
 0x112   : > { %3919 = vmatprep.mubr.msk.bf16.mxu0 %vm514_vm1, %v4550_v7  ;;  %v5002_v19 = vadd.f32 %v3674_v32, %v858_v40  ;;  %v850_v56 = vadd.f32 %v849_v35, %v4907_v12 }
 0x113   : > { %v1233_v23 = vpop.f32.mrf.mxu0  ;;  %v3637_v9 = vpop.f32.mrf.mxu1  ;;  %3876 = vmatmul.mubr.msk.bf16.gmra.mxu1 %vm514_vm1, %v4447_v8 }
 0x114   : > { %v5007_v45 = vadd.f32 %v1220_v62, %v850_v56  ;;  %v871_v21 = vadd.f32 %v3637_v9, %v4915_v51  ;;  %3879 = vmatprep.mubr.msk.bf16.mxu1 %vm514_vm1, %v4143_v41 }
 0x115   : > { %v3678_v34 = vpop.f32.mrf.mxu0  ;;  %v862_v14 = vpop.f32.mrf.mxu1 }
 0x116   : > { %v5012_v6 = vadd.f32 %v3677_v26, %v871_v21  ;;  %v863_v7 = vadd.f32 %v862_v14, %v4926_v39 }
 0x117   : > { %v1236_v42 = vpop.f32.mrf.mxu0  ;;  %v3638_v12 = vpop.f32.mrf.mxu1 }
 0x118   : > { %v5015_v53 = vadd.f32 %v1233_v23, %v863_v7  ;;  %v874_v63 = vadd.f32 %v3638_v12, %v4932_v2 }
 0x119   : > { %v3681_v8 = vpop.f32.mrf.mxu0  ;;  %3920 = vmatmul.mubr.msk.bf16.gmra.mxu0 %vm514_vm1, %v4554_v30  ;;  %v865_v51 = vpop.f32.mrf.mxu1 }
 0x11a   : > { %3923 = vmatprep.mubr.msk.bf16.mxu0 %vm514_vm1, %v4644_v58  ;;  %v5022_v41 = vadd.f32 %v3678_v34, %v874_v63  ;;  %v866_v25 = vadd.f32 %v865_v51, %v4938_v29 }
 0x11b   : > { %v1249_v0 = vpop.f32.mrf.mxu0  ;;  %v3641_v39 = vpop.f32.mrf.mxu1  ;;  %3880 = vmatmul.mubr.msk.bf16.gmra.mxu1 %vm514_vm1, %v4205_v16 }
 0x11c   : > { %v5027_v32 = vadd.f32 %v1236_v42, %v866_v25  ;;  %v887_v2 = vadd.f32 %v3641_v39, %v4942_v20  ;;  %3883 = vmatprep.mubr.msk.bf16.mxu1 %vm514_vm1, %v4242_v48 }
 0x11d   : > { %v3682_v38 = vpop.f32.mrf.mxu0  ;;  %v878_v30 = vpop.f32.mrf.mxu1 }
 0x11e   : > { %v5032_v54 = vadd.f32 %v3681_v8, %v887_v2  ;;  %v879_v58 = vadd.f32 %v878_v30, %v4948_v36 }
 0x11f   : > { %v1252_v62 = vpop.f32.mrf.mxu0  ;;  %v3642_v29 = vpop.f32.mrf.mxu1 }
 0x120   : > { %v5035_v46 = vadd.f32 %v1249_v0, %v879_v58  ;;  %v890_v40 = vadd.f32 %v3642_v29, %v4954_v31 }
 0x121   : > { %v3685_v16 = vpop.f32.mrf.mxu0  ;;  %3924 = vmatmul.mubr.msk.bf16.gmra.mxu0 %vm514_vm1, %v4580_v27  ;;  %v881_v20 = vpop.f32.mrf.mxu1 }
 0x122   : > { %3927 = vmatprep.mubr.msk.bf16.mxu0 %vm514_vm1, %v4662_v61  ;;  %v5042_v48 = vadd.f32 %v3682_v38, %v890_v40  ;;  %v882_v26 = vadd.f32 %v881_v20, %v4960_v43  ;;  %v225_v43 = vld [vmem:[%s4079_s23 + $0xd4] sm:$0x1] }
 0x123   : > { %v1265_v36 = vpop.f32.mrf.mxu0  ;;  %v3645_v35 = vpop.f32.mrf.mxu1  ;;  %3884 = vmatmul.mubr.msk.bf16.gmra.mxu1 %vm514_vm1, %v4307_v44 }
 0x124   : > { %v5047_v56 = vadd.f32 %v1252_v62, %v882_v26  ;;  %v903_v31 = vadd.f32 %v3645_v35, %v4873_v17  ;;  %3887 = vmatprep.mubr.msk.bf16.mxu1 %vm514_vm1, %v4351_v24  ;;  %v277_v17 = vunpack.c.l.bf16 %v4924_v3  ;;  %v278_v24 = vunpack.c.h.bf16 %v4924_v3 }
 0x125   : > { %v3686_v23 = vpop.f32.mrf.mxu0  ;;  %v894_v27 = vpop.f32.mrf.mxu1 }
 0x126   : > { %v5052_v9 = vadd.f32 %v3685_v16, %v903_v31  ;;  %v895_v61 = vadd.f32 %v894_v27, %v4879_v28  ;;  %v279_v28 = vunpack.c.l.bf16 %v225_v43  ;;  %v2537_v3 = vrot.slane %v277_v17, 2  ;;  %v5649_v31 = vld [vmem:[#allocation3_spill] sm:$0xff]  ;;  %v5650_v27 = vld [vmem:[#allocation2_spill] sm:$0xff] }
 0x127   : > { %v1268_v21 = vpop.f32.mrf.mxu0  ;;  %v3646_v34 = vpop.f32.mrf.mxu1  ;;  %v2300_v30 = vrot.slane %v277_v17, 1  ;;  %v2301_v58 = vrot.slane %v278_v24, 1 }
 0x128   : > { %v5056_v14 = vadd.f32 %v1265_v36, %v895_v61  ;;  %v906_v44 = vadd.f32 %v3646_v34, %v4885_v15  ;;  %v2540_v39 = vrot.slane %v279_v28, 2  ;;  %v5651_v34 = vld [vmem:[#allocation4_spill] sm:$0xff] }
 0x129   : > { %v3689_v7 = vpop.f32.mrf.mxu0  ;;  %3928 = vmatmul.mubr.msk.bf16.gmra.mxu0 %vm514_vm1, %v4612_v59  ;;  %v897_v42 = vpop.f32.mrf.mxu1 }
 0x12a   : > { %3931 = vmatprep.mubr.msk.bf16.mxu0 %vm514_vm1, %v4680_v10  ;;  %v5065_v12 = vadd.f32 %v3686_v23, %v906_v44  ;;  %v898_v63 = vadd.f32 %v897_v42, %v4889_v13  ;;  %v2538_v10 = vrot.slane %v278_v24, 2  ;;  %v5652_v42 = vld [vmem:[#allocation5_spill] sm:$0xff] }
 0x12b   : > { %v1281_v8 = vpop.f32.mrf.mxu0  ;;  %v3649_v51 = vpop.f32.mrf.mxu1  ;;  %3888 = vmatmul.mubr.msk.bf16.gmra.mxu1 %vm514_vm1, %v5639_v11 }
 0x12c   : > { %v5070_v15 = vadd.f32 %v1268_v21, %v898_v63  ;;  %v919_v59 = vadd.f32 %v3649_v51, %v4897_v47  ;;  %3891 = vmatprep.mubr.msk.bf16.mxu1 %vm514_vm1, %v4431_v22  ;;  %v2303_v22 = vrot.slane %v279_v28, 1  ;;  %v2539_v16 = vsel %vm957_vm2, %v2537_v3, %v2538_v10 }
 0x12d   : > { %v3690_v25 = vpop.f32.mrf.mxu0  ;;  %v910_v0 = vpop.f32.mrf.mxu1 }
 0x12e   : > { %v5075_v2 = vadd.f32 %v3689_v7, %v919_v59  ;;  %v911_v13 = vadd.f32 %v910_v0, %v4905_v52  ;;  %v2541_v52 = vsel %vm957_vm2, %v2538_v10, %v2540_v39  ;;  %v2304_v61 = vsel %vm352_vm0, %v2301_v58, %v2303_v22  ;;  %v5653_v59 = vld [vmem:[#allocation6_spill] sm:$0xff]  ;;  %v5654_v39 = vld [vmem:[#allocation7_spill] sm:$0xff] }
 0x12f   : > { %v1284_v38 = vpop.f32.mrf.mxu0  ;;  %v3650_v11 = vpop.f32.mrf.mxu1  ;;  %v2544_v21 = vpack.c.bf16 %v2541_v52, %v2539_v16  ;;  %v5656_v16 = vld [vmem:[#allocation9_spill] sm:$0xff] }
 0x130   : > { %v5078_v62 = vadd.f32 %v1281_v8, %v911_v13  ;;  %v922_v47 = vadd.f32 %v3650_v11, %v4911_v1  ;;  %v5655_v11 = vld [vmem:[#allocation8_spill] sm:$0xff] }
 0x131   : > { %v3693_v29 = vpop.f32.mrf.mxu0  ;;  %3932 = vmatmul.mubr.msk.bf16.gmra.mxu0 %vm514_vm1, %v4706_v33  ;;  %v913_v40 = vpop.f32.mrf.mxu1  ;;  %v2302_v33 = vsel %vm352_vm0, %v2300_v30, %v2301_v58 }
 0x132   : > { %3935 = vmatprep.mubr.msk.bf16.mxu0 %vm514_vm1, %v4719_v18  ;;  %v5087_v20 = vadd.f32 %v3690_v25, %v922_v47  ;;  %v914_v26 = vadd.f32 %v913_v40, %v4913_v57  ;;  %v2307_v17 = vpack.c.bf16 %v2304_v61, %v2302_v33  ;;  %v5657_v33 = vld [vmem:[#allocation10_spill] sm:$0xff] }
 0x133   : > { %v1297_v36 = vpop.f32.mrf.mxu0  ;;  %v3653_v35 = vpop.f32.mrf.mxu1  ;;  %3892 = vmatmul.mubr.msk.bf16.gmra.mxu1 %vm514_vm1, %v4462_v55 }
 0x134   : > { %v5093_v1 = vadd.f32 %v1284_v38, %v914_v26  ;;  %v935_v23 = vadd.f32 %v3653_v35, %v5649_v31  ;;  %3895 = vmatprep.mubr.msk.bf16.mxu1 %vm514_vm1, %v5650_v27 }
 0x135   : > { %v3694_v18 = vpop.f32.mrf.mxu0  ;;  %v926_v43 = vpop.f32.mrf.mxu1 }
 0x136   : > { %v5099_v57 = vadd.f32 %v3693_v29, %v935_v23  ;;  %v927_v44 = vadd.f32 %v926_v43, %v5651_v34 }
 0x137   : > { %v1300_v7 = vpop.f32.mrf.mxu0  ;;  %v3654_v55 = vpop.f32.mrf.mxu1 }
 0x138   : > { %v5102_v24 = vadd.f32 %v1297_v36, %v927_v44  ;;  %v938_v28 = vadd.f32 %v3654_v55, %v5652_v42 }
 0x139   : > { %v3697_v63 = vpop.f32.mrf.mxu0  ;;  %3936 = vmatmul.mubr.msk.bf16.gmra.mxu0 %vm514_vm1, %v2544_v21  ;;  %v929_v8 = vpop.f32.mrf.mxu1 }
 0x13a   : > { %v5106_v51 = vadd.f32 %v3694_v18, %v938_v28  ;;  %v930_v25 = vadd.f32 %v929_v8, %v5653_v59 }
 0x13b   : > { %v1313_v3 = vpop.f32.mrf.mxu0  ;;  %v3657_v10 = vpop.f32.mrf.mxu1  ;;  %3896 = vmatmul.mubr.msk.bf16.gmra.mxu1 %vm514_vm1, %v2307_v17 }
 0x13c   : > { %v5110_v0 = vadd.f32 %v1300_v7, %v930_v25  ;;  %v951_v13 = vadd.f32 %v3657_v10, %v5654_v39 }
 0x13d   : > { %v3698_v38 = vpop.f32.mrf.mxu0  ;;  %v942_v30 = vpop.f32.mrf.mxu1 }
 0x13e   : > { %v5113_v58 = vadd.f32 %v3697_v63, %v951_v13  ;;  %v943_v47 = vadd.f32 %v942_v30, %v5655_v11 }
 0x13f   : > { %v1316_v29 = vpop.f32.mrf.mxu0  ;;  %v3658_v22 = vpop.f32.mrf.mxu1 }
 0x140   : > { %v5116_v40 = vadd.f32 %v1313_v3, %v943_v47  ;;  %v954_v52 = vadd.f32 %v3658_v22, %v5656_v16 }
 0x141   : > { %v3749_v26 = vpop.f32.mrf.mxu0  ;;  %v945_v36 = vpop.f32.mrf.mxu1 }
 0x142   : > { %v5119_v35 = vadd.f32 %v3698_v38, %v954_v52  ;;  %v946_v31 = vadd.f32 %v945_v36, %v5657_v33 }
 0x143   : > { %v1671_v23 = vpop.f32.mrf.mxu0  ;;  %v3709_v18 = vpop.f32.mrf.mxu1 }
 0x144   : > { %v5122_v27 = vadd.f32 %v1316_v29, %v946_v31  ;;  %v1560_v61 = vadd.f32 %v3709_v18, %v4974_v49 }
 0x145   : > { %v3750_v21 = vpop.f32.mrf.mxu0  ;;  %v1431_v43 = vpop.f32.mrf.mxu1 }
 0x146   : > { %v5125_v34 = vadd.f32 %v3749_v26, %v1560_v61  ;;  %v1558_v44 = vadd.f32 %v1431_v43, %v4976_v60 }
 0x147   : > { %v1674_v7 = vpop.f32.mrf.mxu0  ;;  %v3710_v55 = vpop.f32.mrf.mxu1 }
 0x148   : > { %v5128_v17 = vadd.f32 %v1671_v23, %v1558_v44  ;;  %v1561_v42 = vadd.f32 %v3710_v55, %v4982_v37 }
 0x149   : > { %v3753_v28 = vpop.f32.mrf.mxu0  ;;  %v1434_v63 = vpop.f32.mrf.mxu1 }
 0x14a   : > { %v5131_v8 = vadd.f32 %v3750_v21, %v1561_v42  ;;  %v1559_v59 = vadd.f32 %v1434_v63, %v4987_v5 }
 0x14b   : > { %v1687_v25 = vpop.f32.mrf.mxu0  ;;  %v3713_v49 = vpop.f32.mrf.mxu1 }
 0x14c   : > { %v5134_v3 = vadd.f32 %v1674_v7, %v1559_v59  ;;  %v1564_v10 = vadd.f32 %v3713_v49, %v4992_v4 }
 0x14d   : > { %v3754_v39 = vpop.f32.mrf.mxu0  ;;  %v1447_v60 = vpop.f32.mrf.mxu1 }
 0x14e   : > { %v5137_v13 = vadd.f32 %v3753_v28, %v1564_v10  ;;  %v1562_v38 = vadd.f32 %v1447_v60, %v4995_v50 }
 0x14f   : > { %v1690_v30 = vpop.f32.mrf.mxu0  ;;  %v3714_v37 = vpop.f32.mrf.mxu1 }
 0x150   : > { %v5140_v11 = vadd.f32 %v1687_v25, %v1562_v38  ;;  %v1565_v47 = vadd.f32 %v3714_v37, %v5002_v19 }
 0x151   : > { %v3757_v29 = vpop.f32.mrf.mxu0  ;;  %v1450_v5 = vpop.f32.mrf.mxu1 }
 0x152   : > { %v5143_v22 = vadd.f32 %v3754_v39, %v1565_v47  ;;  %v1563_v16 = vadd.f32 %v1450_v5, %v5007_v45 }
 0x153   : > { %v1703_v52 = vpop.f32.mrf.mxu0  ;;  %v3717_v4 = vpop.f32.mrf.mxu1 }
 0x154   : > { %v5146_v26 = vadd.f32 %v1690_v30, %v1563_v16  ;;  %v1568_v36 = vadd.f32 %v3717_v4, %v5012_v6 }
 0x155   : > { %v3758_v33 = vpop.f32.mrf.mxu0  ;;  %v1463_v50 = vpop.f32.mrf.mxu1 }
 0x156   : > { %v5149_v31 = vadd.f32 %v3757_v29, %v1568_v36  ;;  %v1566_v23 = vadd.f32 %v1463_v50, %v5015_v53 }
 0x157   : > { %v1706_v18 = vpop.f32.mrf.mxu0  ;;  %v3718_v19 = vpop.f32.mrf.mxu1 }
 0x158   : > { %v5152_v61 = vadd.f32 %v1703_v52, %v1566_v23  ;;  %v1569_v21 = vadd.f32 %v3718_v19, %v5022_v41 }
 0x159   : > { %v3761_v43 = vpop.f32.mrf.mxu0  ;;  %v1466_v45 = vpop.f32.mrf.mxu1 }
 0x15a   : > { %v5155_v44 = vadd.f32 %v3758_v33, %v1569_v21  ;;  %v1567_v7 = vadd.f32 %v1466_v45, %v5027_v32 }
 0x15b   : > { %v1719_v55 = vpop.f32.mrf.mxu0  ;;  %v3721_v6 = vpop.f32.mrf.mxu1 }
 0x15c   : > { %v5158_v42 = vadd.f32 %v1706_v18, %v1567_v7  ;;  %v1572_v28 = vadd.f32 %v3721_v6, %v5032_v54 }
 0x15d   : > { %v3762_v63 = vpop.f32.mrf.mxu0  ;;  %v1479_v53 = vpop.f32.mrf.mxu1 }
 0x15e   : > { %v5161_v59 = vadd.f32 %v3761_v43, %v1572_v28  ;;  %v1570_v25 = vadd.f32 %v1479_v53, %v5035_v46 }
 0x15f   : > { %v1722_v49 = vpop.f32.mrf.mxu0  ;;  %v3722_v41 = vpop.f32.mrf.mxu1 }
 0x160   : > { %v5164_v10 = vadd.f32 %v1719_v55, %v1570_v25  ;;  %v1573_v39 = vadd.f32 %v3722_v41, %v5042_v48 }
 0x161   : > { %v3765_v60 = vpop.f32.mrf.mxu0  ;;  %v1482_v32 = vpop.f32.mrf.mxu1 }
 0x162   : > { %v5167_v38 = vadd.f32 %v3762_v63, %v1573_v39  ;;  %v1571_v30 = vadd.f32 %v1482_v32, %v5047_v56 }
 0x163   : > { %v1735_v37 = vpop.f32.mrf.mxu0  ;;  %v3725_v54 = vpop.f32.mrf.mxu1 }
 0x164   : > { %v5170_v47 = vadd.f32 %v1722_v49, %v1571_v30  ;;  %v1576_v29 = vadd.f32 %v3725_v54, %v5052_v9 }
 0x165   : > { %v3766_v5 = vpop.f32.mrf.mxu0  ;;  %v1495_v46 = vpop.f32.mrf.mxu1 }
 0x166   : > { %v5173_v16 = vadd.f32 %v3765_v60, %v1576_v29  ;;  %v1574_v52 = vadd.f32 %v1495_v46, %v5056_v14 }
 0x167   : > { %v1738_v4 = vpop.f32.mrf.mxu0  ;;  %v3726_v48 = vpop.f32.mrf.mxu1 }
 0x168   : > { %v5176_v36 = vadd.f32 %v1735_v37, %v1574_v52  ;;  %v1577_v33 = vadd.f32 %v3726_v48, %v5065_v12 }
 0x169   : > { %v3769_v50 = vpop.f32.mrf.mxu0  ;;  %v1498_v56 = vpop.f32.mrf.mxu1 }
 0x16a   : > { %v5179_v23 = vadd.f32 %v3766_v5, %v1577_v33  ;;  %v1575_v18 = vadd.f32 %v1498_v56, %v5070_v15 }
 0x16b   : > { %v1751_v19 = vpop.f32.mrf.mxu0  ;;  %v3729_v9 = vpop.f32.mrf.mxu1 }
 0x16c   : > { %5658 = vst [vmem:[#allocation3_spill] sm:$0xff] %v5179_v23  ;;  %v5182_v21 = vadd.f32 %v1738_v4, %v1575_v18  ;;  %v1580_v43 = vadd.f32 %v3729_v9, %v5075_v2 }
 0x16d   : > { %v3770_v45 = vpop.f32.mrf.mxu0  ;;  %v1511_v14 = vpop.f32.mrf.mxu1 }
 0x16e   : > { %5659 = vst [vmem:[#allocation2_spill] sm:$0xff] %v5182_v21  ;;  %v5185_v7 = vadd.f32 %v3769_v50, %v1580_v43  ;;  %v1578_v55 = vadd.f32 %v1511_v14, %v5078_v62 }
 0x16f   : > { %v1754_v6 = vpop.f32.mrf.mxu0  ;;  %v3730_v12 = vpop.f32.mrf.mxu1 }
 0x170   : > { %5660 = vst [vmem:[#allocation4_spill] sm:$0xff] %v5185_v7  ;;  %v5188_v28 = vadd.f32 %v1751_v19, %v1578_v55  ;;  %v1581_v63 = vadd.f32 %v3730_v12, %v5087_v20 }
 0x171   : > { %v3773_v53 = vpop.f32.mrf.mxu0  ;;  %v1514_v15 = vpop.f32.mrf.mxu1 }
 0x172   : > { %5661 = vst [vmem:[#allocation5_spill] sm:$0xff] %v5188_v28  ;;  %v5191_v25 = vadd.f32 %v3770_v45, %v1581_v63  ;;  %v1579_v49 = vadd.f32 %v1514_v15, %v5093_v1 }
 0x173   : > { %v1767_v41 = vpop.f32.mrf.mxu0  ;;  %v3733_v2 = vpop.f32.mrf.mxu1 }
 0x174   : > { %5662 = vst [vmem:[#allocation6_spill] sm:$0xff] %v5191_v25  ;;  %v5194_v39 = vadd.f32 %v1754_v6, %v1579_v49  ;;  %v1584_v60 = vadd.f32 %v3733_v2, %v5099_v57 }
 0x175   : > { %v3774_v32 = vpop.f32.mrf.mxu0  ;;  %v1527_v62 = vpop.f32.mrf.mxu1 }
 0x176   : > { %5663 = vst [vmem:[#allocation7_spill] sm:$0xff] %v5194_v39  ;;  %v5197_v30 = vadd.f32 %v3773_v53, %v1584_v60  ;;  %v1582_v37 = vadd.f32 %v1527_v62, %v5102_v24 }
 0x177   : > { %v1770_v54 = vpop.f32.mrf.mxu0  ;;  %v3734_v20 = vpop.f32.mrf.mxu1 }
 0x178   : > { %5664 = vst [vmem:[#allocation8_spill] sm:$0xff] %v5197_v30  ;;  %v5200_v29 = vadd.f32 %v1767_v41, %v1582_v37  ;;  %v1585_v5 = vadd.f32 %v3734_v20, %v5106_v51 }
 0x179   : > { %v3777_v46 = vpop.f32.mrf.mxu0  ;;  %v1530_v1 = vpop.f32.mrf.mxu1 }
 0x17a   : > { %5665 = vst [vmem:[#allocation9_spill] sm:$0xff] %v5200_v29  ;;  %v5203_v52 = vadd.f32 %v3774_v32, %v1585_v5  ;;  %v1583_v4 = vadd.f32 %v1530_v1, %v5110_v0 }
 0x17b   : > { %v1783_v48 = vpop.f32.mrf.mxu0  ;;  %v3737_v57 = vpop.f32.mrf.mxu1 }
 0x17c   : > { %5666 = vst [vmem:[#allocation10_spill] sm:$0xff] %v5203_v52  ;;  %v5206_v33 = vadd.f32 %v1770_v54, %v1583_v4  ;;  %v1588_v50 = vadd.f32 %v3737_v57, %v5113_v58 }
 0x17d   : > { %v3778_v56 = vpop.f32.mrf.mxu0  ;;  %v1543_v24 = vpop.f32.mrf.mxu1 }
 0x17e   : > { %5667 = vst [vmem:[#allocation11_spill] sm:$0xff] %v5206_v33  ;;  %v5209_v18 = vadd.f32 %v3777_v46, %v1588_v50  ;;  %v1586_v19 = vadd.f32 %v1543_v24, %v5116_v40 }
 0x17f   : > { %v1786_v9 = vpop.f32.mrf.mxu0  ;;  %v3738_v51 = vpop.f32.mrf.mxu1 }
 0x180   : > { %5668 = vst [vmem:[#allocation12_spill] sm:$0xff] %v5209_v18  ;;  %v5212_v43 = vadd.f32 %v1783_v48, %v1586_v19  ;;  %v1589_v45 = vadd.f32 %v3738_v51, %v5119_v35 }
 0x181   : > { %v5215_v14 = vpop.f32.mrf.mxu0  ;;  %v1546_v0 = vpop.f32.mrf.mxu1 }
 0x182   : > { %5669 = vst [vmem:[#allocation13_spill] sm:$0xff] %v5212_v43  ;;  %v5217_v55 = vadd.f32 %v3778_v56, %v1589_v45  ;;  %v1587_v6 = vadd.f32 %v1546_v0, %v5122_v27 }
 0x183   : > { %v5220_v58 = vpop.f32.mrf.mxu0  ;;  %v3789_v12 = vpop.f32.mrf.mxu1 }
 0x184   : > { %5670 = vst [vmem:[#allocation14_spill] sm:$0xff] %v5217_v55  ;;  %v5222_v63 = vadd.f32 %v1786_v9, %v1587_v6 }
 0x185   : > { %v5224_v53 = vpop.f32.mrf.mxu0  ;;  %v1908_v40 = vpop.f32.mrf.mxu1 }
 0x186   : > { %5671 = vst [vmem:[#allocation15_spill] sm:$0xff] %v5222_v63 }
 0x187   : > { %v5226_v15 = vpop.f32.mrf.mxu0  ;;  %v3790_v49 = vpop.f32.mrf.mxu1 }
 0x189   : > { %v5228_v41 = vpop.f32.mrf.mxu0  ;;  %v5230_v35 = vpop.f32.mrf.mxu1 }
 0x18b   : > { %v5232_v2 = vpop.f32.mrf.mxu0  ;;  %v5234_v60 = vpop.f32.mrf.mxu1 }
 0x18d   : > { %v5236_v27 = vpop.f32.mrf.mxu0  ;;  %v5238_v32 = vpop.f32.mrf.mxu1 }
 0x18f   : > { %v5240_v62 = vpop.f32.mrf.mxu0  ;;  %v5242_v37 = vpop.f32.mrf.mxu1 }
 0x191   : > { %v5244_v54 = vpop.f32.mrf.mxu0  ;;  %v5246_v20 = vpop.f32.mrf.mxu1 }
 0x193   : > { %v5248_v5 = vpop.f32.mrf.mxu0  ;;  %v5250_v46 = vpop.f32.mrf.mxu1 }
 0x195   : > { %v5252_v1 = vpop.f32.mrf.mxu0  ;;  %v5254_v4 = vpop.f32.mrf.mxu1 }
 0x197   : > { %v5256_v48 = vpop.f32.mrf.mxu0  ;;  %v5258_v57 = vpop.f32.mrf.mxu1 }
 0x199   : > { %v5260_v50 = vpop.f32.mrf.mxu0  ;;  %v5262_v56 = vpop.f32.mrf.mxu1 }
 0x19b   : > { %v5264_v24 = vpop.f32.mrf.mxu0  ;;  %v5266_v19 = vpop.f32.mrf.mxu1 }
 0x19d   : > { %v5268_v9 = vpop.f32.mrf.mxu0  ;;  %v5270_v51 = vpop.f32.mrf.mxu1 }
 0x19f   : > { %v5272_v45 = vpop.f32.mrf.mxu0  ;;  %v5274_v0 = vpop.f32.mrf.mxu1 }
 0x1a1   : > { %v5276_v6 = vpop.f32.mrf.mxu0  ;;  %v5278_v63 = vpop.f32.mrf.mxu1 }
 0x1a3   : > { %v5280_v55 = vpop.f32.mrf.mxu0  ;;  %v5282_v43 = vpop.f32.mrf.mxu1 }
 0x1a4   : > { %5672 = vst [vmem:[#allocation16_spill] sm:$0xff] %v5280_v55 }
 0x1a5   : > { %v5284_v18 = vpop.f32.mrf.mxu0  ;;  %v5286_v33 = vpop.f32.mrf.mxu1 }
 0x1a6   : > { %5673 = vst [vmem:[#allocation17_spill] sm:$0xff] %v5284_v18 }
 0x1a7   : > { %v5288_v52 = vpop.f32.mrf.mxu0  ;;  %v5290_v29 = vpop.f32.mrf.mxu1 }
 0x1a8   : > { %5674 = vst [vmem:[#allocation18_spill] sm:$0xff] %v5288_v52  ;;  %5675 = vst [vmem:[#allocation19_spill] sm:$0xff] %v5290_v29 }
 0x1a9   : > { %v5292_v30 = vpop.f32.mrf.mxu0  ;;  %v5294_v39 = vpop.f32.mrf.mxu1 }
 0x1aa   : > { %5676 = vst [vmem:[#allocation20_spill] sm:$0xff] %v5292_v30  ;;  %5677 = vst [vmem:[#allocation21_spill] sm:$0xff] %v5294_v39 }
 0x1ab   : > { %v5296_v25 = vpop.f32.mrf.mxu0  ;;  %v5298_v28 = vpop.f32.mrf.mxu1 }
 0x1ac   : > { %5678 = vst [vmem:[#allocation22_spill] sm:$0xff] %v5296_v25  ;;  %5679 = vst [vmem:[#allocation23_spill] sm:$0xff] %v5298_v28 }
 0x1ad   : > { %v5300_v7 = vpop.f32.mrf.mxu0  ;;  %v5302_v21 = vpop.f32.mrf.mxu1 }
 0x1ae   : > { %5680 = vst [vmem:[#allocation24_spill] sm:$0xff] %v5300_v7  ;;  %5681 = vst [vmem:[#allocation25_spill] sm:$0xff] %v5302_v21 }
 0x1af   : > { %v5304_v55 = vpop.f32.mrf.mxu0  ;;  %v5306_v18 = vpop.f32.mrf.mxu1 }
 0x1b0   : > { %5682 = vst [vmem:[#allocation26_spill] sm:$0xff] %v5304_v55  ;;  %5683 = vst [vmem:[#allocation27_spill] sm:$0xff] %v5306_v18 }
 0x1b1   : > { %v5308_v23 = vpop.f32.mrf.mxu0  ;;  %v5310_v52 = vpop.f32.mrf.mxu1 }
 0x1b2   : > { %5684 = vst [vmem:[#allocation28_spill] sm:$0xff] %v5308_v23  ;;  %5685 = vst [vmem:[#allocation29_spill] sm:$0xff] %v5310_v52 }
 0x1b3   : > { %v5312_v29 = vpop.f32.mrf.mxu0  ;;  %v5314_v30 = vpop.f32.mrf.mxu1 }
 0x1b4   : > { %5686 = vst [vmem:[#allocation30_spill] sm:$0xff] %v5312_v29  ;;  %5687 = vst [vmem:[#allocation31_spill] sm:$0xff] %v5314_v30 }
 0x1b5   : > { %v5316_v39 = vpop.f32.mrf.mxu0  ;;  %v5318_v25 = vpop.f32.mrf.mxu1 }
 0x1b6   : > { %5688 = vst [vmem:[#allocation32_spill] sm:$0xff] %v5316_v39  ;;  %5689 = vst [vmem:[#allocation33_spill] sm:$0xff] %v5318_v25  ;;  %v2037_v39 = vadd.f32 %v3789_v12, %v5125_v34  ;;  %v2036_v34 = vadd.f32 %v5230_v35, %v5134_v3 }
 0x1b7   : > { %v5320_v28 = vpop.f32.mrf.mxu0  ;;  %v5322_v7 = vpop.f32.mrf.mxu1 }
 0x1b8   : > { %5690 = vst [vmem:[#allocation34_spill] sm:$0xff] %v5320_v28  ;;  %5691 = vst [vmem:[#allocation35_spill] sm:$0xff] %v5322_v7  ;;  %v2035_v28 = vadd.f32 %v1908_v40, %v5128_v17  ;;  %v5352_v17 = vld [vmem:[%s5547_s2] ss:$0 sm:$0xff] }
 0x1b9   : > { %v5324_v21 = vpop.f32.mrf.mxu0  ;;  %v5326_v55 = vpop.f32.mrf.mxu1 }
 0x1ba   : > { %5692 = vst [vmem:[#allocation36_spill] sm:$0xff] %v5324_v21  ;;  %5693 = vst [vmem:[#allocation37_spill] sm:$0xff] %v5326_v55  ;;  %v2267_v55 = vadd.f32 %v5215_v14, %v2037_v39 }
 0x1bb   : > { %v5328_v18 = vpop.f32.mrf.mxu0  ;;  %v5330_v23 = vpop.f32.mrf.mxu1 }
 0x1bc   : > { %5694 = vst [vmem:[#allocation38_spill] sm:$0xff] %v5328_v18  ;;  %5695 = vst [vmem:[#allocation39_spill] sm:$0xff] %v5330_v23  ;;  %v2038_v18 = vadd.f32 %v3790_v49, %v5131_v8 }
 0x1bd   : > { %v5332_v52 = vpop.f32.mrf.mxu0  ;;  %v5334_v29 = vpop.f32.mrf.mxu1 }
 0x1be   : > { %5696 = vst [vmem:[#allocation40_spill] sm:$0xff] %v5332_v52  ;;  %5697 = vst [vmem:[#allocation41_spill] sm:$0xff] %v5334_v29  ;;  %v2265_v29 = vadd.f32 %v5220_v58, %v2035_v28  ;;  %v2268_v39 = vadd.f32 %v5224_v53, %v2038_v18  ;;  %v2039_v28 = vadd.f32 %v5238_v32, %v5140_v11 }
 0x1bf   : > { %v5337_v30 = vpop.f32.mrf.mxu0  ;;  %v5339_v25 = vpop.f32.mrf.mxu1  ;;  %v2040_v32 = vadd.f32 %v5246_v20, %v5146_v26  ;;  %v2045_v26 = vadd.f32 %v5250_v46, %v5149_v31 }
 0x1c0   : > { %5698 = vst [vmem:[#allocation42_spill] sm:$0xff] %v5337_v30  ;;  %5699 = vst [vmem:[#allocation43_spill] sm:$0xff] %v5339_v25 }
 0x1c1   : > { %v3909_v7 = vpop.f32.mrf.mxu0  ;;  %v5342_v21 = vpop.f32.mrf.mxu1 }
 0x1c2   : > { %5700 = vst [vmem:[#allocation44_spill] sm:$0xff] %v5342_v21  ;;  %v2041_v21 = vadd.f32 %v5234_v60, %v5137_v13 }
 0x1c3   : > { %v2615_v23 = vpop.f32.mrf.mxu0  ;;  %v3869_v52 = vpop.f32.mrf.mxu1 }
 0x1c4   : > { %v2507_v12 = vadd.f32 %v3869_v52, %v2267_v55  ;;  %v2266_v52 = vadd.f32 %v5226_v15, %v2036_v34  ;;  %v2271_v11 = vadd.f32 %v5228_v41, %v2041_v21  ;;  %v2269_v15 = vadd.f32 %v5232_v2, %v2039_v28 }
 0x1c5   : > { %v3910_v30 = vpop.f32.mrf.mxu0  ;;  %v2378_v40 = vpop.f32.mrf.mxu1 }
 0x1c6   : > { %v2744_v14 = vadd.f32 %v3909_v7, %v2507_v12  ;;  %v2505_v8 = vadd.f32 %v2378_v40, %v2265_v29  ;;  %v2042_v7 = vadd.f32 %v5242_v37, %v5143_v22 }
 0x1c7   : > { %v2618_v49 = vpop.f32.mrf.mxu0  ;;  %v3870_v3 = vpop.f32.mrf.mxu1 }
 0x1c8   : > { %v2783_v55 = vadd.f32 %v5352_v17, %v2744_v14  ;;  %v2742_v58 = vadd.f32 %v2615_v23, %v2505_v8  ;;  %v2508_v35 = vadd.f32 %v3870_v3, %v2268_v39  ;;  %v2272_v41 = vadd.f32 %v5236_v27, %v2042_v7 }
 0x1c9   : > { %v3913_v25 = vpop.f32.mrf.mxu0  ;;  %v2381_v29 = vpop.f32.mrf.mxu1  ;;  %v2270_v3 = vadd.f32 %v5240_v62, %v2040_v32  ;;  %v2043_v7 = vadd.f32 %v5254_v4, %v5152_v61 }
 0x1ca   : > { %v2815_v18 = vmax.f32 %v2783_v55, 0.0  ;;  %v2781_v53 = vadd.f32 %v5352_v17, %v2742_v58  ;;  %v2745_v13 = vadd.f32 %v3910_v30, %v2508_v35  ;;  %v2506_v60 = vadd.f32 %v2381_v29, %v2266_v52 }
 0x1cb   : > { %v2631_v12 = vpop.f32.mrf.mxu0  ;;  %v3873_v22 = vpop.f32.mrf.mxu1  ;;  %v2275_v35 = vadd.f32 %v5244_v54, %v2045_v26  ;;  %v2046_v29 = vadd.f32 %v5258_v57, %v5155_v44  ;;  %v2044_v54 = vadd.f32 %v5262_v56, %v5158_v42 }
 0x1cc   : > { %v3369_v23 = vpack.c.bf16 %v2815_v18, %v2815_v18  ;;  %v2813_v37 = vmax.f32 %v2781_v53, 0.0  ;;  %v2784_v30 = vadd.f32 %v5352_v17, %v2745_v13  ;;  %v2743_v34 = vadd.f32 %v2618_v49, %v2506_v60 }
 0x1cd   : > { %v3914_v21 = vpop.f32.mrf.mxu0  ;;  %v2511_v2 = vadd.f32 %v3873_v22, %v2271_v11  ;;  %v2394_v20 = vpop.f32.mrf.mxu1  ;;  %v2273_v22 = vadd.f32 %v5248_v5, %v2043_v7 }
 0x1ce   : > { %2976 = vst.msk [vmem:[%s5372_s20 + $0x8] sm:$0xf] %vm2973_vm3, %v3369_v23  ;;  %v3367_v40 = vpack.c.bf16 %v2813_v37, %v2813_v37  ;;  %v2816_v39 = vmax.f32 %v2784_v30, 0.0  ;;  %v2782_v14 = vadd.f32 %v5352_v17, %v2743_v34  ;;  %v2509_v8 = vadd.f32 %v2394_v20, %v2269_v15 }
 0x1cf   : > { %v2634_v28 = vpop.f32.mrf.mxu0  ;;  %v2748_v49 = vadd.f32 %v3913_v25, %v2511_v2  ;;  %v3874_v52 = vpop.f32.mrf.mxu1  ;;  %v2276_v23 = vadd.f32 %v5252_v1, %v2046_v29  ;;  %v2049_v37 = vadd.f32 %v5266_v19, %v5161_v59  ;;  %v2274_v2 = vadd.f32 %v5256_v48, %v2044_v54 }
 0x1d0   : > { %2974 = vst.msk [vmem:[%s5372_s20] sm:$0xf] %vm2973_vm3, %v3367_v40  ;;  %v3370_v27 = vpack.c.bf16 %v2816_v39, %v2816_v39  ;;  %v2814_v55 = vmax.f32 %v2782_v14, 0.0  ;;  %v2746_v31 = vadd.f32 %v2631_v12, %v2509_v8  ;;  %v2512_v46 = vadd.f32 %v3874_v52, %v2272_v41 }
 0x1d1   : > { %v3917_v58 = vpop.f32.mrf.mxu0  ;;  %v2787_v62 = vadd.f32 %v5352_v17, %v2748_v49  ;;  %v2397_v25 = vpop.f32.mrf.mxu1  ;;  %v2047_v20 = vadd.f32 %v5270_v51, %v5164_v10  ;;  %v2279_v8 = vadd.f32 %v5260_v50, %v2049_v37 }
 0x1d2   : > { %2977 = vst.msk [vmem:[%s5372_s20 + $0xc] sm:$0xf] %vm2973_vm3, %v3370_v27  ;;  %v3368_v18 = vpack.c.bf16 %v2814_v55, %v2814_v55  ;;  %v2785_v53 = vadd.f32 %v5352_v17, %v2746_v31  ;;  %v2749_v13 = vadd.f32 %v3914_v21, %v2512_v46  ;;  %v2510_v60 = vadd.f32 %v2397_v25, %v2270_v3 }
 0x1d3   : > { %v2647_v12 = vpop.f32.mrf.mxu0  ;;  %v2819_v11 = vmax.f32 %v2787_v62, 0.0  ;;  %v3877_v15 = vpop.f32.mrf.mxu1  ;;  %v2277_v27 = vadd.f32 %v5264_v24, %v2047_v20  ;;  %v2050_v55 = vadd.f32 %v5274_v0, %v5167_v38  ;;  %v2048_v31 = vadd.f32 %v5278_v63, %v5170_v47 }
 0x1d4   : > { %2975 = vst.msk [vmem:[%s5372_s20 + $0x4] sm:$0xf] %vm2973_vm3, %v3368_v18  ;;  %v2817_v61 = vmax.f32 %v2785_v53, 0.0  ;;  %v2788_v44 = vadd.f32 %v5352_v17, %v2749_v13  ;;  %v2747_v4 = vadd.f32 %v2634_v28, %v2510_v60  ;;  %v2515_v57 = vadd.f32 %v3877_v15, %v2275_v35 }
 0x1d5   : > { %v3918_v32 = vpop.f32.mrf.mxu0  ;;  %v3373_v42 = vpack.c.bf16 %v2819_v11, %v2819_v11  ;;  %v2410_v56 = vpop.f32.mrf.mxu1  ;;  %v2053_v24 = vadd.f32 %v5282_v43, %v5173_v16  ;;  %v2280_v13 = vadd.f32 %v5268_v9, %v2050_v55  ;;  %v2278_v60 = vadd.f32 %v5272_v45, %v2048_v31  ;;  %v5710_v55 = vld [vmem:[#allocation25_spill] sm:$0xff] }
 0x1d6   : > { %v3371_v30 = vpack.c.bf16 %v2817_v61, %v2817_v61  ;;  %v2820_v34 = vmax.f32 %v2788_v44, 0.0  ;;  %v2786_v21 = vadd.f32 %v5352_v17, %v2747_v4  ;;  %v2752_v41 = vadd.f32 %v3917_v58, %v2515_v57  ;;  %v5701_v57 = vld [vmem:[#allocation3_spill] sm:$0xff] }
 0x1d7   : > { %v2650_v26 = vpop.f32.mrf.mxu0  ;;  %2980 = vst.msk [vmem:[%s5372_s20 + $0x18] sm:$0xf] %vm2973_vm3, %v3373_v42  ;;  %v2513_v5 = vadd.f32 %v2410_v56, %v2273_v22  ;;  %v3878_v1 = vpop.f32.mrf.mxu1  ;;  %v2283_v4 = vadd.f32 %v5276_v6, %v2053_v24  ;;  %v5703_v56 = vld [vmem:[#allocation16_spill] sm:$0xff]  ;;  %v5711_v24 = vld [vmem:[#allocation18_spill] sm:$0xff] }
 0x1d8   : > { %2978 = vst.msk [vmem:[%s5372_s20 + $0x10] sm:$0xf] %vm2973_vm3, %v3371_v30  ;;  %v3374_v59 = vpack.c.bf16 %v2820_v34, %v2820_v34  ;;  %v2818_v19 = vmax.f32 %v2786_v21, 0.0  ;;  %v2791_v40 = vadd.f32 %v5352_v17, %v2752_v41  ;;  %v2516_v39 = vadd.f32 %v3878_v1, %v2276_v23 }
 0x1d9   : > { %v3921_v14 = vpop.f32.mrf.mxu0  ;;  %v2750_v28 = vadd.f32 %v2647_v12, %v2513_v5  ;;  %v2413_v48 = vpop.f32.mrf.mxu1  ;;  %v2051_v12 = vadd.f32 %v5286_v33, %v5176_v36  ;;  %v5704_v5 = vld [vmem:[#allocation17_spill] sm:$0xff] }
 0x1da   : > { %2981 = vst.msk [vmem:[%s5372_s20 + $0x1c] sm:$0xf] %vm2973_vm3, %v3374_v59  ;;  %v3372_v10 = vpack.c.bf16 %v2818_v19, %v2818_v19  ;;  %v2823_v51 = vmax.f32 %v2791_v40, 0.0  ;;  %v2753_v3 = vadd.f32 %v3918_v32, %v2516_v39  ;;  %v2514_v49 = vadd.f32 %v2413_v48, %v2274_v2  ;;  %v5702_v32 = vld [vmem:[#allocation19_spill] sm:$0xff]  ;;  %v5705_v59 = vld [vmem:[#allocation2_spill] sm:$0xff]  ;;  %v5706_v19 = vld [vmem:[#allocation21_spill] sm:$0xff] }
 0x1db   : > { %v2663_v52 = vpop.f32.mrf.mxu0  ;;  %v2789_v50 = vadd.f32 %v5352_v17, %v2750_v28  ;;  %v3881_v46 = vpop.f32.mrf.mxu1  ;;  %v2054_v22 = vadd.f32 %v5702_v32, %v5701_v57  ;;  %v2281_v30 = vadd.f32 %v5703_v56, %v2051_v12  ;;  %v2052_v40 = vadd.f32 %v5706_v19, %v5705_v59  ;;  %v5707_v39 = vld [vmem:[#allocation4_spill] sm:$0xff]  ;;  %v5722_v59 = vld [vmem:[#allocation9_spill] sm:$0xff] }
 0x1dc   : > { %2979 = vst.msk [vmem:[%s5372_s20 + $0x14] sm:$0xf] %vm2973_vm3, %v3372_v10  ;;  %v3377_v58 = vpack.c.bf16 %v2823_v51, %v2823_v51  ;;  %v2792_v35 = vadd.f32 %v5352_v17, %v2753_v3  ;;  %v2751_v7 = vadd.f32 %v2650_v26, %v2514_v49  ;;  %v2519_v29 = vadd.f32 %v3881_v46, %v2279_v8  ;;  %v5723_v19 = vld [vmem:[#allocation33_spill] sm:$0xff] }
 0x1dd   : > { %v3922_v62 = vpop.f32.mrf.mxu0  ;;  %v2821_v25 = vmax.f32 %v2789_v50, 0.0  ;;  %v2426_v18 = vpop.f32.mrf.mxu1  ;;  %v2284_v1 = vadd.f32 %v5704_v5, %v2054_v22  ;;  %v5721_v5 = vld [vmem:[#allocation31_spill] sm:$0xff] }
 0x1de   : > { %2984 = vst.msk [vmem:[%s5372_s20 + $0x28] sm:$0xf] %vm2973_vm3, %v3377_v58  ;;  %v2824_v38 = vmax.f32 %v2792_v35, 0.0  ;;  %v2790_v47 = vadd.f32 %v5352_v17, %v2751_v7  ;;  %v2756_v63 = vadd.f32 %v3921_v14, %v2519_v29  ;;  %v2517_v0 = vadd.f32 %v2426_v18, %v2277_v27  ;;  %v5708_v14 = vld [vmem:[#allocation23_spill] sm:$0xff]  ;;  %v5709_v27 = vld [vmem:[#allocation5_spill] sm:$0xff]  ;;  %v5712_v18 = vld [vmem:[#allocation20_spill] sm:$0xff] }
 0x1df   : > { %v2666_v53 = vpop.f32.mrf.mxu0  ;;  %v3375_v16 = vpack.c.bf16 %v2821_v25, %v2821_v25  ;;  %v3882_v43 = vpop.f32.mrf.mxu1  ;;  %v2057_v8 = vadd.f32 %v5708_v14, %v5707_v39  ;;  %v2055_v31 = vadd.f32 %v5710_v55, %v5709_v27  ;;  %v2282_v25 = vadd.f32 %v5711_v24, %v2052_v40 }
 0x1e0   : > { %v3378_v54 = vpack.c.bf16 %v2824_v38, %v2824_v38  ;;  %v2822_v11 = vmax.f32 %v2790_v47, 0.0  ;;  %v2795_v15 = vadd.f32 %v5352_v17, %v2756_v63  ;;  %v2754_v61 = vadd.f32 %v2663_v52, %v2517_v0  ;;  %v5713_v47 = vld [vmem:[#allocation6_spill] sm:$0xff]  ;;  %v5714_v63 = vld [vmem:[#allocation27_spill] sm:$0xff] }
 0x1e1   : > { %v3925_v44 = vpop.f32.mrf.mxu0  ;;  %2982 = vst.msk [vmem:[%s5372_s20 + $0x20] sm:$0xf] %vm2973_vm3, %v3375_v16  ;;  %v2520_v9 = vadd.f32 %v3882_v43, %v2280_v13  ;;  %v2429_v45 = vpop.f32.mrf.mxu1  ;;  %v2287_v38 = vadd.f32 %v5712_v18, %v2057_v8  ;;  %v2058_v0 = vadd.f32 %v5714_v63, %v5713_v47  ;;  %v2059_v40 = vadd.f32 %v5723_v19, %v5722_v59  ;;  %v5729_v18 = vld [vmem:[#allocation37_spill] sm:$0xff] }
 0x1e2   : > { %2985 = vst.msk [vmem:[%s5372_s20 + $0x2c] sm:$0xf] %vm2973_vm3, %v3378_v54  ;;  %v3376_v36 = vpack.c.bf16 %v2822_v11, %v2822_v11  ;;  %v2827_v33 = vmax.f32 %v2795_v15, 0.0  ;;  %v2793_v23 = vadd.f32 %v5352_v17, %v2754_v61  ;;  %v2518_v37 = vadd.f32 %v2429_v45, %v2278_v60  ;;  %v5715_v11 = vld [vmem:[#allocation22_spill] sm:$0xff]  ;;  %v5716_v61 = vld [vmem:[#allocation7_spill] sm:$0xff] }
 0x1e3   : > { %v2679_v42 = vpop.f32.mrf.mxu0  ;;  %v2757_v34 = vadd.f32 %v3922_v62, %v2520_v9  ;;  %v3885_v6 = vpop.f32.mrf.mxu1  ;;  %v2285_v15 = vadd.f32 %v5715_v11, %v2055_v31  ;;  %v5732_v11 = vld [vmem:[#allocation39_spill] sm:$0xff] }
 0x1e4   : > { %2983 = vst.msk [vmem:[%s5372_s20 + $0x24] sm:$0xf] %vm2973_vm3, %v3376_v36  ;;  %v3381_v21 = vpack.c.bf16 %v2827_v33, %v2827_v33  ;;  %v2825_v41 = vmax.f32 %v2793_v23, 0.0  ;;  %v2755_v26 = vadd.f32 %v2666_v53, %v2518_v37  ;;  %v2523_v2 = vadd.f32 %v3885_v6, %v2283_v4  ;;  %v5718_v23 = vld [vmem:[#allocation24_spill] sm:$0xff] }
 0x1e5   : > { %v3926_v20 = vpop.f32.mrf.mxu0  ;;  %v2796_v28 = vadd.f32 %v5352_v17, %v2757_v34  ;;  %v2442_v48 = vpop.f32.mrf.mxu1  ;;  %v2288_v37 = vadd.f32 %v5718_v23, %v2058_v0 }
 0x1e6   : > { %2988 = vst.msk [vmem:[%s5372_s20 + $0x38] sm:$0xf] %vm2973_vm3, %v3381_v21  ;;  %v3379_v10 = vpack.c.bf16 %v2825_v41, %v2825_v41  ;;  %v2794_v51 = vadd.f32 %v5352_v17, %v2755_v26  ;;  %v2760_v3 = vadd.f32 %v3925_v44, %v2523_v2  ;;  %v2521_v49 = vadd.f32 %v2442_v48, %v2281_v30  ;;  %v5717_v44 = vld [vmem:[#allocation29_spill] sm:$0xff]  ;;  %v5719_v26 = vld [vmem:[#allocation26_spill] sm:$0xff] }
 0x1e7   : > { %v2682_v52 = vpop.f32.mrf.mxu0  ;;  %v2828_v50 = vmax.f32 %v2796_v28, 0.0  ;;  %v3886_v46 = vpop.f32.mrf.mxu1  ;;  %v2056_v4 = vadd.f32 %v5717_v44, %v5716_v61 }
 0x1e8   : > { %2986 = vst.msk [vmem:[%s5372_s20 + $0x30] sm:$0xf] %vm2973_vm3, %v3379_v10  ;;  %v2826_v58 = vmax.f32 %v2794_v51, 0.0  ;;  %v2799_v35 = vadd.f32 %v5352_v17, %v2760_v3  ;;  %v2758_v7 = vadd.f32 %v2679_v42, %v2521_v49  ;;  %v2524_v29 = vadd.f32 %v3886_v46, %v2284_v1  ;;  %v5724_v3 = vld [vmem:[#allocation10_spill] sm:$0xff]  ;;  %v5725_v49 = vld [vmem:[#allocation35_spill] sm:$0xff] }
 0x1e9   : > { %v3929_v62 = vpop.f32.mrf.mxu0  ;;  %v3382_v53 = vpack.c.bf16 %v2828_v50, %v2828_v50  ;;  %v2445_v13 = vpop.f32.mrf.mxu1  ;;  %v2286_v2 = vadd.f32 %v5719_v26, %v2056_v4  ;;  %v5736_v26 = vld [vmem:[#allocation41_spill] sm:$0xff] }
 0x1ea   : > { %v3380_v60 = vpack.c.bf16 %v2826_v58, %v2826_v58  ;;  %v2831_v12 = vmax.f32 %v2799_v35, 0.0  ;;  %v2797_v16 = vadd.f32 %v5352_v17, %v2758_v7  ;;  %v2761_v43 = vadd.f32 %v3926_v20, %v2524_v29  ;;  %v5720_v20 = vld [vmem:[#allocation8_spill] sm:$0xff] }
 0x1eb   : > { %v2695_v54 = vpop.f32.mrf.mxu0  ;;  %2989 = vst.msk [vmem:[%s5372_s20 + $0x3c] sm:$0xf] %vm2973_vm3, %v3382_v53  ;;  %v2522_v57 = vadd.f32 %v2445_v13, %v2282_v25  ;;  %v3889_v32 = vpop.f32.mrf.mxu1  ;;  %v2061_v1 = vadd.f32 %v5721_v5, %v5720_v20  ;;  %v5726_v7 = vld [vmem:[#allocation28_spill] sm:$0xff]  ;;  %v5728_v25 = vld [vmem:[#allocation11_spill] sm:$0xff]  ;;  %v5737_v20 = vld [vmem:[#allocation14_spill] sm:$0xff] }
 0x1ec   : > { %2987 = vst.msk [vmem:[%s5372_s20 + $0x34] sm:$0xf] %vm2973_vm3, %v3380_v60  ;;  %v3385_v22 = vpack.c.bf16 %v2831_v12, %v2831_v12  ;;  %v2829_v9 = vmax.f32 %v2797_v16, 0.0  ;;  %v2800_v45 = vadd.f32 %v5352_v17, %v2761_v43  ;;  %v2527_v36 = vadd.f32 %v3889_v32, %v2287_v38  ;;  %v5730_v16 = vld [vmem:[#allocation32_spill] sm:$0xff]  ;;  %v5738_v5 = vld [vmem:[#allocation43_spill] sm:$0xff] }
 0x1ed   : > { %v3930_v33 = vpop.f32.mrf.mxu0  ;;  %v2759_v42 = vadd.f32 %v2682_v52, %v2522_v57  ;;  %v2458_v56 = vpop.f32.mrf.mxu1  ;;  %v2062_v52 = vadd.f32 %v5725_v49, %v5724_v3  ;;  %v2291_v29 = vadd.f32 %v5726_v7, %v2061_v1  ;;  %v2060_v38 = vadd.f32 %v5729_v18, %v5728_v25 }
 0x1ee   : > { %2992 = vst.msk [vmem:[%s5372_s20 + $0x48] sm:$0xf] %vm2973_vm3, %v3385_v22  ;;  %v3383_v30 = vpack.c.bf16 %v2829_v9, %v2829_v9  ;;  %v2832_v34 = vmax.f32 %v2800_v45, 0.0  ;;  %v2764_v6 = vadd.f32 %v3929_v62, %v2527_v36  ;;  %v2525_v21 = vadd.f32 %v2458_v56, %v2285_v15  ;;  %v5727_v62 = vld [vmem:[#allocation30_spill] sm:$0xff] }
 0x1ef   : > { %v2698_v41 = vpop.f32.mrf.mxu0  ;;  %v2798_v39 = vadd.f32 %v5352_v17, %v2759_v42  ;;  %v3890_v14 = vpop.f32.mrf.mxu1  ;;  %v2289_v24 = vadd.f32 %v5727_v62, %v2059_v40  ;;  %v2292_v43 = vadd.f32 %v5730_v16, %v2062_v52  ;;  %v5733_v45 = vld [vmem:[#allocation34_spill] sm:$0xff]  ;;  %v2066_v1 = vadd.f32 %v5738_v5, %v5737_v20 }
 0x1f0   : > { %2990 = vst.msk [vmem:[%s5372_s20 + $0x40] sm:$0xf] %vm2973_vm3, %v3383_v30  ;;  %v3386_v8 = vpack.c.bf16 %v2832_v34, %v2832_v34  ;;  %v2803_v28 = vadd.f32 %v5352_v17, %v2764_v6  ;;  %v2762_v48 = vadd.f32 %v2695_v54, %v2525_v21  ;;  %v2528_v10 = vadd.f32 %v3890_v14, %v2288_v37  ;;  %v5731_v54 = vld [vmem:[#allocation12_spill] sm:$0xff] }
 0x1f1   : > { %v3933_v51 = vpop.f32.mrf.mxu0  ;;  %v2830_v27 = vmax.f32 %v2798_v39, 0.0  ;;  %v2461_v55 = vpop.f32.mrf.mxu1  ;;  %v2065_v15 = vadd.f32 %v5732_v11, %v5731_v54  ;;  %v2290_v36 = vadd.f32 %v5733_v45, %v2060_v38  ;;  %v5734_v6 = vld [vmem:[#allocation36_spill] sm:$0xff]  ;;  %v5743_v38 = vld [vmem:[#allocation42_spill] sm:$0xff] }
 0x1f2   : > { %2993 = vst.msk [vmem:[%s5372_s20 + $0x4c] sm:$0xf] %vm2973_vm3, %v3386_v8  ;;  %v2835_v31 = vmax.f32 %v2803_v28, 0.0  ;;  %v2801_v50 = vadd.f32 %v5352_v17, %v2762_v48  ;;  %v2765_v46 = vadd.f32 %v3930_v33, %v2528_v10  ;;  %v2526_v58 = vadd.f32 %v2461_v55, %v2286_v2  ;;  %v5739_v28 = vld [vmem:[#allocation15_spill] sm:$0xff]  ;;  %v5740_v48 = vld [vmem:[#allocation44_spill] sm:$0xff] }
 0x1f3   : > { %v2711_v35 = vpop.f32.mrf.mxu0  ;;  %v3384_v47 = vpack.c.bf16 %v2830_v27, %v2830_v27  ;;  %v3893_v63 = vpop.f32.mrf.mxu1  ;;  %v2295_v21 = vadd.f32 %v5734_v6, %v2065_v15  ;;  %v2064_v10 = vadd.f32 %v5740_v48, %v5739_v28 }
 0x1f4   : > { %v3389_v0 = vpack.c.bf16 %v2835_v31, %v2835_v31  ;;  %v2833_v53 = vmax.f32 %v2801_v50, 0.0  ;;  %v2804_v13 = vadd.f32 %v5352_v17, %v2765_v46  ;;  %v2763_v60 = vadd.f32 %v2698_v41, %v2526_v58  ;;  %v5735_v41 = vld [vmem:[#allocation13_spill] sm:$0xff]  ;;  %v5741_v50 = vld [vmem:[#allocation38_spill] sm:$0xff]  ;;  %v5742_v58 = vld [vmem:[#allocation40_spill] sm:$0xff] }
 0x1f5   : > { %v3934_v12 = vpop.f32.mrf.mxu0  ;;  %2991 = vst.msk [vmem:[%s5372_s20 + $0x44] sm:$0xf] %vm2973_vm3, %v3384_v47  ;;  %v2531_v61 = vadd.f32 %v3893_v63, %v2291_v29  ;;  %v2474_v44 = vpop.f32.mrf.mxu1  ;;  %v2063_v2 = vadd.f32 %v5736_v26, %v5735_v41  ;;  %v2294_v47 = vadd.f32 %v5743_v38, %v2064_v10 }
 0x1f6   : > { %2996 = vst.msk [vmem:[%s5372_s20 + $0x58] sm:$0xf] %vm2973_vm3, %v3389_v0  ;;  %v3387_v4 = vpack.c.bf16 %v2833_v53, %v2833_v53  ;;  %v2836_v57 = vmax.f32 %v2804_v13, 0.0  ;;  %v2802_v32 = vadd.f32 %v5352_v17, %v2763_v60  ;;  %v2529_v22 = vadd.f32 %v2474_v44, %v2289_v24 }
 0x1f7   : > { %v2714_v9 = vpop.f32.mrf.mxu0  ;;  %v2768_v33 = vadd.f32 %v3933_v51, %v2531_v61  ;;  %v3894_v23 = vpop.f32.mrf.mxu1  ;;  %v2293_v46 = vadd.f32 %v5741_v50, %v2063_v2 }
 0x1f8   : > { %2994 = vst.msk [vmem:[%s5372_s20 + $0x50] sm:$0xf] %vm2973_vm3, %v3387_v4  ;;  %v3390_v37 = vpack.c.bf16 %v2836_v57, %v2836_v57  ;;  %v2834_v42 = vmax.f32 %v2802_v32, 0.0  ;;  %v2766_v56 = vadd.f32 %v2711_v35, %v2529_v22  ;;  %v2532_v30 = vadd.f32 %v3894_v23, %v2292_v43 }
 0x1f9   : > { %v3937_v34 = vpop.f32.mrf.mxu0  ;;  %v2807_v59 = vadd.f32 %v5352_v17, %v2768_v33  ;;  %v2477_v19 = vpop.f32.mrf.mxu1  ;;  %v2296_v35 = vadd.f32 %v5742_v58, %v2066_v1 }
 0x1fa   : > { %2997 = vst.msk [vmem:[%s5372_s20 + $0x5c] sm:$0xf] %vm2973_vm3, %v3390_v37  ;;  %v3388_v40 = vpack.c.bf16 %v2834_v42, %v2834_v42  ;;  %v2805_v39 = vadd.f32 %v5352_v17, %v2766_v56  ;;  %v2769_v14 = vadd.f32 %v3934_v12, %v2532_v30  ;;  %v2530_v8 = vadd.f32 %v2477_v19, %v2290_v36 }
 0x1fb   : > { %v2839_v51 = vmax.f32 %v2807_v59, 0.0  ;;  %v3897_v3 = vpop.f32.mrf.mxu1  ;;  %v2727_v49 = vpop.f32.mrf.mxu0 }
 0x1fc   : > { %2995 = vst.msk [vmem:[%s5372_s20 + $0x54] sm:$0xf] %vm2973_vm3, %v3388_v40  ;;  %v2837_v52 = vmax.f32 %v2805_v39, 0.0  ;;  %v2808_v27 = vadd.f32 %v5352_v17, %v2769_v14  ;;  %v2767_v55 = vadd.f32 %v2714_v9, %v2530_v8  ;;  %v2535_v31 = vadd.f32 %v3897_v3, %v2295_v21 }
 0x1fd   : > { %v3393_v7 = vpack.c.bf16 %v2839_v51, %v2839_v51  ;;  %v2490_v29 = vpop.f32.mrf.mxu1  ;;  %v3938_v53 = vpop.f32.mrf.mxu0 }
 0x1fe   : > { %v3391_v62 = vpack.c.bf16 %v2837_v52, %v2837_v52  ;;  %v2840_v24 = vmax.f32 %v2808_v27, 0.0  ;;  %v2806_v25 = vadd.f32 %v5352_v17, %v2767_v55  ;;  %v2772_v18 = vadd.f32 %v3937_v34, %v2535_v31 }
 0x1ff   : > { %3000 = vst.msk [vmem:[%s5372_s20 + $0x68] sm:$0xf] %vm2973_vm3, %v3393_v7  ;;  %v2533_v63 = vadd.f32 %v2490_v29, %v2293_v46  ;;  %v3898_v0 = vpop.f32.mrf.mxu1  ;;  %v2730_v57 = vpop.f32.mrf.mxu0 }
 0x200   : > { %2998 = vst.msk [vmem:[%s5372_s20 + $0x60] sm:$0xf] %vm2973_vm3, %v3391_v62  ;;  %v3394_v13 = vpack.c.bf16 %v2840_v24, %v2840_v24  ;;  %v2838_v60 = vmax.f32 %v2806_v25, 0.0  ;;  %v2811_v12 = vadd.f32 %v5352_v17, %v2772_v18  ;;  %v2536_v16 = vadd.f32 %v3898_v0, %v2296_v35 }
 0x201   : > { %v2770_v43 = vadd.f32 %v2727_v49, %v2533_v63  ;;  %v2493_v54 = vpop.f32.mrf.mxu1 }
 0x202   : > { %3001 = vst.msk [vmem:[%s5372_s20 + $0x6c] sm:$0xf] %vm2973_vm3, %v3394_v13  ;;  %v3392_v11 = vpack.c.bf16 %v2838_v60, %v2838_v60  ;;  %v2843_v15 = vmax.f32 %v2811_v12, 0.0  ;;  %v2773_v61 = vadd.f32 %v3938_v53, %v2536_v16  ;;  %v2534_v44 = vadd.f32 %v2493_v54, %v2294_v47 }
 0x203   : > { %v2809_v4 = vadd.f32 %v5352_v17, %v2770_v43 }
 0x204   : > { %2999 = vst.msk [vmem:[%s5372_s20 + $0x64] sm:$0xf] %vm2973_vm3, %v3392_v11  ;;  %v3397_v32 = vpack.c.bf16 %v2843_v15, %v2843_v15  ;;  %v2812_v22 = vadd.f32 %v5352_v17, %v2773_v61  ;;  %v2771_v9 = vadd.f32 %v2730_v57, %v2534_v44 }
 0x205   : > { %v2841_v45 = vmax.f32 %v2809_v4, 0.0 }
 0x206   : > { %3004 = vst.msk [vmem:[%s5372_s20 + $0x78] sm:$0xf] %vm2973_vm3, %v3397_v32  ;;  %v2844_v36 = vmax.f32 %v2812_v22, 0.0  ;;  %v2810_v33 = vadd.f32 %v5352_v17, %v2771_v9 }
 0x207   : > { %v3395_v23 = vpack.c.bf16 %v2841_v45, %v2841_v45 }
 0x208   : > { %v3398_v37 = vpack.c.bf16 %v2844_v36, %v2844_v36  ;;  %v2842_v42 = vmax.f32 %v2810_v33, 0.0 }
 0x209   : > { %3002 = vst.msk [vmem:[%s5372_s20 + $0x70] sm:$0xf] %vm2973_vm3, %v3395_v23 }
 0x20a   : > { %3005 = vst.msk [vmem:[%s5372_s20 + $0x7c] sm:$0xf] %vm2973_vm3, %v3398_v37  ;;  %v3396_v56 = vpack.c.bf16 %v2842_v42, %v2842_v42 }
 0x20c   : > { %3003 = vst.msk [vmem:[%s5372_s20 + $0x74] sm:$0xf] %vm2973_vm3, %v3396_v56 }
 0x20d PF: > { %s13_s12 = sadd.s32 1, %s4034_s12  }
 0x20e   : > { %p10_p4 = scmp.ge.s32.totalorder %s13_s12, 4  }
 0x210   :  { %12 = sbr.rel (!%p10_p4) target bundleno = 1 (0x1), region = 70 }

// kernel: forward.8
= control target key start
LH: loop header
LB: loop body
LE: loop exit
PB: predicated region body
PF: predicated region fallthrough
CT: control target
= control target key end

     0   :  { %s4150_s12 = smov 0   ;;  %s5552_s0 = inlined_call_operand.vmem [shape: bf16[2,18,18,64], index: 0, kind: input, shape index: {}]   ;;  %s5553_s1 = inlined_call_operand.vmem [shape: bf16[9,64,128], index: 1, kind: input, shape index: {}]   ;;  %s5554_s2 = inlined_call_operand.vmem [shape: f32[1,128], index: 2, kind: input, shape index: {}]   ;;  %s5555_s3 = inlined_call_operand.vmem [shape: bf16[2,16,16,128], index: 3, kind: output, shape index: {}]  }
   0x1 LB: > { %s3060_s13 = sadd.s32 4294967295, %s4128_s12   ;;  %p3064_p0 = scmp.ge.s32.totalorder %s4128_s12, 1  ;;  %s4128_s12 = sphi %s4150_s12, %s13_s12  }
   0x2   : > { %p137_p1 = scmp.lt.s32.totalorder %s4128_s12, 3 }
   0x4   : > { %p138_p2 = pnand %p3064_p0, %p137_p1 }
   0x6   : > { %141 = sbr.rel (%p138_p2) target bundleno = 525 (0x20d), region = 32 }
   0xb   : > { %v4050_v0 = vld [vmem:[%s5553_s1 + $0x38] sm:$0xff]   ;;  %p161_p3 = scmp.lt.s32.totalorder %s3060_s13, 1  ;;  %v4051_v1 = vld [vmem:[%s5553_s1 + $0x30] sm:$0xff]   ;;  %v4052_v2 = vld [vmem:[%s5553_s1 + $0x28] sm:$0xff]   ;;  %vm352_vm0 = vcmask 1046528   ;;  %vm514_vm1 = vcmask 523264  }
   0xc   : > { %3673 = vmatprep.subr.bf16.mxu0 %v4050_v0  ;;  %4033 = vmatprep.subr.bf16.mxu1 %v4050_v0  ;;  %v4053_v6 = vld [vmem:[%s5553_s1 + $0x20] sm:$0xff]   ;;  %v4218_v29 = vld [vmem:[%s5553_s1 + $0x18] sm:$0xff]   ;;  %v4058_v57 = vld [vmem:[%s5553_s1 + $0x50] sm:$0xff]   ;;  %vm957_vm2 = vcmask 1045504  }
   0xd   : > { %s5696_s13 = smov (!%p161_p3, %s3060_s13), 1  ;;  %3674 = vmatpush3.bf16.msra.mxu0 %v4050_v0  ;;  %4037 = vmatpush3.bf16.msra.mxu1 %v4050_v0  ;;  %v4056_v30 = vld [vmem:[%s5553_s1 + $0x58] sm:$0xff]  }
   0xe   : > { %3675 = vmatprep.subr.bf16.mxu0 %v4051_v1  ;;  %4034 = vmatprep.subr.bf16.mxu1 %v4051_v1  ;;  %s4041_s20 = smul.u32 216, %s5696_s13  ;;  %s3365_s18 = sshll.u32 %s5696_s13, 7 }
  0x10   : > { %s4173_s23 = scalar_lea.vmem %s5552_s0, %s4041_s20  ;;  %s5455_s20 = scalar_lea.vmem %s5555_s3, %s3365_s18 }
  0x11   : > { %3676 = vmatpush3.bf16.msra.mxu0 %v4051_v1  ;;  %4038 = vmatpush3.bf16.msra.mxu1 %v4051_v1  ;;  %v4176_v3 = vld [vmem:[%s4173_s23] sm:$0xff]   ;;  %v174_v4 = vld [vmem:[%s4173_s23 + $0x8] sm:$0x1]  ;;  %v4192_v12 = vld [vmem:[%s4173_s23 + $0xc] sm:$0xff]  }
  0x12   : > { %v4180_v5 = vld [vmem:[%s4173_s23 + $0x60] sm:$0xff]   ;;  %3677 = vmatprep.subr.bf16.mxu0 %v4052_v2  ;;  %4035 = vmatprep.subr.bf16.mxu1 %v4052_v2  ;;  %v226_v7 = vunpack.c.l.bf16 %v4176_v3  ;;  %v227_v8 = vunpack.c.h.bf16 %v4176_v3  ;;  %v228_v9 = vunpack.c.l.bf16 %v174_v4  ;;  %v4188_v10 = vld [vmem:[%s4173_s23 + $0x68] sm:$0x1]  ;;  %v4197_v15 = vld [vmem:[%s4173_s23 + $0x14] sm:$0x1]  ;;  %v229_v16 = vunpack.c.l.bf16 %v4192_v12 }
  0x13   : > { %v5570_v11 = vunpack.c.l.bf16 %v4180_v5  ;;  %v5569_v13 = vunpack.c.h.bf16 %v4180_v5  ;;  %v5565_v14 = vunpack.c.l.bf16 %v4188_v10  ;;  %v230_v20 = vunpack.c.h.bf16 %v4192_v12  ;;  %v4213_v28 = vld [vmem:[%s4173_s23 + $0x6c] sm:$0xff]   ;;  %v4227_v35 = vld [vmem:[%s4173_s23 + $0x74] sm:$0x1]  ;;  %v4235_v40 = vld [vmem:[%s4173_s23 + $0x18] sm:$0xff]  }
  0x14   : > { %v353_v17 = vrot.slane %v226_v7, 1  ;;  %v354_v18 = vrot.slane %v227_v8, 1  ;;  %v356_v19 = vrot.slane %v228_v9, 1  ;;  %v4201_v21 = vrot.slane %v226_v7, 2  ;;  %v4245_v45 = vld [vmem:[%s4173_s23 + $0x20] sm:$0x1] }
  0x15   : > { %3678 = vmatpush3.bf16.msra.mxu0 %v4052_v2  ;;  %4039 = vmatpush3.bf16.msra.mxu1 %v4052_v2  ;;  %v393_v22 = vrot.slane %v5570_v11, 1  ;;  %v394_v23 = vrot.slane %v5569_v13, 1  ;;  %v396_v26 = vrot.slane %v5565_v14, 1  ;;  %v5590_v27 = vunpack.c.l.bf16 %v4197_v15  ;;  %v4248_v46 = vld [vmem:[%s4173_s23 + $0x78] sm:$0xff]   ;;  %v4257_v51 = vld [vmem:[%s4173_s23 + $0x80] sm:$0x1] }
  0x16   : > { %3679 = vmatprep.subr.bf16.mxu0 %v4053_v6  ;;  %4036 = vmatprep.subr.bf16.mxu1 %v4053_v6  ;;  %v355_v24 = vsel %vm352_vm0, %v353_v17, %v354_v18  ;;  %v357_v25 = vsel %vm352_vm0, %v354_v18, %v356_v19  ;;  %v4223_v32 = vrot.slane %v227_v8, 2  ;;  %v358_v34 = vrot.slane %v229_v16, 1  ;;  %v4268_v56 = vld [vmem:[%s4173_s23 + $0x24] sm:$0xff]   ;;  %v4288_v2 = vld [vmem:[%s4173_s23 + $0x2c] sm:$0x1] }
  0x17   : > { %v465_v31 = vpack.c.bf16 %v357_v25, %v355_v24  ;;  %v395_v33 = vsel %vm352_vm0, %v393_v22, %v394_v23  ;;  %v4229_v36 = vrot.slane %v228_v9, 2  ;;  %v397_v37 = vsel %vm352_vm0, %v394_v23, %v396_v26  ;;  %v4297_v9 = vld [vmem:[%s4173_s23 + $0x84] sm:$0xff]   ;;  %v4057_v22 = vld [vmem:[%s5553_s1 + $0x10] sm:$0xff]  }
  0x18   : > { %v359_v38 = vrot.slane %v230_v20, 1  ;;  %v361_v39 = vrot.slane %v5590_v27, 1  ;;  %v4237_v41 = vpack.c.bf16 %v397_v37, %v395_v33  ;;  %v4239_v42 = vrot.slane %v229_v16, 2  ;;  %v4313_v23 = vld [vmem:[%s4173_s23 + $0x30] sm:$0xff]   ;;  %v4060_v33 = vld [vmem:[%s5553_s1 + $0x48] sm:$0xff]  }
  0x19   : > { %3680 = vmatpush3.bf16.msra.mxu0 %v4053_v6  ;;  %4040 = vmatpush3.bf16.msra.mxu1 %v4053_v6  ;;  %v4241_v43 = vrot.slane %v230_v20, 2  ;;  %v5564_v44 = vunpack.c.l.bf16 %v4213_v28  ;;  %v5563_v49 = vunpack.c.h.bf16 %v4213_v28  ;;  %v5562_v50 = vunpack.c.l.bf16 %v4227_v35  ;;  %v4307_v20 = vld [vmem:[%s4173_s23 + $0x8c] sm:$0x1] }
  0x1a   : > { %3681 = vmatprep.mubr.msk.bf16.mxu0 %vm514_vm1, %v465_v31  ;;  %v360_v47 = vsel %vm352_vm0, %v358_v34, %v359_v38  ;;  %v362_v48 = vsel %vm352_vm0, %v359_v38, %v361_v39  ;;  %3713 = vmatprep.subr.bf16.mxu1 %v4218_v29  ;;  %v5585_v54 = vunpack.c.l.bf16 %v4235_v40  ;;  %v5584_v55 = vunpack.c.h.bf16 %v4235_v40  ;;  %v4320_v31 = vld [vmem:[%s4173_s23 + $0x38] sm:$0x1] }
  0x1b   : > { %3697 = vmatprep.mubr.msk.bf16.mxu1 %vm514_vm1, %v4237_v41  ;;  %v4261_v52 = vpack.c.bf16 %v362_v48, %v360_v47  ;;  %v398_v53 = vrot.slane %v5564_v44, 1  ;;  %3753 = vmatprep.subr.bf16.mxu0 %v4056_v30  ;;  %v399_v58 = vrot.slane %v5563_v49, 1  ;;  %v401_v59 = vrot.slane %v5562_v50, 1  ;;  %v4333_v47 = vld [vmem:[%s4173_s23 + $0x90] sm:$0xff]   ;;  %v4061_v49 = vld [vmem:[%s5553_s1] sm:$0xff]  }
  0x1c   : > { %v5583_v60 = vunpack.c.l.bf16 %v4245_v45  ;;  %v5558_v61 = vunpack.c.l.bf16 %v4248_v46  ;;  %v363_v62 = vrot.slane %v5585_v54, 1  ;;  %v364_v63 = vrot.slane %v5584_v55, 1 }
  0x1d   : > { %3682 = vmatmul.mubr.msk.bf16.vlgmr.msra.gmra.mxu0 %vm514_vm1, %v4261_v52  ;;  %v5557_v0 = vunpack.c.h.bf16 %v4248_v46  ;;  %v5556_v1 = vunpack.c.l.bf16 %v4257_v51  ;;  %v400_v4 = vsel %vm352_vm0, %v398_v53, %v399_v58  ;;  %v402_v6 = vsel %vm352_vm0, %v399_v58, %v401_v59 }
  0x1e   : > { %3754 = vmatpush3.bf16.msra.mxu0 %v4056_v30  ;;  %v366_v7 = vrot.slane %v5583_v60, 1  ;;  %v403_v8 = vrot.slane %v5558_v61, 1  ;;  %v4299_v16 = vpack.c.bf16 %v402_v6, %v400_v4  ;;  %v365_v17 = vsel %vm352_vm0, %v363_v62, %v364_v63  ;;  %v4345_v62 = vld [vmem:[%s4173_s23 + $0x98] sm:$0x1] }
  0x1f   : > { %v404_v18 = vrot.slane %v5557_v0, 1  ;;  %v406_v19 = vrot.slane %v5556_v1, 1  ;;  %3755 = vmatprep.subr.bf16.mxu0 %v4058_v57  ;;  %v5582_v25 = vunpack.c.l.bf16 %v4268_v56  ;;  %v5581_v26 = vunpack.c.h.bf16 %v4268_v56  ;;  %v4381_v1 = vld [vmem:[%s4173_s23 + $0x9c] sm:$0xff]  }
  0x20   : > { %v367_v24 = vsel %vm352_vm0, %v364_v63, %v366_v7  ;;  %v5579_v30 = vunpack.c.l.bf16 %v4288_v2  ;;  %3698 = vmatmul.mubr.msk.bf16.vlgmr.msra.gmra.mxu1 %vm514_vm1, %v4299_v16  ;;  %v5561_v39 = vunpack.c.l.bf16 %v4297_v9  ;;  %v4348_v63 = vld [vmem:[%s4173_s23 + $0x3c] sm:$0xff]   ;;  %v5560_v4 = vunpack.c.l.bf16 %v4307_v20 }
  0x21   : > { %v4327_v34 = vpack.c.bf16 %v367_v24, %v365_v17  ;;  %v405_v37 = vsel %vm352_vm0, %v403_v8, %v404_v18  ;;  %v407_v38 = vsel %vm352_vm0, %v404_v18, %v406_v19  ;;  %3714 = vmatpush3.bf16.msra.mxu1 %v4218_v29  ;;  %v368_v53 = vrot.slane %v5582_v25, 1  ;;  %v4062_v24 = vld [vmem:[%s5553_s1 + $0x40] sm:$0xff]  }
  0x22   : > { %v4336_v48 = vpack.c.bf16 %v407_v38, %v405_v37  ;;  %v369_v58 = vrot.slane %v5581_v26, 1  ;;  %v371_v59 = vrot.slane %v5579_v30, 1  ;;  %3756 = vmatpush3.bf16.msra.mxu0 %v4058_v57  ;;  %v5559_v29 = vunpack.c.h.bf16 %v4297_v9  ;;  %3715 = vmatprep.subr.bf16.mxu1 %v4057_v22  ;;  %v4059_v57 = vld [vmem:[%s5553_s1 + $0x8] sm:$0xff]  }
  0x23   : > { %3685 = vmatprep.mubr.msk.bf16.mxu0 %vm514_vm1, %v4327_v34  ;;  %v408_v6 = vrot.slane %v5561_v39, 1  ;;  %v5578_v7 = vunpack.c.l.bf16 %v4313_v23  ;;  %v5573_v18 = vunpack.c.h.bf16 %v4313_v23  ;;  %v5571_v19 = vunpack.c.l.bf16 %v4320_v31  ;;  %3757 = vmatprep.subr.bf16.mxu0 %v4060_v33 }
  0x24   : > { %3701 = vmatprep.mubr.msk.bf16.mxu1 %vm514_vm1, %v4336_v48  ;;  %v370_v8 = vsel %vm352_vm0, %v368_v53, %v369_v58  ;;  %v372_v17 = vsel %vm352_vm0, %v369_v58, %v371_v59  ;;  %v409_v38 = vrot.slane %v5559_v29, 1  ;;  %v411_v53 = vrot.slane %v5560_v4, 1  ;;  %v4378_v59 = vld [vmem:[%s4173_s23 + $0x44] sm:$0x1] }
  0x25   : > { %v4369_v37 = vpack.c.bf16 %v372_v17, %v370_v8  ;;  %v373_v58 = vrot.slane %v5578_v7, 1  ;;  %3716 = vmatpush3.bf16.msra.mxu1 %v4057_v22  ;;  %v374_v0 = vrot.slane %v5573_v18, 1  ;;  %v376_v8 = vrot.slane %v5571_v19, 1  ;;  %v4390_v29 = vld [vmem:[%s4173_s23 + $0xa4] sm:$0x1] }
  0x26   : > { %v5567_v17 = vunpack.c.l.bf16 %v4333_v47  ;;  %v5566_v61 = vunpack.c.h.bf16 %v4333_v47  ;;  %3758 = vmatpush3.bf16.msra.mxu0 %v4060_v33  ;;  %v410_v4 = vsel %vm352_vm0, %v408_v6, %v409_v38  ;;  %v412_v22 = vsel %vm352_vm0, %v409_v38, %v411_v53  ;;  %3717 = vmatprep.subr.bf16.mxu1 %v4059_v57  ;;  %v4410_v38 = vld [vmem:[%s5553_s1 + $0x98] sm:$0xff]   ;;  %v4443_v18 = vld [vmem:[%s4173_s23 + $0xb0] sm:$0x1] }
  0x27   : > { %3686 = vmatmul.mubr.msk.bf16.gmra.mxu0 %vm514_vm1, %v4369_v37  ;;  %v5568_v39 = vunpack.c.l.bf16 %v4345_v62  ;;  %v5572_v50 = vunpack.c.l.bf16 %v4348_v63  ;;  %v4401_v44 = vpack.c.bf16 %v412_v22, %v410_v4  ;;  %v375_v33 = vsel %vm352_vm0, %v373_v58, %v374_v0  ;;  %3759 = vmatprep.subr.bf16.mxu0 %v4062_v24  ;;  %v4420_v58 = vld [vmem:[%s4173_s23 + $0x50] sm:$0x1] }
  0x28   : > { %v377_v14 = vsel %vm352_vm0, %v374_v0, %v376_v8  ;;  %v413_v6 = vrot.slane %v5567_v17, 1  ;;  %v414_v4 = vrot.slane %v5566_v61, 1  ;;  %v5576_v0 = vunpack.c.h.bf16 %v4348_v63  ;;  %v4430_v17 = vld [vmem:[%s4173_s23 + $0x48] sm:$0xff]  }
  0x29   : > { %v4412_v53 = vpack.c.bf16 %v377_v14, %v375_v33  ;;  %v416_v22 = vrot.slane %v5568_v39, 1  ;;  %3702 = vmatmul.mubr.msk.bf16.gmra.mxu1 %vm514_vm1, %v4401_v44  ;;  %v5574_v8 = vunpack.c.l.bf16 %v4378_v59  ;;  %v378_v14 = vrot.slane %v5572_v50, 1  ;;  %v4440_v50 = vld [vmem:[%s4173_s23 + $0xa8] sm:$0xff]  }
  0x2a   : > { %v5575_v33 = vunpack.c.l.bf16 %v4381_v1  ;;  %v5577_v61 = vunpack.c.h.bf16 %v4381_v1  ;;  %3760 = vmatpush3.bf16.msra.mxu0 %v4062_v24  ;;  %v415_v39 = vsel %vm352_vm0, %v413_v6, %v414_v4  ;;  %v379_v11 = vrot.slane %v5576_v0, 1  ;;  %3718 = vmatpush3.bf16.msra.mxu1 %v4059_v57  ;;  %v4456_v57 = vld [vmem:[%s5553_s1 + $0x78] sm:$0xff]  }
  0x2b   : > { %3689 = vmatprep.mubr.msk.bf16.mxu0 %vm514_vm1, %v4412_v53  ;;  %v417_v13 = vsel %vm352_vm0, %v414_v4, %v416_v22  ;;  %v5580_v19 = vunpack.c.l.bf16 %v4390_v29  ;;  %v381_v6 = vrot.slane %v5574_v8, 1  ;;  %3719 = vmatprep.subr.bf16.mxu1 %v4061_v49  ;;  %v5589_v8 = vunpack.c.l.bf16 %v4430_v17  ;;  %v4465_v0 = vld [vmem:[%s4173_s23 + $0x54] sm:$0xff]  }
  0x2c   : > { %v4445_v24 = vpack.c.bf16 %v417_v13, %v415_v39  ;;  %v418_v4 = vrot.slane %v5575_v33, 1  ;;  %v419_v22 = vrot.slane %v5577_v61, 1  ;;  %3833 = vmatprep.subr.bf16.mxu0 %v4410_v38  ;;  %v380_v13 = vsel %vm352_vm0, %v378_v14, %v379_v11  ;;  %v4468_v61 = vld [vmem:[%s4173_s23 + $0x5c] sm:$0x1] }
  0x2d   : > { %v421_v39 = vrot.slane %v5580_v19, 1  ;;  %v5587_v33 = vunpack.c.h.bf16 %v4430_v17  ;;  %v382_v7 = vsel %vm352_vm0, %v379_v11, %v381_v6  ;;  %v5586_v14 = vunpack.c.l.bf16 %v4420_v58 }
  0x2e   : > { %3705 = vmatprep.mubr.msk.bf16.mxu1 %vm514_vm1, %v4445_v24  ;;  %v420_v30 = vsel %vm352_vm0, %v418_v4, %v419_v22  ;;  %v5588_v19 = vunpack.c.l.bf16 %v4440_v50  ;;  %v4476_v26 = vpack.c.bf16 %v382_v7, %v380_v13  ;;  %v383_v60 = vrot.slane %v5589_v8, 1  ;;  %3720 = vmatpush3.bf16.msra.mxu1 %v4061_v49  ;;  %v4490_v4 = vld [vmem:[%s4173_s23 + $0xb4] sm:$0xff]  }
  0x2f   : > { %v422_v25 = vsel %vm352_vm0, %v419_v22, %v421_v39  ;;  %v384_v55 = vrot.slane %v5587_v33, 1  ;;  %v386_v11 = vrot.slane %v5586_v14, 1  ;;  %v5591_v6 = vunpack.c.h.bf16 %v4440_v50  ;;  %3793 = vmatprep.subr.bf16.mxu1 %v4456_v57  ;;  %v4509_v33 = vld [vmem:[%s4173_s23 + $0xbc] sm:$0x1] }
  0x30   : > { %v4483_v54 = vpack.c.bf16 %v422_v25, %v420_v30  ;;  %v5592_v7 = vunpack.c.l.bf16 %v4443_v18  ;;  %3690 = vmatmul.mubr.msk.bf16.gmra.mxu0 %vm514_vm1, %v4476_v26  ;;  %v423_v49 = vrot.slane %v5588_v19, 1  ;;  %v5596_v25 = vunpack.c.l.bf16 %v4465_v0 }
  0x31   : > { %v385_v22 = vsel %vm352_vm0, %v383_v60, %v384_v55  ;;  %v5595_v30 = vunpack.c.h.bf16 %v4465_v0  ;;  %v387_v13 = vsel %vm352_vm0, %v384_v55, %v386_v11  ;;  %v424_v39 = vrot.slane %v5591_v6, 1 }
  0x32   : > { %5602 = vst [vmem:[#allocation2_spill] sm:$0xff] %v4483_v54  ;;  %3706 = vmatmul.mubr.msk.bf16.gmra.mxu1 %vm514_vm1, %v4483_v54  ;;  %v426_v14 = vrot.slane %v5592_v7, 1  ;;  %v5597_v60 = vunpack.c.l.bf16 %v4468_v61  ;;  %v4511_v19 = vpack.c.bf16 %v387_v13, %v385_v22  ;;  %v388_v8 = vrot.slane %v5596_v25, 1 }
  0x33   : > { %v389_v27 = vrot.slane %v5595_v30, 1  ;;  %v5599_v55 = vunpack.c.l.bf16 %v4490_v4  ;;  %v425_v11 = vsel %vm352_vm0, %v423_v49, %v424_v39  ;;  %v5598_v54 = vunpack.c.h.bf16 %v4490_v4 }
  0x34   : > { %v427_v6 = vsel %vm352_vm0, %v424_v39, %v426_v14  ;;  %v391_v7 = vrot.slane %v5597_v60, 1  ;;  %3693 = vmatprep.mubr.msk.bf16.mxu0 %vm514_vm1, %v4511_v19  ;;  %v5600_v30 = vunpack.c.l.bf16 %v4509_v33  ;;  %v5603_v49 = vunpack.c.l.bf16 %v4197_v15 }
  0x35   : > { %v4525_v22 = vpack.c.bf16 %v427_v6, %v425_v11  ;;  %v390_v13 = vsel %vm352_vm0, %v388_v8, %v389_v27  ;;  %v428_v25 = vrot.slane %v5599_v55, 1  ;;  %v429_v60 = vrot.slane %v5598_v54, 1 }
  0x36   : > { %v966_v14 = vrot.slane %v5603_v49, 2  ;;  %v392_v39 = vsel %vm352_vm0, %v389_v27, %v391_v7  ;;  %v960_v6 = vsel %vm957_vm2, %v4201_v21, %v4223_v32  ;;  %v431_v11 = vrot.slane %v5600_v30, 1 }
  0x37   : > { %3709 = vmatprep.mubr.msk.bf16.mxu1 %vm514_vm1, %v4525_v22  ;;  %v4541_v8 = vpack.c.bf16 %v392_v39, %v390_v13  ;;  %v962_v15 = vsel %vm957_vm2, %v4223_v32, %v4229_v36  ;;  %v430_v27 = vsel %vm352_vm0, %v428_v25, %v429_v60  ;;  %v5604_v49 = vunpack.c.l.bf16 %v4235_v40 }
  0x38   : > { %v1070_v7 = vpack.c.bf16 %v962_v15, %v960_v6  ;;  %v432_v21 = vsel %vm352_vm0, %v429_v60, %v431_v11  ;;  %v5605_v13 = vunpack.c.h.bf16 %v4235_v40  ;;  %v965_v32 = vsel %vm957_vm2, %v4239_v42, %v4241_v43 }
  0x39   : > { %3694 = vmatmul.mubr.msk.bf16.gmra.mxu0 %vm514_vm1, %v4541_v8  ;;  %v968_v54 = vrot.slane %v5604_v49, 2  ;;  %v4556_v55 = vpack.c.bf16 %v432_v21, %v430_v27  ;;  %v967_v36 = vsel %vm957_vm2, %v4241_v43, %v966_v14  ;;  %v5606_v25 = vunpack.c.l.bf16 %v4245_v45 }
  0x3a   : > { %v969_v39 = vrot.slane %v5605_v13, 2  ;;  %3761 = vmatprep.mubr.msk.bf16.mxu0 %vm514_vm1, %v1070_v7  ;;  %v5607_v15 = vunpack.c.l.bf16 %v4268_v56  ;;  %v5608_v7 = vunpack.c.h.bf16 %v4268_v56  ;;  %v5609_v42 = vunpack.c.l.bf16 %v4288_v2  ;;  %v4071_v2 = vld [vmem:[%s5553_s1 + $0x90] sm:$0xff]  }
  0x3b   : > { %v971_v60 = vrot.slane %v5606_v25, 2  ;;  %3710 = vmatmul.mubr.msk.bf16.gmra.mxu1 %vm514_vm1, %v4556_v55  ;;  %v4578_v43 = vpack.c.bf16 %v967_v36, %v965_v32  ;;  %v5610_v45 = vunpack.c.l.bf16 %v4313_v23  ;;  %v5611_v14 = vunpack.c.h.bf16 %v4313_v23 }
  0x3c   : > { %v970_v6 = vsel %vm957_vm2, %v968_v54, %v969_v39  ;;  %v973_v27 = vrot.slane %v5607_v15, 2  ;;  %v974_v21 = vrot.slane %v5608_v7, 2  ;;  %v976_v49 = vrot.slane %v5609_v42, 2  ;;  %3721 = vmatprep.mubr.msk.bf16.mxu1 %vm514_vm1, %v4176_v3 }
  0x3d   : > { %v972_v11 = vsel %vm957_vm2, %v969_v39, %v971_v60  ;;  %v978_v54 = vrot.slane %v5610_v45, 2  ;;  %v979_v13 = vrot.slane %v5611_v14, 2  ;;  %v5612_v39 = vunpack.c.l.bf16 %v4320_v31  ;;  %v4070_v31 = vld [vmem:[%s5553_s1 + $0x70] sm:$0xff]  }
  0x3e   : > { %v4586_v60 = vpack.c.bf16 %v972_v11, %v970_v6  ;;  %v975_v15 = vsel %vm957_vm2, %v973_v27, %v974_v21  ;;  %v977_v3 = vsel %vm957_vm2, %v974_v21, %v976_v49  ;;  %v5613_v11 = vunpack.c.l.bf16 %v4348_v63 }
  0x3f   : > { %v981_v25 = vrot.slane %v5612_v39, 2  ;;  %v980_v32 = vsel %vm957_vm2, %v978_v54, %v979_v13  ;;  %v4603_v6 = vpack.c.bf16 %v977_v3, %v975_v15  ;;  %v5614_v7 = vunpack.c.l.bf16 %v4180_v5 }
  0x40   : > { %v983_v27 = vrot.slane %v5613_v11, 2  ;;  %v5615_v49 = vunpack.c.h.bf16 %v4348_v63  ;;  %v5616_v54 = vunpack.c.h.bf16 %v4180_v5  ;;  %v5619_v3 = vunpack.c.l.bf16 %v4213_v28 }
  0x41   : > { %3762 = vmatmul.mubr.msk.bf16.vlgmr.msra.gmra.mxu0 %vm514_vm1, %v4578_v43  ;;  %v982_v36 = vsel %vm957_vm2, %v979_v13, %v981_v25  ;;  %v998_v21 = vrot.slane %v5614_v7, 2  ;;  %v5617_v13 = vunpack.c.l.bf16 %v4188_v10  ;;  %v5618_v25 = vunpack.c.l.bf16 %v4378_v59 }
  0x42   : > { %3834 = vmatpush3.bf16.msra.mxu0 %v4410_v38  ;;  %3765 = vmatprep.mubr.msk.bf16.mxu0 %vm514_vm1, %v4586_v60  ;;  %v4077_v38 = vld [vmem:[%s5553_s1 + $0x88] sm:$0xff]   ;;  %v4614_v42 = vpack.c.bf16 %v982_v36, %v980_v32  ;;  %v984_v45 = vrot.slane %v5615_v49, 2  ;;  %v999_v14 = vrot.slane %v5616_v54, 2  ;;  %v1003_v32 = vrot.slane %v5619_v3, 2 }
  0x43   : > { %3835 = vmatprep.subr.bf16.mxu0 %v4071_v2  ;;  %3722 = vmatmul.mubr.msk.bf16.vlgmr.msra.gmra.mxu1 %vm514_vm1, %v4192_v12  ;;  %v1001_v39 = vrot.slane %v5617_v13, 2  ;;  %v986_v15 = vrot.slane %v5618_v25, 2  ;;  %v5620_v36 = vunpack.c.h.bf16 %v4213_v28  ;;  %v5621_v7 = vunpack.c.l.bf16 %v4227_v35  ;;  %v4076_v3 = vld [vmem:[%s5553_s1 + $0x68] sm:$0xff]  }
  0x44   : > { %3794 = vmatpush3.bf16.msra.mxu1 %v4456_v57  ;;  %3725 = vmatprep.mubr.msk.bf16.mxu1 %vm514_vm1, %v4235_v40  ;;  %v5622_v10 = vunpack.c.l.bf16 %v4430_v17  ;;  %v5623_v54 = vunpack.c.h.bf16 %v4430_v17  ;;  %v1000_v59 = vsel %vm957_vm2, %v998_v21, %v999_v14  ;;  %v5625_v21 = vunpack.c.l.bf16 %v4297_v9 }
  0x45   : > { %v1004_v11 = vrot.slane %v5620_v36, 2  ;;  %v1006_v49 = vrot.slane %v5621_v7, 2  ;;  %3795 = vmatprep.subr.bf16.mxu1 %v4070_v31  ;;  %v1002_v25 = vsel %vm957_vm2, %v999_v14, %v1001_v39  ;;  %v5624_v36 = vunpack.c.l.bf16 %v4420_v58  ;;  %v4083_v14 = vld [vmem:[%s5553_s1 + $0x80] sm:$0xff]  }
  0x46   : > { %3836 = vmatpush3.bf16.msra.mxu0 %v4071_v2  ;;  %v988_v57 = vrot.slane %v5622_v10, 2  ;;  %v989_v13 = vrot.slane %v5623_v54, 2  ;;  %v4644_v7 = vpack.c.bf16 %v1002_v25, %v1000_v59  ;;  %v1013_v54 = vrot.slane %v5625_v21, 2  ;;  %v4082_v25 = vld [vmem:[%s5553_s1 + $0x60] sm:$0xff]  }
  0x47   : > { %v991_v35 = vrot.slane %v5624_v36, 2  ;;  %v1005_v2 = vsel %vm957_vm2, %v1003_v32, %v1004_v11  ;;  %v1007_v10 = vsel %vm957_vm2, %v1004_v11, %v1006_v49  ;;  %3837 = vmatprep.subr.bf16.mxu0 %v4077_v38  ;;  %v5626_v58 = vunpack.c.h.bf16 %v4297_v9 }
  0x48   : > { %v4648_v30 = vpack.c.bf16 %v1007_v10, %v1005_v2  ;;  %3796 = vmatpush3.bf16.msra.mxu1 %v4070_v31  ;;  %v5627_v32 = vunpack.c.l.bf16 %v4307_v20  ;;  %v985_v49 = vsel %vm957_vm2, %v983_v27, %v984_v45  ;;  %v987_v59 = vsel %vm957_vm2, %v984_v45, %v986_v15 }
  0x49   : > { %3766 = vmatmul.mubr.msk.bf16.gmra.mxu0 %vm514_vm1, %v4603_v6  ;;  %v1014_v39 = vrot.slane %v5626_v58, 2  ;;  %3797 = vmatprep.subr.bf16.mxu1 %v4076_v3  ;;  %v990_v31 = vsel %vm957_vm2, %v988_v57, %v989_v13  ;;  %v992_v36 = vsel %vm957_vm2, %v989_v13, %v991_v35  ;;  %v5628_v45 = vunpack.c.l.bf16 %v4381_v1  ;;  %v4681_v57 = vld [vmem:[%s5553_s1 + $0xd8] sm:$0xff]  }
  0x4a   : > { %v1016_v11 = vrot.slane %v5627_v32, 2  ;;  %3769 = vmatprep.mubr.msk.bf16.mxu0 %vm514_vm1, %v4614_v42  ;;  %3838 = vmatpush3.bf16.msra.mxu0 %v4077_v38  ;;  %v4685_v38 = vpack.c.bf16 %v987_v59, %v985_v49  ;;  %v5629_v13 = vunpack.c.h.bf16 %v4381_v1  ;;  %v5630_v10 = vunpack.c.l.bf16 %v4390_v29 }
  0x4b   : > { %v1015_v20 = vsel %vm957_vm2, %v1013_v54, %v1014_v39  ;;  %3726 = vmatmul.mubr.msk.bf16.gmra.mxu1 %vm514_vm1, %v4268_v56  ;;  %v1023_v15 = vrot.slane %v5628_v45, 2  ;;  %3839 = vmatprep.subr.bf16.mxu0 %v4083_v14  ;;  %v4691_v54 = vpack.c.bf16 %v992_v36, %v990_v31  ;;  %v5631_v58 = vunpack.c.l.bf16 %v4465_v0 }
  0x4c   : > { %v1017_v2 = vsel %vm957_vm2, %v1014_v39, %v1016_v11  ;;  %3729 = vmatprep.mubr.msk.bf16.mxu1 %vm514_vm1, %v4313_v23  ;;  %3798 = vmatpush3.bf16.msra.mxu1 %v4076_v3  ;;  %v1024_v35 = vrot.slane %v5629_v13, 2  ;;  %v1026_v21 = vrot.slane %v5630_v10, 2  ;;  %v5632_v32 = vunpack.c.h.bf16 %v4465_v0  ;;  %v4702_v3 = vld [vmem:[%s5553_s1 + $0xb8] sm:$0xff]  }
  0x4d   : > { %v4674_v27 = vpack.c.bf16 %v1017_v2, %v1015_v20  ;;  %v993_v39 = vrot.slane %v5631_v58, 2  ;;  %v5633_v20 = vunpack.c.l.bf16 %v4468_v61  ;;  %3799 = vmatprep.subr.bf16.mxu1 %v4082_v25  ;;  %v5634_v36 = vunpack.c.l.bf16 %v4248_v46 }
  0x4e   : > { %v994_v11 = vrot.slane %v5632_v32, 2  ;;  %v1025_v29 = vsel %vm957_vm2, %v1023_v15, %v1024_v35  ;;  %v1027_v49 = vsel %vm957_vm2, %v1024_v35, %v1026_v21  ;;  %3840 = vmatpush3.bf16.msra.mxu0 %v4083_v14  ;;  %v5635_v45 = vunpack.c.h.bf16 %v4248_v46 }
  0x4f   : > { %v996_v2 = vrot.slane %v5633_v20, 2  ;;  %v4706_v59 = vpack.c.bf16 %v1027_v49, %v1025_v29  ;;  %3913 = vmatprep.subr.bf16.mxu0 %v4681_v57  ;;  %v5636_v13 = vunpack.c.l.bf16 %v4257_v51  ;;  %v5637_v51 = vunpack.c.l.bf16 %v4333_v47 }
  0x50   : > { %3800 = vmatpush3.bf16.msra.mxu1 %v4082_v25  ;;  %v995_v61 = vsel %vm957_vm2, %v993_v39, %v994_v11  ;;  %v1008_v25 = vrot.slane %v5634_v36, 2  ;;  %v1009_v15 = vrot.slane %v5635_v45, 2  ;;  %v5638_v32 = vunpack.c.h.bf16 %v4333_v47 }
  0x51   : > { %3770 = vmatmul.mubr.msk.bf16.gmra.mxu0 %vm514_vm1, %v4685_v38  ;;  %v997_v31 = vsel %vm957_vm2, %v994_v11, %v996_v2  ;;  %3873 = vmatprep.subr.bf16.mxu1 %v4702_v3  ;;  %v1011_v35 = vrot.slane %v5636_v13, 2  ;;  %v1018_v39 = vrot.slane %v5637_v51, 2  ;;  %v5639_v20 = vunpack.c.l.bf16 %v4345_v62 }
  0x52   : > { %3773 = vmatprep.mubr.msk.bf16.mxu0 %vm514_vm1, %v4691_v54  ;;  %v4720_v14 = vpack.c.bf16 %v997_v31, %v995_v61  ;;  %v1010_v10 = vsel %vm957_vm2, %v1008_v25, %v1009_v15  ;;  %v1019_v11 = vrot.slane %v5638_v32, 2  ;;  %v5640_v62 = vunpack.c.l.bf16 %v4440_v50 }
  0x53   : > { %3730 = vmatmul.mubr.msk.bf16.gmra.mxu1 %vm514_vm1, %v4348_v63  ;;  %v1012_v21 = vsel %vm957_vm2, %v1009_v15, %v1011_v35  ;;  %v1021_v2 = vrot.slane %v5639_v20, 2  ;;  %v5641_v36 = vunpack.c.h.bf16 %v4440_v50  ;;  %v5642_v45 = vunpack.c.l.bf16 %v4443_v18  ;;  %v4783_v20 = vld [vmem:[%s4173_s23 + $0xc0] sm:$0xff]  }
  0x54   : > { %3733 = vmatprep.mubr.msk.bf16.mxu1 %vm514_vm1, %v4430_v17  ;;  %v4738_v58 = vpack.c.bf16 %v1012_v21, %v1010_v10  ;;  %v1020_v29 = vsel %vm957_vm2, %v1018_v39, %v1019_v11  ;;  %v1028_v31 = vrot.slane %v5640_v62, 2  ;;  %v5643_v18 = vunpack.c.l.bf16 %v4490_v4 }
  0x55   : > { %v1022_v49 = vsel %vm957_vm2, %v1019_v11, %v1021_v2  ;;  %v1029_v25 = vrot.slane %v5641_v36, 2  ;;  %v1031_v15 = vrot.slane %v5642_v45, 2  ;;  %v5644_v51 = vunpack.c.h.bf16 %v4490_v4 }
  0x56   : > { %v4756_v61 = vpack.c.bf16 %v1022_v49, %v1020_v29  ;;  %v1033_v21 = vrot.slane %v5643_v18, 2  ;;  %v5645_v32 = vunpack.c.l.bf16 %v4509_v33  ;;  %v4792_v49 = vld [vmem:[%s4173_s23 + $0xc8] sm:$0x1]  ;;  %v274_v62 = vunpack.c.l.bf16 %v4783_v20 }
  0x57   : > { %v1030_v13 = vsel %vm957_vm2, %v1028_v31, %v1029_v25  ;;  %v1032_v35 = vsel %vm957_vm2, %v1029_v25, %v1031_v15  ;;  %v1034_v39 = vrot.slane %v5644_v51, 2  ;;  %v275_v31 = vunpack.c.h.bf16 %v4783_v20  ;;  %v4093_v51 = vld [vmem:[%s5553_s1 + $0xc0] sm:$0xff]  }
  0x58   : > { %v4774_v10 = vpack.c.bf16 %v1032_v35, %v1030_v13  ;;  %v1036_v11 = vrot.slane %v5645_v32, 2  ;;  %v1830_v36 = vrot.slane %v274_v62, 2  ;;  %v276_v45 = vunpack.c.l.bf16 %v4792_v49  ;;  %v4095_v32 = vld [vmem:[%s5553_s1 + $0xf8] sm:$0xff]  }
  0x59   : > { %3774 = vmatmul.mubr.msk.bf16.gmra.mxu0 %vm514_vm1, %v4720_v14  ;;  %v1035_v2 = vsel %vm957_vm2, %v1033_v21, %v1034_v39  ;;  %v1831_v25 = vrot.slane %v275_v31, 2  ;;  %v4089_v21 = vld [vmem:[%s5553_s1 + $0xd0] sm:$0xff]  }
  0x5a   : > { %3777 = vmatprep.mubr.msk.bf16.mxu0 %vm514_vm1, %v4644_v7  ;;  %v1037_v29 = vsel %vm957_vm2, %v1034_v39, %v1036_v11  ;;  %v1833_v15 = vrot.slane %v276_v45, 2  ;;  %v4096_v39 = vld [vmem:[%s5553_s1 + $0x118] sm:$0xff]   ;;  %v5646_v11 = vld [vmem:[#allocation2_spill] sm:$0xff]  ;;  %v1596_v49 = vrot.slane %v276_v45, 1 }
  0x5b   : > { %3734 = vmatmul.mubr.msk.bf16.gmra.mxu1 %vm514_vm1, %v4465_v0  ;;  %v4800_v33 = vpack.c.bf16 %v1037_v29, %v1035_v2  ;;  %v1832_v13 = vsel %vm957_vm2, %v1830_v36, %v1831_v25  ;;  %v1593_v2 = vrot.slane %v274_v62, 1  ;;  %v1594_v29 = vrot.slane %v275_v31, 1  ;;  %v4098_v31 = vld [vmem:[%s5553_s1 + $0x110] sm:$0xff]   ;;  %v4101_v45 = vld [vmem:[%s5553_s1 + $0xe0] sm:$0xff]  }
  0x5c   : > { %3737 = vmatprep.mubr.msk.bf16.mxu1 %vm514_vm1, %v4180_v5  ;;  %v1834_v35 = vsel %vm957_vm2, %v1831_v25, %v1833_v15 }
  0x5d   : > { %v4813_v18 = vpack.c.bf16 %v1834_v35, %v1832_v13  ;;  %v1595_v36 = vsel %vm352_vm0, %v1593_v2, %v1594_v29  ;;  %v1597_v25 = vsel %vm352_vm0, %v1594_v29, %v1596_v49 }
  0x5e   : > { %v4907_v62 = vpack.c.bf16 %v1597_v25, %v1595_v36 }
  0x60   : > { %5647 = vst [vmem:[#allocation2_spill] sm:$0xff] %v4907_v62 }
  0x61   : > { %3778 = vmatmul.mubr.msk.bf16.gmra.mxu0 %vm514_vm1, %v4648_v30 }
  0x62   : > { %3781 = vmatprep.mubr.msk.bf16.mxu0 %vm514_vm1, %v4738_v58 }
  0x63   : > { %3738 = vmatmul.mubr.msk.bf16.gmra.mxu1 %vm514_vm1, %v4213_v28 }
  0x64   : > { %3741 = vmatprep.mubr.msk.bf16.mxu1 %vm514_vm1, %v4248_v46 }
  0x69   : > { %3782 = vmatmul.mubr.msk.bf16.gmra.mxu0 %vm514_vm1, %v4674_v27 }
  0x6a   : > { %3785 = vmatprep.mubr.msk.bf16.mxu0 %vm514_vm1, %v4756_v61 }
  0x6b   : > { %3742 = vmatmul.mubr.msk.bf16.gmra.mxu1 %vm514_vm1, %v4297_v9 }
  0x6c   : > { %3745 = vmatprep.mubr.msk.bf16.mxu1 %vm514_vm1, %v4333_v47 }
  0x71   : > { %3786 = vmatmul.mubr.msk.bf16.gmra.mxu0 %vm514_vm1, %v4706_v59 }
  0x72   : > { %3789 = vmatprep.mubr.msk.bf16.mxu0 %vm514_vm1, %v4774_v10 }
  0x73   : > { %3746 = vmatmul.mubr.msk.bf16.gmra.mxu1 %vm514_vm1, %v4381_v1 }
  0x74   : > { %3749 = vmatprep.mubr.msk.bf16.mxu1 %vm514_vm1, %v4440_v50 }
  0x79   : > { %3790 = vmatmul.mubr.msk.bf16.gmra.mxu0 %vm514_vm1, %v4800_v33 }
  0x7a   : > { %3841 = vmatprep.mubr.msk.bf16.mxu0 %vm514_vm1, %v4261_v52  ;;  %v4088_v52 = vld [vmem:[%s5553_s1 + $0xb0] sm:$0xff]  }
  0x7b   : > { %3750 = vmatmul.mubr.msk.bf16.gmra.mxu1 %vm514_vm1, %v4490_v4 }
  0x7c   : > { %3801 = vmatprep.mubr.msk.bf16.mxu1 %vm514_vm1, %v4192_v12  ;;  %v4091_v12 = vld [vmem:[%s5553_s1 + $0xc8] sm:$0xff]  }
  0x81   : > { %3842 = vmatmul.mubr.msk.bf16.vlgmr.msra.gmra.mxu0 %vm514_vm1, %v4327_v34 }
  0x82   : > { %3914 = vmatpush3.bf16.msra.mxu0 %v4681_v57  ;;  %3845 = vmatprep.mubr.msk.bf16.mxu0 %vm514_vm1, %v4369_v37  ;;  %v4090_v57 = vld [vmem:[%s5553_s1 + $0xa8] sm:$0xff]  }
  0x83   : > { %3915 = vmatprep.subr.bf16.mxu0 %v4089_v21  ;;  %3802 = vmatmul.mubr.msk.bf16.vlgmr.msra.gmra.mxu1 %vm514_vm1, %v4235_v40 }
  0x84   : > { %3874 = vmatpush3.bf16.msra.mxu1 %v4702_v3  ;;  %3805 = vmatprep.mubr.msk.bf16.mxu1 %vm514_vm1, %v4268_v56  ;;  %v4092_v3 = vld [vmem:[%s5553_s1 + $0xa0] sm:$0xff]  }
  0x85   : > { %3875 = vmatprep.subr.bf16.mxu1 %v4088_v52 }
  0x86   : > { %3916 = vmatpush3.bf16.msra.mxu0 %v4089_v21 }
  0x87   : > { %3917 = vmatprep.subr.bf16.mxu0 %v4091_v12 }
  0x88   : > { %3876 = vmatpush3.bf16.msra.mxu1 %v4088_v52 }
  0x89   : > { %3846 = vmatmul.mubr.msk.bf16.gmra.mxu0 %vm514_vm1, %v4412_v53  ;;  %3877 = vmatprep.subr.bf16.mxu1 %v4090_v57 }
  0x8a   : > { %3849 = vmatprep.mubr.msk.bf16.mxu0 %vm514_vm1, %v4476_v26  ;;  %3918 = vmatpush3.bf16.msra.mxu0 %v4091_v12 }
  0x8b   : > { %3806 = vmatmul.mubr.msk.bf16.gmra.mxu1 %vm514_vm1, %v4313_v23  ;;  %3919 = vmatprep.subr.bf16.mxu0 %v4093_v51 }
  0x8c   : > { %3809 = vmatprep.mubr.msk.bf16.mxu1 %vm514_vm1, %v4348_v63  ;;  %3878 = vmatpush3.bf16.msra.mxu1 %v4090_v57 }
  0x8d   : > { %3879 = vmatprep.subr.bf16.mxu1 %v4092_v3 }
  0x8e   : > { %3920 = vmatpush3.bf16.msra.mxu0 %v4093_v51 }
  0x8f   : > { %3993 = vmatprep.subr.bf16.mxu0 %v4096_v39 }
  0x90   : > { %3880 = vmatpush3.bf16.msra.mxu1 %v4092_v3  ;;  %v5018_v3 = vld [vmem:[%s4173_s23 + $0xcc] sm:$0xff]  }
  0x91   : > { %3850 = vmatmul.mubr.msk.bf16.gmra.mxu0 %vm514_vm1, %v4511_v19  ;;  %3953 = vmatprep.subr.bf16.mxu1 %v4095_v32 }
  0x92   : > { %3853 = vmatprep.mubr.msk.bf16.mxu0 %vm514_vm1, %v4541_v8 }
  0x93   : > { %3810 = vmatmul.mubr.msk.bf16.gmra.mxu1 %vm514_vm1, %v4430_v17 }
  0x94   : > { %3813 = vmatprep.mubr.msk.bf16.mxu1 %vm514_vm1, %v4465_v0 }
  0x99   : > { %3854 = vmatmul.mubr.msk.bf16.gmra.mxu0 %vm514_vm1, %v4237_v41 }
  0x9a   : > { %3857 = vmatprep.mubr.msk.bf16.mxu0 %vm514_vm1, %v4299_v16 }
  0x9b   : > { %3814 = vmatmul.mubr.msk.bf16.gmra.mxu1 %vm514_vm1, %v4180_v5 }
  0x9c   : > { %3817 = vmatprep.mubr.msk.bf16.mxu1 %vm514_vm1, %v4213_v28 }
  0xa1   : > { %3858 = vmatmul.mubr.msk.bf16.gmra.mxu0 %vm514_vm1, %v4336_v48 }
  0xa2   : > { %3861 = vmatprep.mubr.msk.bf16.mxu0 %vm514_vm1, %v4401_v44 }
  0xa3   : > { %3818 = vmatmul.mubr.msk.bf16.gmra.mxu1 %vm514_vm1, %v4248_v46 }
  0xa4   : > { %3821 = vmatprep.mubr.msk.bf16.mxu1 %vm514_vm1, %v4297_v9 }
  0xa9   : > { %3862 = vmatmul.mubr.msk.bf16.gmra.mxu0 %vm514_vm1, %v4445_v24 }
  0xaa   : > { %3865 = vmatprep.mubr.msk.bf16.mxu0 %vm514_vm1, %v5646_v11 }
  0xab   : > { %3822 = vmatmul.mubr.msk.bf16.gmra.mxu1 %vm514_vm1, %v4333_v47 }
  0xac   : > { %3825 = vmatprep.mubr.msk.bf16.mxu1 %vm514_vm1, %v4381_v1 }
  0xb1   : > { %3866 = vmatmul.mubr.msk.bf16.gmra.mxu0 %vm514_vm1, %v4525_v22 }
  0xb2   : > { %3869 = vmatprep.mubr.msk.bf16.mxu0 %vm514_vm1, %v4556_v55 }
  0xb3   : > { %3826 = vmatmul.mubr.msk.bf16.gmra.mxu1 %vm514_vm1, %v4440_v50 }
  0xb4   : > { %3829 = vmatprep.mubr.msk.bf16.mxu1 %vm514_vm1, %v4490_v4 }
  0xb9   : > { %3870 = vmatmul.mubr.msk.bf16.gmra.mxu0 %vm514_vm1, %v4907_v62 }
  0xba   : > { %3921 = vmatprep.mubr.msk.bf16.mxu0 %vm514_vm1, %v4235_v40  ;;  %v4097_v40 = vld [vmem:[%s5553_s1 + $0xf0] sm:$0xff]  }
  0xbb   : > { %3830 = vmatmul.mubr.msk.bf16.gmra.mxu1 %vm514_vm1, %v4783_v20 }
  0xbc   : > { %3881 = vmatprep.mubr.msk.bf16.mxu1 %vm514_vm1, %v4578_v43  ;;  %v4100_v43 = vld [vmem:[%s5553_s1 + $0x108] sm:$0xff]  }
  0xc1   : > { %3922 = vmatmul.mubr.msk.bf16.vlgmr.msra.gmra.mxu0 %vm514_vm1, %v4268_v56  ;;  %v4099_v56 = vld [vmem:[%s5553_s1 + $0xe8] sm:$0xff]  }
  0xc2   : > { %3994 = vmatpush3.bf16.msra.mxu0 %v4096_v39  ;;  %3925 = vmatprep.mubr.msk.bf16.mxu0 %vm514_vm1, %v4313_v23  ;;  %v4102_v23 = vld [vmem:[%s5553_s1 + $0x100] sm:$0xff]  }
  0xc3   : > { %3995 = vmatprep.subr.bf16.mxu0 %v4098_v31  ;;  %3882 = vmatmul.mubr.msk.bf16.vlgmr.msra.gmra.mxu1 %vm514_vm1, %v4586_v60 }
  0xc4   : > { %3954 = vmatpush3.bf16.msra.mxu1 %v4095_v32  ;;  %3885 = vmatprep.mubr.msk.bf16.mxu1 %vm514_vm1, %v4603_v6 }
  0xc5   : > { %3955 = vmatprep.subr.bf16.mxu1 %v4097_v40 }
  0xc6   : > { %3996 = vmatpush3.bf16.msra.mxu0 %v4098_v31 }
  0xc7   : > { %3997 = vmatprep.subr.bf16.mxu0 %v4100_v43 }
  0xc8   : > { %3956 = vmatpush3.bf16.msra.mxu1 %v4097_v40 }
  0xc9   : > { %3926 = vmatmul.mubr.msk.bf16.gmra.mxu0 %vm514_vm1, %v4348_v63  ;;  %3957 = vmatprep.subr.bf16.mxu1 %v4099_v56 }
  0xca   : > { %3929 = vmatprep.mubr.msk.bf16.mxu0 %vm514_vm1, %v4430_v17  ;;  %3998 = vmatpush3.bf16.msra.mxu0 %v4100_v43 }
  0xcb   : > { %3886 = vmatmul.mubr.msk.bf16.gmra.mxu1 %vm514_vm1, %v4614_v42  ;;  %3999 = vmatprep.subr.bf16.mxu0 %v4102_v23 }
  0xcc   : > { %3889 = vmatprep.mubr.msk.bf16.mxu1 %vm514_vm1, %v4685_v38  ;;  %3958 = vmatpush3.bf16.msra.mxu1 %v4099_v56 }
  0xcd   : > { %3959 = vmatprep.subr.bf16.mxu1 %v4101_v45 }
  0xce   : > { %4000 = vmatpush3.bf16.msra.mxu0 %v4102_v23 }
  0xd0   : > { %3960 = vmatpush3.bf16.msra.mxu1 %v4101_v45 }
  0xd1   : > { %3930 = vmatmul.mubr.msk.bf16.gmra.mxu0 %vm514_vm1, %v4465_v0 }
  0xd2   : > { %3933 = vmatprep.mubr.msk.bf16.mxu0 %vm514_vm1, %v4180_v5 }
  0xd3   : > { %3890 = vmatmul.mubr.msk.bf16.gmra.mxu1 %vm514_vm1, %v4691_v54 }
  0xd4   : > { %3893 = vmatprep.mubr.msk.bf16.mxu1 %vm514_vm1, %v4720_v14 }
  0xd9   : > { %3934 = vmatmul.mubr.msk.bf16.gmra.mxu0 %vm514_vm1, %v4213_v28 }
  0xda   : > { %3937 = vmatprep.mubr.msk.bf16.mxu0 %vm514_vm1, %v4248_v46 }
  0xdb   : > { %3894 = vmatmul.mubr.msk.bf16.gmra.mxu1 %vm514_vm1, %v4644_v7 }
  0xdc   : > { %3897 = vmatprep.mubr.msk.bf16.mxu1 %vm514_vm1, %v4648_v30 }
  0xdd   : > { %v3683_v63 = vpop.f32.mrf.mxu0 }
  0xdf   : > { %v597_v5 = vpop.f32.mrf.mxu0 }
  0xe0   : > { %v4967_v17 = vpop.f32.mrf.mxu1 }
  0xe1   : > { %3938 = vmatmul.mubr.msk.bf16.gmra.mxu0 %vm514_vm1, %v4297_v9  ;;  %v3684_v0 = vpop.f32.mrf.mxu0 }
  0xe2   : > { %3941 = vmatprep.mubr.msk.bf16.mxu0 %vm514_vm1, %v4333_v47  ;;  %v4973_v28 = vpop.f32.mrf.mxu1 }
  0xe3   : > { %v4975_v46 = vpop.f32.mrf.mxu0  ;;  %3898 = vmatmul.mubr.msk.bf16.gmra.mxu1 %vm514_vm1, %v4738_v58 }
  0xe4   : > { %v4979_v15 = vpop.f32.mrf.mxu1  ;;  %3901 = vmatprep.mubr.msk.bf16.mxu1 %vm514_vm1, %v4674_v27 }
  0xe6   : > { %v4983_v13 = vpop.f32.mrf.mxu1 }
  0xe7   : > { %v4985_v35 = vpop.f32.mrf.mxu0 }
  0xe9   : > { %3942 = vmatmul.mubr.msk.bf16.gmra.mxu0 %vm514_vm1, %v4381_v1  ;;  %v4989_v9 = vpop.f32.mrf.mxu0  ;;  %v4991_v47 = vpop.f32.mrf.mxu1 }
  0xea   : > { %3945 = vmatprep.mubr.msk.bf16.mxu0 %vm514_vm1, %v4440_v50 }
  0xeb   : > { %v4995_v21 = vpop.f32.mrf.mxu0  ;;  %3902 = vmatmul.mubr.msk.bf16.gmra.mxu1 %vm514_vm1, %v4756_v61  ;;  %v4999_v52 = vpop.f32.mrf.mxu1 }
  0xec   : > { %3905 = vmatprep.mubr.msk.bf16.mxu1 %vm514_vm1, %v4706_v59 }
  0xed   : > { %v5001_v12 = vpop.f32.mrf.mxu0  ;;  %v5005_v1 = vpop.f32.mrf.mxu1 }
  0xef   : > { %v5007_v57 = vpop.f32.mrf.mxu1 }
  0xf0   : > { %v5009_v51 = vpop.f32.mrf.mxu0 }
  0xf1   : > { %3946 = vmatmul.mubr.msk.bf16.gmra.mxu0 %vm514_vm1, %v4490_v4 }
  0xf2   : > { %v5013_v50 = vpop.f32.mrf.mxu1  ;;  %3949 = vmatprep.mubr.msk.bf16.mxu0 %vm514_vm1, %v4783_v20  ;;  %v5020_v39 = vpop.f32.mrf.mxu0 }
  0xf3   : > { %5648 = vst [vmem:[#allocation3_spill] sm:$0xff] %v5013_v50  ;;  %3906 = vmatmul.mubr.msk.bf16.gmra.mxu1 %vm514_vm1, %v4774_v10 }
  0xf4   : > { %v5024_v32 = vpop.f32.mrf.mxu1  ;;  %v5026_v2 = vpop.f32.mrf.mxu0  ;;  %3909 = vmatprep.mubr.msk.bf16.mxu1 %vm514_vm1, %v4800_v33 }
  0xf5   : > { %5649 = vst [vmem:[#allocation4_spill] sm:$0xff] %v5024_v32 }
  0xf6   : > { %v5030_v4 = vpop.f32.mrf.mxu1  ;;  %v5032_v29 = vpop.f32.mrf.mxu0 }
  0xf7   : > { %5650 = vst [vmem:[#allocation5_spill] sm:$0xff] %v5030_v4 }
  0xf8   : > { %v5034_v49 = vpop.f32.mrf.mxu1 }
  0xf9   : > { %5651 = vst [vmem:[#allocation6_spill] sm:$0xff] %v5034_v49  ;;  %v5036_v20 = vpop.f32.mrf.mxu0  ;;  %3950 = vmatmul.mubr.msk.bf16.gmra.mxu0 %vm514_vm1, %v5018_v3 }
  0xfa   : > { %4001 = vmatprep.mubr.msk.bf16.mxu0 %vm514_vm1, %v4586_v60 }
  0xfb   : > { %v5042_v36 = vpop.f32.mrf.mxu0  ;;  %v5044_v25 = vpop.f32.mrf.mxu1  ;;  %3910 = vmatmul.mubr.msk.bf16.gmra.mxu1 %vm514_vm1, %v4813_v18 }
  0xfc   : > { %5652 = vst [vmem:[#allocation7_spill] sm:$0xff] %v5044_v25  ;;  %3961 = vmatprep.mubr.msk.bf16.mxu1 %vm514_vm1, %v4327_v34 }
  0xfd   : > { %v5048_v31 = vpop.f32.mrf.mxu0  ;;  %v5052_v40 = vpop.f32.mrf.mxu1 }
  0xfe   : > { %5653 = vst [vmem:[#allocation8_spill] sm:$0xff] %v5052_v40 }
  0xff   : > { %v5054_v43 = vpop.f32.mrf.mxu0  ;;  %v5056_v56 = vpop.f32.mrf.mxu1 }
 0x100   : > { %5654 = vst [vmem:[#allocation9_spill] sm:$0xff] %v5056_v56 }
 0x101   : > { %v3763_v23 = vpop.f32.mrf.mxu0  ;;  %4002 = vmatmul.mubr.msk.bf16.vlgmr.msra.gmra.mxu0 %vm514_vm1, %v4603_v6  ;;  %v5060_v60 = vpop.f32.mrf.mxu1 }
 0x102   : > { %5655 = vst [vmem:[#allocation10_spill] sm:$0xff] %v5060_v60  ;;  %4005 = vmatprep.mubr.msk.bf16.mxu0 %vm514_vm1, %v4614_v42 }
 0x103   : > { %v1201_v45 = vpop.f32.mrf.mxu0  ;;  %v3723_v25 = vpop.f32.mrf.mxu1  ;;  %3962 = vmatmul.mubr.msk.bf16.vlgmr.msra.gmra.mxu1 %vm514_vm1, %v4369_v37 }
 0x104   : > { %v839_v34 = vadd.f32 %v3723_v25, %v3683_v63  ;;  %3965 = vmatprep.mubr.msk.bf16.mxu1 %vm514_vm1, %v4412_v53 }
 0x105   : > { %v3764_v40 = vpop.f32.mrf.mxu0  ;;  %v830_v56 = vpop.f32.mrf.mxu1 }
 0x106   : > { %v5068_v49 = vadd.f32 %v3763_v23, %v839_v34  ;;  %v831_v4 = vadd.f32 %v830_v56, %v597_v5 }
 0x107   : > { %v1204_v6 = vpop.f32.mrf.mxu0  ;;  %v3724_v32 = vpop.f32.mrf.mxu1 }
 0x108   : > { %v5070_v60 = vadd.f32 %v1201_v45, %v831_v4  ;;  %v842_v62 = vadd.f32 %v3724_v32, %v3684_v0 }
 0x109   : > { %v3767_v42 = vpop.f32.mrf.mxu0  ;;  %4006 = vmatmul.mubr.msk.bf16.gmra.mxu0 %vm514_vm1, %v4685_v38  ;;  %v833_v50 = vpop.f32.mrf.mxu1 }
 0x10a   : > { %4009 = vmatprep.mubr.msk.bf16.mxu0 %vm514_vm1, %v4691_v54  ;;  %v5076_v37 = vadd.f32 %v3764_v40, %v842_v62  ;;  %v834_v53 = vadd.f32 %v833_v50, %v4975_v46 }
 0x10b   : > { %v1217_v63 = vpop.f32.mrf.mxu0  ;;  %v3727_v25 = vpop.f32.mrf.mxu1  ;;  %3966 = vmatmul.mubr.msk.bf16.gmra.mxu1 %vm514_vm1, %v4476_v26 }
 0x10c   : > { %v5081_v5 = vadd.f32 %v1204_v6, %v834_v53  ;;  %v855_v0 = vadd.f32 %v3727_v25, %v4985_v35  ;;  %3969 = vmatprep.mubr.msk.bf16.mxu1 %vm514_vm1, %v4511_v19 }
 0x10d   : > { %v3768_v32 = vpop.f32.mrf.mxu0  ;;  %v846_v38 = vpop.f32.mrf.mxu1 }
 0x10e   : > { %v5086_v4 = vadd.f32 %v3767_v42, %v855_v0  ;;  %v847_v54 = vadd.f32 %v846_v38, %v4989_v9 }
 0x10f   : > { %v1220_v62 = vpop.f32.mrf.mxu0  ;;  %v3728_v46 = vpop.f32.mrf.mxu1 }
 0x110   : > { %v5089_v50 = vadd.f32 %v1217_v63, %v847_v54  ;;  %v858_v40 = vadd.f32 %v3728_v46, %v4995_v21 }
 0x111   : > { %v3771_v26 = vpop.f32.mrf.mxu0  ;;  %4010 = vmatmul.mubr.msk.bf16.gmra.mxu0 %vm514_vm1, %v4720_v14  ;;  %v849_v35 = vpop.f32.mrf.mxu1 }
 0x112   : > { %4013 = vmatprep.mubr.msk.bf16.mxu0 %vm514_vm1, %v4644_v7  ;;  %v5096_v19 = vadd.f32 %v3768_v32, %v858_v40  ;;  %v850_v56 = vadd.f32 %v849_v35, %v5001_v12 }
 0x113   : > { %v1233_v23 = vpop.f32.mrf.mxu0  ;;  %v3731_v9 = vpop.f32.mrf.mxu1  ;;  %3970 = vmatmul.mubr.msk.bf16.gmra.mxu1 %vm514_vm1, %v4541_v8 }
 0x114   : > { %v5101_v45 = vadd.f32 %v1220_v62, %v850_v56  ;;  %v871_v21 = vadd.f32 %v3731_v9, %v5009_v51  ;;  %3973 = vmatprep.mubr.msk.bf16.mxu1 %vm514_vm1, %v4237_v41 }
 0x115   : > { %v3772_v34 = vpop.f32.mrf.mxu0  ;;  %v862_v14 = vpop.f32.mrf.mxu1 }
 0x116   : > { %v5106_v6 = vadd.f32 %v3771_v26, %v871_v21  ;;  %v863_v7 = vadd.f32 %v862_v14, %v5020_v39 }
 0x117   : > { %v1236_v42 = vpop.f32.mrf.mxu0  ;;  %v3732_v12 = vpop.f32.mrf.mxu1 }
 0x118   : > { %v5109_v53 = vadd.f32 %v1233_v23, %v863_v7  ;;  %v874_v63 = vadd.f32 %v3732_v12, %v5026_v2 }
 0x119   : > { %v3775_v8 = vpop.f32.mrf.mxu0  ;;  %4014 = vmatmul.mubr.msk.bf16.gmra.mxu0 %vm514_vm1, %v4648_v30  ;;  %v865_v51 = vpop.f32.mrf.mxu1 }
 0x11a   : > { %4017 = vmatprep.mubr.msk.bf16.mxu0 %vm514_vm1, %v4738_v58  ;;  %v5116_v41 = vadd.f32 %v3772_v34, %v874_v63  ;;  %v866_v25 = vadd.f32 %v865_v51, %v5032_v29 }
 0x11b   : > { %v1249_v0 = vpop.f32.mrf.mxu0  ;;  %v3735_v39 = vpop.f32.mrf.mxu1  ;;  %3974 = vmatmul.mubr.msk.bf16.gmra.mxu1 %vm514_vm1, %v4299_v16 }
 0x11c   : > { %v5121_v32 = vadd.f32 %v1236_v42, %v866_v25  ;;  %v887_v2 = vadd.f32 %v3735_v39, %v5036_v20  ;;  %3977 = vmatprep.mubr.msk.bf16.mxu1 %vm514_vm1, %v4336_v48 }
 0x11d   : > { %v3776_v38 = vpop.f32.mrf.mxu0  ;;  %v878_v30 = vpop.f32.mrf.mxu1 }
 0x11e   : > { %v5126_v54 = vadd.f32 %v3775_v8, %v887_v2  ;;  %v879_v58 = vadd.f32 %v878_v30, %v5042_v36 }
 0x11f   : > { %v1252_v62 = vpop.f32.mrf.mxu0  ;;  %v3736_v29 = vpop.f32.mrf.mxu1 }
 0x120   : > { %v5129_v46 = vadd.f32 %v1249_v0, %v879_v58  ;;  %v890_v40 = vadd.f32 %v3736_v29, %v5048_v31 }
 0x121   : > { %v3779_v16 = vpop.f32.mrf.mxu0  ;;  %4018 = vmatmul.mubr.msk.bf16.gmra.mxu0 %vm514_vm1, %v4674_v27  ;;  %v881_v20 = vpop.f32.mrf.mxu1 }
 0x122   : > { %4021 = vmatprep.mubr.msk.bf16.mxu0 %vm514_vm1, %v4756_v61  ;;  %v5136_v48 = vadd.f32 %v3776_v38, %v890_v40  ;;  %v882_v26 = vadd.f32 %v881_v20, %v5054_v43  ;;  %v225_v43 = vld [vmem:[%s4173_s23 + $0xd4] sm:$0x1] }
 0x123   : > { %v1265_v36 = vpop.f32.mrf.mxu0  ;;  %v3739_v35 = vpop.f32.mrf.mxu1  ;;  %3978 = vmatmul.mubr.msk.bf16.gmra.mxu1 %vm514_vm1, %v4401_v44 }
 0x124   : > { %v5141_v56 = vadd.f32 %v1252_v62, %v882_v26  ;;  %v903_v31 = vadd.f32 %v3739_v35, %v4967_v17  ;;  %3981 = vmatprep.mubr.msk.bf16.mxu1 %vm514_vm1, %v4445_v24  ;;  %v277_v17 = vunpack.c.l.bf16 %v5018_v3  ;;  %v278_v24 = vunpack.c.h.bf16 %v5018_v3 }
 0x125   : > { %v3780_v23 = vpop.f32.mrf.mxu0  ;;  %v894_v27 = vpop.f32.mrf.mxu1 }
 0x126   : > { %v5146_v9 = vadd.f32 %v3779_v16, %v903_v31  ;;  %v895_v61 = vadd.f32 %v894_v27, %v4973_v28  ;;  %v279_v28 = vunpack.c.l.bf16 %v225_v43  ;;  %v2537_v3 = vrot.slane %v277_v17, 2  ;;  %v5656_v31 = vld [vmem:[#allocation3_spill] sm:$0xff]  ;;  %v5657_v27 = vld [vmem:[#allocation2_spill] sm:$0xff] }
 0x127   : > { %v1268_v21 = vpop.f32.mrf.mxu0  ;;  %v3740_v34 = vpop.f32.mrf.mxu1  ;;  %v2300_v30 = vrot.slane %v277_v17, 1  ;;  %v2301_v58 = vrot.slane %v278_v24, 1 }
 0x128   : > { %v5150_v14 = vadd.f32 %v1265_v36, %v895_v61  ;;  %v906_v44 = vadd.f32 %v3740_v34, %v4979_v15  ;;  %v2540_v39 = vrot.slane %v279_v28, 2  ;;  %v5658_v34 = vld [vmem:[#allocation4_spill] sm:$0xff] }
 0x129   : > { %v3783_v7 = vpop.f32.mrf.mxu0  ;;  %4022 = vmatmul.mubr.msk.bf16.gmra.mxu0 %vm514_vm1, %v4706_v59  ;;  %v897_v42 = vpop.f32.mrf.mxu1 }
 0x12a   : > { %4025 = vmatprep.mubr.msk.bf16.mxu0 %vm514_vm1, %v4774_v10  ;;  %v5159_v12 = vadd.f32 %v3780_v23, %v906_v44  ;;  %v898_v63 = vadd.f32 %v897_v42, %v4983_v13  ;;  %v2538_v10 = vrot.slane %v278_v24, 2  ;;  %v5659_v42 = vld [vmem:[#allocation5_spill] sm:$0xff] }
 0x12b   : > { %v1281_v8 = vpop.f32.mrf.mxu0  ;;  %v3743_v51 = vpop.f32.mrf.mxu1  ;;  %3982 = vmatmul.mubr.msk.bf16.gmra.mxu1 %vm514_vm1, %v5646_v11 }
 0x12c   : > { %v5164_v15 = vadd.f32 %v1268_v21, %v898_v63  ;;  %v919_v59 = vadd.f32 %v3743_v51, %v4991_v47  ;;  %3985 = vmatprep.mubr.msk.bf16.mxu1 %vm514_vm1, %v4525_v22  ;;  %v2303_v22 = vrot.slane %v279_v28, 1  ;;  %v2539_v16 = vsel %vm957_vm2, %v2537_v3, %v2538_v10 }
 0x12d   : > { %v3784_v25 = vpop.f32.mrf.mxu0  ;;  %v910_v0 = vpop.f32.mrf.mxu1 }
 0x12e   : > { %v5169_v2 = vadd.f32 %v3783_v7, %v919_v59  ;;  %v911_v13 = vadd.f32 %v910_v0, %v4999_v52  ;;  %v2541_v52 = vsel %vm957_vm2, %v2538_v10, %v2540_v39  ;;  %v2304_v61 = vsel %vm352_vm0, %v2301_v58, %v2303_v22  ;;  %v5660_v59 = vld [vmem:[#allocation6_spill] sm:$0xff]  ;;  %v5661_v39 = vld [vmem:[#allocation7_spill] sm:$0xff] }
 0x12f   : > { %v1284_v38 = vpop.f32.mrf.mxu0  ;;  %v3744_v11 = vpop.f32.mrf.mxu1  ;;  %v2544_v21 = vpack.c.bf16 %v2541_v52, %v2539_v16  ;;  %v5663_v16 = vld [vmem:[#allocation9_spill] sm:$0xff] }
 0x130   : > { %v5172_v62 = vadd.f32 %v1281_v8, %v911_v13  ;;  %v922_v47 = vadd.f32 %v3744_v11, %v5005_v1  ;;  %v5662_v11 = vld [vmem:[#allocation8_spill] sm:$0xff] }
 0x131   : > { %v3787_v29 = vpop.f32.mrf.mxu0  ;;  %4026 = vmatmul.mubr.msk.bf16.gmra.mxu0 %vm514_vm1, %v4800_v33  ;;  %v913_v40 = vpop.f32.mrf.mxu1  ;;  %v2302_v33 = vsel %vm352_vm0, %v2300_v30, %v2301_v58 }
 0x132   : > { %4029 = vmatprep.mubr.msk.bf16.mxu0 %vm514_vm1, %v4813_v18  ;;  %v5181_v20 = vadd.f32 %v3784_v25, %v922_v47  ;;  %v914_v26 = vadd.f32 %v913_v40, %v5007_v57  ;;  %v2307_v17 = vpack.c.bf16 %v2304_v61, %v2302_v33  ;;  %v5664_v33 = vld [vmem:[#allocation10_spill] sm:$0xff] }
 0x133   : > { %v1297_v36 = vpop.f32.mrf.mxu0  ;;  %v3747_v35 = vpop.f32.mrf.mxu1  ;;  %3986 = vmatmul.mubr.msk.bf16.gmra.mxu1 %vm514_vm1, %v4556_v55 }
 0x134   : > { %v5187_v1 = vadd.f32 %v1284_v38, %v914_v26  ;;  %v935_v23 = vadd.f32 %v3747_v35, %v5656_v31  ;;  %3989 = vmatprep.mubr.msk.bf16.mxu1 %vm514_vm1, %v5657_v27 }
 0x135   : > { %v3788_v18 = vpop.f32.mrf.mxu0  ;;  %v926_v43 = vpop.f32.mrf.mxu1 }
 0x136   : > { %v5193_v57 = vadd.f32 %v3787_v29, %v935_v23  ;;  %v927_v44 = vadd.f32 %v926_v43, %v5658_v34 }
 0x137   : > { %v1300_v7 = vpop.f32.mrf.mxu0  ;;  %v3748_v55 = vpop.f32.mrf.mxu1 }
 0x138   : > { %v5196_v24 = vadd.f32 %v1297_v36, %v927_v44  ;;  %v938_v28 = vadd.f32 %v3748_v55, %v5659_v42 }
 0x139   : > { %v3791_v63 = vpop.f32.mrf.mxu0  ;;  %4030 = vmatmul.mubr.msk.bf16.gmra.mxu0 %vm514_vm1, %v2544_v21  ;;  %v929_v8 = vpop.f32.mrf.mxu1 }
 0x13a   : > { %v5200_v51 = vadd.f32 %v3788_v18, %v938_v28  ;;  %v930_v25 = vadd.f32 %v929_v8, %v5660_v59 }
 0x13b   : > { %v1313_v3 = vpop.f32.mrf.mxu0  ;;  %v3751_v10 = vpop.f32.mrf.mxu1  ;;  %3990 = vmatmul.mubr.msk.bf16.gmra.mxu1 %vm514_vm1, %v2307_v17 }
 0x13c   : > { %v5204_v0 = vadd.f32 %v1300_v7, %v930_v25  ;;  %v951_v13 = vadd.f32 %v3751_v10, %v5661_v39 }
 0x13d   : > { %v3792_v38 = vpop.f32.mrf.mxu0  ;;  %v942_v30 = vpop.f32.mrf.mxu1 }
 0x13e   : > { %v5207_v58 = vadd.f32 %v3791_v63, %v951_v13  ;;  %v943_v47 = vadd.f32 %v942_v30, %v5662_v11 }
 0x13f   : > { %v1316_v29 = vpop.f32.mrf.mxu0  ;;  %v3752_v22 = vpop.f32.mrf.mxu1 }
 0x140   : > { %v5210_v40 = vadd.f32 %v1313_v3, %v943_v47  ;;  %v954_v52 = vadd.f32 %v3752_v22, %v5663_v16 }
 0x141   : > { %v3843_v26 = vpop.f32.mrf.mxu0  ;;  %v945_v36 = vpop.f32.mrf.mxu1 }
 0x142   : > { %v5213_v35 = vadd.f32 %v3792_v38, %v954_v52  ;;  %v946_v31 = vadd.f32 %v945_v36, %v5664_v33 }
 0x143   : > { %v1671_v23 = vpop.f32.mrf.mxu0  ;;  %v3803_v18 = vpop.f32.mrf.mxu1 }
 0x144   : > { %v5216_v27 = vadd.f32 %v1316_v29, %v946_v31  ;;  %v1560_v61 = vadd.f32 %v3803_v18, %v5068_v49 }
 0x145   : > { %v3844_v21 = vpop.f32.mrf.mxu0  ;;  %v1431_v43 = vpop.f32.mrf.mxu1 }
 0x146   : > { %v5219_v34 = vadd.f32 %v3843_v26, %v1560_v61  ;;  %v1558_v44 = vadd.f32 %v1431_v43, %v5070_v60 }
 0x147   : > { %v1674_v7 = vpop.f32.mrf.mxu0  ;;  %v3804_v55 = vpop.f32.mrf.mxu1 }
 0x148   : > { %v5222_v17 = vadd.f32 %v1671_v23, %v1558_v44  ;;  %v1561_v42 = vadd.f32 %v3804_v55, %v5076_v37 }
 0x149   : > { %v3847_v28 = vpop.f32.mrf.mxu0  ;;  %v1434_v63 = vpop.f32.mrf.mxu1 }
 0x14a   : > { %v5225_v8 = vadd.f32 %v3844_v21, %v1561_v42  ;;  %v1559_v59 = vadd.f32 %v1434_v63, %v5081_v5 }
 0x14b   : > { %v1687_v25 = vpop.f32.mrf.mxu0  ;;  %v3807_v49 = vpop.f32.mrf.mxu1 }
 0x14c   : > { %v5228_v3 = vadd.f32 %v1674_v7, %v1559_v59  ;;  %v1564_v10 = vadd.f32 %v3807_v49, %v5086_v4 }
 0x14d   : > { %v3848_v39 = vpop.f32.mrf.mxu0  ;;  %v1447_v60 = vpop.f32.mrf.mxu1 }
 0x14e   : > { %v5231_v13 = vadd.f32 %v3847_v28, %v1564_v10  ;;  %v1562_v38 = vadd.f32 %v1447_v60, %v5089_v50 }
 0x14f   : > { %v1690_v30 = vpop.f32.mrf.mxu0  ;;  %v3808_v37 = vpop.f32.mrf.mxu1 }
 0x150   : > { %v5234_v11 = vadd.f32 %v1687_v25, %v1562_v38  ;;  %v1565_v47 = vadd.f32 %v3808_v37, %v5096_v19 }
 0x151   : > { %v3851_v29 = vpop.f32.mrf.mxu0  ;;  %v1450_v5 = vpop.f32.mrf.mxu1 }
 0x152   : > { %v5237_v22 = vadd.f32 %v3848_v39, %v1565_v47  ;;  %v1563_v16 = vadd.f32 %v1450_v5, %v5101_v45 }
 0x153   : > { %v1703_v52 = vpop.f32.mrf.mxu0  ;;  %v3811_v4 = vpop.f32.mrf.mxu1 }
 0x154   : > { %v5240_v26 = vadd.f32 %v1690_v30, %v1563_v16  ;;  %v1568_v36 = vadd.f32 %v3811_v4, %v5106_v6 }
 0x155   : > { %v3852_v33 = vpop.f32.mrf.mxu0  ;;  %v1463_v50 = vpop.f32.mrf.mxu1 }
 0x156   : > { %v5243_v31 = vadd.f32 %v3851_v29, %v1568_v36  ;;  %v1566_v23 = vadd.f32 %v1463_v50, %v5109_v53 }
 0x157   : > { %v1706_v18 = vpop.f32.mrf.mxu0  ;;  %v3812_v19 = vpop.f32.mrf.mxu1 }
 0x158   : > { %v5246_v61 = vadd.f32 %v1703_v52, %v1566_v23  ;;  %v1569_v21 = vadd.f32 %v3812_v19, %v5116_v41 }
 0x159   : > { %v3855_v43 = vpop.f32.mrf.mxu0  ;;  %v1466_v45 = vpop.f32.mrf.mxu1 }
 0x15a   : > { %v5249_v44 = vadd.f32 %v3852_v33, %v1569_v21  ;;  %v1567_v7 = vadd.f32 %v1466_v45, %v5121_v32 }
 0x15b   : > { %v1719_v55 = vpop.f32.mrf.mxu0  ;;  %v3815_v6 = vpop.f32.mrf.mxu1 }
 0x15c   : > { %v5252_v42 = vadd.f32 %v1706_v18, %v1567_v7  ;;  %v1572_v28 = vadd.f32 %v3815_v6, %v5126_v54 }
 0x15d   : > { %v3856_v63 = vpop.f32.mrf.mxu0  ;;  %v1479_v53 = vpop.f32.mrf.mxu1 }
 0x15e   : > { %v5255_v59 = vadd.f32 %v3855_v43, %v1572_v28  ;;  %v1570_v25 = vadd.f32 %v1479_v53, %v5129_v46 }
 0x15f   : > { %v1722_v49 = vpop.f32.mrf.mxu0  ;;  %v3816_v41 = vpop.f32.mrf.mxu1 }
 0x160   : > { %v5258_v10 = vadd.f32 %v1719_v55, %v1570_v25  ;;  %v1573_v39 = vadd.f32 %v3816_v41, %v5136_v48 }
 0x161   : > { %v3859_v60 = vpop.f32.mrf.mxu0  ;;  %v1482_v32 = vpop.f32.mrf.mxu1 }
 0x162   : > { %v5261_v38 = vadd.f32 %v3856_v63, %v1573_v39  ;;  %v1571_v30 = vadd.f32 %v1482_v32, %v5141_v56 }
 0x163   : > { %v1735_v37 = vpop.f32.mrf.mxu0  ;;  %v3819_v54 = vpop.f32.mrf.mxu1 }
 0x164   : > { %v5264_v47 = vadd.f32 %v1722_v49, %v1571_v30  ;;  %v1576_v29 = vadd.f32 %v3819_v54, %v5146_v9 }
 0x165   : > { %v3860_v5 = vpop.f32.mrf.mxu0  ;;  %v1495_v46 = vpop.f32.mrf.mxu1 }
 0x166   : > { %v5267_v16 = vadd.f32 %v3859_v60, %v1576_v29  ;;  %v1574_v52 = vadd.f32 %v1495_v46, %v5150_v14 }
 0x167   : > { %v1738_v4 = vpop.f32.mrf.mxu0  ;;  %v3820_v48 = vpop.f32.mrf.mxu1 }
 0x168   : > { %v5270_v36 = vadd.f32 %v1735_v37, %v1574_v52  ;;  %v1577_v33 = vadd.f32 %v3820_v48, %v5159_v12 }
 0x169   : > { %v3863_v50 = vpop.f32.mrf.mxu0  ;;  %v1498_v56 = vpop.f32.mrf.mxu1 }
 0x16a   : > { %v5273_v23 = vadd.f32 %v3860_v5, %v1577_v33  ;;  %v1575_v18 = vadd.f32 %v1498_v56, %v5164_v15 }
 0x16b   : > { %v1751_v19 = vpop.f32.mrf.mxu0  ;;  %v3823_v9 = vpop.f32.mrf.mxu1 }
 0x16c   : > { %v5276_v21 = vadd.f32 %v1738_v4, %v1575_v18  ;;  %v1580_v43 = vadd.f32 %v3823_v9, %v5169_v2 }
 0x16d   : > { %v3864_v45 = vpop.f32.mrf.mxu0  ;;  %v1511_v14 = vpop.f32.mrf.mxu1 }
 0x16e   : > { %v5279_v7 = vadd.f32 %v3863_v50, %v1580_v43  ;;  %v1578_v55 = vadd.f32 %v1511_v14, %v5172_v62 }
 0x16f   : > { %v1754_v6 = vpop.f32.mrf.mxu0  ;;  %v3824_v12 = vpop.f32.mrf.mxu1 }
 0x170   : > { %v5282_v28 = vadd.f32 %v1751_v19, %v1578_v55  ;;  %v1581_v63 = vadd.f32 %v3824_v12, %v5181_v20 }
 0x171   : > { %v3867_v53 = vpop.f32.mrf.mxu0  ;;  %v1514_v15 = vpop.f32.mrf.mxu1 }
 0x172   : > { %v5285_v25 = vadd.f32 %v3864_v45, %v1581_v63  ;;  %v1579_v49 = vadd.f32 %v1514_v15, %v5187_v1 }
 0x173   : > { %v1767_v41 = vpop.f32.mrf.mxu0  ;;  %v3827_v2 = vpop.f32.mrf.mxu1 }
 0x174   : > { %v5288_v39 = vadd.f32 %v1754_v6, %v1579_v49  ;;  %v1584_v60 = vadd.f32 %v3827_v2, %v5193_v57 }
 0x175   : > { %v3868_v32 = vpop.f32.mrf.mxu0  ;;  %v1527_v62 = vpop.f32.mrf.mxu1 }
 0x176   : > { %v5291_v30 = vadd.f32 %v3867_v53, %v1584_v60  ;;  %v1582_v37 = vadd.f32 %v1527_v62, %v5196_v24 }
 0x177   : > { %v1770_v54 = vpop.f32.mrf.mxu0  ;;  %v3828_v20 = vpop.f32.mrf.mxu1 }
 0x178   : > { %v5294_v29 = vadd.f32 %v1767_v41, %v1582_v37  ;;  %v1585_v5 = vadd.f32 %v3828_v20, %v5200_v51 }
 0x179   : > { %v3871_v46 = vpop.f32.mrf.mxu0  ;;  %v1530_v1 = vpop.f32.mrf.mxu1 }
 0x17a   : > { %v5297_v52 = vadd.f32 %v3868_v32, %v1585_v5  ;;  %v1583_v4 = vadd.f32 %v1530_v1, %v5204_v0 }
 0x17b   : > { %v1783_v48 = vpop.f32.mrf.mxu0  ;;  %v3831_v57 = vpop.f32.mrf.mxu1 }
 0x17c   : > { %5665 = vst [vmem:[#allocation3_spill] sm:$0xff] %v5297_v52  ;;  %v5300_v33 = vadd.f32 %v1770_v54, %v1583_v4  ;;  %v1588_v50 = vadd.f32 %v3831_v57, %v5207_v58 }
 0x17d   : > { %v3872_v56 = vpop.f32.mrf.mxu0  ;;  %v1543_v24 = vpop.f32.mrf.mxu1 }
 0x17e   : > { %5666 = vst [vmem:[#allocation2_spill] sm:$0xff] %v5300_v33  ;;  %v5303_v18 = vadd.f32 %v3871_v46, %v1588_v50  ;;  %v1586_v19 = vadd.f32 %v1543_v24, %v5210_v40 }
 0x17f   : > { %v1786_v9 = vpop.f32.mrf.mxu0  ;;  %v3832_v51 = vpop.f32.mrf.mxu1 }
 0x180   : > { %v5306_v43 = vadd.f32 %v1783_v48, %v1586_v19  ;;  %v1589_v45 = vadd.f32 %v3832_v51, %v5213_v35 }
 0x181   : > { %v3923_v14 = vpop.f32.mrf.mxu0  ;;  %v1546_v0 = vpop.f32.mrf.mxu1 }
 0x182   : > { %v5309_v55 = vadd.f32 %v3872_v56, %v1589_v45  ;;  %v1587_v6 = vadd.f32 %v1546_v0, %v5216_v27 }
 0x183   : > { %v2138_v12 = vpop.f32.mrf.mxu0  ;;  %v3883_v58 = vpop.f32.mrf.mxu1 }
 0x184   : > { %5667 = vst [vmem:[#allocation4_spill] sm:$0xff] %v5309_v55  ;;  %v5312_v63 = vadd.f32 %v1786_v9, %v1587_v6  ;;  %v2037_v53 = vadd.f32 %v3883_v58, %v5219_v34 }
 0x185   : > { %v5315_v15 = vpop.f32.mrf.mxu0  ;;  %v1908_v40 = vpop.f32.mrf.mxu1 }
 0x186   : > { %5668 = vst [vmem:[#allocation5_spill] sm:$0xff] %v5312_v63  ;;  %v5317_v49 = vadd.f32 %v3923_v14, %v2037_v53  ;;  %v2035_v41 = vadd.f32 %v1908_v40, %v5222_v17 }
 0x187   : > { %v5320_v35 = vpop.f32.mrf.mxu0  ;;  %v5322_v2 = vpop.f32.mrf.mxu1 }
 0x188   : > { %v5324_v60 = vadd.f32 %v2138_v12, %v2035_v41 }
 0x189   : > { %v3927_v27 = vpop.f32.mrf.mxu0  ;;  %v5326_v32 = vpop.f32.mrf.mxu1 }
 0x18b   : > { %v2154_v62 = vpop.f32.mrf.mxu0  ;;  %v3887_v37 = vpop.f32.mrf.mxu1 }
 0x18c   : > { %v2041_v34 = vadd.f32 %v3887_v37, %v5231_v13 }
 0x18d   : > { %v5329_v54 = vpop.f32.mrf.mxu0  ;;  %v1924_v20 = vpop.f32.mrf.mxu1 }
 0x18e   : > { %v5331_v5 = vadd.f32 %v3927_v27, %v2041_v34  ;;  %v2039_v17 = vadd.f32 %v1924_v20, %v5234_v11 }
 0x18f   : > { %v5334_v46 = vpop.f32.mrf.mxu0  ;;  %v5336_v1 = vpop.f32.mrf.mxu1 }
 0x190   : > { %v5338_v4 = vadd.f32 %v2154_v62, %v2039_v17 }
 0x191   : > { %v3931_v48 = vpop.f32.mrf.mxu0  ;;  %v5340_v57 = vpop.f32.mrf.mxu1 }
 0x193   : > { %v2170_v50 = vpop.f32.mrf.mxu0  ;;  %v3891_v56 = vpop.f32.mrf.mxu1 }
 0x194   : > { %v2045_v13 = vadd.f32 %v3891_v56, %v5243_v31 }
 0x195   : > { %v5343_v24 = vpop.f32.mrf.mxu0  ;;  %v1940_v19 = vpop.f32.mrf.mxu1 }
 0x196   : > { %v5345_v9 = vadd.f32 %v3931_v48, %v2045_v13  ;;  %v2043_v11 = vadd.f32 %v1940_v19, %v5246_v61 }
 0x197   : > { %v5348_v51 = vpop.f32.mrf.mxu0  ;;  %v5350_v45 = vpop.f32.mrf.mxu1 }
 0x198   : > { %v5352_v14 = vadd.f32 %v2170_v50, %v2043_v11 }
 0x199   : > { %v3935_v0 = vpop.f32.mrf.mxu0  ;;  %v5354_v6 = vpop.f32.mrf.mxu1 }
 0x19b   : > { %v2186_v12 = vpop.f32.mrf.mxu0  ;;  %v3895_v58 = vpop.f32.mrf.mxu1 }
 0x19c   : > { %v2049_v31 = vadd.f32 %v3895_v58, %v5255_v59 }
 0x19d   : > { %v5357_v53 = vpop.f32.mrf.mxu0  ;;  %v1956_v40 = vpop.f32.mrf.mxu1 }
 0x19e   : > { %v5359_v41 = vadd.f32 %v3935_v0, %v2049_v31  ;;  %v2047_v61 = vadd.f32 %v1956_v40, %v5258_v10 }
 0x19f   : > { %v5362_v27 = vpop.f32.mrf.mxu0  ;;  %v5364_v62 = vpop.f32.mrf.mxu1 }
 0x1a0   : > { %v5366_v37 = vadd.f32 %v2186_v12, %v2047_v61 }
 0x1a1   : > { %v3939_v34 = vpop.f32.mrf.mxu0  ;;  %v5368_v20 = vpop.f32.mrf.mxu1 }
 0x1a3   : > { %v2202_v17 = vpop.f32.mrf.mxu0  ;;  %v3899_v48 = vpop.f32.mrf.mxu1 }
 0x1a4   : > { %v2053_v59 = vadd.f32 %v3899_v48, %v5267_v16 }
 0x1a5   : > { %v5371_v50 = vpop.f32.mrf.mxu0  ;;  %v1972_v56 = vpop.f32.mrf.mxu1 }
 0x1a6   : > { %v5373_v13 = vadd.f32 %v3939_v34, %v2053_v59  ;;  %v2051_v10 = vadd.f32 %v1972_v56, %v5270_v36 }
 0x1a7   : > { %v5376_v19 = vpop.f32.mrf.mxu0  ;;  %v5378_v11 = vpop.f32.mrf.mxu1 }
 0x1a8   : > { %v5380_v0 = vadd.f32 %v2202_v17, %v2051_v10 }
 0x1a9   : > { %v3943_v12 = vpop.f32.mrf.mxu0  ;;  %v5382_v58 = vpop.f32.mrf.mxu1 }
 0x1ab   : > { %v2218_v31 = vpop.f32.mrf.mxu0  ;;  %v3903_v40 = vpop.f32.mrf.mxu1 }
 0x1ac   : > { %v2057_v16 = vadd.f32 %v3903_v40, %v5279_v7 }
 0x1ad   : > { %v5385_v61 = vpop.f32.mrf.mxu0  ;;  %v1988_v48 = vpop.f32.mrf.mxu1 }
 0x1ae   : > { %5669 = vst [vmem:[#allocation6_spill] sm:$0xff] %v5385_v61  ;;  %v5387_v34 = vadd.f32 %v3943_v12, %v2057_v16  ;;  %v2055_v36 = vadd.f32 %v1988_v48, %v5282_v28 }
 0x1af   : > { %v5390_v59 = vpop.f32.mrf.mxu0  ;;  %v5392_v56 = vpop.f32.mrf.mxu1 }
 0x1b0   : > { %5670 = vst [vmem:[#allocation7_spill] sm:$0xff] %v5390_v59  ;;  %v5394_v17 = vadd.f32 %v2218_v31, %v2055_v36 }
 0x1b1   : > { %v3947_v10 = vpop.f32.mrf.mxu0  ;;  %v5396_v63 = vpop.f32.mrf.mxu1 }
 0x1b2   : > { %5671 = vst [vmem:[#allocation8_spill] sm:$0xff] %v5394_v17 }
 0x1b3   : > { %v2234_v55 = vpop.f32.mrf.mxu0  ;;  %v3907_v33 = vpop.f32.mrf.mxu1 }
 0x1b4   : > { %v2061_v7 = vadd.f32 %v3907_v33, %v5291_v30 }
 0x1b5   : > { %v5399_v40 = vpop.f32.mrf.mxu0  ;;  %v2004_v52 = vpop.f32.mrf.mxu1 }
 0x1b6   : > { %5672 = vst [vmem:[#allocation9_spill] sm:$0xff] %v5399_v40  ;;  %v5401_v12 = vadd.f32 %v3947_v10, %v2061_v7  ;;  %v2059_v28 = vadd.f32 %v2004_v52, %v5294_v29 }
 0x1b7   : > { %v5404_v16 = vpop.f32.mrf.mxu0  ;;  %v5406_v48 = vpop.f32.mrf.mxu1 }
 0x1b8   : > { %5673 = vst [vmem:[#allocation10_spill] sm:$0xff] %v5404_v16  ;;  %v5408_v31 = vadd.f32 %v2234_v55, %v2059_v28 }
 0x1b9   : > { %v3951_v36 = vpop.f32.mrf.mxu0  ;;  %v5410_v59 = vpop.f32.mrf.mxu1 }
 0x1ba   : > { %5674 = vst [vmem:[#allocation11_spill] sm:$0xff] %v5408_v31  ;;  %v2038_v31 = vadd.f32 %v5322_v2, %v5225_v8  ;;  %v5436_v8 = vld [vmem:[%s5554_s2] ss:$0 sm:$0xff] }
 0x1bb   : > { %v2250_v17 = vpop.f32.mrf.mxu0  ;;  %v3911_v61 = vpop.f32.mrf.mxu1 }
 0x1bc   : > { %v2065_v30 = vadd.f32 %v3911_v61, %v5303_v18 }
 0x1bd   : > { %v5413_v33 = vpop.f32.mrf.mxu0  ;;  %v2020_v40 = vpop.f32.mrf.mxu1 }
 0x1be   : > { %5675 = vst [vmem:[#allocation12_spill] sm:$0xff] %v5413_v33  ;;  %v5415_v10 = vadd.f32 %v3951_v36, %v2065_v30  ;;  %v2063_v29 = vadd.f32 %v2020_v40, %v5306_v43  ;;  %v2036_v36 = vadd.f32 %v5326_v32, %v5228_v3 }
 0x1bf   : > { %v5418_v52 = vpop.f32.mrf.mxu0  ;;  %v5420_v7 = vpop.f32.mrf.mxu1 }
 0x1c0   : > { %5676 = vst [vmem:[#allocation13_spill] sm:$0xff] %v5415_v10  ;;  %5677 = vst [vmem:[#allocation14_spill] sm:$0xff] %v5418_v52  ;;  %v5422_v55 = vadd.f32 %v2250_v17, %v2063_v29  ;;  %v2268_v52 = vadd.f32 %v5315_v15, %v2038_v31 }
 0x1c1   : > { %v4003_v28 = vpop.f32.mrf.mxu0  ;;  %v5424_v16 = vpop.f32.mrf.mxu1 }
 0x1c2   : > { %5678 = vst [vmem:[#allocation15_spill] sm:$0xff] %v5422_v55  ;;  %5679 = vst [vmem:[#allocation16_spill] sm:$0xff] %v5424_v16  ;;  %v2266_v55 = vadd.f32 %v5320_v35, %v2036_v36 }
 0x1c3   : > { %v2615_v18 = vpop.f32.mrf.mxu0  ;;  %v3963_v61 = vpop.f32.mrf.mxu1 }
 0x1c4   : > { %v2507_v30 = vadd.f32 %v3963_v61, %v5317_v49 }
 0x1c5   : > { %v4004_v43 = vpop.f32.mrf.mxu0  ;;  %v2378_v40 = vpop.f32.mrf.mxu1 }
 0x1c6   : > { %v2744_v33 = vadd.f32 %v4003_v28, %v2507_v30  ;;  %v2505_v17 = vadd.f32 %v2378_v40, %v5324_v60  ;;  %v2042_v60 = vadd.f32 %v5336_v1, %v5237_v22  ;;  %v2040_v30 = vadd.f32 %v5340_v57, %v5240_v26 }
 0x1c7   : > { %v2618_v29 = vpop.f32.mrf.mxu0  ;;  %v3964_v2 = vpop.f32.mrf.mxu1 }
 0x1c8   : > { %v2742_v3 = vadd.f32 %v2615_v18, %v2505_v17  ;;  %v2508_v32 = vadd.f32 %v3964_v2, %v2268_v52  ;;  %v2783_v10 = vadd.f32 %v5436_v8, %v2744_v33  ;;  %v2272_v26 = vadd.f32 %v5329_v54, %v2042_v60 }
 0x1c9   : > { %v4007_v49 = vpop.f32.mrf.mxu0  ;;  %v2381_v61 = vpop.f32.mrf.mxu1  ;;  %v2270_v57 = vadd.f32 %v5334_v46, %v2040_v30  ;;  %v2046_v54 = vadd.f32 %v5350_v45, %v5249_v44 }
 0x1ca   : > { %v2745_v15 = vadd.f32 %v4004_v43, %v2508_v32  ;;  %v2506_v31 = vadd.f32 %v2381_v61, %v2266_v55  ;;  %v2781_v16 = vadd.f32 %v5436_v8, %v2742_v3  ;;  %v2815_v43 = vmax.f32 %v2783_v10, 0.0 }
 0x1cb   : > { %v2631_v28 = vpop.f32.mrf.mxu0  ;;  %v3967_v40 = vpop.f32.mrf.mxu1 }
 0x1cc   : > { %v2784_v35 = vadd.f32 %v5436_v8, %v2745_v15  ;;  %v2743_v52 = vadd.f32 %v2618_v29, %v2506_v31  ;;  %v2511_v18 = vadd.f32 %v3967_v40, %v5331_v5  ;;  %v2813_v10 = vmax.f32 %v2781_v16, 0.0 }
 0x1cd   : > { %v4008_v36 = vpop.f32.mrf.mxu0  ;;  %v2394_v33 = vpop.f32.mrf.mxu1 }
 0x1ce   : > { %v2816_v55 = vmax.f32 %v2784_v35, 0.0  ;;  %v2782_v17 = vadd.f32 %v5436_v8, %v2743_v52  ;;  %v2509_v22 = vadd.f32 %v2394_v33, %v5338_v4  ;;  %v2748_v5 = vadd.f32 %v4007_v49, %v2511_v18 }
 0x1cf   : > { %v2634_v1 = vpop.f32.mrf.mxu0  ;;  %v3968_v29 = vpop.f32.mrf.mxu1  ;;  %v2044_v18 = vadd.f32 %v5354_v6, %v5252_v42  ;;  %v2276_v33 = vadd.f32 %v5343_v24, %v2046_v54  ;;  %v2050_v24 = vadd.f32 %v5364_v62, %v5261_v38  ;;  %v2048_v54 = vadd.f32 %v5368_v20, %v5264_v47 }
 0x1d0   : > { %v3406_v2 = vpack.c.bf16 %v2816_v55, %v2815_v43  ;;  %v2814_v3 = vmax.f32 %v2782_v17, 0.0  ;;  %v2746_v32 = vadd.f32 %v2631_v28, %v2509_v22  ;;  %v2512_v4 = vadd.f32 %v3968_v29, %v2272_v26 }
 0x1d1   : > { %v4011_v61 = vpop.f32.mrf.mxu0  ;;  %v2397_v15 = vpop.f32.mrf.mxu1  ;;  %v2787_v30 = vadd.f32 %v5436_v8, %v2748_v5  ;;  %v2274_v6 = vadd.f32 %v5348_v51, %v2044_v18  ;;  %v2280_v62 = vadd.f32 %v5357_v53, %v2050_v24 }
 0x1d2   : > { %3478 = vst [vmem:[%s5455_s20 + $0x8] sm:$0xff] %v3406_v2   ;;  %v3401_v46 = vpack.c.bf16 %v2814_v3, %v2813_v10  ;;  %v2510_v31 = vadd.f32 %v2397_v15, %v2270_v57  ;;  %v2749_v40 = vadd.f32 %v4008_v36, %v2512_v4  ;;  %v2785_v16 = vadd.f32 %v5436_v8, %v2746_v32 }
 0x1d3   : > { %v2647_v60 = vpop.f32.mrf.mxu0  ;;  %v3971_v49 = vpop.f32.mrf.mxu1  ;;  %v2819_v22 = vmax.f32 %v2787_v30, 0.0 }
 0x1d4   : > { %3402 = vst [vmem:[%s5455_s20] sm:$0xff] %v3401_v46   ;;  %v2747_v35 = vadd.f32 %v2634_v1, %v2510_v31  ;;  %v2515_v28 = vadd.f32 %v3971_v49, %v5345_v9  ;;  %v2788_v44 = vadd.f32 %v5436_v8, %v2749_v40  ;;  %v2817_v9 = vmax.f32 %v2785_v16, 0.0 }
 0x1d5   : > { %v4012_v52 = vpop.f32.mrf.mxu0  ;;  %v2410_v45 = vpop.f32.mrf.mxu1 }
 0x1d6   : > { %v2786_v43 = vadd.f32 %v5436_v8, %v2747_v35  ;;  %v2752_v55 = vadd.f32 %v4011_v61, %v2515_v28  ;;  %v2513_v36 = vadd.f32 %v2410_v45, %v5352_v14  ;;  %v2820_v1 = vmax.f32 %v2788_v44, 0.0 }
 0x1d7   : > { %v2650_v17 = vpop.f32.mrf.mxu0  ;;  %v3972_v26 = vpop.f32.mrf.mxu1 }
 0x1d8   : > { %v2818_v57 = vmax.f32 %v2786_v43, 0.0  ;;  %v2516_v5 = vadd.f32 %v3972_v26, %v2276_v33  ;;  %v3416_v29 = vpack.c.bf16 %v2820_v1, %v2819_v22  ;;  %v2750_v10 = vadd.f32 %v2647_v60, %v2513_v36 }
 0x1d9   : > { %v4015_v42 = vpop.f32.mrf.mxu0  ;;  %v2413_v2 = vpop.f32.mrf.mxu1  ;;  %v2791_v14 = vadd.f32 %v5436_v8, %v2752_v55  ;;  %v2054_v22 = vadd.f32 %v5378_v11, %v5273_v23 }
 0x1da   : > { %v3411_v3 = vpack.c.bf16 %v2818_v57, %v2817_v9  ;;  %v2753_v32 = vadd.f32 %v4012_v52, %v2516_v5  ;;  %3480 = vst [vmem:[%s5455_s20 + $0x18] sm:$0xff] %v3416_v29   ;;  %v2514_v4 = vadd.f32 %v2413_v2, %v2274_v6  ;;  %v2789_v31 = vadd.f32 %v5436_v8, %v2750_v10 }
 0x1db   : > { %v2663_v61 = vpop.f32.mrf.mxu0  ;;  %v3975_v15 = vpop.f32.mrf.mxu1  ;;  %v2823_v40 = vmax.f32 %v2791_v14, 0.0  ;;  %v2278_v52 = vadd.f32 %v5362_v27, %v2048_v54  ;;  %v2052_v27 = vadd.f32 %v5382_v58, %v5276_v21  ;;  %v2284_v58 = vadd.f32 %v5371_v50, %v2054_v22 }
 0x1dc   : > { %3479 = vst [vmem:[%s5455_s20 + $0x10] sm:$0xff] %v3411_v3   ;;  %v2792_v51 = vadd.f32 %v5436_v8, %v2753_v32  ;;  %v2519_v46 = vadd.f32 %v3975_v15, %v5359_v41  ;;  %v2751_v60 = vadd.f32 %v2650_v17, %v2514_v4  ;;  %v2821_v45 = vmax.f32 %v2789_v31, 0.0 }
 0x1dd   : > { %v4016_v38 = vpop.f32.mrf.mxu0  ;;  %v2426_v30 = vpop.f32.mrf.mxu1  ;;  %v2282_v2 = vadd.f32 %v5376_v19, %v2052_v27 }
 0x1de   : > { %v2824_v49 = vmax.f32 %v2792_v51, 0.0  ;;  %v2756_v16 = vadd.f32 %v4015_v42, %v2519_v46  ;;  %v2517_v35 = vadd.f32 %v2426_v30, %v5366_v37  ;;  %v2790_v47 = vadd.f32 %v5436_v8, %v2751_v60 }
 0x1df   : > { %v2666_v28 = vpop.f32.mrf.mxu0  ;;  %v3976_v20 = vpop.f32.mrf.mxu1  ;;  %v2058_v46 = vadd.f32 %v5392_v56, %v5285_v25 }
 0x1e0   : > { %v3426_v41 = vpack.c.bf16 %v2824_v49, %v2823_v40  ;;  %v2754_v18 = vadd.f32 %v2663_v61, %v2517_v35  ;;  %v2520_v44 = vadd.f32 %v3976_v20, %v2280_v62  ;;  %v2822_v33 = vmax.f32 %v2790_v47, 0.0  ;;  %v5680_v35 = vld [vmem:[#allocation6_spill] sm:$0xff] }
 0x1e1   : > { %v4019_v53 = vpop.f32.mrf.mxu0  ;;  %v2429_v43 = vpop.f32.mrf.mxu1  ;;  %v2795_v55 = vadd.f32 %v5436_v8, %v2756_v16  ;;  %v2056_v16 = vadd.f32 %v5396_v63, %v5288_v39  ;;  %v5682_v63 = vld [vmem:[#allocation7_spill] sm:$0xff] }
 0x1e2   : > { %3482 = vst [vmem:[%s5455_s20 + $0x28] sm:$0xff] %v3426_v41   ;;  %v2757_v36 = vadd.f32 %v4016_v38, %v2520_v44  ;;  %v2518_v17 = vadd.f32 %v2429_v43, %v2278_v52  ;;  %v3421_v1 = vpack.c.bf16 %v2822_v33, %v2821_v45  ;;  %v2793_v9 = vadd.f32 %v5436_v8, %v2754_v18  ;;  %v5681_v52 = vld [vmem:[#allocation8_spill] sm:$0xff] }
 0x1e3   : > { %v2679_v37 = vpop.f32.mrf.mxu0  ;;  %v3979_v26 = vpop.f32.mrf.mxu1  ;;  %v2827_v29 = vmax.f32 %v2795_v55, 0.0  ;;  %v2286_v55 = vadd.f32 %v5682_v63, %v2056_v16  ;;  %v5689_v16 = vld [vmem:[#allocation5_spill] sm:$0xff] }
 0x1e4   : > { %v2796_v57 = vadd.f32 %v5436_v8, %v2757_v36  ;;  %v2755_v5 = vadd.f32 %v2666_v28, %v2518_v17  ;;  %v2523_v42 = vadd.f32 %v3979_v26, %v5373_v13  ;;  %3481 = vst [vmem:[%s5455_s20 + $0x20] sm:$0xff] %v3421_v1   ;;  %v2825_v32 = vmax.f32 %v2793_v9, 0.0  ;;  %v5683_v36 = vld [vmem:[#allocation3_spill] sm:$0xff] }
 0x1e5   : > { %v4020_v6 = vpop.f32.mrf.mxu0  ;;  %v2442_v24 = vpop.f32.mrf.mxu1  ;;  %v2288_v28 = vadd.f32 %v5680_v35, %v2058_v46  ;;  %v2062_v17 = vadd.f32 %v5406_v48, %v5683_v36 }
 0x1e6   : > { %v2828_v10 = vmax.f32 %v2796_v57, 0.0  ;;  %v2794_v23 = vadd.f32 %v5436_v8, %v2755_v5  ;;  %v2521_v11 = vadd.f32 %v2442_v24, %v5380_v0  ;;  %v2760_v3 = vadd.f32 %v4019_v53, %v2523_v42 }
 0x1e7   : > { %v2682_v21 = vpop.f32.mrf.mxu0  ;;  %v3980_v14 = vpop.f32.mrf.mxu1 }
 0x1e8   : > { %v3436_v13 = vpack.c.bf16 %v2828_v10, %v2827_v29  ;;  %v2826_v61 = vmax.f32 %v2794_v23, 0.0  ;;  %v2758_v4 = vadd.f32 %v2679_v37, %v2521_v11  ;;  %v2524_v54 = vadd.f32 %v3980_v14, %v2284_v58  ;;  %v5685_v23 = vld [vmem:[#allocation9_spill] sm:$0xff] }
 0x1e9   : > { %v4023_v15 = vpop.f32.mrf.mxu0  ;;  %v2445_v51 = vpop.f32.mrf.mxu1  ;;  %v2799_v50 = vadd.f32 %v5436_v8, %v2760_v3  ;;  %v2292_v11 = vadd.f32 %v5685_v23, %v2062_v17 }
 0x1ea   : > { %3484 = vst [vmem:[%s5455_s20 + $0x38] sm:$0xff] %v3436_v13   ;;  %v3431_v0 = vpack.c.bf16 %v2826_v61, %v2825_v32  ;;  %v2522_v38 = vadd.f32 %v2445_v51, %v2282_v2  ;;  %v2761_v19 = vadd.f32 %v4020_v6, %v2524_v54  ;;  %v2797_v60 = vadd.f32 %v5436_v8, %v2758_v4  ;;  %v5684_v6 = vld [vmem:[#allocation2_spill] sm:$0xff]  ;;  %v5686_v13 = vld [vmem:[#allocation11_spill] sm:$0xff] }
 0x1eb   : > { %v2695_v62 = vpop.f32.mrf.mxu0  ;;  %v3983_v31 = vpop.f32.mrf.mxu1  ;;  %v2831_v44 = vmax.f32 %v2799_v50, 0.0  ;;  %v2060_v24 = vadd.f32 %v5410_v59, %v5684_v6  ;;  %v5687_v54 = vld [vmem:[#allocation10_spill] sm:$0xff] }
 0x1ec   : > { %3483 = vst [vmem:[%s5455_s20 + $0x30] sm:$0xff] %v3431_v0   ;;  %v2759_v30 = vadd.f32 %v2682_v21, %v2522_v38  ;;  %v2527_v40 = vadd.f32 %v3983_v31, %v5387_v34  ;;  %v2800_v25 = vadd.f32 %v5436_v8, %v2761_v19  ;;  %v2829_v34 = vmax.f32 %v2797_v60, 0.0 }
 0x1ed   : > { %v4024_v49 = vpop.f32.mrf.mxu0  ;;  %v2458_v56 = vpop.f32.mrf.mxu1  ;;  %v2290_v51 = vadd.f32 %v5687_v54, %v2060_v24 }
 0x1ee   : > { %v2798_v47 = vadd.f32 %v5436_v8, %v2759_v30  ;;  %v2764_v20 = vadd.f32 %v4023_v15, %v2527_v40  ;;  %v2525_v41 = vadd.f32 %v2458_v56, %v5681_v52  ;;  %v2832_v53 = vmax.f32 %v2800_v25, 0.0  ;;  %v5688_v40 = vld [vmem:[#allocation4_spill] sm:$0xff] }
 0x1ef   : > { %v2698_v18 = vpop.f32.mrf.mxu0  ;;  %v3984_v45 = vpop.f32.mrf.mxu1  ;;  %v5690_v25 = vld [vmem:[#allocation16_spill] sm:$0xff] }
 0x1f0   : > { %v2830_v33 = vmax.f32 %v2798_v47, 0.0  ;;  %v2528_v43 = vadd.f32 %v3984_v45, %v2288_v28  ;;  %v3446_v37 = vpack.c.bf16 %v2832_v53, %v2831_v44  ;;  %v2762_v22 = vadd.f32 %v2695_v62, %v2525_v41 }
 0x1f1   : > { %v4027_v39 = vpop.f32.mrf.mxu0  ;;  %v2461_v27 = vpop.f32.mrf.mxu1  ;;  %v2803_v26 = vadd.f32 %v5436_v8, %v2764_v20  ;;  %v2064_v56 = vadd.f32 %v5690_v25, %v5689_v16 }
 0x1f2   : > { %v3441_v1 = vpack.c.bf16 %v2830_v33, %v2829_v34  ;;  %v2765_v9 = vadd.f32 %v4024_v49, %v2528_v43  ;;  %3486 = vst [vmem:[%s5455_s20 + $0x48] sm:$0xff] %v3446_v37   ;;  %v2526_v5 = vadd.f32 %v2461_v27, %v2286_v55  ;;  %v2801_v21 = vadd.f32 %v5436_v8, %v2762_v22  ;;  %v5692_v33 = vld [vmem:[#allocation15_spill] sm:$0xff]  ;;  %v5694_v55 = vld [vmem:[#allocation14_spill] sm:$0xff] }
 0x1f3   : > { %v2711_v57 = vpop.f32.mrf.mxu0  ;;  %v3987_v42 = vpop.f32.mrf.mxu1  ;;  %v2835_v3 = vmax.f32 %v2803_v26, 0.0  ;;  %v2066_v49 = vadd.f32 %v5420_v7, %v5688_v40  ;;  %v2294_v36 = vadd.f32 %v5694_v55, %v2064_v56 }
 0x1f4   : > { %3485 = vst [vmem:[%s5455_s20 + $0x40] sm:$0xff] %v3441_v1   ;;  %v2804_v29 = vadd.f32 %v5436_v8, %v2765_v9  ;;  %v2531_v10 = vadd.f32 %v3987_v42, %v5401_v12  ;;  %v2763_v58 = vadd.f32 %v2698_v18, %v2526_v5  ;;  %v2833_v62 = vmax.f32 %v2801_v21, 0.0  ;;  %v5691_v18 = vld [vmem:[#allocation13_spill] sm:$0xff] }
 0x1f5   : > { %v4028_v48 = vpop.f32.mrf.mxu0  ;;  %v2474_v2 = vpop.f32.mrf.mxu1 }
 0x1f6   : > { %v2836_v14 = vmax.f32 %v2804_v29, 0.0  ;;  %v2768_v32 = vadd.f32 %v4027_v39, %v2531_v10  ;;  %v2529_v61 = vadd.f32 %v2474_v2, %v5686_v13  ;;  %v2802_v59 = vadd.f32 %v5436_v8, %v2763_v58  ;;  %v5693_v39 = vld [vmem:[#allocation12_spill] sm:$0xff] }
 0x1f7   : > { %v2714_v4 = vpop.f32.mrf.mxu0  ;;  %v3988_v15 = vpop.f32.mrf.mxu1  ;;  %v2296_v63 = vadd.f32 %v5693_v39, %v2066_v49 }
 0x1f8   : > { %v3456_v12 = vpack.c.bf16 %v2836_v14, %v2835_v3  ;;  %v2766_v46 = vadd.f32 %v2711_v57, %v2529_v61  ;;  %v2532_v0 = vadd.f32 %v3988_v15, %v2292_v11  ;;  %v2834_v50 = vmax.f32 %v2802_v59, 0.0 }
 0x1f9   : > { %v4031_v38 = vpop.f32.mrf.mxu0  ;;  %v2477_v19 = vpop.f32.mrf.mxu1  ;;  %v2807_v31 = vadd.f32 %v5436_v8, %v2768_v32 }
 0x1fa   : > { %3488 = vst [vmem:[%s5455_s20 + $0x58] sm:$0xff] %v3456_v12   ;;  %v2769_v60 = vadd.f32 %v4028_v48, %v2532_v0  ;;  %v2530_v30 = vadd.f32 %v2477_v19, %v2290_v51  ;;  %v3451_v35 = vpack.c.bf16 %v2834_v50, %v2833_v62  ;;  %v2805_v20 = vadd.f32 %v5436_v8, %v2766_v46 }
 0x1fb   : > { %v3991_v28 = vpop.f32.mrf.mxu1  ;;  %v2727_v47 = vpop.f32.mrf.mxu0  ;;  %v2839_v45 = vmax.f32 %v2807_v31, 0.0 }
 0x1fc   : > { %v2808_v52 = vadd.f32 %v5436_v8, %v2769_v60  ;;  %v2767_v41 = vadd.f32 %v2714_v4, %v2530_v30  ;;  %v2535_v44 = vadd.f32 %v3991_v28, %v5691_v18  ;;  %3487 = vst [vmem:[%s5455_s20 + $0x50] sm:$0xff] %v3451_v35   ;;  %v2837_v27 = vmax.f32 %v2805_v20, 0.0 }
 0x1fd   : > { %v2490_v53 = vpop.f32.mrf.mxu1  ;;  %v4032_v22 = vpop.f32.mrf.mxu0 }
 0x1fe   : > { %v2840_v34 = vmax.f32 %v2808_v52, 0.0  ;;  %v2806_v7 = vadd.f32 %v5436_v8, %v2767_v41  ;;  %v2533_v43 = vadd.f32 %v2490_v53, %v5692_v33  ;;  %v2772_v17 = vadd.f32 %v4031_v38, %v2535_v44 }
 0x1ff   : > { %v3992_v37 = vpop.f32.mrf.mxu1  ;;  %v2730_v10 = vpop.f32.mrf.mxu0 }
 0x200   : > { %v3466_v1 = vpack.c.bf16 %v2840_v34, %v2839_v45  ;;  %v2838_v26 = vmax.f32 %v2806_v7, 0.0  ;;  %v2770_v9 = vadd.f32 %v2727_v47, %v2533_v43  ;;  %v2536_v57 = vadd.f32 %v3992_v37, %v2296_v63 }
 0x201   : > { %v2493_v5 = vpop.f32.mrf.mxu1  ;;  %v2811_v24 = vadd.f32 %v5436_v8, %v2772_v17 }
 0x202   : > { %3490 = vst [vmem:[%s5455_s20 + $0x68] sm:$0xff] %v3466_v1   ;;  %v3461_v42 = vpack.c.bf16 %v2838_v26, %v2837_v27  ;;  %v2534_v6 = vadd.f32 %v2493_v5, %v2294_v36  ;;  %v2773_v29 = vadd.f32 %v4032_v22, %v2536_v57  ;;  %v2809_v48 = vadd.f32 %v5436_v8, %v2770_v9 }
 0x203   : > { %v2843_v58 = vmax.f32 %v2811_v24, 0.0 }
 0x204   : > { %3489 = vst [vmem:[%s5455_s20 + $0x60] sm:$0xff] %v3461_v42   ;;  %v2771_v23 = vadd.f32 %v2730_v10, %v2534_v6  ;;  %v2812_v11 = vadd.f32 %v5436_v8, %v2773_v29  ;;  %v2841_v3 = vmax.f32 %v2809_v48, 0.0 }
 0x206   : > { %v2810_v21 = vadd.f32 %v5436_v8, %v2771_v23  ;;  %v2844_v2 = vmax.f32 %v2812_v11, 0.0 }
 0x208   : > { %v2842_v14 = vmax.f32 %v2810_v21, 0.0  ;;  %v3476_v32 = vpack.c.bf16 %v2844_v2, %v2843_v58 }
 0x20a   : > { %v3471_v13 = vpack.c.bf16 %v2842_v14, %v2841_v3  ;;  %3492 = vst [vmem:[%s5455_s20 + $0x78] sm:$0xff] %v3476_v32  }
 0x20c   : > { %3491 = vst [vmem:[%s5455_s20 + $0x70] sm:$0xff] %v3471_v13  }
 0x20d PF: > { %s13_s12 = sadd.s32 1, %s4128_s12  }
 0x20e   : > { %p10_p4 = scmp.ge.s32.totalorder %s13_s12, 4  }
 0x210   :  { %12 = sbr.rel (!%p10_p4) target bundleno = 1 (0x1), region = 70 }

// kernel: forward.9
= control target key start
LH: loop header
LB: loop body
LE: loop exit
PB: predicated region body
PF: predicated region fallthrough
CT: control target
= control target key end

     0   :  { %s2172_s24 = smov 0   ;;  %s2454_s0 = inlined_call_operand.vmem [shape: bf16[2,8,8,128], index: 0, kind: input, shape index: {}]   ;;  %s2455_s1 = inlined_call_operand.vmem [shape: bf16[128,32], index: 1, kind: input, shape index: {}]   ;;  %s2456_s2 = inlined_call_operand.vmem [shape: f32[1,32], index: 2, kind: input, shape index: {}]   ;;  %s2457_s3 = inlined_call_operand.vmem [shape: bf16[9,32,32], index: 3, kind: input, shape index: {}]   ;;  %s2458_s4 = inlined_call_operand.vmem [shape: f32[1,32], index: 4, kind: input, shape index: {}]   ;;  %s2459_s5 = inlined_call_operand.vmem [shape: bf16[32,128], index: 5, kind: input, shape index: {}]   ;;  %s2460_s6 = inlined_call_operand.vmem [shape: f32[1,128], index: 6, kind: input, shape index: {}]   ;;  %s2461_s7 = inlined_call_operand.vmem [shape: bf16[2,8,8,128], index: 7, kind: output, shape index: {}]  }
   0x1 LB: > { %s1719_s25 = sadd.s32 4294967295, %s2129_s24   ;;  %p1723_p0 = scmp.ge.s32.totalorder %s2129_s24, 1  ;;  %s2129_s24 = sphi %s2172_s24, %s17_s24  }
   0x2   : > { %p237_p1 = scmp.lt.s32.totalorder %s2129_s24, 3 }
   0x4   : > { %p238_p2 = pnand %p1723_p0, %p237_p1 }
   0x6   : > { %241 = sbr.rel (%p238_p2) target bundleno = 761 (0x2f9), region = 48 }
   0xb   : > { %v2087_v0 = vld [vmem:[%s2455_s1 + $0x38] sm:$0xff]   ;;  %p269_p3 = scmp.lt.s32.totalorder %s1719_s25, 1  ;;  %v2088_v1 = vld [vmem:[%s2455_s1 + $0x30] sm:$0xff]   ;;  %v2089_v2 = vld [vmem:[%s2455_s1 + $0x28] sm:$0xff]   ;;  %vm456_vm0 = vcmask 261120   ;;  %vm458_vm1 = vcmask 254976  }
   0xc   : > { %1934 = vmatprep.subr.bf16.mxu0 %v2087_v0  ;;  %v2090_v3 = vld [vmem:[%s2455_s1 + $0x20] sm:$0xff]   ;;  %v2091_v5 = vld [vmem:[%s2455_s1 + $0x18] sm:$0xff]   ;;  %v2092_v6 = vld [vmem:[%s2455_s1 + $0x10] sm:$0xff]   ;;  %v2131_v12 = vmov 0.0  }
   0xd   : > { %s2485_s25 = smov (!%p269_p3, %s1719_s25), 1  ;;  %1935 = vmatpush3.bf16.msra.mxu0 %v2087_v0  ;;  %v2093_v7 = vld [vmem:[%s2455_s1 + $0x8] sm:$0xff]   ;;  %v2094_v8 = vld [vmem:[%s2455_s1] sm:$0xff]   ;;  %464 = vst.msk [vmem:[#allocation2 + $0x30] sm:$0xff] %vm456_vm0, %v2131_v12  ;;  %457 = vst.msk [vmem:[#allocation2] sm:$0xff] %vm456_vm0, %v2131_v12 }
   0xe   : > { %1936 = vmatprep.subr.bf16.mxu0 %v2088_v1  ;;  %s1837_s9 = sshll.u32 %s2485_s25, 5  ;;  %465 = vst.msk [vmem:[#allocation2 + $0x38] sm:$0x3] %vm458_vm1, %v2131_v12  ;;  %459 = vst.msk [vmem:[#allocation2 + $0x8] sm:$0x3] %vm458_vm1, %v2131_v12  ;;  %v2099_v13 = vld [vmem:[%s2457_s3 + $0x18] sm:$0xff]  }
   0xf   : > { %s273_s12 = scalar_lea.vmem %s2454_s0, %s1837_s9  ;;  %460 = vst.msk [vmem:[#allocation2 + $0x10] sm:$0xff] %vm456_vm0, %v2131_v12  ;;  %462 = vst.msk [vmem:[#allocation2 + $0x20] sm:$0xff] %vm456_vm0, %v2131_v12  ;;  %v2100_v14 = vld [vmem:[%s2457_s3 + $0x38] sm:$0xff]   ;;  %1958 = vmatprep.subr.bf16.mxu1 %v2099_v13  ;;  %v2101_v15 = vld [vmem:[%s2457_s3 + $0x10] sm:$0xff]   ;;  %s278_s11 = scalar_lea.vmem %s2461_s7, %s1837_s9 }
  0x10   : > { %v2200_v4 = vld [vmem:[%s273_s12] sm:$0xff]   ;;  %v2215_v9 = vld [vmem:[%s273_s12 + $0x8] sm:$0xff]   ;;  %v2217_v10 = vld [vmem:[%s273_s12 + $0x10] sm:$0xff]   ;;  %461 = vst.msk [vmem:[#allocation2 + $0x18] sm:$0x3] %vm458_vm1, %v2131_v12  ;;  %1959 = vmatpush3.bf16.msra.mxu1 %v2099_v13 }
  0x11   : > { %1937 = vmatpush3.bf16.msra.mxu0 %v2088_v1  ;;  %2470 = vst [vmem:[#allocation3_spill] sm:$0xff] %v2200_v4  ;;  %1950 = vmatprep.mubr.bf16.mxu0 %v2200_v4  ;;  %2471 = vst [vmem:[#allocation4_spill] sm:$0xff] %v2215_v9  ;;  %v2221_v11 = vld [vmem:[%s273_s12 + $0x18] sm:$0xff]   ;;  %v2102_v16 = vld [vmem:[%s2457_s3 + $0x30] sm:$0xff]  }
  0x12   : > { %1938 = vmatprep.subr.bf16.mxu0 %v2089_v2  ;;  %2472 = vst [vmem:[#allocation5_spill] sm:$0xff] %v2217_v10  ;;  %2473 = vst [vmem:[#allocation6_spill] sm:$0xff] %v2221_v11  ;;  %1960 = vmatprep.subr.bf16.mxu1 %v2101_v15  ;;  %v2103_v17 = vld [vmem:[%s2457_s3 + $0x8] sm:$0xff]   ;;  %v2105_v18 = vld [vmem:[%s2457_s3 + $0x58] sm:$0xff]  }
  0x13   : > { %463 = vst.msk [vmem:[#allocation2 + $0x28] sm:$0x3] %vm458_vm1, %v2131_v12  ;;  %467 = vst.msk [vmem:[#allocation2 + $0x48] sm:$0x3] %vm458_vm1, %v2131_v12  ;;  %v1728_v19 = vld [vmem:[%s2456_s2] ss:$0 sm:$0xff] }
  0x14   : > { %466 = vst.msk [vmem:[#allocation2 + $0x40] sm:$0xff] %vm456_vm0, %v2131_v12  ;;  %468 = vst.msk [vmem:[#allocation2 + $0x50] sm:$0xff] %vm456_vm0, %v2131_v12  ;;  %1961 = vmatpush3.bf16.msra.mxu1 %v2101_v15  ;;  %v2104_v55 = vld [vmem:[%s2457_s3] sm:$0xff]   ;;  %v2106_v57 = vld [vmem:[%s2457_s3 + $0x50] sm:$0xff]  }
  0x15   : > { %1939 = vmatpush3.bf16.msra.mxu0 %v2089_v2  ;;  %469 = vst.msk [vmem:[#allocation2 + $0x58] sm:$0x3] %vm458_vm1, %v2131_v12  ;;  %471 = vst.msk [vmem:[#allocation2 + $0x68] sm:$0x3] %vm458_vm1, %v2131_v12  ;;  %1970 = vmatprep.subr.bf16.mxu1 %v2103_v17  ;;  %v503_v38 = vld [vmem:[#allocation2 + $0x1] sm:$0xff]  ;;  %v2109_v63 = vld [vmem:[%s2457_s3 + $0x78] sm:$0xff]  }
  0x16   : > { %1940 = vmatprep.subr.bf16.mxu0 %v2090_v3  ;;  %470 = vst.msk [vmem:[#allocation2 + $0x60] sm:$0xff] %vm456_vm0, %v2131_v12  ;;  %472 = vst.msk [vmem:[#allocation2 + $0x70] sm:$0xff] %vm456_vm0, %v2131_v12  ;;  %v2107_v61 = vld [vmem:[%s2457_s3 + $0x28] sm:$0xff]   ;;  %v487_v62 = vld [vmem:[#allocation2] sm:$0xff] }
  0x17   : > { %473 = vst.msk [vmem:[#allocation2 + $0x78] sm:$0x3] %vm458_vm1, %v2131_v12  ;;  %475 = vst.msk [vmem:[#allocation2 + $0x88] sm:$0x3] %vm458_vm1, %v2131_v12 }
  0x18   : > { %474 = vst.msk [vmem:[#allocation2 + $0x80] sm:$0xff] %vm456_vm0, %v2131_v12  ;;  %476 = vst.msk [vmem:[#allocation2 + $0x90] sm:$0xff] %vm456_vm0, %v2131_v12 }
  0x19   : > { %1941 = vmatpush3.bf16.msra.mxu0 %v2090_v3  ;;  %477 = vst.msk [vmem:[#allocation2 + $0x98] sm:$0x3] %vm458_vm1, %v2131_v12 }
  0x1a   : > { %1942 = vmatprep.subr.bf16.mxu0 %v2091_v5 }
  0x1d   : > { %1943 = vmatpush3.bf16.msra.mxu0 %v2091_v5 }
  0x1e   : > { %1944 = vmatprep.subr.bf16.mxu0 %v2092_v6 }
  0x21   : > { %1945 = vmatpush3.bf16.msra.mxu0 %v2092_v6 }
  0x22   : > { %1946 = vmatprep.subr.bf16.mxu0 %v2093_v7 }
  0x25   : > { %1947 = vmatpush3.bf16.msra.mxu0 %v2093_v7 }
  0x26   : > { %1948 = vmatprep.subr.bf16.mxu0 %v2094_v8 }
  0x29   : > { %1949 = vmatpush3.bf16.msra.mxu0 %v2094_v8 }
  0x2a   : > { %1994 = vmatprep.subr.bf16.mxu0 %v2100_v14 }
  0x2c   : > { %1951 = vmatmul.mubr.bf16.vlgmr.msra.gmra.mxu0 %v2215_v9 }
  0x2d   : > { %1954 = vmatprep.mubr.bf16.mxu0 %v2217_v10  ;;  %1995 = vmatpush3.bf16.msra.mxu0 %v2100_v14 }
  0x2e   : > { %1996 = vmatprep.subr.bf16.mxu0 %v2102_v16 }
  0x31   : > { %1997 = vmatpush3.bf16.msra.mxu0 %v2102_v16 }
  0x32   : > { %2018 = vmatprep.subr.bf16.mxu0 %v2105_v18 }
  0x34   : > { %1955 = vmatmul.mubr.bf16.gmra.mxu0 %v2221_v11 }
  0xec   : > { %v1952_v20 = vpop.f32.mrf.mxu0 }
  0xed   : > { %v426_v21 = vadd.f32 %v1952_v20, %v1728_v19  ;;  %v2108_v20 = vld [vmem:[%s2457_s3 + $0x20] sm:$0xff]  }
  0xee   : > { %v417_v22 = vpop.f32.mrf.mxu0 }
  0xef   : > { %v450_v23 = vmax.f32 %v426_v21, 0.0  ;;  %v418_v24 = vadd.f32 %v1728_v19, %v417_v22 }
  0xf0   : > { %v1953_v25 = vpop.f32.mrf.mxu0 }
  0xf1   : > { %481 = vst.msk [vmem:[#allocation2 + $0x31] sm:$0xff] %vm456_vm0, %v450_v23  ;;  %v448_v26 = vmax.f32 %v418_v24, 0.0  ;;  %v429_v27 = vadd.f32 %v1953_v25, %v1728_v19  ;;  %v2110_v25 = vld [vmem:[%s2457_s3 + $0x70] sm:$0xff]  }
  0xf2   : > { %v420_v28 = vpop.f32.mrf.mxu0 }
  0xf3   : > { %479 = vst.msk [vmem:[#allocation2 + $0x11] sm:$0xff] %vm456_vm0, %v448_v26  ;;  %v451_v29 = vmax.f32 %v429_v27, 0.0  ;;  %v421_v30 = vadd.f32 %v1728_v19, %v420_v28  ;;  %v2111_v27 = vld [vmem:[%s2457_s3 + $0x48] sm:$0xff]  }
  0xf4   : > { %v1956_v31 = vpop.f32.mrf.mxu0  ;;  %v698_v28 = vld [vmem:[#allocation2 + $0x2] sm:$0xff] }
  0xf5   : > { %482 = vst.msk [vmem:[#allocation2 + $0x41] sm:$0xff] %vm456_vm0, %v451_v29  ;;  %v449_v32 = vmax.f32 %v421_v30, 0.0  ;;  %v442_v33 = vadd.f32 %v1956_v31, %v1728_v19 }
  0xf6   : > { %v433_v34 = vpop.f32.mrf.mxu0 }
  0xf7   : > { %480 = vst.msk [vmem:[#allocation2 + $0x21] sm:$0xff] %vm456_vm0, %v449_v32  ;;  %v454_v35 = vmax.f32 %v442_v33, 0.0  ;;  %v434_v36 = vadd.f32 %v1728_v19, %v433_v34 }
  0xf8   : > { %v1957_v37 = vpop.f32.mrf.mxu0  ;;  %v2276_v47 = vld [vmem:[#allocation2 + $0x31] sm:$0xff] }
  0xf9   : > { %485 = vst.msk [vmem:[#allocation2 + $0x71] sm:$0xff] %vm456_vm0, %v454_v35  ;;  %v452_v39 = vmax.f32 %v434_v36, 0.0  ;;  %v445_v40 = vadd.f32 %v1957_v37, %v1728_v19  ;;  %v814_v54 = vld [vmem:[#allocation2 + $0x30] sm:$0xff]  ;;  %v2112_v35 = vld [vmem:[%s2457_s3 + $0x40] sm:$0xff]   ;;  %v2113_v37 = vld [vmem:[%s2457_s3 + $0x68] sm:$0xff]  }
  0xfa   : > { %v436_v41 = vpop.f32.mrf.mxu0  ;;  %v2270_v42 = vld [vmem:[#allocation2 + $0x11] sm:$0xff] }
  0xfb   : > { %483 = vst.msk [vmem:[#allocation2 + $0x51] sm:$0xff] %vm456_vm0, %v452_v39  ;;  %v455_v43 = vmax.f32 %v445_v40, 0.0  ;;  %v437_v44 = vadd.f32 %v1728_v19, %v436_v41  ;;  %v511_v45 = vpack.c.bf16 %v2270_v42, %v503_v38  ;;  %v812_v50 = vld [vmem:[#allocation2 + $0x10] sm:$0xff] }
  0xfc   : > { %v815_v48 = vld [vmem:[#allocation2 + $0x40] sm:$0xff]  ;;  %v495_v13 = vpack.c.bf16 %v812_v50, %v487_v62  ;;  %v1040_v15 = vld [vmem:[#allocation2 + $0x12] sm:$0xff] }
  0xfd   : > { %486 = vst.msk [vmem:[#allocation2 + $0x81] sm:$0xff] %vm456_vm0, %v455_v43  ;;  %v453_v46 = vmax.f32 %v437_v44, 0.0  ;;  %1962 = vmatprep.mubr.msk.bf16.mxu1 %vm456_vm0, %v511_v45  ;;  %v821_v56 = vpack.c.bf16 %v815_v48, %v814_v54  ;;  %v2295_v58 = vld [vmem:[#allocation2 + $0x41] sm:$0xff]  ;;  %v1042_v22 = vld [vmem:[#allocation2 + $0x32] sm:$0xff]  ;;  %v706_v31 = vpack.c.bf16 %v1040_v15, %v698_v28 }
  0xfe   : > { %v2278_v49 = vld [vmem:[#allocation2 + $0x21] sm:$0xff]  ;;  %v1276_v39 = vld [vmem:[#allocation2 + $0x91] sm:$0xff]  ;;  %v935_v44 = vpack.c.bf16 %v2295_v58, %v2276_v47 }
  0xff   : > { %v813_v51 = vld [vmem:[#allocation2 + $0x20] sm:$0xff]  ;;  %484 = vst.msk [vmem:[#allocation2 + $0x61] sm:$0xff] %vm456_vm0, %v453_v46  ;;  %v2283_v52 = vpack.c.bf16 %v2276_v47, %v2278_v49  ;;  %v934_v41 = vpack.c.bf16 %v2278_v49, %v2270_v42  ;;  %v2115_v42 = vld [vmem:[%s2457_s3 + $0x88] sm:$0xff]   ;;  %v1162_v49 = vld [vmem:[#allocation2 + $0x90] sm:$0xff] }
 0x100   : > { %v820_v53 = vpack.c.bf16 %v813_v51, %v812_v50  ;;  %v2311_v0 = vld [vmem:[#allocation2 + $0x71] sm:$0xff]  ;;  %v1041_v2 = vld [vmem:[#allocation2 + $0x22] sm:$0xff] }
 0x101   : > { %1963 = vmatmul.mubr.msk.bf16.vlgmr.msra.gmra.mxu1 %vm456_vm0, %v2283_v52  ;;  %v818_v12 = vld [vmem:[#allocation2 + $0x70] sm:$0xff]  ;;  %v1048_v16 = vpack.c.bf16 %v1041_v2, %v1040_v15  ;;  %v707_v34 = vpack.c.bf16 %v1042_v22, %v1041_v2  ;;  %v2114_v45 = vld [vmem:[%s2457_s3 + $0x60] sm:$0xff]  }
 0x102   : > { %1998 = vmatprep.mubr.msk.bf16.mxu0 %vm456_vm0, %v820_v53  ;;  %1971 = vmatpush3.bf16.msra.mxu1 %v2103_v17  ;;  %v2297_v59 = vld [vmem:[#allocation2 + $0x51] sm:$0xff]  ;;  %v1043_v17 = vld [vmem:[#allocation2 + $0x42] sm:$0xff] }
 0x103   : > { %1999 = vmatmul.mubr.msk.bf16.vlgmr.msra.gmra.mxu0 %vm456_vm0, %v821_v56  ;;  %v2301_v60 = vpack.c.bf16 %v2297_v59, %v2295_v58  ;;  %1972 = vmatprep.subr.bf16.mxu1 %v2104_v55  ;;  %v816_v5 = vld [vmem:[#allocation2 + $0x50] sm:$0xff]  ;;  %v1049_v23 = vpack.c.bf16 %v1043_v17, %v1042_v22  ;;  %v2117_v53 = vld [vmem:[%s2459_s5 + $0x8] sm:$0xff]  }
 0x104   : > { %2019 = vmatpush3.bf16.msra.mxu0 %v2105_v18  ;;  %v2313_v1 = vld [vmem:[#allocation2 + $0x80] sm:$0xff]  ;;  %v2325_v18 = vpack.c.bf16 %v814_v54, %v813_v51  ;;  %v497_v21 = vpack.c.bf16 %v816_v5, %v815_v48  ;;  %v1044_v24 = vld [vmem:[#allocation2 + $0x52] sm:$0xff] }
 0x105   : > { %2020 = vmatprep.subr.bf16.mxu0 %v2106_v57  ;;  %1966 = vmatprep.mubr.msk.bf16.mxu1 %vm456_vm0, %v2301_v60  ;;  %v823_v14 = vpack.c.bf16 %v2313_v1, %v818_v12  ;;  %v1047_v29 = vld [vmem:[#allocation2 + $0x82] sm:$0xff]  ;;  %v1046_v32 = vld [vmem:[#allocation2 + $0x72] sm:$0xff]  ;;  %v708_v36 = vpack.c.bf16 %v1044_v24, %v1043_v17  ;;  %v1166_v50 = vpack.c.bf16 %v1162_v49, %v2313_v1 }
 0x106   : > { %v2315_v3 = vld [vmem:[#allocation2 + $0x61] sm:$0xff]  ;;  %1973 = vmatpush3.bf16.msra.mxu1 %v2104_v55  ;;  %v1051_v33 = vpack.c.bf16 %v1047_v29, %v1046_v32  ;;  %v1390_v51 = vld [vmem:[#allocation2 + $0x92] sm:$0xff] }
 0x107   : > { %v817_v6 = vld [vmem:[#allocation2 + $0x60] sm:$0xff]  ;;  %v514_v7 = vpack.c.bf16 %v2311_v0, %v2315_v3  ;;  %1982 = vmatprep.subr.bf16.mxu1 %v2107_v61  ;;  %v936_v46 = vpack.c.bf16 %v2315_v3, %v2297_v59 }
 0x108   : > { %v822_v8 = vpack.c.bf16 %v817_v6, %v816_v5  ;;  %2021 = vmatpush3.bf16.msra.mxu0 %v2106_v57  ;;  %v1045_v19 = vld [vmem:[#allocation2 + $0x62] sm:$0xff]  ;;  %v498_v30 = vpack.c.bf16 %v818_v12, %v817_v6 }
 0x109   : > { %2042 = vmatprep.subr.bf16.mxu0 %v2109_v63  ;;  %1967 = vmatmul.mubr.msk.bf16.gmra.mxu1 %vm456_vm0, %v514_v7  ;;  %v1050_v26 = vpack.c.bf16 %v1045_v19, %v1044_v24  ;;  %v1275_v38 = vld [vmem:[#allocation2 + $0x81] sm:$0xff]  ;;  %v709_v40 = vpack.c.bf16 %v1046_v32, %v1045_v19 }
 0x10a   : > { %2002 = vmatprep.mubr.msk.bf16.mxu0 %vm456_vm0, %v822_v8  ;;  %1974 = vmatprep.mubr.msk.bf16.mxu1 %vm456_vm0, %v495_v13  ;;  %v1280_v43 = vpack.c.bf16 %v1276_v39, %v1275_v38  ;;  %v937_v47 = vpack.c.bf16 %v1275_v38, %v2311_v0  ;;  %v2116_v48 = vld [vmem:[%s2457_s3 + $0x80] sm:$0xff]  }
 0x10b   : > { %2003 = vmatmul.mubr.msk.bf16.gmra.mxu0 %vm456_vm0, %v823_v14  ;;  %v2118_v54 = vld [vmem:[%s2459_s5] sm:$0xff]  }
 0x10c   : > { %2022 = vmatprep.mubr.msk.bf16.mxu0 %vm456_vm0, %v1048_v16 }
 0x111   : > { %1975 = vmatmul.mubr.msk.bf16.vlgmr.msra.gmra.mxu1 %vm456_vm0, %v2325_v18 }
 0x112   : > { %1983 = vmatpush3.bf16.msra.mxu1 %v2107_v61  ;;  %1978 = vmatprep.mubr.msk.bf16.mxu1 %vm456_vm0, %v497_v21 }
 0x113   : > { %2023 = vmatmul.mubr.msk.bf16.vlgmr.msra.gmra.mxu0 %vm456_vm0, %v1049_v23  ;;  %1984 = vmatprep.subr.bf16.mxu1 %v2108_v20 }
 0x114   : > { %2026 = vmatprep.mubr.msk.bf16.mxu0 %vm456_vm0, %v1050_v26  ;;  %2043 = vmatpush3.bf16.msra.mxu0 %v2109_v63 }
 0x115   : > { %2044 = vmatprep.subr.bf16.mxu0 %v2110_v25 }
 0x116   : > { %1985 = vmatpush3.bf16.msra.mxu1 %v2108_v20 }
 0x117   : > { %2006 = vmatprep.subr.bf16.mxu1 %v2111_v27 }
 0x118   : > { %2045 = vmatpush3.bf16.msra.mxu0 %v2110_v25 }
 0x119   : > { %1979 = vmatmul.mubr.msk.bf16.gmra.mxu1 %vm456_vm0, %v498_v30  ;;  %2066 = vmatprep.subr.bf16.mxu0 %v2117_v53 }
 0x11a   : > { %1986 = vmatprep.mubr.msk.bf16.mxu1 %vm456_vm0, %v706_v31 }
 0x11b   : > { %2027 = vmatmul.mubr.msk.bf16.gmra.mxu0 %vm456_vm0, %v1051_v33 }
 0x11c   : > { %2046 = vmatprep.mubr.msk.bf16.mxu0 %vm456_vm0, %v2283_v52  ;;  %v1394_v52 = vpack.c.bf16 %v1390_v51, %v1047_v29 }
 0x121   : > { %1987 = vmatmul.mubr.msk.bf16.vlgmr.msra.gmra.mxu1 %vm456_vm0, %v707_v34 }
 0x122   : > { %2007 = vmatpush3.bf16.msra.mxu1 %v2111_v27  ;;  %1990 = vmatprep.mubr.msk.bf16.mxu1 %vm456_vm0, %v708_v36 }
 0x123   : > { %2047 = vmatmul.mubr.msk.bf16.vlgmr.msra.gmra.mxu0 %vm456_vm0, %v2301_v60  ;;  %2008 = vmatprep.subr.bf16.mxu1 %v2112_v35 }
 0x124   : > { %2050 = vmatprep.mubr.msk.bf16.mxu0 %vm456_vm0, %v514_v7  ;;  %2067 = vmatpush3.bf16.msra.mxu0 %v2117_v53 }
 0x125   : > { %2068 = vmatprep.subr.bf16.mxu0 %v2118_v54 }
 0x126   : > { %2009 = vmatpush3.bf16.msra.mxu1 %v2112_v35 }
 0x127   : > { %2030 = vmatprep.subr.bf16.mxu1 %v2113_v37 }
 0x128   : > { %2069 = vmatpush3.bf16.msra.mxu0 %v2118_v54 }
 0x129   : > { %1991 = vmatmul.mubr.msk.bf16.gmra.mxu1 %vm456_vm0, %v709_v40 }
 0x12a   : > { %2010 = vmatprep.mubr.msk.bf16.mxu1 %vm456_vm0, %v934_v41 }
 0x12b   : > { %2051 = vmatmul.mubr.msk.bf16.gmra.mxu0 %vm456_vm0, %v1280_v43 }
 0x131   : > { %2011 = vmatmul.mubr.msk.bf16.vlgmr.msra.gmra.mxu1 %vm456_vm0, %v935_v44 }
 0x132   : > { %2031 = vmatpush3.bf16.msra.mxu1 %v2113_v37  ;;  %2014 = vmatprep.mubr.msk.bf16.mxu1 %vm456_vm0, %v936_v46 }
 0x133   : > { %2032 = vmatprep.subr.bf16.mxu1 %v2114_v45 }
 0x136   : > { %2033 = vmatpush3.bf16.msra.mxu1 %v2114_v45 }
 0x137   : > { %2054 = vmatprep.subr.bf16.mxu1 %v2115_v42 }
 0x139   : > { %2015 = vmatmul.mubr.msk.bf16.gmra.mxu1 %vm456_vm0, %v937_v47 }
 0x13a   : > { %2034 = vmatprep.mubr.msk.bf16.mxu1 %vm456_vm0, %v2325_v18 }
 0x141   : > { %2035 = vmatmul.mubr.msk.bf16.vlgmr.msra.gmra.mxu1 %vm456_vm0, %v497_v21 }
 0x142   : > { %2055 = vmatpush3.bf16.msra.mxu1 %v2115_v42  ;;  %2038 = vmatprep.mubr.msk.bf16.mxu1 %vm456_vm0, %v498_v30 }
 0x143   : > { %2056 = vmatprep.subr.bf16.mxu1 %v2116_v48 }
 0x146   : > { %2057 = vmatpush3.bf16.msra.mxu1 %v2116_v48 }
 0x149   : > { %2039 = vmatmul.mubr.msk.bf16.gmra.mxu1 %vm456_vm0, %v1166_v50 }
 0x14a   : > { %2058 = vmatprep.mubr.msk.bf16.mxu1 %vm456_vm0, %v707_v34 }
 0x151   : > { %2059 = vmatmul.mubr.msk.bf16.vlgmr.msra.gmra.mxu1 %vm456_vm0, %v708_v36 }
 0x152   : > { %2062 = vmatprep.mubr.msk.bf16.mxu1 %vm456_vm0, %v709_v40 }
 0x159   : > { %2063 = vmatmul.mubr.msk.bf16.gmra.mxu1 %vm456_vm0, %v1394_v52 }
 0x1c1   : > { %v1964_v55 = vpop.f32.mrf.mxu1 }
 0x1c3   : > { %v2000_v56 = vpop.f32.mrf.mxu0  ;;  %v578_v57 = vpop.f32.mrf.mxu1 }
 0x1c5   : > { %v887_v58 = vpop.f32.mrf.mxu0  ;;  %v1965_v59 = vpop.f32.mrf.mxu1 }
 0x1c7   : > { %v581_v60 = vpop.f32.mrf.mxu1  ;;  %v2395_v61 = vpop.f32.mrf.mxu0 }
 0x1c9   : > { %v1968_v62 = vpop.f32.mrf.mxu1  ;;  %v2397_v0 = vpop.f32.mrf.mxu0 }
 0x1cb   : > { %v594_v63 = vpop.f32.mrf.mxu1  ;;  %v2401_v3 = vpop.f32.mrf.mxu0 }
 0x1cd   : > { %v1969_v1 = vpop.f32.mrf.mxu1  ;;  %v2403_v7 = vpop.f32.mrf.mxu0 }
 0x1cf   : > { %v2399_v2 = vpop.f32.mrf.mxu1  ;;  %v2405_v13 = vpop.f32.mrf.mxu0 }
 0x1d1   : > { %v1976_v5 = vpop.f32.mrf.mxu1  ;;  %v2407_v16 = vpop.f32.mrf.mxu0 }
 0x1d2   : > { %v676_v43 = vadd.f32 %v1976_v5, %v1964_v55 }
 0x1d3   : > { %v667_v6 = vpop.f32.mrf.mxu1  ;;  %v2024_v19 = vpop.f32.mrf.mxu0 }
 0x1d4   : > { %v668_v45 = vadd.f32 %v667_v6, %v578_v57 }
 0x1d5   : > { %v1977_v8 = vpop.f32.mrf.mxu1  ;;  %v1115_v22 = vpop.f32.mrf.mxu0 }
 0x1d6   : > { %v679_v48 = vadd.f32 %v1977_v8, %v1965_v59 }
 0x1d7   : > { %v670_v12 = vpop.f32.mrf.mxu1  ;;  %v2025_v25 = vpop.f32.mrf.mxu0 }
 0x1d8   : > { %v671_v51 = vadd.f32 %v670_v12, %v581_v60 }
 0x1d9   : > { %v1980_v14 = vpop.f32.mrf.mxu1  ;;  %v1118_v28 = vpop.f32.mrf.mxu0 }
 0x1da   : > { %v692_v11 = vadd.f32 %v1980_v14, %v1968_v62 }
 0x1db   : > { %v683_v15 = vpop.f32.mrf.mxu1  ;;  %v2409_v31 = vpop.f32.mrf.mxu0 }
 0x1dd   : > { %v1981_v17 = vpop.f32.mrf.mxu1  ;;  %v2411_v34 = vpop.f32.mrf.mxu0 }
 0x1de   : > { %2474 = vst [vmem:[#allocation7_spill] sm:$0xff] %v2411_v34  ;;  %v695_v6 = vadd.f32 %v1981_v17, %v1969_v1 }
 0x1df   : > { %v686_v18 = vpop.f32.mrf.mxu1  ;;  %v2413_v37 = vpop.f32.mrf.mxu0 }
 0x1e0   : > { %2475 = vst [vmem:[#allocation8_spill] sm:$0xff] %v2413_v37  ;;  %v687_v12 = vadd.f32 %v686_v18, %v2399_v2 }
 0x1e1   : > { %v1988_v20 = vpop.f32.mrf.mxu1  ;;  %v2415_v40 = vpop.f32.mrf.mxu0 }
 0x1e2   : > { %2476 = vst [vmem:[#allocation9_spill] sm:$0xff] %v2415_v40  ;;  %v806_v46 = vadd.f32 %v1988_v20, %v676_v43  ;;  %v684_v40 = vadd.f32 %v683_v15, %v594_v63 }
 0x1e3   : > { %v773_v21 = vpop.f32.mrf.mxu1  ;;  %v2048_v42 = vpop.f32.mrf.mxu0 }
 0x1e4   : > { %v804_v49 = vadd.f32 %v773_v21, %v668_v45  ;;  %v920_v53 = vadd.f32 %v2000_v56, %v806_v46 }
 0x1e5   : > { %v1989_v23 = vpop.f32.mrf.mxu1  ;;  %v1344_v54 = vpop.f32.mrf.mxu0 }
 0x1e6   : > { %v807_v52 = vadd.f32 %v1989_v23, %v679_v48  ;;  %v918_v37 = vadd.f32 %v887_v58, %v804_v49 }
 0x1e7   : > { %v776_v24 = vpop.f32.mrf.mxu1  ;;  %v2049_v20 = vpop.f32.mrf.mxu0 }
 0x1e8   : > { %v805_v4 = vadd.f32 %v776_v24, %v671_v51  ;;  %v921_v57 = vadd.f32 %v2395_v61, %v807_v52 }
 0x1e9   : > { %v1992_v26 = vpop.f32.mrf.mxu1  ;;  %v1347_v15 = vpop.f32.mrf.mxu0 }
 0x1ea   : > { %v810_v55 = vadd.f32 %v1992_v26, %v692_v11  ;;  %v919_v60 = vadd.f32 %v2397_v0, %v805_v4 }
 0x1eb   : > { %v789_v27 = vpop.f32.mrf.mxu1 }
 0x1ec   : > { %v808_v59 = vadd.f32 %v789_v27, %v684_v40  ;;  %v924_v58 = vadd.f32 %v2401_v3, %v810_v55 }
 0x1ed   : > { %v1993_v29 = vpop.f32.mrf.mxu1 }
 0x1ee   : > { %v811_v62 = vadd.f32 %v1993_v29, %v695_v6  ;;  %v922_v61 = vadd.f32 %v2403_v7, %v808_v59 }
 0x1ef   : > { %v792_v30 = vpop.f32.mrf.mxu1 }
 0x1f0   : > { %v809_v24 = vadd.f32 %v792_v30, %v687_v12  ;;  %v925_v4 = vadd.f32 %v2405_v13, %v811_v62  ;;  %v1827_v13 = vld [vmem:[%s2458_s4] ss:$0 sm:$0xff] }
 0x1f1   : > { %v2012_v32 = vpop.f32.mrf.mxu1 }
 0x1f2   : > { %v1034_v9 = vadd.f32 %v2012_v32, %v920_v53  ;;  %v923_v3 = vadd.f32 %v2407_v16, %v809_v24  ;;  %v2478_v16 = vld [vmem:[#allocation8_spill] sm:$0xff] }
 0x1f3   : > { %v1001_v33 = vpop.f32.mrf.mxu1 }
 0x1f4   : > { %v1032_v5 = vadd.f32 %v1001_v33, %v918_v37  ;;  %v1148_v56 = vadd.f32 %v2024_v19, %v1034_v9  ;;  %v2052_v19 = vpop.f32.mrf.mxu0  ;;  %v2477_v37 = vld [vmem:[#allocation7_spill] sm:$0xff] }
 0x1f5   : > { %v2013_v35 = vpop.f32.mrf.mxu1 }
 0x1f6   : > { %v1035_v21 = vadd.f32 %v2013_v35, %v921_v57  ;;  %v1146_v11 = vadd.f32 %v1115_v22, %v1032_v5  ;;  %v1360_v40 = vpop.f32.mrf.mxu0 }
 0x1f7   : > { %v1004_v36 = vpop.f32.mrf.mxu1 }
 0x1f8   : > { %v1033_v23 = vadd.f32 %v1004_v36, %v919_v60  ;;  %v1149_v27 = vadd.f32 %v2025_v25, %v1035_v21  ;;  %v2053_v53 = vpop.f32.mrf.mxu0 }
 0x1f9   : > { %v2016_v38 = vpop.f32.mrf.mxu1 }
 0x1fa   : > { %v1038_v17 = vadd.f32 %v2016_v38, %v924_v58  ;;  %v1147_v2 = vadd.f32 %v1118_v28, %v1033_v23 }
 0x1fb   : > { %v1017_v39 = vpop.f32.mrf.mxu1 }
 0x1fc   : > { %v1036_v32 = vadd.f32 %v1017_v39, %v922_v61  ;;  %v1152_v30 = vadd.f32 %v2409_v31, %v1038_v17 }
 0x1fd   : > { %v2017_v41 = vpop.f32.mrf.mxu1 }
 0x1fe   : > { %v1039_v29 = vadd.f32 %v2017_v41, %v925_v4  ;;  %v1150_v25 = vadd.f32 %v2477_v37, %v1036_v32 }
 0x1ff   : > { %v1020_v44 = vpop.f32.mrf.mxu1 }
 0x200   : > { %v1037_v36 = vadd.f32 %v1020_v44, %v923_v3  ;;  %v1153_v43 = vadd.f32 %v2478_v16, %v1039_v29  ;;  %v2479_v44 = vld [vmem:[#allocation9_spill] sm:$0xff]  ;;  %v2480_v3 = vld [vmem:[#allocation4_spill] sm:$0xff]  ;;  %v2482_v16 = vld [vmem:[#allocation6_spill] sm:$0xff] }
 0x201   : > { %v2036_v47 = vpop.f32.mrf.mxu1 }
 0x202   : > { %v1263_v63 = vadd.f32 %v2036_v47, %v1148_v56  ;;  %v1151_v47 = vadd.f32 %v2479_v44, %v1037_v36  ;;  %v1627_v36 = vunpack.c.h.bf16 %v2480_v3  ;;  %v2483_v44 = vld [vmem:[#allocation5_spill] sm:$0xff] }
 0x203   : > { %v1230_v50 = vpop.f32.mrf.mxu1 }
 0x204   : > { %v1261_v26 = vadd.f32 %v1230_v50, %v1146_v11  ;;  %v1377_v18 = vadd.f32 %v2048_v42, %v1263_v63 }
 0x205   : > { %v2037_v10 = vpop.f32.mrf.mxu1 }
 0x206   : > { %v1264_v0 = vadd.f32 %v2037_v10, %v1149_v27  ;;  %v1375_v35 = vadd.f32 %v1344_v54, %v1261_v26 }
 0x207   : > { %v1233_v34 = vpop.f32.mrf.mxu1 }
 0x208   : > { %v1262_v33 = vadd.f32 %v1233_v34, %v1147_v2  ;;  %v1378_v39 = vadd.f32 %v2049_v20, %v1264_v0 }
 0x209   : > { %v2040_v8 = vpop.f32.mrf.mxu1 }
 0x20a   : > { %v1267_v28 = vadd.f32 %v2040_v8, %v1152_v30  ;;  %v1376_v46 = vadd.f32 %v1347_v15, %v1262_v33  ;;  %v2481_v30 = vld [vmem:[#allocation3_spill] sm:$0xff] }
 0x20b   : > { %v1246_v14 = vpop.f32.mrf.mxu1 }
 0x20c   : > { %v1265_v41 = vadd.f32 %v1246_v14, %v1150_v25  ;;  %v1381_v52 = vadd.f32 %v2052_v19, %v1267_v28  ;;  %v1363_v14 = vpop.f32.mrf.mxu0  ;;  %v1625_v25 = vunpack.c.h.bf16 %v2481_v30 }
 0x20d   : > { %v2041_v1 = vpop.f32.mrf.mxu1 }
 0x20e   : > { %v1268_v42 = vadd.f32 %v2041_v1, %v1153_v43  ;;  %v1379_v5 = vadd.f32 %v1360_v40, %v1265_v41  ;;  %v1630_v43 = vunpack.c.l.bf16 %v2482_v16 }
 0x20f   : > { %v1249_v9 = vpop.f32.mrf.mxu1 }
 0x210   : > { %v1266_v54 = vadd.f32 %v1249_v9, %v1151_v47  ;;  %v1382_v21 = vadd.f32 %v2053_v53, %v1268_v42  ;;  %v1628_v47 = vunpack.c.l.bf16 %v2483_v44 }
 0x211   : > { %v2060_v22 = vpop.f32.mrf.mxu1 }
 0x212   : > { %v1491_v7 = vadd.f32 %v2060_v22, %v1377_v18  ;;  %v1380_v15 = vadd.f32 %v1363_v14, %v1266_v54  ;;  %v1828_v18 = vld [vmem:[%s2460_s6] ss:$0 sm:$0xff]  ;;  %v1626_v22 = vunpack.c.l.bf16 %v2480_v3 }
 0x213   : > { %v1458_v10 = vpop.f32.mrf.mxu1 }
 0x214   : > { %v1489_v38 = vadd.f32 %v1458_v10, %v1375_v35  ;;  %v1506_v45 = vadd.f32 %v1827_v13, %v1491_v7  ;;  %v1624_v7 = vunpack.c.l.bf16 %v2481_v30 }
 0x215   : > { %v2061_v34 = vpop.f32.mrf.mxu1 }
 0x216   : > { %v1492_v31 = vadd.f32 %v2061_v34, %v1378_v39  ;;  %v1504_v49 = vadd.f32 %v1827_v13, %v1489_v38  ;;  %v1514_v57 = vmax.f32 %v1506_v45, 0.0 }
 0x217   : > { %v1461_v48 = vpop.f32.mrf.mxu1 }
 0x218   : > { %v1507_v50 = vadd.f32 %v1827_v13, %v1492_v31  ;;  %v1490_v51 = vadd.f32 %v1461_v48, %v1376_v46  ;;  %v1512_v60 = vmax.f32 %v1504_v49, 0.0  ;;  %v1631_v48 = vunpack.c.h.bf16 %v2482_v16 }
 0x219   : > { %v2064_v55 = vpop.f32.mrf.mxu1 }
 0x21a   : > { %v1515_v6 = vmax.f32 %v1507_v50, 0.0  ;;  %v1505_v20 = vadd.f32 %v1827_v13, %v1490_v51  ;;  %v1495_v59 = vadd.f32 %v2064_v55, %v1381_v52 }
 0x21b   : > { %v1474_v8 = vpop.f32.mrf.mxu1 }
 0x21c   : > { %v1521_v56 = vpack.c.bf16 %v1515_v6, %v1514_v57  ;;  %v1513_v12 = vmax.f32 %v1505_v20, 0.0  ;;  %v1493_v62 = vadd.f32 %v1474_v8, %v1379_v5  ;;  %v1510_v63 = vadd.f32 %v1827_v13, %v1495_v59 }
 0x21d   : > { %v2065_v23 = vpop.f32.mrf.mxu1  ;;  %v1629_v57 = vunpack.c.h.bf16 %v2483_v44 }
 0x21e   : > { %v1520_v58 = vpack.c.bf16 %v1513_v12, %v1512_v60  ;;  %v1496_v11 = vadd.f32 %v2065_v23, %v1382_v21  ;;  %v1508_v61 = vadd.f32 %v1827_v13, %v1493_v62  ;;  %v1518_v26 = vmax.f32 %v1510_v63, 0.0 }
 0x21f   : > { %v1477_v24 = vpop.f32.mrf.mxu1 }
 0x220   : > { %v1511_v1 = vadd.f32 %v1827_v13, %v1496_v11  ;;  %v1494_v17 = vadd.f32 %v1477_v24, %v1380_v15  ;;  %2070 = vmatprep.mubr.msk.bf16.mxu0 %vm456_vm0, %v1520_v58  ;;  %v1516_v4 = vmax.f32 %v1508_v61, 0.0 }
 0x221   : > { %2071 = vmatmul.mubr.msk.bf16.vlgmr.msra.gmra.mxu0 %vm456_vm0, %v1521_v56 }
 0x222   : > { %v1519_v27 = vmax.f32 %v1511_v1, 0.0  ;;  %v1509_v32 = vadd.f32 %v1827_v13, %v1494_v17 }
 0x224   : > { %v1523_v9 = vpack.c.bf16 %v1519_v27, %v1518_v26  ;;  %v1517_v0 = vmax.f32 %v1509_v32, 0.0 }
 0x226   : > { %v1522_v2 = vpack.c.bf16 %v1517_v0, %v1516_v4 }
 0x228   : > { %2074 = vmatprep.mubr.msk.bf16.mxu0 %vm456_vm0, %v1522_v2 }
 0x229   : > { %2075 = vmatmul.mubr.msk.bf16.gmra.mxu0 %vm456_vm0, %v1523_v9 }
 0x2e1   : > { %v2072_v19 = vpop.f32.mrf.mxu0 }
 0x2e2   : > { %v1602_v29 = vadd.f32 %v2072_v19, %v1828_v18 }
 0x2e3   : > { %v1593_v33 = vpop.f32.mrf.mxu0 }
 0x2e4   : > { %v1594_v35 = vadd.f32 %v1828_v18, %v1593_v33  ;;  %v1634_v13 = vadd.f32 %v1626_v22, %v1602_v29 }
 0x2e5   : > { %v2073_v37 = vpop.f32.mrf.mxu0 }
 0x2e6   : > { %v1605_v10 = vadd.f32 %v2073_v37, %v1828_v18  ;;  %v1632_v38 = vadd.f32 %v1624_v7, %v1594_v35  ;;  %v1642_v34 = vmax.f32 %v1634_v13, 0.0 }
 0x2e7   : > { %v1596_v28 = vpop.f32.mrf.mxu0 }
 0x2e8   : > { %v1635_v39 = vadd.f32 %v1627_v36, %v1605_v10  ;;  %v1597_v40 = vadd.f32 %v1828_v18, %v1596_v28  ;;  %v1640_v49 = vmax.f32 %v1632_v38, 0.0 }
 0x2e9   : > { %v2076_v41 = vpop.f32.mrf.mxu0 }
 0x2ea   : > { %v1643_v45 = vmax.f32 %v1635_v39, 0.0  ;;  %v1633_v31 = vadd.f32 %v1625_v25, %v1597_v40  ;;  %v1618_v46 = vadd.f32 %v2076_v41, %v1828_v18 }
 0x2eb   : > { %v1609_v42 = vpop.f32.mrf.mxu0 }
 0x2ec   : > { %v1847_v50 = vpack.c.bf16 %v1643_v45, %v1642_v34  ;;  %v1641_v51 = vmax.f32 %v1633_v31, 0.0  ;;  %v1610_v52 = vadd.f32 %v1828_v18, %v1609_v42  ;;  %v1638_v55 = vadd.f32 %v1630_v43, %v1618_v46 }
 0x2ed   : > { %v2077_v53 = vpop.f32.mrf.mxu0 }
 0x2ee   : > { %1859 = vst [vmem:[%s278_s11 + $0x8] sm:$0xff] %v1847_v50   ;;  %v1842_v54 = vpack.c.bf16 %v1641_v51, %v1640_v49  ;;  %v1621_v5 = vadd.f32 %v2077_v53, %v1828_v18  ;;  %v1636_v20 = vadd.f32 %v1628_v47, %v1610_v52  ;;  %v1646_v21 = vmax.f32 %v1638_v55, 0.0 }
 0x2ef   : > { %v1612_v6 = vpop.f32.mrf.mxu0 }
 0x2f0   : > { %1843 = vst [vmem:[%s278_s11] sm:$0xff] %v1842_v54   ;;  %v1639_v59 = vadd.f32 %v1631_v48, %v1621_v5  ;;  %v1613_v8 = vadd.f32 %v1828_v18, %v1612_v6  ;;  %v1644_v12 = vmax.f32 %v1636_v20, 0.0 }
 0x2f2   : > { %v1647_v60 = vmax.f32 %v1639_v59, 0.0  ;;  %v1637_v56 = vadd.f32 %v1629_v57, %v1613_v8 }
 0x2f4   : > { %v1857_v62 = vpack.c.bf16 %v1647_v60, %v1646_v21  ;;  %v1645_v14 = vmax.f32 %v1637_v56, 0.0 }
 0x2f6   : > { %1861 = vst [vmem:[%s278_s11 + $0x18] sm:$0xff] %v1857_v62   ;;  %v1852_v23 = vpack.c.bf16 %v1645_v14, %v1644_v12 }
 0x2f8   : > { %1860 = vst [vmem:[%s278_s11 + $0x10] sm:$0xff] %v1852_v23  }
 0x2f9 PF: > { %s17_s24 = sadd.s32 1, %s2129_s24  }
 0x2fa   : > { %p14_p4 = scmp.ge.s32.totalorder %s17_s24, 4  }
 0x2fc   :  { %16 = sbr.rel (!%p14_p4) target bundleno = 1 (0x1), region = 88 }

// kernel: forward.11
= control target key start
LH: loop header
LB: loop body
LE: loop exit
PB: predicated region body
PF: predicated region fallthrough
CT: control target
= control target key end

     0   :  { %v630_v1 = vmov 0   ;;  %v57_v57 = vlaneseq  ;;  %vm440_vm0 = vcmask 1041409   ;;  %vm515_vm1 = vcmask 1024   ;;  %s882_s1 = inlined_call_operand.vmem [shape: bf16[128,256], index: 1, kind: input, shape index: {}]   ;;  %s883_s0 = inlined_call_operand.vmem [shape: bf16[128,128], index: 0, kind: input, shape index: {}]   ;;  %s884_s3 = inlined_call_operand.vmem [shape: f32[256,1], index: 3, kind: input, shape index: {}]   ;;  %s885_s2 = inlined_call_operand.vmem [shape: f32[1,256], index: 2, kind: input, shape index: {}]   ;;  %s886_s4 = inlined_call_operand.<no memory space> [shape: f32[1,1], index: 4, kind: input, shape index: {}]   ;;  %s887_s5 = inlined_call_operand.vmem [shape: f32[2,1], index: 5, kind: output, shape index: {}]  }
   0x1   :  { %v598_v0 = vld [vmem:[%s882_s1 + $0x74] ss:$8 sps:$4 sm:$0xff]   ;;  %227 = vmatprep.mubr.bf16.mxu0 %v630_v1  ;;  %267 = vmatprep.mubr.bf16.mxu1 %v630_v1  ;;  %v600_v2 = vld [vmem:[%s882_s1 + $0x70] ss:$8 sps:$4 sm:$0xff]   ;;  %v601_v3 = vld [vmem:[%s882_s1 + $0x64] ss:$8 sps:$4 sm:$0xff]  }
   0x2   :  { %195 = vmatprep.subr.bf16.mxu0 %v598_v0  ;;  %581 = vmatprep.subr.bf16.mxu1 %v598_v0  ;;  %v603_v4 = vld [vmem:[%s882_s1 + $0x60] ss:$8 sps:$4 sm:$0xff]   ;;  %v604_v5 = vld [vmem:[%s882_s1 + $0x54] ss:$8 sps:$4 sm:$0xff]   ;;  %v606_v6 = vld [vmem:[%s882_s1 + $0x50] ss:$8 sps:$4 sm:$0xff]  }
   0x3   :  { %196 = vmatpush1.bf16.msra.mxu0 %v600_v2  ;;  %589 = vmatpush1.bf16.msra.mxu1 %v600_v2  ;;  %v607_v7 = vld [vmem:[%s882_s1 + $0x44] ss:$8 sps:$4 sm:$0xff]   ;;  %v609_v8 = vld [vmem:[%s882_s1 + $0x40] ss:$8 sps:$4 sm:$0xff]   ;;  %v610_v9 = vld [vmem:[%s882_s1 + $0x34] ss:$8 sps:$4 sm:$0xff]  }
   0x4   :  { %197 = vmatprep.subr.bf16.mxu0 %v601_v3  ;;  %582 = vmatprep.subr.bf16.mxu1 %v601_v3  ;;  %v612_v10 = vld [vmem:[%s882_s1 + $0x30] ss:$8 sps:$4 sm:$0xff]   ;;  %v613_v11 = vld [vmem:[%s882_s1 + $0x24] ss:$8 sps:$4 sm:$0xff]   ;;  %v615_v12 = vld [vmem:[%s882_s1 + $0x20] ss:$8 sps:$4 sm:$0xff]  }
   0x5   :  { %v616_v13 = vld [vmem:[%s882_s1 + $0x14] ss:$8 sps:$4 sm:$0xff]   ;;  %v618_v14 = vld [vmem:[%s882_s1 + $0x10] ss:$8 sps:$4 sm:$0xff]   ;;  %v619_v15 = vld [vmem:[%s882_s1 + $0x4] ss:$8 sps:$4 sm:$0xff]  }
   0x6   :  { %v621_v16 = vld [vmem:[%s882_s1] ss:$8 sps:$4 sm:$0xff]   ;;  %v626_v21 = vld [vmem:[%s883_s0 + $0x10] sm:$0xff]   ;;  %v628_v23 = vld [vmem:[%s883_s0 + $0x18] sm:$0xff]   ;;  %v58_v58 = vshrl.u32 %v57_v57, 7 }
   0x7   :  { %198 = vmatpush1.bf16.msra.mxu0 %v603_v4  ;;  %590 = vmatpush1.bf16.msra.mxu1 %v603_v4  ;;  %v622_v17 = vld [vmem:[%s883_s0] sm:$0xff]   ;;  %v624_v19 = vld [vmem:[%s883_s0 + $0x8] sm:$0xff]   ;;  %v627_v22 = vld [vmem:[%s883_s0 + $0x30] sm:$0xff]  }
   0x8   :  { %199 = vmatprep.subr.bf16.mxu0 %v604_v5  ;;  %583 = vmatprep.subr.bf16.mxu1 %v604_v5  ;;  %v623_v18 = vld [vmem:[%s883_s0 + $0x20] sm:$0xff]   ;;  %v625_v20 = vld [vmem:[%s883_s0 + $0x28] sm:$0xff]   ;;  %v629_v24 = vld [vmem:[%s883_s0 + $0x38] sm:$0xff]   ;;  %v59_v61 = vsub.s32 0, %v58_v58 }
   0x9   :  { %v428_v25 = vld [vmem:[%s884_s3 + $0xf8] sm:$0xff]  ;;  %v427_v27 = vld [vmem:[%s884_s3 + $0xf0] sm:$0xff]  ;;  %v426_v29 = vld [vmem:[%s884_s3 + $0xe8] sm:$0xff] }
   0xa   :  { %v412_v26 = vld [vmem:[%s884_s3 + $0x78] sm:$0xff]  ;;  %v411_v28 = vld [vmem:[%s884_s3 + $0x70] sm:$0xff]  ;;  %v410_v30 = vld [vmem:[%s884_s3 + $0x68] sm:$0xff] }
   0xb   :  { %200 = vmatpush1.bf16.msra.mxu0 %v606_v6  ;;  %591 = vmatpush1.bf16.msra.mxu1 %v606_v6  ;;  %v425_v31 = vld [vmem:[%s884_s3 + $0xe0] sm:$0xff]  ;;  %v424_v33 = vld [vmem:[%s884_s3 + $0xd8] sm:$0xff]  ;;  %v423_v35 = vld [vmem:[%s884_s3 + $0xd0] sm:$0xff] }
   0xc   :  { %201 = vmatprep.subr.bf16.mxu0 %v607_v7  ;;  %584 = vmatprep.subr.bf16.mxu1 %v607_v7  ;;  %v409_v32 = vld [vmem:[%s884_s3 + $0x60] sm:$0xff]  ;;  %v408_v34 = vld [vmem:[%s884_s3 + $0x58] sm:$0xff]  ;;  %v407_v36 = vld [vmem:[%s884_s3 + $0x50] sm:$0xff] }
   0xd   :  { %v422_v37 = vld [vmem:[%s884_s3 + $0xc8] sm:$0xff]  ;;  %v421_v39 = vld [vmem:[%s884_s3 + $0xc0] sm:$0xff]  ;;  %v420_v41 = vld [vmem:[%s884_s3 + $0xb8] sm:$0xff] }
   0xe   :  { %v406_v38 = vld [vmem:[%s884_s3 + $0x48] sm:$0xff]  ;;  %v405_v40 = vld [vmem:[%s884_s3 + $0x40] sm:$0xff]  ;;  %v404_v42 = vld [vmem:[%s884_s3 + $0x38] sm:$0xff] }
   0xf   :  { %202 = vmatpush1.bf16.msra.mxu0 %v609_v8  ;;  %592 = vmatpush1.bf16.msra.mxu1 %v609_v8  ;;  %v419_v43 = vld [vmem:[%s884_s3 + $0xb0] sm:$0xff]  ;;  %v418_v45 = vld [vmem:[%s884_s3 + $0xa8] sm:$0xff]  ;;  %v417_v47 = vld [vmem:[%s884_s3 + $0xa0] sm:$0xff] }
  0x10   :  { %203 = vmatprep.subr.bf16.mxu0 %v610_v9  ;;  %585 = vmatprep.subr.bf16.mxu1 %v610_v9  ;;  %v403_v44 = vld [vmem:[%s884_s3 + $0x30] sm:$0xff]  ;;  %v402_v46 = vld [vmem:[%s884_s3 + $0x28] sm:$0xff]  ;;  %v401_v48 = vld [vmem:[%s884_s3 + $0x20] sm:$0xff] }
  0x11   :  { %v416_v49 = vld [vmem:[%s884_s3 + $0x98] sm:$0xff]  ;;  %v415_v51 = vld [vmem:[%s884_s3 + $0x90] sm:$0xff]  ;;  %v414_v53 = vld [vmem:[%s884_s3 + $0x88] sm:$0xff] }
  0x12   :  { %v400_v50 = vld [vmem:[%s884_s3 + $0x18] sm:$0xff]  ;;  %v399_v52 = vld [vmem:[%s884_s3 + $0x10] sm:$0xff]  ;;  %v398_v54 = vld [vmem:[%s884_s3 + $0x8] sm:$0xff] }
  0x13   :  { %204 = vmatpush1.bf16.msra.mxu0 %v612_v10  ;;  %593 = vmatpush1.bf16.msra.mxu1 %v612_v10  ;;  %v413_v55 = vld [vmem:[%s884_s3 + $0x80] sm:$0xff] }
  0x14   :  { %205 = vmatprep.subr.bf16.mxu0 %v613_v11  ;;  %586 = vmatprep.subr.bf16.mxu1 %v613_v11  ;;  %v397_v56 = vld [vmem:[%s884_s3] sm:$0xff] }
  0x15   :  { %v55_v0 = vld [vmem:[%s885_s2] sm:$0x3] }
  0x16   :  { %v840_v4 = vrot.slane %v55_v0, %v59_v61 }
  0x17   :  { %206 = vmatpush1.bf16.msra.mxu0 %v615_v12  ;;  %594 = vmatpush1.bf16.msra.mxu1 %v615_v12 }
  0x18   :  { %207 = vmatprep.subr.bf16.mxu0 %v616_v13  ;;  %587 = vmatprep.subr.bf16.mxu1 %v616_v13 }
  0x1b   :  { %208 = vmatpush1.bf16.msra.mxu0 %v618_v14  ;;  %595 = vmatpush1.bf16.msra.mxu1 %v618_v14 }
  0x1c   :  { %209 = vmatprep.subr.bf16.mxu0 %v619_v15  ;;  %588 = vmatprep.subr.bf16.mxu1 %v619_v15 }
  0x1f   :  { %210 = vmatpush1.bf16.msra.mxu0 %v621_v16  ;;  %596 = vmatpush1.bf16.msra.mxu1 %v621_v16 }
  0x20   :  { %546 = vmatprep.subr.mxu1 %v428_v25 }
  0x22   :  { %228 = vmatmul.mubr.bf16.vlgmr.msra.gmra.mxu0 %v622_v17  ;;  %268 = vmatmul.mubr.bf16.vlgmr.msra.gmra.mxu1 %v623_v18 }
  0x23   :  { %237 = vmatprep.mubr.bf16.mxu0 %v630_v1  ;;  %277 = vmatprep.mubr.bf16.mxu1 %v630_v1 }
  0x24   :  { %547 = vmatpush3.msra.mxu1 %v412_v26 }
  0x25   :  { %548 = vmatprep.subr.mxu1 %v427_v27 }
  0x26   :  { %549 = vmatpush3.msra.mxu1 %v411_v28 }
  0x27   :  { %550 = vmatprep.subr.mxu1 %v426_v29 }
  0x28   :  { %551 = vmatpush3.msra.mxu1 %v410_v30 }
  0x29   :  { %552 = vmatprep.subr.mxu1 %v425_v31 }
  0x2a   :  { %238 = vmatmul.mubr.bf16.gmra.mxu0 %v624_v19  ;;  %278 = vmatmul.mubr.bf16.gmra.mxu1 %v625_v20 }
  0x2b   :  { %247 = vmatprep.mubr.bf16.mxu0 %v630_v1  ;;  %287 = vmatprep.mubr.bf16.mxu1 %v630_v1 }
  0x2c   :  { %553 = vmatpush3.msra.mxu1 %v409_v32 }
  0x2d   :  { %554 = vmatprep.subr.mxu1 %v424_v33 }
  0x2e   :  { %555 = vmatpush3.msra.mxu1 %v408_v34 }
  0x2f   :  { %556 = vmatprep.subr.mxu1 %v423_v35 }
  0x30   :  { %557 = vmatpush3.msra.mxu1 %v407_v36 }
  0x31   :  { %558 = vmatprep.subr.mxu1 %v422_v37 }
  0x32   :  { %248 = vmatmul.mubr.bf16.gmra.mxu0 %v626_v21  ;;  %288 = vmatmul.mubr.bf16.gmra.mxu1 %v627_v22 }
  0x33   :  { %257 = vmatprep.mubr.bf16.mxu0 %v630_v1  ;;  %297 = vmatprep.mubr.bf16.mxu1 %v630_v1  ;;  %v63_v1 = vsub.s32 1, %v58_v58 }
  0x34   :  { %559 = vmatpush3.msra.mxu1 %v406_v38 }
  0x35   :  { %560 = vmatprep.subr.mxu1 %v421_v39  ;;  %v842_v7 = vrot.slane %v55_v0, %v63_v1 }
  0x36   :  { %561 = vmatpush3.msra.mxu1 %v405_v40 }
  0x37   :  { %562 = vmatprep.subr.mxu1 %v420_v41 }
  0x38   :  { %563 = vmatpush3.msra.mxu1 %v404_v42 }
  0x39   :  { %564 = vmatprep.subr.mxu1 %v419_v43 }
  0x3a   :  { %258 = vmatmul.mubr.bf16.gmra.mxu0 %v628_v23  ;;  %298 = vmatmul.mubr.bf16.gmra.mxu1 %v629_v24 }
  0x3b   :  { %565 = vmatpush3.msra.mxu1 %v403_v44 }
  0x3c   :  { %566 = vmatprep.subr.mxu1 %v418_v45 }
  0x3d   :  { %567 = vmatpush3.msra.mxu1 %v402_v46 }
  0x3e   :  { %568 = vmatprep.subr.mxu1 %v417_v47 }
  0x3f   :  { %569 = vmatpush3.msra.mxu1 %v401_v48 }
  0x40   :  { %570 = vmatprep.subr.mxu1 %v416_v49 }
  0x41   :  { %571 = vmatpush3.msra.mxu1 %v400_v50 }
  0x42   :  { %572 = vmatprep.subr.mxu1 %v415_v51 }
  0x43   :  { %573 = vmatpush3.msra.mxu1 %v399_v52 }
  0x44   :  { %574 = vmatprep.subr.mxu1 %v414_v53 }
  0x45   :  { %575 = vmatpush3.msra.mxu1 %v398_v54 }
  0x46   :  { %576 = vmatprep.subr.mxu1 %v413_v55 }
  0x47   :  { %577 = vmatpush3.msra.mxu1 %v397_v56 }
  0xe2   :  { %v229_v59 = vpop.f32.mrf.mxu0  ;;  %v269_v60 = vpop.f32.mrf.mxu1 }
  0xe3   :  { %v230_v12 = vadd.f32 %v229_v59, %v840_v4  ;;  %v270_v13 = vadd.f32 %v269_v60, %v840_v4 }
  0xe4   :  { %v231_v62 = vpop.f32.mrf.mxu0  ;;  %v271_v63 = vpop.f32.mrf.mxu1 }
  0xe5   :  { %v232_v18 = vadd.f32 %v231_v62, %v842_v7  ;;  %v272_v19 = vadd.f32 %v271_v63, %v842_v7  ;;  %v308_v30 = vmax.f32 %v230_v12, 0.0  ;;  %v324_v31 = vmax.f32 %v270_v13, 0.0 }
  0xe6   :  { %v233_v2 = vpop.f32.mrf.mxu0  ;;  %v273_v3 = vpop.f32.mrf.mxu1 }
  0xe7   :  { %v234_v8 = vadd.f32 %v233_v2, %v840_v4  ;;  %v274_v9 = vadd.f32 %v273_v3, %v840_v4  ;;  %v309_v36 = vmax.f32 %v232_v18, 0.0  ;;  %v325_v37 = vmax.f32 %v272_v19, 0.0 }
  0xe8   :  { %v235_v5 = vpop.f32.mrf.mxu0  ;;  %v275_v6 = vpop.f32.mrf.mxu1 }
  0xe9   :  { %v236_v14 = vadd.f32 %v235_v5, %v842_v7  ;;  %v276_v15 = vadd.f32 %v275_v6, %v842_v7  ;;  %v310_v22 = vmax.f32 %v234_v8, 0.0  ;;  %v326_v23 = vmax.f32 %v274_v9, 0.0 }
  0xea   :  { %v239_v10 = vpop.f32.mrf.mxu0  ;;  %v279_v11 = vpop.f32.mrf.mxu1 }
  0xeb   :  { %v240_v20 = vadd.f32 %v239_v10, %v840_v4  ;;  %v280_v21 = vadd.f32 %v279_v11, %v840_v4  ;;  %v311_v32 = vmax.f32 %v236_v14, 0.0  ;;  %v327_v33 = vmax.f32 %v276_v15, 0.0 }
  0xec   :  { %v241_v16 = vpop.f32.mrf.mxu0  ;;  %v281_v17 = vpop.f32.mrf.mxu1  ;;  %v340_v40 = vadd.f32 %v310_v22, %v308_v30  ;;  %v366_v41 = vadd.f32 %v326_v23, %v324_v31 }
  0xed   :  { %v242_v26 = vadd.f32 %v241_v16, %v842_v7  ;;  %v282_v27 = vadd.f32 %v281_v17, %v842_v7  ;;  %v312_v38 = vmax.f32 %v240_v20, 0.0  ;;  %v328_v39 = vmax.f32 %v280_v21, 0.0 }
  0xee   :  { %v243_v24 = vpop.f32.mrf.mxu0  ;;  %v283_v25 = vpop.f32.mrf.mxu1  ;;  %v353_v50 = vadd.f32 %v311_v32, %v309_v36  ;;  %v379_v51 = vadd.f32 %v327_v33, %v325_v37 }
  0xef   :  { %v244_v28 = vadd.f32 %v243_v24, %v840_v4  ;;  %v284_v29 = vadd.f32 %v283_v25, %v840_v4  ;;  %v313_v46 = vmax.f32 %v242_v26, 0.0  ;;  %v329_v47 = vmax.f32 %v282_v27, 0.0 }
  0xf0   :  { %v245_v34 = vpop.f32.mrf.mxu0  ;;  %v285_v35 = vpop.f32.mrf.mxu1  ;;  %v341_v56 = vadd.f32 %v340_v40, %v312_v38  ;;  %v367_v57 = vadd.f32 %v366_v41, %v328_v39 }
  0xf1   :  { %v246_v42 = vadd.f32 %v245_v34, %v842_v7  ;;  %v286_v43 = vadd.f32 %v285_v35, %v842_v7  ;;  %v314_v48 = vmax.f32 %v244_v28, 0.0  ;;  %v330_v49 = vmax.f32 %v284_v29, 0.0 }
  0xf2   :  { %v249_v44 = vpop.f32.mrf.mxu0  ;;  %v289_v45 = vpop.f32.mrf.mxu1  ;;  %v354_v0 = vadd.f32 %v353_v50, %v313_v46  ;;  %v380_v1 = vadd.f32 %v379_v51, %v329_v47 }
  0xf3   :  { %v250_v52 = vadd.f32 %v249_v44, %v840_v4  ;;  %v290_v53 = vadd.f32 %v289_v45, %v840_v4  ;;  %v315_v60 = vmax.f32 %v246_v42, 0.0  ;;  %v331_v61 = vmax.f32 %v286_v43, 0.0 }
  0xf4   :  { %v251_v54 = vpop.f32.mrf.mxu0  ;;  %v291_v55 = vpop.f32.mrf.mxu1  ;;  %v342_v2 = vadd.f32 %v341_v56, %v314_v48  ;;  %v368_v3 = vadd.f32 %v367_v57, %v330_v49 }
  0xf5   :  { %v252_v58 = vadd.f32 %v251_v54, %v842_v7  ;;  %v292_v59 = vadd.f32 %v291_v55, %v842_v7  ;;  %v316_v5 = vmax.f32 %v250_v52, 0.0  ;;  %v332_v6 = vmax.f32 %v290_v53, 0.0 }
  0xf6   :  { %v253_v62 = vpop.f32.mrf.mxu0  ;;  %v293_v63 = vpop.f32.mrf.mxu1  ;;  %v355_v16 = vadd.f32 %v354_v0, %v315_v60  ;;  %v381_v17 = vadd.f32 %v380_v1, %v331_v61 }
  0xf7   :  { %v254_v8 = vadd.f32 %v253_v62, %v840_v4  ;;  %v294_v9 = vadd.f32 %v293_v63, %v840_v4  ;;  %v317_v12 = vmax.f32 %v252_v58, 0.0  ;;  %v333_v13 = vmax.f32 %v292_v59, 0.0 }
  0xf8   :  { %v255_v10 = vpop.f32.mrf.mxu0  ;;  %v295_v11 = vpop.f32.mrf.mxu1  ;;  %v343_v26 = vadd.f32 %v342_v2, %v316_v5  ;;  %v369_v27 = vadd.f32 %v368_v3, %v332_v6 }
  0xf9   :  { %v256_v14 = vadd.f32 %v255_v10, %v842_v7  ;;  %v296_v15 = vadd.f32 %v295_v11, %v842_v7  ;;  %v318_v18 = vmax.f32 %v254_v8, 0.0  ;;  %v334_v19 = vmax.f32 %v294_v9, 0.0 }
  0xfa   :  { %v259_v20 = vpop.f32.mrf.mxu0  ;;  %v299_v21 = vpop.f32.mrf.mxu1  ;;  %v356_v30 = vadd.f32 %v355_v16, %v317_v12  ;;  %v382_v31 = vadd.f32 %v381_v17, %v333_v13 }
  0xfb   :  { %v319_v22 = vmax.f32 %v256_v14, 0.0  ;;  %v335_v23 = vmax.f32 %v296_v15, 0.0  ;;  %v260_v24 = vadd.f32 %v259_v20, %v840_v4  ;;  %v300_v25 = vadd.f32 %v299_v21, %v840_v4 }
  0xfc   :  { %v261_v28 = vpop.f32.mrf.mxu0  ;;  %v301_v29 = vpop.f32.mrf.mxu1  ;;  %v344_v34 = vadd.f32 %v343_v26, %v318_v18  ;;  %v370_v35 = vadd.f32 %v369_v27, %v334_v19 }
  0xfd   :  { %v320_v32 = vmax.f32 %v260_v24, 0.0  ;;  %v336_v33 = vmax.f32 %v300_v25, 0.0  ;;  %v262_v36 = vadd.f32 %v261_v28, %v842_v7  ;;  %v302_v37 = vadd.f32 %v301_v29, %v842_v7 }
  0xfe   :  { %v263_v38 = vpop.f32.mrf.mxu0  ;;  %v303_v39 = vpop.f32.mrf.mxu1  ;;  %v357_v40 = vadd.f32 %v356_v30, %v319_v22  ;;  %v383_v41 = vadd.f32 %v382_v31, %v335_v23  ;;  %v10_v28 = vstv %s886_s4 }
  0xff   :  { %v264_v42 = vadd.f32 %v263_v38, %v840_v4  ;;  %v304_v43 = vadd.f32 %v303_v39, %v840_v4  ;;  %v345_v44 = vadd.f32 %v344_v34, %v320_v32  ;;  %v371_v45 = vadd.f32 %v370_v35, %v336_v33  ;;  %11 = vst [vmem:[#allocation2] sm:$0x1] %v10_v28 }
 0x100   :  { %v321_v46 = vmax.f32 %v262_v36, 0.0  ;;  %v337_v47 = vmax.f32 %v302_v37, 0.0  ;;  %v265_v48 = vpop.f32.mrf.mxu0  ;;  %v305_v49 = vpop.f32.mrf.mxu1 }
 0x101   :  { %v322_v50 = vmax.f32 %v264_v42, 0.0  ;;  %v338_v51 = vmax.f32 %v304_v43, 0.0  ;;  %v266_v52 = vadd.f32 %v265_v48, %v842_v7  ;;  %v306_v53 = vadd.f32 %v305_v49, %v842_v7 }
 0x102   :  { %v358_v54 = vadd.f32 %v357_v40, %v321_v46  ;;  %v384_v55 = vadd.f32 %v383_v41, %v337_v47 }
 0x103   :  { %v346_v56 = vadd.f32 %v345_v44, %v322_v50  ;;  %v372_v57 = vadd.f32 %v371_v45, %v338_v51  ;;  %v323_v58 = vmax.f32 %v266_v52, 0.0  ;;  %v339_v59 = vmax.f32 %v306_v53, 0.0 }
 0x105   :  { %v347_v60 = vrot.slane %v346_v56, 4  ;;  %v373_v4 = vrot.slane %v372_v57, 4  ;;  %v359_v61 = vadd.f32 %v358_v54, %v323_v58  ;;  %v385_v62 = vadd.f32 %v384_v55, %v339_v59 }
 0x106   :  { %v545_v30 = vld [vmem:[#allocation2] ss:$0 sm:$0xff] }
 0x107   :  { %v348_v63 = vadd.f32 %v347_v60, %v346_v56  ;;  %v374_v0 = vadd.f32 %v373_v4, %v372_v57  ;;  %v360_v1 = vrot.slane %v359_v61, 4  ;;  %v386_v2 = vrot.slane %v385_v62, 4 }
 0x109   :  { %v349_v3 = vrot.slane %v348_v63, 2  ;;  %v375_v5 = vrot.slane %v374_v0, 2  ;;  %v361_v6 = vadd.f32 %v360_v1, %v359_v61  ;;  %v387_v8 = vadd.f32 %v386_v2, %v385_v62 }
 0x10b   :  { %v350_v9 = vadd.f32 %v349_v3, %v348_v63  ;;  %v376_v7 = vadd.f32 %v375_v5, %v374_v0  ;;  %v362_v10 = vrot.slane %v361_v6, 2  ;;  %v388_v11 = vrot.slane %v387_v8, 2 }
 0x10d   :  { %v351_v12 = vrot.slane %v350_v9, 1  ;;  %v377_v13 = vrot.slane %v376_v7, 1  ;;  %v363_v14 = vadd.f32 %v362_v10, %v361_v6  ;;  %v389_v15 = vadd.f32 %v388_v11, %v387_v8 }
 0x10f   :  { %v352_v16 = vadd.f32 %v351_v12, %v350_v9  ;;  %v378_v17 = vadd.f32 %v377_v13, %v376_v7  ;;  %v364_v18 = vrot.slane %v363_v14, 1  ;;  %v390_v19 = vrot.slane %v389_v15, 1 }
 0x111   :  { %v365_v20 = vadd.f32 %v364_v18, %v363_v14  ;;  %v391_v21 = vadd.f32 %v390_v19, %v389_v15  ;;  %v393_v22 = vmul.f32 0.015625, %v352_v16  ;;  %v395_v23 = vmul.f32 0.015625, %v378_v17 }
 0x113   :  { %v394_v24 = vmul.f32 0.015625, %v365_v20  ;;  %v396_v25 = vmul.f32 0.015625, %v391_v21  ;;  %v441_v27 = vsel %vm440_vm0, %v395_v23, %v393_v22 }
 0x115   :  { %v442_v26 = vsel %vm440_vm0, %v396_v25, %v394_v24 }
 0x116   :  { %509 = vmatprep.mubr.f32.mxu1 %v442_v26 }
 0x117   :  { %510 = vmatmul.mubr.f32.vlgmr.msra.gmra.mxu1 %v441_v27 }
 0x1d7   :  { %v578_v29 = vpop.f32.mrf.mxu1 }
 0x1d9   :  { %v579_v31 = vpop.f32.mrf.mxu1 }
 0x1da   :  { %v580_v32 = vadd.f32 %v579_v31, %v578_v29 }
 0x1dc   :  { %v512_v33 = vadd.f32 %v580_v32, %v545_v30 }
 0x1de   :  { %516 = vst.msk [vmem:[%s887_s5] sm:$0x3] %vm515_vm1, %v512_v33 }

</bundles_post_ra>
